<compile_context>
chip_gen: v5e
topology: v5e:2x2
jax: 0.10.0
libtpu: 0.0.40
codegen_flags: <defaults>
</compile_context>

<pallas_src>
import functools

import jax
import jax.numpy as jnp
from jax.experimental import pallas as pl
from jax.experimental.pallas import tpu as pltpu

EPS = 1e-06


def _vn_leaky_relu_kernel(x_ref, a_ref, s_ref, o_ref, *, negative_slope, eps):
    # x_ref : [TM, 3C]  packed vector features (channel-major, xyz fastest)
    # a_ref : [3C, 3C]  kron(W^T, I3)        -> d_flat = x_flat @ A
    # s_ref : [3C, 3C]  kron(I_C, ones(3,3)) -> per-channel 3-component sums,
    #                                           broadcast back over the 3 lanes
    x = x_ref[...].astype(jnp.float32)                               # [TM, 3C]

    # Direction features d (the bias-free map_to_dir Linear), MXU matmul.
    d = jnp.dot(x, a_ref[...], preferred_element_type=jnp.float32)   # [TM, 3C]

    # Per-channel <x, d> and |d|^2, already broadcast over the 3 components.
    dotprod = jnp.dot(x * d, s_ref[...],
                      preferred_element_type=jnp.float32)            # [TM, 3C]
    d_norm_sq = jnp.dot(d * d, s_ref[...],
                        preferred_element_type=jnp.float32)          # [TM, 3C]

    # out = x                                        where <x,d> >= 0
    #       x - (1-slope)*<x,d>/(|d|^2+eps) * d      where <x,d> <  0
    coeff = jnp.where(dotprod < 0.0,
                      (1.0 - negative_slope) * dotprod / (d_norm_sq + eps),
                      0.0)
    o_ref[...] = (x - coeff * d).astype(o_ref.dtype)


def _round_up(x, m):
    return (x + m - 1) // m * m


@functools.partial(jax.jit, static_argnames=("negative_slope", "eps", "tm"))
def vn_leaky_relu_pallas(x, w, *, negative_slope=0.01, eps=EPS, tm=512):
    """x: [B, N, C, 3] point features; w: [C, C] map_to_dir weight ([out, in])."""
    B, N, C, D = x.shape
    assert D == 3
    c_out, c_in = w.shape
    assert c_in == C
    # TODO(synk): share_nonlinearity=True (w of shape [1, C]) needs a broadcast
    # of d over channels; only the default per-channel direction is implemented.
    assert c_out == C, "share_nonlinearity=True is not supported by this kernel"

    M = B * N
    c3 = 3 * C
    dtype = x.dtype

    # Packed, transpose-free layout: [M, 3C] (reshape of contiguous dims only).
    x_flat = x.reshape(M, c3)

    # Tile the token axis; pad ragged M with zeros (padded rows produce zeros
    # in the output and are sliced off — there is no cross-token reduction).
    tile = min(tm, _round_up(M, 8))
    Mp = _round_up(M, tile)
    if Mp != M:
        x_flat = jnp.pad(x_flat, ((0, Mp - M), (0, 0)))

    # Channel-mixing Linear in the packed layout:  d_flat = x_flat @ kron(W^T, I3).
    a_mat = jnp.kron(w.astype(jnp.float32).T, jnp.eye(3, dtype=jnp.float32))
    # Per-channel sum over the 3 vector components (broadcast back): block-diag ones.
    s_mat = jnp.kron(jnp.eye(C, dtype=jnp.float32),
                     jnp.ones((3, 3), dtype=jnp.float32))

    grid = (Mp // tile,)
    flops = 3 * 2 * Mp * c3 * c3 + 10 * Mp * c3
    bytes_accessed = (2 * Mp * c3 + 2 * c3 * c3) * 4

    out_flat = pl.pallas_call(
        functools.partial(_vn_leaky_relu_kernel,
                          negative_slope=float(negative_slope), eps=float(eps)),
        out_shape=jax.ShapeDtypeStruct((Mp, c3), dtype),
        grid=grid,
        in_specs=[
            pl.BlockSpec((tile, c3), lambda i: (i, 0)),   # x tile (pipelined)
            pl.BlockSpec((c3, c3), lambda i: (0, 0)),     # A: VMEM-resident
            pl.BlockSpec((c3, c3), lambda i: (0, 0)),     # S: VMEM-resident
        ],
        out_specs=pl.BlockSpec((tile, c3), lambda i: (i, 0)),
        compiler_params=pltpu.CompilerParams(
            dimension_semantics=("parallel",)),
        cost_estimate=pl.CostEstimate(flops=flops, transcendentals=0,
                                      bytes_accessed=bytes_accessed),
    )(x_flat, a_mat, s_mat)

    return out_flat[:M].reshape(B, N, C, 3)


def vn_leaky_relu_reference(x, w, negative_slope=0.01, eps=EPS):
    """Plain-JAX literal translation of the PyTorch forward."""
    # d = map_to_dir(x.transpose(-2,-1)).transpose(-2,-1):
    # d[b,n,o,k] = sum_c W[o,c] * x[b,n,c,k]
    d = jnp.einsum("bnck,oc->bnok", x, w,
                   precision=jax.lax.Precision.HIGHEST)
    dotprod = jnp.sum(x * d, axis=-1, keepdims=True)
    mask = (dotprod >= 0).astype(x.dtype)
    d_norm_sq = jnp.sum(d * d, axis=-1, keepdims=True)
    return negative_slope * x + (1.0 - negative_slope) * (
        mask * x + (1.0 - mask) * (x - dotprod / (d_norm_sq + eps) * d))


if __name__ == "__main__":
    # Small shapes consistent with VN point-cloud usage.
    B, N, C = 2, 1024, 64          # M = 2048 tokens -> grid of 4 tiles at tm=512
    negative_slope = 0.01

    key = jax.random.PRNGKey(0)
    kx, kw = jax.random.split(key)

    x = jax.random.normal(kx, (B, N, C, 3), jnp.float32)
    bound = 1.0 / jnp.sqrt(C)      # torch.nn.Linear default init, weight [out, in]
    w = jax.random.uniform(kw, (C, C), jnp.float32, -bound, bound)

    out = vn_leaky_relu_pallas(x, w, negative_slope=negative_slope)
    jax.block_until_ready(out)

    ref = vn_leaky_relu_reference(x, w, negative_slope)
    assert out.shape == (B, N, C, 3)
    max_err = float(jnp.max(jnp.abs(out - ref)))
    assert jnp.allclose(out, ref, rtol=1e-4, atol=1e-4), f"max |diff| = {max_err}"

    print("KERNEL_OK")
</pallas_src>

<mosaic_0001>
module attributes {stable_mosaic.version = 11 : i64} {
  func.func @_vn_leaky_relu_kernel(%arg0: i32, %arg1: memref<512x192xf32, #tpu.memory_space<vmem>>, %arg2: memref<192x192xf32, #tpu.memory_space<vmem>>, %arg3: memref<192x192xf32, #tpu.memory_space<vmem>>, %arg4: memref<512x192xf32, #tpu.memory_space<vmem>>) attributes {dimension_semantics = [#tpu.dimension_semantics<parallel>], iteration_bounds = array<i64: 4>, scalar_prefetch = 0 : i64, scratch_operands = 0 : i64, tpu.core_type = #tpu.core_type<tc>, window_params = [{transform_indices = @transform_0, window_bounds = array<i64: 512, 192>}, {pipeline_mode = #tpu.pipeline_mode<synchronous>, transform_indices = @transform_1, window_bounds = array<i64: 192, 192>}, {pipeline_mode = #tpu.pipeline_mode<synchronous>, transform_indices = @transform_2, window_bounds = array<i64: 192, 192>}, {transform_indices = @transform_3, window_bounds = array<i64: 512, 192>}]} {
    %c0 = arith.constant 0 : index
    %c0_0 = arith.constant 0 : index
    %0 = vector.load %arg1[%c0, %c0_0] : memref<512x192xf32, #tpu.memory_space<vmem>>, vector<512x192xf32>
    %c0_1 = arith.constant 0 : index
    %c0_2 = arith.constant 0 : index
    %1 = vector.load %arg2[%c0_1, %c0_2] : memref<192x192xf32, #tpu.memory_space<vmem>>, vector<192x192xf32>
    %cst = arith.constant dense<0.000000e+00> : vector<512x192xf32>
    %2 = tpu.matmul %0, %1, %cst {dimension_numbers = #tpu.dot_dimension_numbers<[1], [0], [0], [1], [0, 0, 1, 1], [], []>} : vector<512x192xf32>, vector<192x192xf32>, vector<512x192xf32> -> vector<512x192xf32>
    %3 = arith.mulf %0, %2 : vector<512x192xf32>
    %c0_3 = arith.constant 0 : index
    %c0_4 = arith.constant 0 : index
    %4 = vector.load %arg3[%c0_3, %c0_4] : memref<192x192xf32, #tpu.memory_space<vmem>>, vector<192x192xf32>
    %cst_5 = arith.constant dense<0.000000e+00> : vector<512x192xf32>
    %5 = tpu.matmul %3, %4, %cst_5 {dimension_numbers = #tpu.dot_dimension_numbers<[1], [0], [0], [1], [0, 0, 1, 1], [], []>} : vector<512x192xf32>, vector<192x192xf32>, vector<512x192xf32> -> vector<512x192xf32>
    %6 = arith.mulf %2, %2 : vector<512x192xf32>
    %c0_6 = arith.constant 0 : index
    %c0_7 = arith.constant 0 : index
    %7 = vector.load %arg3[%c0_6, %c0_7] : memref<192x192xf32, #tpu.memory_space<vmem>>, vector<192x192xf32>
    %cst_8 = arith.constant dense<0.000000e+00> : vector<512x192xf32>
    %8 = tpu.matmul %6, %7, %cst_8 {dimension_numbers = #tpu.dot_dimension_numbers<[1], [0], [0], [1], [0, 0, 1, 1], [], []>} : vector<512x192xf32>, vector<192x192xf32>, vector<512x192xf32> -> vector<512x192xf32>
    %cst_9 = arith.constant 0.000000e+00 : f32
    %9 = vector.broadcast %cst_9 : f32 to vector<512x192xf32>
    %10 = arith.cmpf olt, %5, %9 : vector<512x192xf32>
    %cst_10 = arith.constant 9.900000e-01 : f32
    %11 = vector.broadcast %cst_10 : f32 to vector<512x192xf32>
    %12 = arith.mulf %11, %5 : vector<512x192xf32>
    %cst_11 = arith.constant 9.99999997E-7 : f32
    %13 = vector.broadcast %cst_11 : f32 to vector<512x192xf32>
    %14 = arith.addf %8, %13 : vector<512x192xf32>
    %15 = arith.divf %12, %14 : vector<512x192xf32>
    %cst_12 = arith.constant 0.000000e+00 : f32
    %16 = vector.broadcast %cst_12 : f32 to vector<512x192xf32>
    %17 = arith.select %10, %15, %16 : vector<512x192xi1>, vector<512x192xf32>
    %18 = arith.mulf %17, %2 : vector<512x192xf32>
    %19 = arith.subf %0, %18 : vector<512x192xf32>
    %c0_13 = arith.constant 0 : index
    %c0_14 = arith.constant 0 : index
    %20 = vector.load %arg4[%c0_13, %c0_14] : memref<512x192xf32, #tpu.memory_space<vmem>>, vector<512x192xf32>
    tpu.vector_store %arg4[%c0_13, %c0_14], %19 {strides = array<i32>} : memref<512x192xf32, #tpu.memory_space<vmem>>, vector<512x192xf32>,
    return
  }
  func.func @transform_0(%arg0: i32) -> (i32, i32) {
    %c0_i32 = arith.constant 0 : i32
    %c0_i32_0 = arith.constant 0 : i32
    return %arg0, %c0_i32 : i32, i32
  }
  func.func @transform_1(%arg0: i32) -> (i32, i32) {
    %c0_i32 = arith.constant 0 : i32
    %c0_i32_0 = arith.constant 0 : i32
    %c0_i32_1 = arith.constant 0 : i32
    return %c0_i32, %c0_i32_0 : i32, i32
  }
  func.func @transform_2(%arg0: i32) -> (i32, i32) {
    %c0_i32 = arith.constant 0 : i32
    %c0_i32_0 = arith.constant 0 : i32
    %c0_i32_1 = arith.constant 0 : i32
    return %c0_i32, %c0_i32_0 : i32, i32
  }
  func.func @transform_3(%arg0: i32) -> (i32, i32) {
    %c0_i32 = arith.constant 0 : i32
    %c0_i32_0 = arith.constant 0 : i32
    return %arg0, %c0_i32 : i32, i32
  }
}

</mosaic_0001>

<bundles_post_ra>
// kernel: vn_leaky_relu_pallas.1
= control target key start
LH: loop header
LB: loop body
LE: loop exit
PB: predicated region body
PF: predicated region fallthrough
CT: control target
= control target key end

     0   :  { %s7481_s12 = smov 0   ;;  %s14566_s0 = inlined_call_operand.vmem [shape: f32[2048,192], index: 0, kind: input, shape index: {}]   ;;  %s14567_s1 = inlined_call_operand.vmem [shape: f32[192,192], index: 1, kind: input, shape index: {}]   ;;  %s14568_s2 = inlined_call_operand.vmem [shape: f32[192,192], index: 2, kind: input, shape index: {}]   ;;  %s14569_s3 = inlined_call_operand.vmem [shape: f32[2048,192], index: 3, kind: output, shape index: {}]  }
   0x1 LB: > { %s6490_s13 = sadd.s32 4294967295, %s7459_s12   ;;  %p6494_p0 = scmp.ge.s32.totalorder %s7459_s12, 1  ;;  %s7459_s12 = sphi %s7481_s12, %s13_s12  }
   0x2   : > { %p139_p1 = scmp.lt.s32.totalorder %s7459_s12, 5 }
   0x4   : > { %p140_p2 = pnand %p6494_p0, %p139_p1 }
   0x6   : > { %143 = sbr.rel (%p140_p2) target bundleno = 1979 (0x7bb), region = 32 }
   0xb   : > { %v337_v0 = vld [vmem:[%s14567_s1 + $0xf0] sm:$0xff]  ;;  %v338_v2 = vld [vmem:[%s14567_s1 + $0xf8] sm:$0xff]  ;;  %s6495_s20 = sshll.u32 %s6490_s13, 6  ;;  %v335_v4 = vld [vmem:[%s14567_s1 + $0xe0] sm:$0xff]  ;;  %vm355_vm0 = vcmask 523264  }
   0xc   : > { %v353_v1 = vld [vmem:[%s14567_s1 + $0x170] sm:$0xff]  ;;  %548 = vmatpush.msra.mxu0 %v337_v0  ;;  %v354_v3 = vld [vmem:[%s14567_s1 + $0x178] sm:$0xff]  ;;  %v351_v5 = vld [vmem:[%s14567_s1 + $0x160] sm:$0xff]  ;;  %p166_p3 = scmp.lt.s32.totalorder %s6495_s20, 255  ;;  %966 = vmatpush.msra.mxu2 %v338_v2 }
   0xd   : > { %765 = vmatpush.msra.mxu1 %v353_v1  ;;  %1183 = vmatpush.msra.mxu3 %v354_v3  ;;  %v336_v6 = vld [vmem:[%s14567_s1 + $0xe8] sm:$0xff]  ;;  %v333_v8 = vld [vmem:[%s14567_s1 + $0xd0] sm:$0xff]  ;;  %v334_v10 = vld [vmem:[%s14567_s1 + $0xd8] sm:$0xff] }
   0xe   : > { %v352_v7 = vld [vmem:[%s14567_s1 + $0x168] sm:$0xff]  ;;  %549 = vmatpush.msra.mxu0 %v335_v4  ;;  %v349_v9 = vld [vmem:[%s14567_s1 + $0x150] sm:$0xff]  ;;  %v350_v11 = vld [vmem:[%s14567_s1 + $0x158] sm:$0xff]  ;;  %967 = vmatpush.msra.mxu2 %v336_v6  ;;  %s16477_s20 = smov (!%p166_p3, %s6495_s20), 255 }
   0xf   : > { %766 = vmatpush.msra.mxu1 %v351_v5  ;;  %1184 = vmatpush.msra.mxu3 %v352_v7  ;;  %v331_v12 = vld [vmem:[%s14567_s1 + $0xc0] sm:$0xff]  ;;  %v332_v14 = vld [vmem:[%s14567_s1 + $0xc8] sm:$0xff]  ;;  %v329_v16 = vld [vmem:[%s14567_s1 + $0xb0] sm:$0xff]  ;;  %s6887_s7 = sshll.u32 %s16477_s20, 4 }
  0x10   : > { %v347_v13 = vld [vmem:[%s14567_s1 + $0x140] sm:$0xff]  ;;  %550 = vmatpush.msra.mxu0 %v333_v8  ;;  %v348_v15 = vld [vmem:[%s14567_s1 + $0x148] sm:$0xff]  ;;  %968 = vmatpush.msra.mxu2 %v334_v10  ;;  %v345_v17 = vld [vmem:[%s14567_s1 + $0x130] sm:$0xff]  ;;  %s7582_s24 = scalar_lea.vmem %s14566_s0, %s6887_s7  ;;  %s10440_s17 = scalar_lea.vmem %s14569_s3, %s6887_s7 }
  0x11   : > { %767 = vmatpush.msra.mxu1 %v349_v9  ;;  %1185 = vmatpush.msra.mxu3 %v350_v11  ;;  %v330_v18 = vld [vmem:[%s14567_s1 + $0xb8] sm:$0xff]  ;;  %v327_v20 = vld [vmem:[%s14567_s1 + $0xa0] sm:$0xff]  ;;  %v328_v22 = vld [vmem:[%s14567_s1 + $0xa8] sm:$0xff] }
  0x12   : > { %551 = vmatpush.msra.mxu0 %v331_v12  ;;  %v346_v19 = vld [vmem:[%s14567_s1 + $0x138] sm:$0xff]  ;;  %969 = vmatpush.msra.mxu2 %v332_v14  ;;  %v343_v21 = vld [vmem:[%s14567_s1 + $0x120] sm:$0xff]  ;;  %v344_v23 = vld [vmem:[%s14567_s1 + $0x128] sm:$0xff] }
  0x13   : > { %768 = vmatpush.msra.mxu1 %v347_v13  ;;  %1186 = vmatpush.msra.mxu3 %v348_v15  ;;  %v325_v24 = vld [vmem:[%s14567_s1 + $0x90] sm:$0xff]  ;;  %v326_v26 = vld [vmem:[%s14567_s1 + $0x98] sm:$0xff]  ;;  %v323_v28 = vld [vmem:[%s14567_s1 + $0x80] sm:$0xff] }
  0x14   : > { %552 = vmatpush.msra.mxu0 %v329_v16  ;;  %970 = vmatpush.msra.mxu2 %v330_v18  ;;  %v341_v25 = vld [vmem:[%s14567_s1 + $0x110] sm:$0xff]  ;;  %v342_v27 = vld [vmem:[%s14567_s1 + $0x118] sm:$0xff]  ;;  %v339_v29 = vld [vmem:[%s14567_s1 + $0x100] sm:$0xff] }
  0x15   : > { %769 = vmatpush.msra.mxu1 %v345_v17  ;;  %1187 = vmatpush.msra.mxu3 %v346_v19  ;;  %v324_v30 = vld [vmem:[%s14567_s1 + $0x88] sm:$0xff]  ;;  %v1558_v33 = vld [vmem:[%s14568_s2 + $0x170] sm:$0xff]  ;;  %v322_v35 = vld [vmem:[%s14567_s1 + $0x78] sm:$0xff] }
  0x16   : > { %553 = vmatpush.msra.mxu0 %v327_v20  ;;  %971 = vmatpush.msra.mxu2 %v328_v22  ;;  %v340_v31 = vld [vmem:[%s14567_s1 + $0x108] sm:$0xff]  ;;  %v321_v34 = vld [vmem:[%s14567_s1 + $0x70] sm:$0xff]  ;;  %v319_v37 = vld [vmem:[%s14567_s1 + $0x60] sm:$0xff] }
  0x17   : > { %770 = vmatpush.msra.mxu1 %v343_v21  ;;  %1188 = vmatpush.msra.mxu3 %v344_v23  ;;  %v180_v32 = vld [vmem:[%s7582_s24 + $0x8] sm:$0xff]  ;;  %v1542_v36 = vld [vmem:[%s14568_s2 + $0xf0] sm:$0xff]  ;;  %v318_v40 = vld [vmem:[%s14567_s1 + $0x58] sm:$0xff] }
  0x18   : > { %554 = vmatpush.msra.mxu0 %v325_v24  ;;  %972 = vmatpush.msra.mxu2 %v326_v26  ;;  %v320_v38 = vld [vmem:[%s14567_s1 + $0x68] sm:$0xff]  ;;  %v317_v39 = vld [vmem:[%s14567_s1 + $0x50] sm:$0xff]  ;;  %v1540_v41 = vld [vmem:[%s14568_s2 + $0xe0] sm:$0xff] }
  0x19   : > { %771 = vmatpush.msra.mxu1 %v341_v25  ;;  %1189 = vmatpush.msra.mxu3 %v342_v27  ;;  %v315_v42 = vld [vmem:[%s14567_s1 + $0x40] sm:$0xff]  ;;  %v316_v43 = vld [vmem:[%s14567_s1 + $0x48] sm:$0xff]  ;;  %v182_v44 = vld [vmem:[%s7582_s24 + $0x18] sm:$0xff] }
  0x1a   : > { %555 = vmatpush.msra.mxu0 %v323_v28  ;;  %973 = vmatpush.msra.mxu2 %v324_v30  ;;  %v313_v45 = vld [vmem:[%s14567_s1 + $0x30] sm:$0xff]  ;;  %v314_v46 = vld [vmem:[%s14567_s1 + $0x38] sm:$0xff]  ;;  %v311_v47 = vld [vmem:[%s14567_s1 + $0x20] sm:$0xff] }
  0x1b   : > { %772 = vmatpush.msra.mxu1 %v339_v29  ;;  %1190 = vmatpush.msra.mxu3 %v340_v31  ;;  %v312_v48 = vld [vmem:[%s14567_s1 + $0x28] sm:$0xff]  ;;  %v309_v49 = vld [vmem:[%s14567_s1 + $0x10] sm:$0xff]  ;;  %v310_v50 = vld [vmem:[%s14567_s1 + $0x18] sm:$0xff] }
  0x1c   : > { %6501 = vmatmul.msk.f32.vlgmr.msra.gmra.mxu1 %vm355_vm0, %v180_v32  ;;  %6565 = vmatmul.msk.f32.vlgmr.msra.gmra.mxu3 %vm355_vm0, %v180_v32  ;;  %v307_v51 = vld [vmem:[%s14567_s1] sm:$0xff]  ;;  %v308_v52 = vld [vmem:[%s14567_s1 + $0x8] sm:$0xff]  ;;  %v1559_v55 = vld [vmem:[%s14568_s2 + $0x178] sm:$0xff] }
  0x1d   : > { %1969 = vmatpush.msrb.mxu3 %v1558_v33  ;;  %556 = vmatpush.msra.mxu0 %v321_v34  ;;  %v179_v53 = vld [vmem:[%s7582_s24] sm:$0xff]  ;;  %v184_v54 = vld [vmem:[%s7582_s24 + $0x28] sm:$0xff]  ;;  %v1543_v56 = vld [vmem:[%s14568_s2 + $0xf8] sm:$0xff] }
  0x1e   : > { %974 = vmatpush.msra.mxu2 %v322_v35  ;;  %1752 = vmatpush.msrb.mxu1 %v1542_v36  ;;  %v1541_v57 = vld [vmem:[%s14568_s2 + $0xe8] sm:$0xff]  ;;  %v181_v58 = vld [vmem:[%s7582_s24 + $0x10] sm:$0xff]  ;;  %v186_v59 = vld [vmem:[%s7582_s24 + $0x38] sm:$0xff] }
  0x1f   : > { %557 = vmatpush.msra.mxu0 %v319_v37  ;;  %v183_v60 = vld [vmem:[%s7582_s24 + $0x20] sm:$0xff]  ;;  %v188_v61 = vld [vmem:[%s7582_s24 + $0x48] sm:$0xff]  ;;  %v1538_v63 = vld [vmem:[%s14568_s2 + $0xd0] sm:$0xff] }
  0x20   : > { %975 = vmatpush.msra.mxu2 %v320_v38  ;;  %1753 = vmatpush.msrb.mxu1 %v1540_v41  ;;  %v1556_v62 = vld [vmem:[%s14568_s2 + $0x160] sm:$0xff]  ;;  %v185_v0 = vld [vmem:[%s7582_s24 + $0x30] sm:$0xff]  ;;  %v190_v1 = vld [vmem:[%s7582_s24 + $0x58] sm:$0xff] }
  0x21   : > { %558 = vmatpush.msra.mxu0 %v317_v39  ;;  %1970 = vmatpush.msrb.mxu3 %v1556_v62  ;;  %v187_v2 = vld [vmem:[%s7582_s24 + $0x40] sm:$0xff]  ;;  %v192_v3 = vld [vmem:[%s7582_s24 + $0x68] sm:$0xff]  ;;  %v1539_v5 = vld [vmem:[%s14568_s2 + $0xd8] sm:$0xff] }
  0x22   : > { %976 = vmatpush.msra.mxu2 %v318_v40  ;;  %1754 = vmatpush.msrb.mxu1 %v1538_v63  ;;  %v1557_v4 = vld [vmem:[%s14568_s2 + $0x168] sm:$0xff]  ;;  %v189_v6 = vld [vmem:[%s7582_s24 + $0x50] sm:$0xff]  ;;  %v194_v7 = vld [vmem:[%s7582_s24 + $0x78] sm:$0xff] }
  0x23   : > { %559 = vmatpush.msra.mxu0 %v315_v42  ;;  %v191_v8 = vld [vmem:[%s7582_s24 + $0x60] sm:$0xff]  ;;  %v196_v9 = vld [vmem:[%s7582_s24 + $0x88] sm:$0xff]  ;;  %v193_v11 = vld [vmem:[%s7582_s24 + $0x70] sm:$0xff] }
  0x24   : > { %977 = vmatpush.msra.mxu2 %v316_v43  ;;  %6502 = vmatmul.msk.f32.gmra.mxu1 %vm355_vm0, %v182_v44  ;;  %v1536_v10 = vld [vmem:[%s14568_s2 + $0xc0] sm:$0xff]  ;;  %v198_v12 = vld [vmem:[%s7582_s24 + $0x98] sm:$0xff]  ;;  %v200_v14 = vld [vmem:[%s7582_s24 + $0xa8] sm:$0xff] }
  0x25   : > { %6566 = vmatmul.msk.f32.gmra.mxu3 %vm355_vm0, %v182_v44  ;;  %560 = vmatpush.msra.mxu0 %v313_v45  ;;  %v195_v13 = vld [vmem:[%s7582_s24 + $0x80] sm:$0xff]  ;;  %v1537_v15 = vld [vmem:[%s14568_s2 + $0xc8] sm:$0xff]  ;;  %v197_v16 = vld [vmem:[%s7582_s24 + $0x90] sm:$0xff] }
  0x26   : > { %978 = vmatpush.msra.mxu2 %v314_v46  ;;  %1755 = vmatpush.msrb.mxu1 %v1536_v10  ;;  %v202_v17 = vld [vmem:[%s7582_s24 + $0xb8] sm:$0xff]  ;;  %v199_v18 = vld [vmem:[%s7582_s24 + $0xa0] sm:$0xff]  ;;  %v204_v19 = vld [vmem:[%s7582_s24 + $0xc8] sm:$0xff] }
  0x27   : > { %561 = vmatpush.msra.mxu0 %v311_v47  ;;  %v7733_v20 = vld [vmem:[%s14568_s2 + $0x150] sm:$0xff]  ;;  %v206_v23 = vld [vmem:[%s7582_s24 + $0xd8] sm:$0xff]  ;;  %v203_v24 = vld [vmem:[%s7582_s24 + $0xc0] sm:$0xff] }
  0x28   : > { %979 = vmatpush.msra.mxu2 %v312_v48  ;;  %1971 = vmatpush.msrb.mxu3 %v7733_v20  ;;  %v1534_v21 = vld [vmem:[%s14568_s2 + $0xb0] sm:$0xff]  ;;  %v208_v25 = vld [vmem:[%s7582_s24 + $0xe8] sm:$0xff]  ;;  %v7750_v26 = vld [vmem:[%s14568_s2 + $0x158] sm:$0xff] }
  0x29   : > { %562 = vmatpush.msra.mxu0 %v309_v49  ;;  %1756 = vmatpush.msrb.mxu1 %v1534_v21  ;;  %v201_v22 = vld [vmem:[%s7582_s24 + $0xb0] sm:$0xff]  ;;  %v210_v28 = vld [vmem:[%s7582_s24 + $0xf8] sm:$0xff]  ;;  %v207_v31 = vld [vmem:[%s7582_s24 + $0xe0] sm:$0xff] }
  0x2a   : > { %980 = vmatpush.msra.mxu2 %v310_v50  ;;  %v205_v27 = vld [vmem:[%s7582_s24 + $0xd0] sm:$0xff]  ;;  %v1535_v29 = vld [vmem:[%s14568_s2 + $0xb8] sm:$0xff]  ;;  %v212_v32 = vld [vmem:[%s7582_s24 + $0x108] sm:$0xff] }
  0x2b   : > { %563 = vmatpush.msra.mxu0 %v307_v51  ;;  %v209_v35 = vld [vmem:[%s7582_s24 + $0xf0] sm:$0xff]  ;;  %v214_v36 = vld [vmem:[%s7582_s24 + $0x118] sm:$0xff]  ;;  %v1532_v37 = vld [vmem:[%s14568_s2 + $0xa0] sm:$0xff] }
  0x2c   : > { %981 = vmatpush.msra.mxu2 %v308_v52  ;;  %564 = vmatmul.f32.vlgmr.msra.gmra.mxu0 %v179_v53  ;;  %v211_v40 = vld [vmem:[%s7582_s24 + $0x100] sm:$0xff]  ;;  %v216_v42 = vld [vmem:[%s7582_s24 + $0x128] sm:$0xff]  ;;  %v213_v47 = vld [vmem:[%s7582_s24 + $0x110] sm:$0xff] }
  0x2d   : > { %6503 = vmatmul.msk.f32.gmra.mxu1 %vm355_vm0, %v184_v54  ;;  %982 = vmatmul.f32.vlgmr.msra.gmra.mxu2 %v179_v53  ;;  %v218_v49 = vld [vmem:[%s7582_s24 + $0x138] sm:$0xff]  ;;  %v1533_v50 = vld [vmem:[%s14568_s2 + $0xa8] sm:$0xff]  ;;  %v217_v63 = vld [vmem:[%s7582_s24 + $0x130] sm:$0xff] }
  0x2e   : > { %6567 = vmatmul.msk.f32.gmra.mxu3 %vm355_vm0, %v184_v54  ;;  %2387 = vmatpush.msrb.mxu2 %v1559_v55  ;;  %v215_v55 = vld [vmem:[%s7582_s24 + $0x120] sm:$0xff]  ;;  %v7841_v10 = vld [vmem:[%s14568_s2 + $0x148] sm:$0xff] }
  0x2f   : > { %2170 = vmatpush.msrb.mxu0 %v1543_v56  ;;  %1757 = vmatpush.msrb.mxu1 %v1532_v37  ;;  %v7878_v37 = vld [vmem:[%s14568_s2 + $0x80] sm:$0xff] }
  0x30   : > { %2388 = vmatpush.msrb.mxu2 %v1557_v4 }
  0x31   : > { %2171 = vmatpush.msrb.mxu0 %v1541_v57  ;;  %v220_v57 = vld [vmem:[%s7582_s24 + $0x148] sm:$0xff] }
  0x32   : > { %2389 = vmatpush.msrb.mxu2 %v7750_v26 }
  0x33   : > { %2172 = vmatpush.msrb.mxu0 %v1539_v5 }
  0x34   : > { %567 = vmatmul.f32.gmra.mxu0 %v181_v58  ;;  %2390 = vmatpush.msrb.mxu2 %v7841_v10 }
  0x35   : > { %6504 = vmatmul.msk.f32.gmra.mxu1 %vm355_vm0, %v186_v59  ;;  %985 = vmatmul.f32.gmra.mxu2 %v181_v58  ;;  %v7809_v58 = vld [vmem:[%s14568_s2 + $0x140] sm:$0xff] }
  0x36   : > { %6568 = vmatmul.msk.f32.gmra.mxu3 %vm355_vm0, %v186_v59  ;;  %2173 = vmatpush.msrb.mxu0 %v1537_v15  ;;  %v221_v15 = vld [vmem:[%s7582_s24 + $0x150] sm:$0xff] }
  0x37   : > { %1972 = vmatpush.msrb.mxu3 %v7809_v58 }
  0x38   : > { %2174 = vmatpush.msrb.mxu0 %v1535_v29 }
  0x3a   : > { %2175 = vmatpush.msrb.mxu0 %v1533_v50 }
  0x3c   : > { %570 = vmatmul.f32.gmra.mxu0 %v183_v60 }
  0x3d   : > { %6505 = vmatmul.msk.f32.gmra.mxu1 %vm355_vm0, %v188_v61  ;;  %988 = vmatmul.f32.gmra.mxu2 %v183_v60 }
  0x3e   : > { %6569 = vmatmul.msk.f32.gmra.mxu3 %vm355_vm0, %v188_v61 }
  0x44   : > { %573 = vmatmul.f32.gmra.mxu0 %v185_v0 }
  0x45   : > { %6506 = vmatmul.msk.f32.gmra.mxu1 %vm355_vm0, %v190_v1  ;;  %991 = vmatmul.f32.gmra.mxu2 %v185_v0 }
  0x46   : > { %6570 = vmatmul.msk.f32.gmra.mxu3 %vm355_vm0, %v190_v1  ;;  %v222_v1 = vld [vmem:[%s7582_s24 + $0x158] sm:$0xff] }
  0x4c   : > { %576 = vmatmul.f32.gmra.mxu0 %v187_v2 }
  0x4d   : > { %6507 = vmatmul.msk.f32.gmra.mxu1 %vm355_vm0, %v192_v3  ;;  %994 = vmatmul.f32.gmra.mxu2 %v187_v2  ;;  %v7823_v2 = vld [vmem:[%s14568_s2 + $0x90] sm:$0xff] }
  0x4e   : > { %6571 = vmatmul.msk.f32.gmra.mxu3 %vm355_vm0, %v192_v3  ;;  %1758 = vmatpush.msrb.mxu1 %v7823_v2 }
  0x50   : > { %1759 = vmatpush.msrb.mxu1 %v7878_v37 }
  0x54   : > { %579 = vmatmul.f32.gmra.mxu0 %v189_v6 }
  0x55   : > { %6508 = vmatmul.msk.f32.gmra.mxu1 %vm355_vm0, %v194_v7  ;;  %997 = vmatmul.f32.gmra.mxu2 %v189_v6 }
  0x56   : > { %6572 = vmatmul.msk.f32.gmra.mxu3 %vm355_vm0, %v194_v7  ;;  %v219_v7 = vld [vmem:[%s7582_s24 + $0x140] sm:$0xff] }
  0x5c   : > { %582 = vmatmul.f32.gmra.mxu0 %v191_v8 }
  0x5d   : > { %6509 = vmatmul.msk.f32.gmra.mxu1 %vm355_vm0, %v196_v9  ;;  %1000 = vmatmul.f32.gmra.mxu2 %v191_v8 }
  0x5e   : > { %6573 = vmatmul.msk.f32.gmra.mxu3 %vm355_vm0, %v196_v9  ;;  %v224_v9 = vld [vmem:[%s7582_s24 + $0x168] sm:$0xff] }
  0x64   : > { %585 = vmatmul.f32.gmra.mxu0 %v193_v11 }
  0x65   : > { %6510 = vmatmul.msk.f32.gmra.mxu1 %vm355_vm0, %v198_v12  ;;  %1003 = vmatmul.f32.gmra.mxu2 %v193_v11 }
  0x66   : > { %6574 = vmatmul.msk.f32.gmra.mxu3 %vm355_vm0, %v198_v12 }
  0x6c   : > { %588 = vmatmul.f32.gmra.mxu0 %v195_v13 }
  0x6d   : > { %6511 = vmatmul.msk.f32.gmra.mxu1 %vm355_vm0, %v200_v14  ;;  %1006 = vmatmul.f32.gmra.mxu2 %v195_v13 }
  0x6e   : > { %6575 = vmatmul.msk.f32.gmra.mxu3 %vm355_vm0, %v200_v14 }
  0x74   : > { %591 = vmatmul.f32.gmra.mxu0 %v197_v16 }
  0x75   : > { %6512 = vmatmul.msk.f32.gmra.mxu1 %vm355_vm0, %v202_v17  ;;  %1009 = vmatmul.f32.gmra.mxu2 %v197_v16 }
  0x76   : > { %6576 = vmatmul.msk.f32.gmra.mxu3 %vm355_vm0, %v202_v17  ;;  %v226_v17 = vld [vmem:[%s7582_s24 + $0x178] sm:$0xff] }
  0x7c   : > { %594 = vmatmul.f32.gmra.mxu0 %v199_v18 }
  0x7d   : > { %6513 = vmatmul.msk.f32.gmra.mxu1 %vm355_vm0, %v204_v19  ;;  %1012 = vmatmul.f32.gmra.mxu2 %v199_v18  ;;  %v1531_v18 = vld [vmem:[%s14568_s2 + $0x98] sm:$0xff] }
  0x7e   : > { %6577 = vmatmul.msk.f32.gmra.mxu3 %vm355_vm0, %v204_v19  ;;  %2176 = vmatpush.msrb.mxu0 %v1531_v18 }
  0x84   : > { %597 = vmatmul.f32.gmra.mxu0 %v201_v22 }
  0x85   : > { %6514 = vmatmul.msk.f32.gmra.mxu1 %vm355_vm0, %v206_v23  ;;  %1015 = vmatmul.f32.gmra.mxu2 %v201_v22 }
  0x86   : > { %6578 = vmatmul.msk.f32.gmra.mxu3 %vm355_vm0, %v206_v23 }
  0x8c   : > { %600 = vmatmul.f32.gmra.mxu0 %v203_v24 }
  0x8d   : > { %6515 = vmatmul.msk.f32.gmra.mxu1 %vm355_vm0, %v208_v25  ;;  %1018 = vmatmul.f32.gmra.mxu2 %v203_v24  ;;  %v223_v24 = vld [vmem:[%s7582_s24 + $0x160] sm:$0xff] }
  0x8e   : > { %6579 = vmatmul.msk.f32.gmra.mxu3 %vm355_vm0, %v208_v25 }
  0x94   : > { %603 = vmatmul.f32.gmra.mxu0 %v205_v27 }
  0x95   : > { %6516 = vmatmul.msk.f32.gmra.mxu1 %vm355_vm0, %v210_v28  ;;  %1021 = vmatmul.f32.gmra.mxu2 %v205_v27  ;;  %v228_v27 = vld [vmem:[%s7582_s24 + $0x188] sm:$0xff] }
  0x96   : > { %6580 = vmatmul.msk.f32.gmra.mxu3 %vm355_vm0, %v210_v28 }
  0x99   : > { %v7760_v30 = vpop.f32.mrf.mxu1 }
  0x9c   : > { %606 = vmatmul.f32.gmra.mxu0 %v207_v31 }
  0x9d   : > { %6517 = vmatmul.msk.f32.gmra.mxu1 %vm355_vm0, %v212_v32  ;;  %1024 = vmatmul.f32.gmra.mxu2 %v207_v31 }
  0x9e   : > { %6581 = vmatmul.msk.f32.gmra.mxu3 %vm355_vm0, %v212_v32 }
  0x9f   : > { %v1192_v33 = vpop.f32.mrf.mxu3 }
  0xa1   : > { %v7766_v34 = vpop.f32.mrf.mxu1 }
  0xa4   : > { %609 = vmatmul.f32.gmra.mxu0 %v209_v35 }
  0xa5   : > { %6518 = vmatmul.msk.f32.gmra.mxu1 %vm355_vm0, %v214_v36  ;;  %1027 = vmatmul.f32.gmra.mxu2 %v209_v35 }
  0xa6   : > { %6582 = vmatmul.msk.f32.gmra.mxu3 %vm355_vm0, %v214_v36  ;;  %v230_v36 = vld [vmem:[%s7582_s24 + $0x198] sm:$0xff] }
  0xa8   : > { %v1195_v38 = vpop.f32.mrf.mxu3 }
  0xa9   : > { %v7775_v39 = vpop.f32.mrf.mxu0 }
  0xaa   : > { %v7778_v41 = vpop.f32.mrf.mxu1 }
  0xac   : > { %612 = vmatmul.f32.gmra.mxu0 %v211_v40 }
  0xad   : > { %6519 = vmatmul.msk.f32.gmra.mxu1 %vm355_vm0, %v216_v42  ;;  %1030 = vmatmul.f32.gmra.mxu2 %v211_v40 }
  0xae   : > { %6583 = vmatmul.msk.f32.gmra.mxu3 %vm355_vm0, %v216_v42 }
  0xb0   : > { %v983_v43 = vpop.f32.mrf.mxu2 }
  0xb1   : > { %v7783_v44 = vadd.f32 %v1192_v33, %v983_v43  ;;  %v1198_v45 = vpop.f32.mrf.mxu3  ;;  %v7785_v46 = vpop.f32.mrf.mxu0  ;;  %v225_v33 = vld [vmem:[%s7582_s24 + $0x170] sm:$0xff] }
  0xb2   : > { %v7788_v48 = vpop.f32.mrf.mxu1 }
  0xb3   : > { %14989 = vst [vmem:[#allocation2_spill] sm:$0xff] %v7783_v44 }
  0xb4   : > { %615 = vmatmul.f32.gmra.mxu0 %v213_v47 }
  0xb5   : > { %6520 = vmatmul.msk.f32.gmra.mxu1 %vm355_vm0, %v218_v49  ;;  %1033 = vmatmul.f32.gmra.mxu2 %v213_v47 }
  0xb6   : > { %6584 = vmatmul.msk.f32.gmra.mxu3 %vm355_vm0, %v218_v49  ;;  %v232_v49 = vld [vmem:[%s7582_s24 + $0x1a8] sm:$0xff] }
  0xb8   : > { %v986_v51 = vpop.f32.mrf.mxu2 }
  0xb9   : > { %v7796_v52 = vadd.f32 %v1195_v38, %v986_v51  ;;  %v1201_v53 = vpop.f32.mrf.mxu3  ;;  %v7798_v54 = vpop.f32.mrf.mxu0 }
  0xba   : > { %v7801_v56 = vpop.f32.mrf.mxu1 }
  0xbb   : > { %14990 = vst [vmem:[#allocation3_spill] sm:$0xff] %v7796_v52 }
  0xbc   : > { %618 = vmatmul.f32.gmra.mxu0 %v215_v55 }
  0xbd   : > { %6521 = vmatmul.msk.f32.gmra.mxu1 %vm355_vm0, %v220_v57  ;;  %1036 = vmatmul.f32.gmra.mxu2 %v215_v55 }
  0xbe   : > { %6585 = vmatmul.msk.f32.gmra.mxu3 %vm355_vm0, %v220_v57  ;;  %v229_v57 = vld [vmem:[%s7582_s24 + $0x190] sm:$0xff] }
  0xc0   : > { %v989_v59 = vpop.f32.mrf.mxu2 }
  0xc1   : > { %v7812_v60 = vadd.f32 %v1198_v45, %v989_v59  ;;  %v1204_v61 = vpop.f32.mrf.mxu3  ;;  %v7814_v62 = vpop.f32.mrf.mxu0  ;;  %v227_v45 = vld [vmem:[%s7582_s24 + $0x180] sm:$0xff] }
  0xc2   : > { %v7817_v0 = vpop.f32.mrf.mxu1 }
  0xc3   : > { %14991 = vst [vmem:[#allocation4_spill] sm:$0xff] %v7812_v60 }
  0xc4   : > { %621 = vmatmul.f32.gmra.mxu0 %v217_v63 }
  0xc5   : > { %6522 = vmatmul.msk.f32.gmra.mxu1 %vm355_vm0, %v222_v1  ;;  %1039 = vmatmul.f32.gmra.mxu2 %v217_v63  ;;  %v7904_v63 = vld [vmem:[%s14568_s2 + $0x88] sm:$0xff] }
  0xc6   : > { %6586 = vmatmul.msk.f32.gmra.mxu3 %vm355_vm0, %v222_v1  ;;  %2177 = vmatpush.msrb.mxu0 %v7904_v63 }
  0xc8   : > { %v992_v3 = vpop.f32.mrf.mxu2 }
  0xc9   : > { %v7828_v4 = vadd.f32 %v1201_v53, %v992_v3  ;;  %v1207_v5 = vpop.f32.mrf.mxu3  ;;  %v7830_v6 = vpop.f32.mrf.mxu0 }
  0xca   : > { %v7833_v8 = vpop.f32.mrf.mxu1 }
  0xcb   : > { %14992 = vst [vmem:[#allocation5_spill] sm:$0xff] %v7828_v4 }
  0xcc   : > { %624 = vmatmul.f32.gmra.mxu0 %v219_v7 }
  0xcd   : > { %6523 = vmatmul.msk.f32.gmra.mxu1 %vm355_vm0, %v224_v9  ;;  %1042 = vmatmul.f32.gmra.mxu2 %v219_v7 }
  0xce   : > { %6587 = vmatmul.msk.f32.gmra.mxu3 %vm355_vm0, %v224_v9  ;;  %v231_v9 = vld [vmem:[%s7582_s24 + $0x1a0] sm:$0xff] }
  0xd0   : > { %v995_v11 = vpop.f32.mrf.mxu2 }
  0xd1   : > { %v7844_v12 = vadd.f32 %v1204_v61, %v995_v11  ;;  %v1210_v13 = vpop.f32.mrf.mxu3  ;;  %v7846_v14 = vpop.f32.mrf.mxu0  ;;  %v234_v61 = vld [vmem:[%s7582_s24 + $0x1b8] sm:$0xff] }
  0xd2   : > { %v7849_v16 = vpop.f32.mrf.mxu1 }
  0xd3   : > { %14993 = vst [vmem:[#allocation6_spill] sm:$0xff] %v7844_v12 }
  0xd4   : > { %627 = vmatmul.f32.gmra.mxu0 %v221_v15 }
  0xd5   : > { %6524 = vmatmul.msk.f32.gmra.mxu1 %vm355_vm0, %v226_v17  ;;  %1045 = vmatmul.f32.gmra.mxu2 %v221_v15  ;;  %v7922_v15 = vld [vmem:[%s14568_s2 + $0x130] sm:$0xff] }
  0xd6   : > { %6588 = vmatmul.msk.f32.gmra.mxu3 %vm355_vm0, %v226_v17 }
  0xd7   : > { %1973 = vmatpush.msrb.mxu3 %v7922_v15 }
  0xd8   : > { %v998_v19 = vpop.f32.mrf.mxu2 }
  0xd9   : > { %v7857_v21 = vadd.f32 %v1207_v5, %v998_v19  ;;  %v1213_v22 = vpop.f32.mrf.mxu3  ;;  %v7859_v23 = vpop.f32.mrf.mxu0 }
  0xda   : > { %v7862_v25 = vpop.f32.mrf.mxu1 }
  0xdb   : > { %14994 = vst [vmem:[#allocation7_spill] sm:$0xff] %v7857_v21 }
  0xdc   : > { %630 = vmatmul.f32.gmra.mxu0 %v223_v24 }
  0xdd   : > { %6525 = vmatmul.msk.f32.gmra.mxu1 %vm355_vm0, %v228_v27  ;;  %1048 = vmatmul.f32.gmra.mxu2 %v223_v24  ;;  %v233_v24 = vld [vmem:[%s7582_s24 + $0x1b0] sm:$0xff] }
  0xde   : > { %6589 = vmatmul.msk.f32.gmra.mxu3 %vm355_vm0, %v228_v27 }
  0xe0   : > { %v1001_v28 = vpop.f32.mrf.mxu2 }
  0xe1   : > { %v7867_v29 = vadd.f32 %v1210_v13, %v1001_v28  ;;  %v1216_v31 = vpop.f32.mrf.mxu3  ;;  %v7869_v32 = vpop.f32.mrf.mxu0  ;;  %v236_v13 = vld [vmem:[%s7582_s24 + $0x1c8] sm:$0xff]  ;;  %v238_v28 = vld [vmem:[%s7582_s24 + $0x1d8] sm:$0xff] }
  0xe2   : > { %v7872_v35 = vpop.f32.mrf.mxu1 }
  0xe3   : > { %14995 = vst [vmem:[#allocation8_spill] sm:$0xff] %v7867_v29 }
  0xe4   : > { %14996 = vst [vmem:[#allocation9_spill] sm:$0xff] %v7872_v35  ;;  %633 = vmatmul.f32.gmra.mxu0 %v225_v33  ;;  %v282_v35 = vld [vmem:[%s7582_s24 + $0x338] sm:$0xff] }
  0xe5   : > { %6526 = vmatmul.msk.f32.gmra.mxu1 %vm355_vm0, %v230_v36  ;;  %1051 = vmatmul.f32.gmra.mxu2 %v225_v33 }
  0xe6   : > { %6590 = vmatmul.msk.f32.gmra.mxu3 %vm355_vm0, %v230_v36 }
  0xe8   : > { %v1004_v38 = vpop.f32.mrf.mxu2 }
  0xe9   : > { %v7883_v40 = vadd.f32 %v1213_v22, %v1004_v38  ;;  %v1219_v42 = vpop.f32.mrf.mxu3  ;;  %v7885_v43 = vpop.f32.mrf.mxu0 }
  0xea   : > { %v7888_v47 = vpop.f32.mrf.mxu1 }
  0xeb   : > { %14997 = vst [vmem:[#allocation10_spill] sm:$0xff] %v7883_v40 }
  0xec   : > { %14998 = vst [vmem:[#allocation11_spill] sm:$0xff] %v7888_v47  ;;  %636 = vmatmul.f32.gmra.mxu0 %v227_v45 }
  0xed   : > { %6527 = vmatmul.msk.f32.gmra.mxu1 %vm355_vm0, %v232_v49  ;;  %1054 = vmatmul.f32.gmra.mxu2 %v227_v45  ;;  %v235_v45 = vld [vmem:[%s7582_s24 + $0x1c0] sm:$0xff] }
  0xee   : > { %6591 = vmatmul.msk.f32.gmra.mxu3 %vm355_vm0, %v232_v49 }
  0xf0   : > { %v1007_v50 = vpop.f32.mrf.mxu2 }
  0xf1   : > { %v7893_v51 = vadd.f32 %v1216_v31, %v1007_v50  ;;  %v1222_v53 = vpop.f32.mrf.mxu3  ;;  %v7895_v55 = vpop.f32.mrf.mxu0  ;;  %v7936_v31 = vld [vmem:[%s14568_s2 + $0x70] sm:$0xff]  ;;  %v240_v50 = vld [vmem:[%s7582_s24 + $0x1e8] sm:$0xff] }
  0xf2   : > { %15000 = vst [vmem:[#allocation13_spill] sm:$0xff] %v7895_v55  ;;  %v7898_v59 = vpop.f32.mrf.mxu1  ;;  %1760 = vmatpush.msrb.mxu1 %v7936_v31  ;;  %v7178_v55 = vld [vmem:[%s14568_s2 + $0x160] sm:$0xff] }
  0xf3   : > { %14999 = vst [vmem:[#allocation12_spill] sm:$0xff] %v7893_v51  ;;  %v288_v51 = vld [vmem:[%s7582_s24 + $0x368] sm:$0xff] }
  0xf4   : > { %15001 = vst [vmem:[#allocation14_spill] sm:$0xff] %v7898_v59  ;;  %639 = vmatmul.f32.gmra.mxu0 %v229_v57  ;;  %v266_v59 = vld [vmem:[%s7582_s24 + $0x2b8] sm:$0xff] }
  0xf5   : > { %6528 = vmatmul.msk.f32.gmra.mxu1 %vm355_vm0, %v234_v61  ;;  %1057 = vmatmul.f32.gmra.mxu2 %v229_v57 }
  0xf6   : > { %6592 = vmatmul.msk.f32.gmra.mxu3 %vm355_vm0, %v234_v61 }
  0xf8   : > { %v1010_v1 = vpop.f32.mrf.mxu2 }
  0xf9   : > { %v7909_v3 = vadd.f32 %v1219_v42, %v1010_v1  ;;  %v1225_v5 = vpop.f32.mrf.mxu3  ;;  %v7911_v7 = vpop.f32.mrf.mxu0 }
  0xfa   : > { %15003 = vst [vmem:[#allocation16_spill] sm:$0xff] %v7911_v7  ;;  %v7914_v11 = vpop.f32.mrf.mxu1  ;;  %v276_v7 = vld [vmem:[%s7582_s24 + $0x308] sm:$0xff] }
  0xfb   : > { %15002 = vst [vmem:[#allocation15_spill] sm:$0xff] %v7909_v3  ;;  %v278_v3 = vld [vmem:[%s7582_s24 + $0x318] sm:$0xff] }
  0xfc   : > { %15004 = vst [vmem:[#allocation17_spill] sm:$0xff] %v7914_v11  ;;  %642 = vmatmul.f32.gmra.mxu0 %v231_v9 }
  0xfd   : > { %6529 = vmatmul.msk.f32.gmra.mxu1 %vm355_vm0, %v236_v13  ;;  %1060 = vmatmul.f32.gmra.mxu2 %v231_v9  ;;  %v237_v9 = vld [vmem:[%s7582_s24 + $0x1d0] sm:$0xff] }
  0xfe   : > { %6593 = vmatmul.msk.f32.gmra.mxu3 %vm355_vm0, %v236_v13 }
 0x100   : > { %v1013_v17 = vpop.f32.mrf.mxu2 }
 0x101   : > { %v7925_v18 = vadd.f32 %v1222_v53, %v1013_v17  ;;  %v1228_v19 = vpop.f32.mrf.mxu3  ;;  %v7927_v22 = vpop.f32.mrf.mxu0  ;;  %v7954_v53 = vld [vmem:[%s14568_s2 + $0x138] sm:$0xff] }
 0x102   : > { %15006 = vst [vmem:[#allocation19_spill] sm:$0xff] %v7927_v22  ;;  %v7930_v27 = vpop.f32.mrf.mxu1  ;;  %2391 = vmatpush.msrb.mxu2 %v7954_v53  ;;  %v242_v17 = vld [vmem:[%s7582_s24 + $0x1f8] sm:$0xff] }
 0x103   : > { %15005 = vst [vmem:[#allocation18_spill] sm:$0xff] %v7925_v18  ;;  %v272_v18 = vld [vmem:[%s7582_s24 + $0x2e8] sm:$0xff] }
 0x104   : > { %15007 = vst [vmem:[#allocation20_spill] sm:$0xff] %v7930_v27  ;;  %645 = vmatmul.f32.gmra.mxu0 %v233_v24  ;;  %v250_v27 = vld [vmem:[%s7582_s24 + $0x238] sm:$0xff] }
 0x105   : > { %6530 = vmatmul.msk.f32.gmra.mxu1 %vm355_vm0, %v238_v28  ;;  %1063 = vmatmul.f32.gmra.mxu2 %v233_v24  ;;  %v7968_v24 = vld [vmem:[%s14568_s2 + $0x78] sm:$0xff] }
 0x106   : > { %6594 = vmatmul.msk.f32.gmra.mxu3 %vm355_vm0, %v238_v28  ;;  %2178 = vmatpush.msrb.mxu0 %v7968_v24 }
 0x108   : > { %v1016_v33 = vpop.f32.mrf.mxu2 }
 0x109   : > { %v7941_v36 = vadd.f32 %v1225_v5, %v1016_v33  ;;  %v1231_v38 = vpop.f32.mrf.mxu3  ;;  %v7943_v42 = vpop.f32.mrf.mxu0 }
 0x10a   : > { %15009 = vst [vmem:[#allocation22_spill] sm:$0xff] %v7943_v42  ;;  %v7946_v49 = vpop.f32.mrf.mxu1  ;;  %v260_v42 = vld [vmem:[%s7582_s24 + $0x288] sm:$0xff] }
 0x10b   : > { %15008 = vst [vmem:[#allocation21_spill] sm:$0xff] %v7941_v36  ;;  %v262_v36 = vld [vmem:[%s7582_s24 + $0x298] sm:$0xff] }
 0x10c   : > { %15010 = vst [vmem:[#allocation23_spill] sm:$0xff] %v7946_v49  ;;  %648 = vmatmul.f32.gmra.mxu0 %v235_v45  ;;  %v241_v49 = vld [vmem:[%s7582_s24 + $0x1f0] sm:$0xff] }
 0x10d   : > { %6531 = vmatmul.msk.f32.gmra.mxu1 %vm355_vm0, %v240_v50  ;;  %1066 = vmatmul.f32.gmra.mxu2 %v235_v45 }
 0x10e   : > { %6595 = vmatmul.msk.f32.gmra.mxu3 %vm355_vm0, %v240_v50  ;;  %v239_v50 = vld [vmem:[%s7582_s24 + $0x1e0] sm:$0xff] }
 0x110   : > { %v1019_v57 = vpop.f32.mrf.mxu2 }
 0x111   : > { %v7957_v61 = vadd.f32 %v1228_v19, %v1019_v57  ;;  %v1234_v1 = vpop.f32.mrf.mxu3  ;;  %v7959_v5 = vpop.f32.mrf.mxu0 }
 0x112   : > { %15012 = vst [vmem:[#allocation25_spill] sm:$0xff] %v7959_v5  ;;  %v7962_v13 = vpop.f32.mrf.mxu1 }
 0x113   : > { %15011 = vst [vmem:[#allocation24_spill] sm:$0xff] %v7957_v61  ;;  %v256_v61 = vld [vmem:[%s7582_s24 + $0x268] sm:$0xff] }
 0x114   : > { %15013 = vst [vmem:[#allocation26_spill] sm:$0xff] %v7962_v13  ;;  %651 = vmatmul.f32.gmra.mxu0 %v237_v9  ;;  %v244_v13 = vld [vmem:[%s7582_s24 + $0x208] sm:$0xff] }
 0x115   : > { %6532 = vmatmul.msk.f32.gmra.mxu1 %vm355_vm0, %v242_v17  ;;  %1069 = vmatmul.f32.gmra.mxu2 %v237_v9 }
 0x116   : > { %6596 = vmatmul.msk.f32.gmra.mxu3 %vm355_vm0, %v242_v17 }
 0x118   : > { %v1022_v19 = vpop.f32.mrf.mxu2 }
 0x119   : > { %v7973_v28 = vadd.f32 %v1231_v38, %v1022_v19  ;;  %v1237_v33 = vpop.f32.mrf.mxu3  ;;  %v7975_v45 = vpop.f32.mrf.mxu0 }
 0x11a   : > { %15015 = vst [vmem:[#allocation28_spill] sm:$0xff] %v7975_v45  ;;  %v7978_v57 = vpop.f32.mrf.mxu1 }
 0x11b   : > { %15014 = vst [vmem:[#allocation27_spill] sm:$0xff] %v7973_v28  ;;  %v246_v28 = vld [vmem:[%s7582_s24 + $0x218] sm:$0xff] }
 0x11c   : > { %15016 = vst [vmem:[#allocation29_spill] sm:$0xff] %v7978_v57  ;;  %654 = vmatmul.f32.gmra.mxu0 %v239_v50  ;;  %v7994_v57 = vld [vmem:[%s14568_s2 + $0x60] sm:$0xff] }
 0x11d   : > { %6533 = vmatmul.msk.f32.gmra.mxu1 %vm355_vm0, %v244_v13  ;;  %1072 = vmatmul.f32.gmra.mxu2 %v239_v50 }
 0x11e   : > { %6597 = vmatmul.msk.f32.gmra.mxu3 %vm355_vm0, %v244_v13  ;;  %1761 = vmatpush.msrb.mxu1 %v7994_v57 }
 0x120   : > { %v1025_v9 = vpop.f32.mrf.mxu2 }
 0x121   : > { %v7983_v17 = vadd.f32 %v1234_v1, %v1025_v9  ;;  %v1240_v38 = vpop.f32.mrf.mxu3  ;;  %v7985_v19 = vpop.f32.mrf.mxu0 }
 0x122   : > { %15018 = vst [vmem:[#allocation31_spill] sm:$0xff] %v7985_v19  ;;  %v7988_v45 = vpop.f32.mrf.mxu1 }
 0x123   : > { %15017 = vst [vmem:[#allocation30_spill] sm:$0xff] %v7983_v17  ;;  %v248_v17 = vld [vmem:[%s7582_s24 + $0x228] sm:$0xff] }
 0x124   : > { %15019 = vst [vmem:[#allocation32_spill] sm:$0xff] %v7988_v45  ;;  %657 = vmatmul.f32.gmra.mxu0 %v241_v49  ;;  %v243_v45 = vld [vmem:[%s7582_s24 + $0x200] sm:$0xff] }
 0x125   : > { %6534 = vmatmul.msk.f32.gmra.mxu1 %vm355_vm0, %v246_v28  ;;  %1075 = vmatmul.f32.gmra.mxu2 %v241_v49 }
 0x126   : > { %6598 = vmatmul.msk.f32.gmra.mxu3 %vm355_vm0, %v246_v28 }
 0x128   : > { %v1028_v1 = vpop.f32.mrf.mxu2 }
 0x129   : > { %v7999_v13 = vadd.f32 %v1237_v33, %v1028_v1  ;;  %v1243_v50 = vpop.f32.mrf.mxu3  ;;  %v8001_v9 = vpop.f32.mrf.mxu0 }
 0x12a   : > { %15021 = vst [vmem:[#allocation34_spill] sm:$0xff] %v8001_v9  ;;  %v8004_v19 = vpop.f32.mrf.mxu1 }
 0x12b   : > { %15020 = vst [vmem:[#allocation33_spill] sm:$0xff] %v7999_v13  ;;  %v245_v13 = vld [vmem:[%s7582_s24 + $0x210] sm:$0xff] }
 0x12c   : > { %15022 = vst [vmem:[#allocation35_spill] sm:$0xff] %v8004_v19  ;;  %660 = vmatmul.f32.gmra.mxu0 %v243_v45  ;;  %v8020_v19 = vld [vmem:[%s14568_s2 + $0x68] sm:$0xff] }
 0x12d   : > { %6535 = vmatmul.msk.f32.gmra.mxu1 %vm355_vm0, %v248_v17  ;;  %1078 = vmatmul.f32.gmra.mxu2 %v243_v45 }
 0x12e   : > { %6599 = vmatmul.msk.f32.gmra.mxu3 %vm355_vm0, %v248_v17  ;;  %2179 = vmatpush.msrb.mxu0 %v8020_v19 }
 0x130   : > { %v1031_v49 = vpop.f32.mrf.mxu2 }
 0x131   : > { %v8009_v28 = vadd.f32 %v1240_v38, %v1031_v49  ;;  %v1246_v33 = vpop.f32.mrf.mxu3  ;;  %v8011_v1 = vpop.f32.mrf.mxu0 }
 0x132   : > { %15024 = vst [vmem:[#allocation37_spill] sm:$0xff] %v8011_v1  ;;  %v8014_v9 = vpop.f32.mrf.mxu1 }
 0x133   : > { %15023 = vst [vmem:[#allocation36_spill] sm:$0xff] %v8009_v28  ;;  %v252_v28 = vld [vmem:[%s7582_s24 + $0x248] sm:$0xff] }
 0x134   : > { %15025 = vst [vmem:[#allocation38_spill] sm:$0xff] %v8014_v9  ;;  %663 = vmatmul.f32.gmra.mxu0 %v245_v13  ;;  %v247_v9 = vld [vmem:[%s7582_s24 + $0x220] sm:$0xff] }
 0x135   : > { %6536 = vmatmul.msk.f32.gmra.mxu1 %vm355_vm0, %v250_v27  ;;  %1081 = vmatmul.f32.gmra.mxu2 %v245_v13 }
 0x136   : > { %6600 = vmatmul.msk.f32.gmra.mxu3 %vm355_vm0, %v250_v27  ;;  %v8038_v27 = vld [vmem:[%s14568_s2 + $0x120] sm:$0xff] }
 0x137   : > { %1974 = vmatpush.msrb.mxu3 %v8038_v27 }
 0x138   : > { %v1034_v45 = vpop.f32.mrf.mxu2 }
 0x139   : > { %v8025_v17 = vadd.f32 %v1243_v50, %v1034_v45  ;;  %v1249_v38 = vpop.f32.mrf.mxu3  ;;  %v8027_v49 = vpop.f32.mrf.mxu0 }
 0x13a   : > { %15027 = vst [vmem:[#allocation40_spill] sm:$0xff] %v8027_v49  ;;  %v8030_v1 = vpop.f32.mrf.mxu1  ;;  %v249_v49 = vld [vmem:[%s7582_s24 + $0x230] sm:$0xff] }
 0x13b   : > { %15026 = vst [vmem:[#allocation39_spill] sm:$0xff] %v8025_v17 }
 0x13c   : > { %15028 = vst [vmem:[#allocation41_spill] sm:$0xff] %v8030_v1  ;;  %666 = vmatmul.f32.gmra.mxu0 %v247_v9 }
 0x13d   : > { %6537 = vmatmul.msk.f32.gmra.mxu1 %vm355_vm0, %v252_v28  ;;  %1084 = vmatmul.f32.gmra.mxu2 %v247_v9  ;;  %v254_v9 = vld [vmem:[%s7582_s24 + $0x258] sm:$0xff] }
 0x13e   : > { %6601 = vmatmul.msk.f32.gmra.mxu3 %vm355_vm0, %v252_v28  ;;  %v8052_v28 = vld [vmem:[%s14568_s2 + $0x50] sm:$0xff] }
 0x13f   : > { %1762 = vmatpush.msrb.mxu1 %v8052_v28 }
 0x140   : > { %v1037_v13 = vpop.f32.mrf.mxu2 }
 0x141   : > { %v8041_v50 = vadd.f32 %v1246_v33, %v1037_v13  ;;  %v1252_v45 = vpop.f32.mrf.mxu3  ;;  %v8043_v1 = vpop.f32.mrf.mxu0 }
 0x142   : > { %15030 = vst [vmem:[#allocation43_spill] sm:$0xff] %v8043_v1  ;;  %v8046_v17 = vpop.f32.mrf.mxu1 }
 0x143   : > { %15029 = vst [vmem:[#allocation42_spill] sm:$0xff] %v8041_v50  ;;  %v251_v50 = vld [vmem:[%s7582_s24 + $0x240] sm:$0xff] }
 0x144   : > { %15031 = vst [vmem:[#allocation44_spill] sm:$0xff] %v8046_v17  ;;  %669 = vmatmul.f32.gmra.mxu0 %v249_v49 }
 0x145   : > { %6538 = vmatmul.msk.f32.gmra.mxu1 %vm355_vm0, %v254_v9  ;;  %1087 = vmatmul.f32.gmra.mxu2 %v249_v49 }
 0x146   : > { %6602 = vmatmul.msk.f32.gmra.mxu3 %vm355_vm0, %v254_v9 }
 0x148   : > { %v1040_v33 = vpop.f32.mrf.mxu2 }
 0x149   : > { %v8057_v13 = vadd.f32 %v1249_v38, %v1040_v33  ;;  %v1255_v1 = vpop.f32.mrf.mxu3  ;;  %v8059_v17 = vpop.f32.mrf.mxu0  ;;  %v8070_v38 = vld [vmem:[%s14568_s2 + $0x128] sm:$0xff] }
 0x14a   : > { %15033 = vst [vmem:[#allocation46_spill] sm:$0xff] %v8059_v17  ;;  %v8062_v5 = vpop.f32.mrf.mxu1  ;;  %2392 = vmatpush.msrb.mxu2 %v8070_v38  ;;  %v253_v17 = vld [vmem:[%s7582_s24 + $0x250] sm:$0xff] }
 0x14b   : > { %15032 = vst [vmem:[#allocation45_spill] sm:$0xff] %v8057_v13 }
 0x14c   : > { %15034 = vst [vmem:[#allocation47_spill] sm:$0xff] %v8062_v5  ;;  %672 = vmatmul.f32.gmra.mxu0 %v251_v50 }
 0x14d   : > { %6539 = vmatmul.msk.f32.gmra.mxu1 %vm355_vm0, %v256_v61  ;;  %1090 = vmatmul.f32.gmra.mxu2 %v251_v50  ;;  %v258_v50 = vld [vmem:[%s7582_s24 + $0x278] sm:$0xff] }
 0x14e   : > { %6603 = vmatmul.msk.f32.gmra.mxu3 %vm355_vm0, %v256_v61  ;;  %v8084_v61 = vld [vmem:[%s14568_s2 + $0x58] sm:$0xff] }
 0x14f   : > { %2180 = vmatpush.msrb.mxu0 %v8084_v61 }
 0x150   : > { %v1043_v49 = vpop.f32.mrf.mxu2 }
 0x151   : > { %v8073_v9 = vadd.f32 %v1252_v45, %v1043_v49  ;;  %v1258_v33 = vpop.f32.mrf.mxu3  ;;  %v8075_v5 = vpop.f32.mrf.mxu0 }
 0x152   : > { %15036 = vst [vmem:[#allocation49_spill] sm:$0xff] %v8075_v5  ;;  %v8078_v13 = vpop.f32.mrf.mxu1 }
 0x153   : > { %15035 = vst [vmem:[#allocation48_spill] sm:$0xff] %v8073_v9  ;;  %v255_v9 = vld [vmem:[%s7582_s24 + $0x260] sm:$0xff] }
 0x154   : > { %15037 = vst [vmem:[#allocation50_spill] sm:$0xff] %v8078_v13  ;;  %675 = vmatmul.f32.gmra.mxu0 %v253_v17 }
 0x155   : > { %6540 = vmatmul.msk.f32.gmra.mxu1 %vm355_vm0, %v258_v50  ;;  %1093 = vmatmul.f32.gmra.mxu2 %v253_v17 }
 0x156   : > { %6604 = vmatmul.msk.f32.gmra.mxu3 %vm355_vm0, %v258_v50 }
 0x158   : > { %v1046_v45 = vpop.f32.mrf.mxu2 }
 0x159   : > { %v8089_v49 = vadd.f32 %v1255_v1, %v1046_v45  ;;  %v1261_v13 = vpop.f32.mrf.mxu3  ;;  %v8091_v5 = vpop.f32.mrf.mxu0 }
 0x15a   : > { %15039 = vst [vmem:[#allocation52_spill] sm:$0xff] %v8091_v5  ;;  %v8094_v11 = vpop.f32.mrf.mxu1 }
 0x15b   : > { %15038 = vst [vmem:[#allocation51_spill] sm:$0xff] %v8089_v49  ;;  %v257_v49 = vld [vmem:[%s7582_s24 + $0x270] sm:$0xff] }
 0x15c   : > { %15040 = vst [vmem:[#allocation53_spill] sm:$0xff] %v8094_v11  ;;  %678 = vmatmul.f32.gmra.mxu0 %v255_v9  ;;  %v8110_v11 = vld [vmem:[%s14568_s2 + $0x40] sm:$0xff] }
 0x15d   : > { %6541 = vmatmul.msk.f32.gmra.mxu1 %vm355_vm0, %v260_v42  ;;  %1096 = vmatmul.f32.gmra.mxu2 %v255_v9 }
 0x15e   : > { %6605 = vmatmul.msk.f32.gmra.mxu3 %vm355_vm0, %v260_v42  ;;  %1763 = vmatpush.msrb.mxu1 %v8110_v11 }
 0x160   : > { %v1049_v17 = vpop.f32.mrf.mxu2 }
 0x161   : > { %v8099_v50 = vadd.f32 %v1258_v33, %v1049_v17  ;;  %v1264_v1 = vpop.f32.mrf.mxu3  ;;  %v8101_v45 = vpop.f32.mrf.mxu0 }
 0x162   : > { %15042 = vst [vmem:[#allocation55_spill] sm:$0xff] %v8101_v45  ;;  %v8104_v5 = vpop.f32.mrf.mxu1 }
 0x163   : > { %15041 = vst [vmem:[#allocation54_spill] sm:$0xff] %v8099_v50  ;;  %v264_v50 = vld [vmem:[%s7582_s24 + $0x2a8] sm:$0xff] }
 0x164   : > { %15043 = vst [vmem:[#allocation56_spill] sm:$0xff] %v8104_v5  ;;  %681 = vmatmul.f32.gmra.mxu0 %v257_v49  ;;  %v259_v5 = vld [vmem:[%s7582_s24 + $0x280] sm:$0xff] }
 0x165   : > { %6542 = vmatmul.msk.f32.gmra.mxu1 %vm355_vm0, %v262_v36  ;;  %1099 = vmatmul.f32.gmra.mxu2 %v257_v49 }
 0x166   : > { %6606 = vmatmul.msk.f32.gmra.mxu3 %vm355_vm0, %v262_v36 }
 0x168   : > { %v1052_v42 = vpop.f32.mrf.mxu2 }
 0x169   : > { %v8115_v9 = vadd.f32 %v1261_v13, %v1052_v42  ;;  %v1267_v33 = vpop.f32.mrf.mxu3  ;;  %v8117_v17 = vpop.f32.mrf.mxu0 }
 0x16a   : > { %15045 = vst [vmem:[#allocation58_spill] sm:$0xff] %v8117_v17  ;;  %v8120_v45 = vpop.f32.mrf.mxu1 }
 0x16b   : > { %15044 = vst [vmem:[#allocation57_spill] sm:$0xff] %v8115_v9  ;;  %v261_v9 = vld [vmem:[%s7582_s24 + $0x290] sm:$0xff] }
 0x16c   : > { %15046 = vst [vmem:[#allocation59_spill] sm:$0xff] %v8120_v45  ;;  %684 = vmatmul.f32.gmra.mxu0 %v259_v5  ;;  %v8136_v45 = vld [vmem:[%s14568_s2 + $0x48] sm:$0xff] }
 0x16d   : > { %6543 = vmatmul.msk.f32.gmra.mxu1 %vm355_vm0, %v264_v50  ;;  %1102 = vmatmul.f32.gmra.mxu2 %v259_v5 }
 0x16e   : > { %6607 = vmatmul.msk.f32.gmra.mxu3 %vm355_vm0, %v264_v50  ;;  %2181 = vmatpush.msrb.mxu0 %v8136_v45 }
 0x170   : > { %v1055_v49 = vpop.f32.mrf.mxu2 }
 0x171   : > { %v8125_v36 = vadd.f32 %v1264_v1, %v1055_v49  ;;  %v1270_v13 = vpop.f32.mrf.mxu3  ;;  %v8127_v42 = vpop.f32.mrf.mxu0 }
 0x172   : > { %15048 = vst [vmem:[#allocation61_spill] sm:$0xff] %v8127_v42  ;;  %v8130_v17 = vpop.f32.mrf.mxu1 }
 0x173   : > { %15047 = vst [vmem:[#allocation60_spill] sm:$0xff] %v8125_v36  ;;  %v268_v36 = vld [vmem:[%s7582_s24 + $0x2c8] sm:$0xff] }
 0x174   : > { %15049 = vst [vmem:[#allocation62_spill] sm:$0xff] %v8130_v17  ;;  %687 = vmatmul.f32.gmra.mxu0 %v261_v9  ;;  %v263_v17 = vld [vmem:[%s7582_s24 + $0x2a0] sm:$0xff] }
 0x175   : > { %6544 = vmatmul.msk.f32.gmra.mxu1 %vm355_vm0, %v266_v59  ;;  %1105 = vmatmul.f32.gmra.mxu2 %v261_v9 }
 0x176   : > { %6608 = vmatmul.msk.f32.gmra.mxu3 %vm355_vm0, %v266_v59  ;;  %v8154_v59 = vld [vmem:[%s14568_s2 + $0x110] sm:$0xff] }
 0x177   : > { %1975 = vmatpush.msrb.mxu3 %v8154_v59 }
 0x178   : > { %v1058_v5 = vpop.f32.mrf.mxu2 }
 0x179   : > { %v8141_v50 = vadd.f32 %v1267_v33, %v1058_v5  ;;  %v1273_v1 = vpop.f32.mrf.mxu3  ;;  %v8143_v49 = vpop.f32.mrf.mxu0 }
 0x17a   : > { %15051 = vst [vmem:[#allocation64_spill] sm:$0xff] %v8143_v49  ;;  %v8146_v42 = vpop.f32.mrf.mxu1  ;;  %v265_v49 = vld [vmem:[%s7582_s24 + $0x2b0] sm:$0xff] }
 0x17b   : > { %15050 = vst [vmem:[#allocation63_spill] sm:$0xff] %v8141_v50 }
 0x17c   : > { %15052 = vst [vmem:[#allocation65_spill] sm:$0xff] %v8146_v42  ;;  %690 = vmatmul.f32.gmra.mxu0 %v263_v17 }
 0x17d   : > { %6545 = vmatmul.msk.f32.gmra.mxu1 %vm355_vm0, %v268_v36  ;;  %1108 = vmatmul.f32.gmra.mxu2 %v263_v17  ;;  %v270_v17 = vld [vmem:[%s7582_s24 + $0x2d8] sm:$0xff] }
 0x17e   : > { %6609 = vmatmul.msk.f32.gmra.mxu3 %vm355_vm0, %v268_v36  ;;  %v8168_v36 = vld [vmem:[%s14568_s2 + $0x30] sm:$0xff] }
 0x17f   : > { %1764 = vmatpush.msrb.mxu1 %v8168_v36 }
 0x180   : > { %v1061_v9 = vpop.f32.mrf.mxu2 }
 0x181   : > { %v8157_v33 = vadd.f32 %v1270_v13, %v1061_v9  ;;  %v1276_v5 = vpop.f32.mrf.mxu3  ;;  %v8159_v42 = vpop.f32.mrf.mxu0 }
 0x182   : > { %15054 = vst [vmem:[#allocation67_spill] sm:$0xff] %v8159_v42  ;;  %v8162_v50 = vpop.f32.mrf.mxu1 }
 0x183   : > { %15053 = vst [vmem:[#allocation66_spill] sm:$0xff] %v8157_v33  ;;  %v267_v33 = vld [vmem:[%s7582_s24 + $0x2c0] sm:$0xff] }
 0x184   : > { %15055 = vst [vmem:[#allocation68_spill] sm:$0xff] %v8162_v50  ;;  %693 = vmatmul.f32.gmra.mxu0 %v265_v49 }
 0x185   : > { %6546 = vmatmul.msk.f32.gmra.mxu1 %vm355_vm0, %v270_v17  ;;  %1111 = vmatmul.f32.gmra.mxu2 %v265_v49 }
 0x186   : > { %6610 = vmatmul.msk.f32.gmra.mxu3 %vm355_vm0, %v270_v17 }
 0x188   : > { %v1064_v13 = vpop.f32.mrf.mxu2 }
 0x189   : > { %v8173_v9 = vadd.f32 %v1273_v1, %v1064_v13  ;;  %v1279_v42 = vpop.f32.mrf.mxu3  ;;  %v8175_v50 = vpop.f32.mrf.mxu0  ;;  %v8186_v1 = vld [vmem:[%s14568_s2 + $0x118] sm:$0xff] }
 0x18a   : > { %15057 = vst [vmem:[#allocation70_spill] sm:$0xff] %v8175_v50  ;;  %v8178_v22 = vpop.f32.mrf.mxu1  ;;  %2393 = vmatpush.msrb.mxu2 %v8186_v1  ;;  %v269_v50 = vld [vmem:[%s7582_s24 + $0x2d0] sm:$0xff] }
 0x18b   : > { %15056 = vst [vmem:[#allocation69_spill] sm:$0xff] %v8173_v9 }
 0x18c   : > { %15058 = vst [vmem:[#allocation71_spill] sm:$0xff] %v8178_v22  ;;  %696 = vmatmul.f32.gmra.mxu0 %v267_v33 }
 0x18d   : > { %6547 = vmatmul.msk.f32.gmra.mxu1 %vm355_vm0, %v272_v18  ;;  %1114 = vmatmul.f32.gmra.mxu2 %v267_v33  ;;  %v274_v33 = vld [vmem:[%s7582_s24 + $0x2f8] sm:$0xff] }
 0x18e   : > { %6611 = vmatmul.msk.f32.gmra.mxu3 %vm355_vm0, %v272_v18  ;;  %v8200_v18 = vld [vmem:[%s14568_s2 + $0x38] sm:$0xff] }
 0x18f   : > { %2182 = vmatpush.msrb.mxu0 %v8200_v18 }
 0x190   : > { %v1067_v49 = vpop.f32.mrf.mxu2 }
 0x191   : > { %v8189_v17 = vadd.f32 %v1276_v5, %v1067_v49  ;;  %v1282_v13 = vpop.f32.mrf.mxu3  ;;  %v8191_v22 = vpop.f32.mrf.mxu0 }
 0x192   : > { %15060 = vst [vmem:[#allocation73_spill] sm:$0xff] %v8191_v22  ;;  %v8194_v9 = vpop.f32.mrf.mxu1 }
 0x193   : > { %15059 = vst [vmem:[#allocation72_spill] sm:$0xff] %v8189_v17  ;;  %v271_v17 = vld [vmem:[%s7582_s24 + $0x2e0] sm:$0xff] }
 0x194   : > { %15061 = vst [vmem:[#allocation74_spill] sm:$0xff] %v8194_v9  ;;  %699 = vmatmul.f32.gmra.mxu0 %v269_v50 }
 0x195   : > { %6548 = vmatmul.msk.f32.gmra.mxu1 %vm355_vm0, %v274_v33  ;;  %1117 = vmatmul.f32.gmra.mxu2 %v269_v50 }
 0x196   : > { %6612 = vmatmul.msk.f32.gmra.mxu3 %vm355_vm0, %v274_v33 }
 0x198   : > { %v1070_v5 = vpop.f32.mrf.mxu2 }
 0x199   : > { %v8205_v49 = vadd.f32 %v1279_v42, %v1070_v5  ;;  %v1285_v9 = vpop.f32.mrf.mxu3  ;;  %v8207_v22 = vpop.f32.mrf.mxu0 }
 0x19a   : > { %15063 = vst [vmem:[#allocation76_spill] sm:$0xff] %v8207_v22  ;;  %v8210_v47 = vpop.f32.mrf.mxu1 }
 0x19b   : > { %15062 = vst [vmem:[#allocation75_spill] sm:$0xff] %v8205_v49  ;;  %v273_v49 = vld [vmem:[%s7582_s24 + $0x2f0] sm:$0xff] }
 0x19c   : > { %15064 = vst [vmem:[#allocation77_spill] sm:$0xff] %v8210_v47  ;;  %702 = vmatmul.f32.gmra.mxu0 %v271_v17  ;;  %v8226_v47 = vld [vmem:[%s14568_s2 + $0x20] sm:$0xff] }
 0x19d   : > { %6549 = vmatmul.msk.f32.gmra.mxu1 %vm355_vm0, %v276_v7  ;;  %1120 = vmatmul.f32.gmra.mxu2 %v271_v17 }
 0x19e   : > { %6613 = vmatmul.msk.f32.gmra.mxu3 %vm355_vm0, %v276_v7  ;;  %1765 = vmatpush.msrb.mxu1 %v8226_v47 }
 0x1a0   : > { %v1073_v50 = vpop.f32.mrf.mxu2 }
 0x1a1   : > { %v8215_v33 = vadd.f32 %v1282_v13, %v1073_v50  ;;  %v1288_v42 = vpop.f32.mrf.mxu3  ;;  %v8217_v5 = vpop.f32.mrf.mxu0 }
 0x1a2   : > { %15066 = vst [vmem:[#allocation79_spill] sm:$0xff] %v8217_v5  ;;  %v8220_v22 = vpop.f32.mrf.mxu1 }
 0x1a3   : > { %15065 = vst [vmem:[#allocation78_spill] sm:$0xff] %v8215_v33  ;;  %v280_v33 = vld [vmem:[%s7582_s24 + $0x328] sm:$0xff] }
 0x1a4   : > { %15067 = vst [vmem:[#allocation80_spill] sm:$0xff] %v8220_v22  ;;  %705 = vmatmul.f32.gmra.mxu0 %v273_v49  ;;  %v275_v22 = vld [vmem:[%s7582_s24 + $0x300] sm:$0xff] }
 0x1a5   : > { %6550 = vmatmul.msk.f32.gmra.mxu1 %vm355_vm0, %v278_v3  ;;  %1123 = vmatmul.f32.gmra.mxu2 %v273_v49 }
 0x1a6   : > { %6614 = vmatmul.msk.f32.gmra.mxu3 %vm355_vm0, %v278_v3 }
 0x1a8   : > { %v1076_v7 = vpop.f32.mrf.mxu2 }
 0x1a9   : > { %v8231_v17 = vadd.f32 %v1285_v9, %v1076_v7  ;;  %v1291_v13 = vpop.f32.mrf.mxu3  ;;  %v8233_v50 = vpop.f32.mrf.mxu0 }
 0x1aa   : > { %15069 = vst [vmem:[#allocation82_spill] sm:$0xff] %v8233_v50  ;;  %v8236_v5 = vpop.f32.mrf.mxu1 }
 0x1ab   : > { %15068 = vst [vmem:[#allocation81_spill] sm:$0xff] %v8231_v17  ;;  %v277_v17 = vld [vmem:[%s7582_s24 + $0x310] sm:$0xff] }
 0x1ac   : > { %15070 = vst [vmem:[#allocation83_spill] sm:$0xff] %v8236_v5  ;;  %708 = vmatmul.f32.gmra.mxu0 %v275_v22  ;;  %v8252_v5 = vld [vmem:[%s14568_s2 + $0x28] sm:$0xff] }
 0x1ad   : > { %6551 = vmatmul.msk.f32.gmra.mxu1 %vm355_vm0, %v280_v33  ;;  %1126 = vmatmul.f32.gmra.mxu2 %v275_v22 }
 0x1ae   : > { %6615 = vmatmul.msk.f32.gmra.mxu3 %vm355_vm0, %v280_v33  ;;  %2183 = vmatpush.msrb.mxu0 %v8252_v5 }
 0x1b0   : > { %v1079_v49 = vpop.f32.mrf.mxu2 }
 0x1b1   : > { %v8241_v3 = vadd.f32 %v1288_v42, %v1079_v49  ;;  %v1294_v9 = vpop.f32.mrf.mxu3  ;;  %v8243_v7 = vpop.f32.mrf.mxu0 }
 0x1b2   : > { %15072 = vst [vmem:[#allocation85_spill] sm:$0xff] %v8243_v7  ;;  %v8246_v50 = vpop.f32.mrf.mxu1 }
 0x1b3   : > { %15071 = vst [vmem:[#allocation84_spill] sm:$0xff] %v8241_v3  ;;  %v284_v3 = vld [vmem:[%s7582_s24 + $0x348] sm:$0xff] }
 0x1b4   : > { %15073 = vst [vmem:[#allocation86_spill] sm:$0xff] %v8246_v50  ;;  %711 = vmatmul.f32.gmra.mxu0 %v277_v17  ;;  %v279_v50 = vld [vmem:[%s7582_s24 + $0x320] sm:$0xff] }
 0x1b5   : > { %6552 = vmatmul.msk.f32.gmra.mxu1 %vm355_vm0, %v282_v35  ;;  %1129 = vmatmul.f32.gmra.mxu2 %v277_v17 }
 0x1b6   : > { %6616 = vmatmul.msk.f32.gmra.mxu3 %vm355_vm0, %v282_v35  ;;  %v1544_v35 = vld [vmem:[%s14568_s2 + $0x100] sm:$0xff] }
 0x1b7   : > { %1976 = vmatpush.msrb.mxu3 %v1544_v35 }
 0x1b8   : > { %v1082_v22 = vpop.f32.mrf.mxu2 }
 0x1b9   : > { %v8257_v33 = vadd.f32 %v1291_v13, %v1082_v22  ;;  %v1297_v42 = vpop.f32.mrf.mxu3  ;;  %v8259_v49 = vpop.f32.mrf.mxu0  ;;  %v7177_v13 = vld [vmem:[%s14568_s2 + $0x170] sm:$0xff] }
 0x1ba   : > { %15075 = vst [vmem:[#allocation88_spill] sm:$0xff] %v8259_v49  ;;  %v8262_v7 = vpop.f32.mrf.mxu1  ;;  %3381 = vmatpush.msra.mxu3 %v7177_v13  ;;  %v8287_v13 = vld [vmem:[%s14568_s2 + $0x10] sm:$0xff] }
 0x1bb   : > { %15074 = vst [vmem:[#allocation87_spill] sm:$0xff] %v8257_v33  ;;  %v281_v33 = vld [vmem:[%s7582_s24 + $0x330] sm:$0xff]  ;;  %1766 = vmatpush.msrb.mxu1 %v8287_v13 }
 0x1bc   : > { %15076 = vst [vmem:[#allocation89_spill] sm:$0xff] %v8262_v7  ;;  %714 = vmatmul.f32.gmra.mxu0 %v279_v50  ;;  %3382 = vmatpush.msra.mxu3 %v7178_v55 }
 0x1bd   : > { %6553 = vmatmul.msk.f32.gmra.mxu1 %vm355_vm0, %v284_v3  ;;  %1132 = vmatmul.f32.gmra.mxu2 %v279_v50 }
 0x1be   : > { %6617 = vmatmul.msk.f32.gmra.mxu3 %vm355_vm0, %v284_v3  ;;  %v286_v3 = vld [vmem:[%s7582_s24 + $0x358] sm:$0xff] }
 0x1bf   : > { %3383 = vmatpush.msra.mxu3 %v7733_v20  ;;  %v8308_v20 = vld [vmem:[%s14568_s2 + $0x108] sm:$0xff] }
 0x1c0   : > { %v1085_v17 = vpop.f32.mrf.mxu2  ;;  %2394 = vmatpush.msrb.mxu2 %v8308_v20 }
 0x1c1   : > { %v8273_v22 = vadd.f32 %v1294_v9, %v1085_v17  ;;  %v1300_v7 = vpop.f32.mrf.mxu3  ;;  %v8275_v49 = vpop.f32.mrf.mxu0  ;;  %3384 = vmatpush.msra.mxu3 %v7809_v58 }
 0x1c2   : > { %15078 = vst [vmem:[#allocation91_spill] sm:$0xff] %v8275_v49  ;;  %v8278_v50 = vpop.f32.mrf.mxu1  ;;  %v283_v49 = vld [vmem:[%s7582_s24 + $0x340] sm:$0xff] }
 0x1c3   : > { %15077 = vst [vmem:[#allocation90_spill] sm:$0xff] %v8273_v22  ;;  %3385 = vmatpush.msra.mxu3 %v7922_v15  ;;  %v8315_v15 = vld [vmem:[%s14568_s2 + $0x178] sm:$0xff] }
 0x1c4   : > { %15079 = vst [vmem:[#allocation92_spill] sm:$0xff] %v8278_v50  ;;  %717 = vmatmul.f32.gmra.mxu0 %v281_v33  ;;  %3799 = vmatpush.msra.mxu2 %v8315_v15 }
 0x1c5   : > { %6554 = vmatmul.msk.f32.gmra.mxu1 %vm355_vm0, %v286_v3  ;;  %1135 = vmatmul.f32.gmra.mxu2 %v281_v33 }
 0x1c6   : > { %6618 = vmatmul.msk.f32.gmra.mxu3 %vm355_vm0, %v286_v3 }
 0x1c7   : > { %3386 = vmatpush.msra.mxu3 %v8038_v27  ;;  %v8330_v27 = vld [vmem:[%s14568_s2 + $0x168] sm:$0xff] }
 0x1c8   : > { %v1088_v9 = vpop.f32.mrf.mxu2  ;;  %3800 = vmatpush.msra.mxu2 %v8330_v27 }
 0x1c9   : > { %v8293_v17 = vadd.f32 %v1297_v42, %v1088_v9  ;;  %v1303_v50 = vpop.f32.mrf.mxu3  ;;  %v8295_v55 = vpop.f32.mrf.mxu0  ;;  %3387 = vmatpush.msra.mxu3 %v8154_v59  ;;  %v290_v9 = vld [vmem:[%s7582_s24 + $0x378] sm:$0xff] }
 0x1ca   : > { %v8299_v22 = vpop.f32.mrf.mxu1  ;;  %3801 = vmatpush.msra.mxu2 %v7750_v26 }
 0x1cb   : > { %15080 = vst [vmem:[#allocation93_spill] sm:$0xff] %v8293_v17  ;;  %3388 = vmatpush.msra.mxu3 %v1544_v35  ;;  %v287_v35 = vld [vmem:[%s7582_s24 + $0x360] sm:$0xff] }
 0x1cc   : > { %15081 = vst [vmem:[#allocation94_spill] sm:$0xff] %v8299_v22  ;;  %720 = vmatmul.f32.gmra.mxu0 %v283_v49  ;;  %3802 = vmatpush.msra.mxu2 %v7841_v10 }
 0x1cd   : > { %6555 = vmatmul.msk.f32.gmra.mxu1 %vm355_vm0, %v288_v51  ;;  %1138 = vmatmul.f32.gmra.mxu2 %v283_v49  ;;  %v285_v49 = vld [vmem:[%s7582_s24 + $0x350] sm:$0xff] }
 0x1ce   : > { %6619 = vmatmul.msk.f32.gmra.mxu3 %vm355_vm0, %v288_v51  ;;  %3803 = vmatpush.msra.mxu2 %v7954_v53 }
 0x1d0   : > { %v1091_v58 = vpop.f32.mrf.mxu2  ;;  %3804 = vmatpush.msra.mxu2 %v8070_v38 }
 0x1d1   : > { %v8318_v33 = vadd.f32 %v1300_v7, %v1091_v58  ;;  %v1306_v51 = vpop.f32.mrf.mxu3  ;;  %v8320_v42 = vpop.f32.mrf.mxu0  ;;  %v8336_v7 = vld [vmem:[%s14568_s2 + $0x18] sm:$0xff] }
 0x1d2   : > { %15083 = vst [vmem:[#allocation96_spill] sm:$0xff] %v8320_v42  ;;  %v8324_v3 = vpop.f32.mrf.mxu1  ;;  %2184 = vmatpush.msrb.mxu0 %v8336_v7  ;;  %3805 = vmatpush.msra.mxu2 %v8186_v1  ;;  %v291_v42 = vld [vmem:[%s7582_s24 + $0x380] sm:$0xff] }
 0x1d3   : > { %15082 = vst [vmem:[#allocation95_spill] sm:$0xff] %v8318_v33  ;;  %v7183_v33 = vld [vmem:[%s14568_s2 + $0xd0] sm:$0xff] }
 0x1d4   : > { %15084 = vst [vmem:[#allocation97_spill] sm:$0xff] %v8324_v3  ;;  %723 = vmatmul.f32.gmra.mxu0 %v285_v49  ;;  %3806 = vmatpush.msra.mxu2 %v8308_v20 }
 0x1d5   : > { %6556 = vmatmul.msk.f32.gmra.mxu1 %vm355_vm0, %v290_v9  ;;  %1141 = vmatmul.f32.gmra.mxu2 %v285_v49  ;;  %v292_v49 = vld [vmem:[%s7582_s24 + $0x388] sm:$0xff] }
 0x1d6   : > { %6620 = vmatmul.msk.f32.gmra.mxu3 %vm355_vm0, %v290_v9 }
 0x1d8   : > { %v1094_v59 = vpop.f32.mrf.mxu2 }
 0x1d9   : > { %v8343_v58 = vadd.f32 %v1303_v50, %v1094_v59  ;;  %v1309_v3 = vpop.f32.mrf.mxu3  ;;  %v8345_v22 = vpop.f32.mrf.mxu0 }
 0x1da   : > { %15086 = vst [vmem:[#allocation99_spill] sm:$0xff] %v8345_v22  ;;  %v8349_v26 = vpop.f32.mrf.mxu1 }
 0x1db   : > { %15085 = vst [vmem:[#allocation98_spill] sm:$0xff] %v8343_v58  ;;  %v294_v58 = vld [vmem:[%s7582_s24 + $0x398] sm:$0xff] }
 0x1dc   : > { %15087 = vst [vmem:[#allocation100_spill] sm:$0xff] %v8349_v26  ;;  %726 = vmatmul.f32.gmra.mxu0 %v287_v35  ;;  %v289_v26 = vld [vmem:[%s7582_s24 + $0x370] sm:$0xff] }
 0x1dd   : > { %6557 = vmatmul.msk.f32.gmra.mxu1 %vm355_vm0, %v292_v49  ;;  %1144 = vmatmul.f32.gmra.mxu2 %v287_v35  ;;  %v8368_v35 = vld [vmem:[%s14568_s2] sm:$0xff] }
 0x1de   : > { %6621 = vmatmul.msk.f32.gmra.mxu3 %vm355_vm0, %v292_v49  ;;  %1767 = vmatpush.msrb.mxu1 %v8368_v35 }
 0x1e0   : > { %v1097_v10 = vpop.f32.mrf.mxu2 }
 0x1e1   : > { %v8357_v50 = vadd.f32 %v1306_v51, %v1097_v10  ;;  %v1312_v9 = vpop.f32.mrf.mxu3  ;;  %v8359_v59 = vpop.f32.mrf.mxu0  ;;  %v7181_v51 = vld [vmem:[%s14568_s2 + $0xf0] sm:$0xff]  ;;  %v7182_v10 = vld [vmem:[%s14568_s2 + $0xe0] sm:$0xff] }
 0x1e2   : > { %15089 = vst [vmem:[#allocation102_spill] sm:$0xff] %v8359_v59  ;;  %v8362_v22 = vpop.f32.mrf.mxu1  ;;  %3164 = vmatpush.msra.mxu1 %v7181_v51  ;;  %v7185_v51 = vld [vmem:[%s14568_s2 + $0xb0] sm:$0xff] }
 0x1e3   : > { %15088 = vst [vmem:[#allocation101_spill] sm:$0xff] %v8357_v50 }
 0x1e4   : > { %15090 = vst [vmem:[#allocation103_spill] sm:$0xff] %v8362_v22  ;;  %729 = vmatmul.f32.gmra.mxu0 %v289_v26  ;;  %3165 = vmatpush.msra.mxu1 %v7182_v10 }
 0x1e5   : > { %6558 = vmatmul.msk.f32.gmra.mxu1 %vm355_vm0, %v294_v58  ;;  %1147 = vmatmul.f32.gmra.mxu2 %v289_v26 }
 0x1e6   : > { %6622 = vmatmul.msk.f32.gmra.mxu3 %vm355_vm0, %v294_v58  ;;  %v296_v58 = vld [vmem:[%s7582_s24 + $0x3a8] sm:$0xff]  ;;  %3166 = vmatpush.msra.mxu1 %v7183_v33  ;;  %v7186_v33 = vld [vmem:[%s14568_s2 + $0xa0] sm:$0xff] }
 0x1e8   : > { %v1100_v49 = vpop.f32.mrf.mxu2 }
 0x1e9   : > { %v8379_v22 = vadd.f32 %v1309_v3, %v1100_v49  ;;  %v1315_v59 = vpop.f32.mrf.mxu3  ;;  %v8381_v50 = vpop.f32.mrf.mxu0  ;;  %v7184_v3 = vld [vmem:[%s14568_s2 + $0xc0] sm:$0xff] }
 0x1ea   : > { %15092 = vst [vmem:[#allocation105_spill] sm:$0xff] %v8381_v50  ;;  %v8384_v26 = vpop.f32.mrf.mxu1  ;;  %3167 = vmatpush.msra.mxu1 %v7184_v3  ;;  %v293_v50 = vld [vmem:[%s7582_s24 + $0x390] sm:$0xff] }
 0x1eb   : > { %15091 = vst [vmem:[#allocation104_spill] sm:$0xff] %v8379_v22 }
 0x1ec   : > { %15093 = vst [vmem:[#allocation106_spill] sm:$0xff] %v8384_v26  ;;  %732 = vmatmul.f32.gmra.mxu0 %v291_v42  ;;  %3168 = vmatpush.msra.mxu1 %v7185_v51  ;;  %v8413_v51 = vld [vmem:[%s14568_s2 + $0x8] sm:$0xff] }
 0x1ed   : > { %6559 = vmatmul.msk.f32.gmra.mxu1 %vm355_vm0, %v296_v58  ;;  %1150 = vmatmul.f32.gmra.mxu2 %v291_v42 }
 0x1ee   : > { %6623 = vmatmul.msk.f32.gmra.mxu3 %vm355_vm0, %v296_v58  ;;  %3169 = vmatpush.msra.mxu1 %v7186_v33  ;;  %v298_v58 = vld [vmem:[%s7582_s24 + $0x3b8] sm:$0xff] }
 0x1ef   : > { %2185 = vmatpush.msrb.mxu0 %v8413_v51 }
 0x1f0   : > { %v1103_v49 = vpop.f32.mrf.mxu2  ;;  %3170 = vmatpush.msra.mxu1 %v7823_v2  ;;  %v8422_v2 = vld [vmem:[%s14568_s2 + $0xf8] sm:$0xff] }
 0x1f1   : > { %v8401_v10 = vadd.f32 %v1312_v9, %v1103_v49  ;;  %v1318_v26 = vpop.f32.mrf.mxu3  ;;  %v8403_v3 = vpop.f32.mrf.mxu0  ;;  %3582 = vmatpush.msra.mxu0 %v8422_v2 }
 0x1f2   : > { %15095 = vst [vmem:[#allocation108_spill] sm:$0xff] %v8403_v3  ;;  %v8406_v42 = vpop.f32.mrf.mxu1  ;;  %3171 = vmatpush.msra.mxu1 %v7878_v37  ;;  %v300_v3 = vld [vmem:[%s7582_s24 + $0x3c8] sm:$0xff] }
 0x1f3   : > { %15094 = vst [vmem:[#allocation107_spill] sm:$0xff] %v8401_v10 }
 0x1f4   : > { %15096 = vst [vmem:[#allocation109_spill] sm:$0xff] %v8406_v42  ;;  %735 = vmatmul.f32.gmra.mxu0 %v293_v50  ;;  %3172 = vmatpush.msra.mxu1 %v7936_v31  ;;  %v8444_v31 = vld [vmem:[%s14568_s2 + $0xd8] sm:$0xff] }
 0x1f5   : > { %6560 = vmatmul.msk.f32.gmra.mxu1 %vm355_vm0, %v298_v58  ;;  %1153 = vmatmul.f32.gmra.mxu2 %v293_v50  ;;  %v295_v50 = vld [vmem:[%s7582_s24 + $0x3a0] sm:$0xff] }
 0x1f6   : > { %6624 = vmatmul.msk.f32.gmra.mxu3 %vm355_vm0, %v298_v58  ;;  %v8434_v58 = vld [vmem:[%s14568_s2 + $0xe8] sm:$0xff]  ;;  %3173 = vmatpush.msra.mxu1 %v7994_v57 }
 0x1f7   : > { %3583 = vmatpush.msra.mxu0 %v8434_v58  ;;  %v8453_v57 = vld [vmem:[%s14568_s2 + $0xc8] sm:$0xff] }
 0x1f8   : > { %v1106_v9 = vpop.f32.mrf.mxu2  ;;  %3174 = vmatpush.msra.mxu1 %v8052_v28  ;;  %v8460_v28 = vld [vmem:[%s14568_s2 + $0xb8] sm:$0xff] }
 0x1f9   : > { %v8426_v49 = vadd.f32 %v1315_v59, %v1106_v9  ;;  %v1321_v37 = vpop.f32.mrf.mxu3  ;;  %v8428_v33 = vpop.f32.mrf.mxu0  ;;  %3584 = vmatpush.msra.mxu0 %v8444_v31 }
 0x1fa   : > { %15098 = vst [vmem:[#allocation111_spill] sm:$0xff] %v8428_v33  ;;  %v8438_v42 = vpop.f32.mrf.mxu1  ;;  %3175 = vmatpush.msra.mxu1 %v8110_v11  ;;  %v8475_v11 = vld [vmem:[%s14568_s2 + $0xa8] sm:$0xff] }
 0x1fb   : > { %15097 = vst [vmem:[#allocation110_spill] sm:$0xff] %v8426_v49  ;;  %3585 = vmatpush.msra.mxu0 %v8453_v57  ;;  %v302_v49 = vld [vmem:[%s7582_s24 + $0x3d8] sm:$0xff] }
 0x1fc   : > { %15099 = vst [vmem:[#allocation112_spill] sm:$0xff] %v8438_v42  ;;  %738 = vmatmul.f32.gmra.mxu0 %v295_v50  ;;  %v297_v42 = vld [vmem:[%s7582_s24 + $0x3b0] sm:$0xff]  ;;  %3176 = vmatpush.msra.mxu1 %v8168_v36  ;;  %v8484_v36 = vld [vmem:[%s14568_s2 + $0x98] sm:$0xff] }
 0x1fd   : > { %6561 = vmatmul.msk.f32.gmra.mxu1 %vm355_vm0, %v300_v3  ;;  %1156 = vmatmul.f32.gmra.mxu2 %v295_v50 }
 0x1fe   : > { %6625 = vmatmul.msk.f32.gmra.mxu3 %vm355_vm0, %v300_v3  ;;  %3586 = vmatpush.msra.mxu0 %v8460_v28 }
 0x1ff   : > { %3177 = vmatpush.msra.mxu1 %v8226_v47 }
 0x200   : > { %v1109_v59 = vpop.f32.mrf.mxu2  ;;  %3587 = vmatpush.msra.mxu0 %v8475_v11 }
 0x201   : > { %v8463_v9 = vadd.f32 %v1318_v26, %v1109_v59  ;;  %v1324_v3 = vpop.f32.mrf.mxu3  ;;  %v8465_v50 = vpop.f32.mrf.mxu0  ;;  %3178 = vmatpush.msra.mxu1 %v8287_v13 }
 0x202   : > { %15101 = vst [vmem:[#allocation114_spill] sm:$0xff] %v8465_v50  ;;  %v8469_v33 = vpop.f32.mrf.mxu1  ;;  %3588 = vmatpush.msra.mxu0 %v8484_v36  ;;  %v304_v50 = vld [vmem:[%s7582_s24 + $0x3e8] sm:$0xff] }
 0x203   : > { %15100 = vst [vmem:[#allocation113_spill] sm:$0xff] %v8463_v9  ;;  %3179 = vmatpush.msra.mxu1 %v8368_v35 }
 0x204   : > { %15102 = vst [vmem:[#allocation115_spill] sm:$0xff] %v8469_v33  ;;  %741 = vmatmul.f32.gmra.mxu0 %v297_v42 }
 0x205   : > { %6562 = vmatmul.msk.f32.gmra.mxu1 %vm355_vm0, %v302_v49  ;;  %1159 = vmatmul.f32.gmra.mxu2 %v297_v42  ;;  %v299_v42 = vld [vmem:[%s7582_s24 + $0x3c0] sm:$0xff] }
 0x206   : > { %6626 = vmatmul.msk.f32.gmra.mxu3 %vm355_vm0, %v302_v49  ;;  %3589 = vmatpush.msra.mxu0 %v7904_v63 }
 0x208   : > { %v1112_v26 = vpop.f32.mrf.mxu2  ;;  %3590 = vmatpush.msra.mxu0 %v7968_v24 }
 0x209   : > { %v8489_v47 = vadd.f32 %v1321_v37, %v1112_v26  ;;  %v1327_v59 = vpop.f32.mrf.mxu3  ;;  %v8491_v33 = vpop.f32.mrf.mxu0  ;;  %v301_v26 = vld [vmem:[%s7582_s24 + $0x3d0] sm:$0xff] }
 0x20a   : > { %15104 = vst [vmem:[#allocation117_spill] sm:$0xff] %v8491_v33  ;;  %v8495_v49 = vpop.f32.mrf.mxu1  ;;  %3591 = vmatpush.msra.mxu0 %v8020_v19  ;;  %v306_v33 = vld [vmem:[%s7582_s24 + $0x3f8] sm:$0xff] }
 0x20b   : > { %15103 = vst [vmem:[#allocation116_spill] sm:$0xff] %v8489_v47  ;;  %v7195_v47 = vld [vmem:[%s7582_s24 + $0x8] sm:$0xff] }
 0x20c   : > { %15105 = vst [vmem:[#allocation118_spill] sm:$0xff] %v8495_v49  ;;  %744 = vmatmul.f32.gmra.mxu0 %v299_v42 }
 0x20d   : > { %6563 = vmatmul.msk.f32.gmra.mxu1 %vm355_vm0, %v304_v50  ;;  %1162 = vmatmul.f32.gmra.mxu2 %v299_v42 }
 0x20e   : > { %6627 = vmatmul.msk.f32.gmra.mxu3 %vm355_vm0, %v304_v50  ;;  %3592 = vmatpush.msra.mxu0 %v8084_v61 }
 0x210   : > { %v1115_v63 = vpop.f32.mrf.mxu2  ;;  %3593 = vmatpush.msra.mxu0 %v8136_v45 }
 0x211   : > { %v8503_v13 = vadd.f32 %v1324_v3, %v1115_v63  ;;  %v1330_v35 = vpop.f32.mrf.mxu3  ;;  %v8505_v37 = vpop.f32.mrf.mxu0  ;;  %v8517_v3 = vadd.f32 %v7760_v30, %v7775_v39  ;;  %v1385_v30 = vmul.f32 %v7195_v47, %v7783_v44  ;;  %v8536_v39 = vadd.f32 %v7766_v34, %v7785_v46  ;;  %v7196_v34 = vld [vmem:[%s7582_s24 + $0x10] sm:$0xff] }
 0x212   : > { %15107 = vst [vmem:[#allocation120_spill] sm:$0xff] %v8505_v37  ;;  %v8508_v49 = vpop.f32.mrf.mxu1  ;;  %3594 = vmatpush.msra.mxu0 %v8200_v18  ;;  %v303_v37 = vld [vmem:[%s7582_s24 + $0x3e0] sm:$0xff] }
 0x213   : > { %15106 = vst [vmem:[#allocation119_spill] sm:$0xff] %v8503_v13  ;;  %v1386_v46 = vmul.f32 %v7196_v34, %v8536_v39 }
 0x214   : > { %15108 = vst [vmem:[#allocation121_spill] sm:$0xff] %v8508_v49  ;;  %747 = vmatmul.f32.gmra.mxu0 %v301_v26 }
 0x215   : > { %6564 = vmatmul.msk.f32.gmra.mxu1 %vm355_vm0, %v306_v33  ;;  %1165 = vmatmul.f32.gmra.mxu2 %v301_v26  ;;  %15109 = vst [vmem:[#allocation122_spill] sm:$0xff] %v8517_v3 }
 0x216   : > { %6628 = vmatmul.msk.f32.gmra.mxu3 %vm355_vm0, %v306_v33  ;;  %3595 = vmatpush.msra.mxu0 %v8252_v5  ;;  %v7194_v33 = vld [vmem:[%s7582_s24] sm:$0xff]  ;;  %15111 = vst [vmem:[#allocation124_spill] sm:$0xff] %v8536_v39 }
 0x217   : > { %v1384_v26 = vmul.f32 %v7194_v33, %v8517_v3 }
 0x218   : > { %v1118_v50 = vpop.f32.mrf.mxu2  ;;  %3596 = vmatpush.msra.mxu0 %v8336_v7 }
 0x219   : > { %v8520_v42 = vadd.f32 %v1327_v59, %v1118_v50  ;;  %v1333_v63 = vpop.f32.mrf.mxu3  ;;  %v8522_v49 = vpop.f32.mrf.mxu0 }
 0x21a   : > { %v8525_v13 = vpop.f32.mrf.mxu1  ;;  %3597 = vmatpush.msra.mxu0 %v8413_v51 }
 0x21b   : > { %15110 = vst [vmem:[#allocation123_spill] sm:$0xff] %v8520_v42 }
 0x21c   : > { %750 = vmatmul.f32.gmra.mxu0 %v303_v37 }
 0x21d   : > { %1168 = vmatmul.f32.gmra.mxu2 %v303_v37  ;;  %1768 = vmatmul.f32.vlgmr.msrb.gmra.mxu1 %v1384_v26  ;;  %v305_v37 = vld [vmem:[%s7582_s24 + $0x3f0] sm:$0xff] }
 0x21e   : > { %6629 = vmatmul.msk.f32.vlgmr.msrb.gmra.mxu3 %vm355_vm0, %v1385_v30  ;;  %6889 = vmatpush.msrb.mxu1 %v8422_v2  ;;  %v7198_v2 = vld [vmem:[%s7582_s24 + $0x18] sm:$0xff] }
 0x21f   : > { %6905 = vmatpush.msrb.mxu3 %v8315_v15  ;;  %v7197_v15 = vld [vmem:[%s14568_s2 + $0x158] sm:$0xff] }
 0x220   : > { %v1121_v59 = vpop.f32.mrf.mxu2  ;;  %6890 = vmatpush.msrb.mxu1 %v8434_v58  ;;  %v7199_v58 = vld [vmem:[%s14568_s2 + $0x148] sm:$0xff] }
 0x221   : > { %v8540_v50 = vadd.f32 %v1330_v35, %v1121_v59  ;;  %v1336_v47 = vpop.f32.mrf.mxu3  ;;  %v8542_v33 = vpop.f32.mrf.mxu0  ;;  %6906 = vmatpush.msrb.mxu3 %v8330_v27  ;;  %v1387_v35 = vmul.f32 %v7198_v2, %v7796_v52  ;;  %v8561_v27 = vadd.f32 %v7778_v41, %v7798_v54  ;;  %v7200_v41 = vld [vmem:[%s7582_s24 + $0x20] sm:$0xff] }
 0x222   : > { %v8547_v44 = vpop.f32.mrf.mxu1  ;;  %6891 = vmatpush.msrb.mxu1 %v8444_v31 }
 0x223   : > { %15112 = vst [vmem:[#allocation125_spill] sm:$0xff] %v8540_v50  ;;  %6907 = vmatpush.msrb.mxu3 %v7197_v15  ;;  %v1388_v54 = vmul.f32 %v7200_v41, %v8561_v27  ;;  %v7201_v15 = vld [vmem:[%s7582_s24 + $0x28] sm:$0xff] }
 0x224   : > { %753 = vmatmul.f32.gmra.mxu0 %v305_v37  ;;  %6892 = vmatpush.msrb.mxu1 %v8453_v57  ;;  %15113 = vst [vmem:[#allocation126_spill] sm:$0xff] %v8561_v27  ;;  %v1389_v2 = vmul.f32 %v7201_v15, %v7812_v60  ;;  %v7208_v15 = vld [vmem:[%s7582_s24 + $0x58] sm:$0xff] }
 0x225   : > { %1171 = vmatmul.f32.gmra.mxu2 %v305_v37  ;;  %1771 = vmatmul.f32.gmra.mxu1 %v1386_v46 }
 0x226   : > { %6630 = vmatmul.msk.f32.gmra.mxu3 %vm355_vm0, %v1387_v35  ;;  %6893 = vmatpush.msrb.mxu1 %v8460_v28 }
 0x227   : > { %6908 = vmatpush.msrb.mxu3 %v7199_v58  ;;  %v7206_v58 = vld [vmem:[%s7582_s24 + $0x48] sm:$0xff] }
 0x228   : > { %v1124_v31 = vpop.f32.mrf.mxu2  ;;  %6894 = vmatpush.msrb.mxu1 %v8475_v11 }
 0x229   : > { %v8567_v59 = vadd.f32 %v1333_v63, %v1124_v31  ;;  %v1339_v37 = vpop.f32.mrf.mxu3  ;;  %v8569_v34 = vpop.f32.mrf.mxu0  ;;  %6909 = vmatpush.msrb.mxu3 %v7954_v53  ;;  %v7202_v53 = vld [vmem:[%s14568_s2 + $0x88] sm:$0xff] }
 0x22a   : > { %v8572_v57 = vpop.f32.mrf.mxu1  ;;  %6895 = vmatpush.msrb.mxu1 %v8484_v36 }
 0x22b   : > { %15114 = vst [vmem:[#allocation127_spill] sm:$0xff] %v8567_v59  ;;  %6910 = vmatpush.msrb.mxu3 %v8070_v38  ;;  %v8588_v38 = vadd.f32 %v7788_v48, %v7814_v62  ;;  %v7204_v62 = vld [vmem:[%s7582_s24 + $0x38] sm:$0xff] }
 0x22c   : > { %2186 = vmatmul.f32.vlgmr.msrb.gmra.mxu0 %v1384_v26  ;;  %6896 = vmatpush.msrb.mxu1 %v7202_v53 }
 0x22d   : > { %1774 = vmatmul.f32.gmra.mxu1 %v1388_v54  ;;  %6693 = vmatmul.msk.f32.vlgmr.msrb.gmra.mxu2 %vm355_vm0, %v1385_v30  ;;  %15115 = vst [vmem:[#allocation128_spill] sm:$0xff] %v8588_v38  ;;  %v7203_v30 = vld [vmem:[%s7582_s24 + $0x30] sm:$0xff] }
 0x22e   : > { %6631 = vmatmul.msk.f32.gmra.mxu3 %vm355_vm0, %v1389_v2  ;;  %6897 = vmatpush.msrb.mxu1 %v7968_v24  ;;  %v1390_v48 = vmul.f32 %v7203_v30, %v8588_v38  ;;  %v8610_v24 = vadd.f32 %v7801_v56, %v7830_v6  ;;  %v1393_v56 = vmul.f32 %v7206_v58, %v7844_v12  ;;  %v7209_v30 = vld [vmem:[%s7582_s24 + $0x60] sm:$0xff] }
 0x22f   : > { %6911 = vmatpush.msrb.mxu3 %v8186_v1  ;;  %v1391_v1 = vmul.f32 %v7204_v62, %v7828_v4  ;;  %v8630_v6 = vadd.f32 %v7817_v0, %v7846_v14  ;;  %v8646_v0 = vadd.f32 %v7833_v8, %v7859_v23  ;;  %v7210_v62 = vld [vmem:[%s7582_s24 + $0x68] sm:$0xff]  ;;  %v8662_v8 = vadd.f32 %v7849_v16, %v7869_v32 }
 0x230   : > { %v1127_v28 = vpop.f32.mrf.mxu2  ;;  %6898 = vmatpush.msrb.mxu1 %v8020_v19  ;;  %15117 = vst [vmem:[#allocation130_spill] sm:$0xff] %v8610_v24  ;;  %v8678_v16 = vadd.f32 %v7862_v25, %v7885_v43  ;;  %v15128_v25 = vld [vmem:[#allocation13_spill] sm:$0xff] }
 0x231   : > { %v8592_v11 = vadd.f32 %v1336_v47, %v1127_v28  ;;  %v1342_v36 = vpop.f32.mrf.mxu3  ;;  %v8594_v63 = vpop.f32.mrf.mxu0  ;;  %6912 = vmatpush.msrb.mxu3 %v8308_v20  ;;  %15119 = vst [vmem:[#allocation132_spill] sm:$0xff] %v8630_v6  ;;  %v15129_v43 = vld [vmem:[#allocation9_spill] sm:$0xff] }
 0x232   : > { %v8597_v26 = vpop.f32.mrf.mxu1  ;;  %6899 = vmatpush.msrb.mxu1 %v8084_v61  ;;  %15121 = vst [vmem:[#allocation134_spill] sm:$0xff] %v8646_v0 }
 0x233   : > { %15116 = vst [vmem:[#allocation129_spill] sm:$0xff] %v8592_v11 }
 0x234   : > { %2189 = vmatmul.f32.gmra.mxu0 %v1386_v46  ;;  %6900 = vmatpush.msrb.mxu1 %v8136_v45  ;;  %15123 = vst [vmem:[#allocation136_spill] sm:$0xff] %v8662_v8 }
 0x235   : > { %1777 = vmatmul.f32.gmra.mxu1 %v1390_v48  ;;  %6694 = vmatmul.msk.f32.gmra.mxu2 %vm355_vm0, %v1387_v35  ;;  %v7205_v35 = vld [vmem:[%s7582_s24 + $0x40] sm:$0xff]  ;;  %15125 = vst [vmem:[#allocation138_spill] sm:$0xff] %v8678_v16 }
 0x236   : > { %6632 = vmatmul.msk.f32.gmra.mxu3 %vm355_vm0, %v1391_v1  ;;  %6901 = vmatpush.msrb.mxu1 %v8200_v18  ;;  %v1392_v45 = vmul.f32 %v7205_v35, %v8610_v24 }
 0x238   : > { %v1130_v19 = vpop.f32.mrf.mxu2  ;;  %6902 = vmatpush.msrb.mxu1 %v8252_v5 }
 0x239   : > { %v8613_v20 = vadd.f32 %v1339_v37, %v1130_v19  ;;  %v1345_v47 = vpop.f32.mrf.mxu3  ;;  %v8615_v46 = vpop.f32.mrf.mxu0 }
 0x23a   : > { %v8617_v61 = vpop.f32.mrf.mxu1  ;;  %6903 = vmatpush.msrb.mxu1 %v8336_v7  ;;  %v7207_v7 = vld [vmem:[%s7582_s24 + $0x50] sm:$0xff] }
 0x23b   : > { %15118 = vst [vmem:[#allocation131_spill] sm:$0xff] %v8613_v20 }
 0x23c   : > { %2192 = vmatmul.f32.gmra.mxu0 %v1388_v54  ;;  %6904 = vmatpush.msrb.mxu1 %v8413_v51  ;;  %v1394_v54 = vmul.f32 %v7207_v7, %v8630_v6  ;;  %v1395_v51 = vmul.f32 %v7208_v15, %v7857_v21 }
 0x23d   : > { %1780 = vmatmul.f32.gmra.mxu1 %v1392_v45  ;;  %6695 = vmatmul.msk.f32.gmra.mxu2 %vm355_vm0, %v1389_v2 }
 0x23e   : > { %6633 = vmatmul.msk.f32.gmra.mxu3 %vm355_vm0, %v1393_v56 }
 0x240   : > { %v1133_v18 = vpop.f32.mrf.mxu2 }
 0x241   : > { %v8632_v5 = vadd.f32 %v1342_v36, %v1133_v18  ;;  %v1348_v31 = vpop.f32.mrf.mxu3  ;;  %v8634_v37 = vpop.f32.mrf.mxu0  ;;  %v7211_v18 = vld [vmem:[%s7582_s24 + $0x70] sm:$0xff] }
 0x242   : > { %v8636_v41 = vpop.f32.mrf.mxu1 }
 0x243   : > { %15120 = vst [vmem:[#allocation133_spill] sm:$0xff] %v8632_v5 }
 0x244   : > { %2195 = vmatmul.f32.gmra.mxu0 %v1390_v48  ;;  %v1396_v48 = vmul.f32 %v7209_v30, %v8646_v0 }
 0x245   : > { %1783 = vmatmul.f32.gmra.mxu1 %v1394_v54  ;;  %6696 = vmatmul.msk.f32.gmra.mxu2 %vm355_vm0, %v1391_v1  ;;  %v1397_v1 = vmul.f32 %v7210_v62, %v7867_v29  ;;  %v7213_v62 = vld [vmem:[%s7582_s24 + $0x80] sm:$0xff] }
 0x246   : > { %6634 = vmatmul.msk.f32.gmra.mxu3 %vm355_vm0, %v1395_v51 }
 0x248   : > { %v1136_v14 = vpop.f32.mrf.mxu2 }
 0x249   : > { %v8648_v2 = vadd.f32 %v1345_v47, %v1136_v14  ;;  %v1351_v53 = vpop.f32.mrf.mxu3  ;;  %v8650_v28 = vpop.f32.mrf.mxu0 }
 0x24a   : > { %v8652_v36 = vpop.f32.mrf.mxu1 }
 0x24b   : > { %15122 = vst [vmem:[#allocation135_spill] sm:$0xff] %v8648_v2 }
 0x24c   : > { %2198 = vmatmul.f32.gmra.mxu0 %v1392_v45  ;;  %v1398_v45 = vmul.f32 %v7211_v18, %v8662_v8 }
 0x24d   : > { %1786 = vmatmul.f32.gmra.mxu1 %v1396_v48  ;;  %6697 = vmatmul.msk.f32.gmra.mxu2 %vm355_vm0, %v1393_v56  ;;  %v7212_v56 = vld [vmem:[%s7582_s24 + $0x78] sm:$0xff] }
 0x24e   : > { %6635 = vmatmul.msk.f32.gmra.mxu3 %vm355_vm0, %v1397_v1  ;;  %v1399_v7 = vmul.f32 %v7212_v56, %v7883_v40 }
 0x250   : > { %v1139_v23 = vpop.f32.mrf.mxu2 }
 0x251   : > { %v8664_v19 = vadd.f32 %v1348_v31, %v1139_v23  ;;  %v1354_v47 = vpop.f32.mrf.mxu3  ;;  %v8666_v35 = vpop.f32.mrf.mxu0  ;;  %v15127_v23 = vld [vmem:[#allocation12_spill] sm:$0xff] }
 0x252   : > { %v8668_v58 = vpop.f32.mrf.mxu1 }
 0x253   : > { %15124 = vst [vmem:[#allocation137_spill] sm:$0xff] %v8664_v19 }
 0x254   : > { %2201 = vmatmul.f32.gmra.mxu0 %v1394_v54  ;;  %v1400_v54 = vmul.f32 %v7213_v62, %v8678_v16 }
 0x255   : > { %1789 = vmatmul.f32.gmra.mxu1 %v1398_v45  ;;  %6698 = vmatmul.msk.f32.gmra.mxu2 %vm355_vm0, %v1395_v51  ;;  %v7214_v51 = vld [vmem:[%s7582_s24 + $0x88] sm:$0xff] }
 0x256   : > { %6636 = vmatmul.msk.f32.gmra.mxu3 %vm355_vm0, %v1399_v7  ;;  %v1401_v18 = vmul.f32 %v7214_v51, %v15127_v23  ;;  %v7215_v51 = vld [vmem:[%s7582_s24 + $0x90] sm:$0xff]  ;;  %v15132_v23 = vld [vmem:[#allocation15_spill] sm:$0xff] }
 0x258   : > { %v1142_v32 = vpop.f32.mrf.mxu2 }
 0x259   : > { %v8680_v31 = vadd.f32 %v1351_v53, %v1142_v32  ;;  %v1357_v15 = vpop.f32.mrf.mxu3  ;;  %v8682_v14 = vpop.f32.mrf.mxu0  ;;  %v8694_v53 = vadd.f32 %v15129_v43, %v15128_v25  ;;  %v15134_v25 = vld [vmem:[#allocation11_spill] sm:$0xff] }
 0x25a   : > { %v8684_v30 = vpop.f32.mrf.mxu1 }
 0x25b   : > { %15126 = vst [vmem:[#allocation139_spill] sm:$0xff] %v8680_v31 }
 0x25c   : > { %2204 = vmatmul.f32.gmra.mxu0 %v1396_v48  ;;  %15130 = vst [vmem:[#allocation13_spill] sm:$0xff] %v8694_v53  ;;  %v1402_v48 = vmul.f32 %v7215_v51, %v8694_v53 }
 0x25d   : > { %1792 = vmatmul.f32.gmra.mxu1 %v1400_v54  ;;  %6699 = vmatmul.msk.f32.gmra.mxu2 %vm355_vm0, %v1397_v1  ;;  %v7216_v1 = vld [vmem:[%s7582_s24 + $0x98] sm:$0xff] }
 0x25e   : > { %6637 = vmatmul.msk.f32.gmra.mxu3 %vm355_vm0, %v1401_v18  ;;  %v1403_v16 = vmul.f32 %v7216_v1, %v15132_v23  ;;  %v7217_v1 = vld [vmem:[%s7582_s24 + $0xa0] sm:$0xff] }
 0x25f   : > { %v15137_v23 = vld [vmem:[#allocation18_spill] sm:$0xff] }
 0x260   : > { %v1145_v56 = vpop.f32.mrf.mxu2 }
 0x261   : > { %v8696_v32 = vadd.f32 %v1354_v47, %v1145_v56  ;;  %v1360_v40 = vpop.f32.mrf.mxu3  ;;  %v8698_v8 = vpop.f32.mrf.mxu0  ;;  %v15133_v47 = vld [vmem:[#allocation16_spill] sm:$0xff] }
 0x262   : > { %v8700_v62 = vpop.f32.mrf.mxu1  ;;  %v8710_v43 = vadd.f32 %v15134_v25, %v15133_v47  ;;  %v15139_v47 = vld [vmem:[#allocation14_spill] sm:$0xff] }
 0x263   : > { %15131 = vst [vmem:[#allocation9_spill] sm:$0xff] %v8696_v32 }
 0x264   : > { %2207 = vmatmul.f32.gmra.mxu0 %v1398_v45  ;;  %15135 = vst [vmem:[#allocation16_spill] sm:$0xff] %v8710_v43  ;;  %v1404_v45 = vmul.f32 %v7217_v1, %v8710_v43 }
 0x265   : > { %1795 = vmatmul.f32.gmra.mxu1 %v1402_v48  ;;  %6700 = vmatmul.msk.f32.gmra.mxu2 %vm355_vm0, %v1399_v7  ;;  %v7218_v7 = vld [vmem:[%s7582_s24 + $0xa8] sm:$0xff] }
 0x266   : > { %6638 = vmatmul.msk.f32.gmra.mxu3 %vm355_vm0, %v1403_v16  ;;  %v1405_v53 = vmul.f32 %v7218_v7, %v15137_v23  ;;  %v7219_v7 = vld [vmem:[%s7582_s24 + $0xb0] sm:$0xff]  ;;  %v15143_v23 = vld [vmem:[#allocation21_spill] sm:$0xff] }
 0x268   : > { %v1148_v56 = vpop.f32.mrf.mxu2 }
 0x269   : > { %v8712_v29 = vadd.f32 %v1357_v15, %v1148_v56  ;;  %v1363_v0 = vpop.f32.mrf.mxu3  ;;  %v8714_v21 = vpop.f32.mrf.mxu0  ;;  %v15138_v15 = vld [vmem:[#allocation19_spill] sm:$0xff] }
 0x26a   : > { %v8716_v51 = vpop.f32.mrf.mxu1  ;;  %v8726_v25 = vadd.f32 %v15139_v47, %v15138_v15  ;;  %v15145_v15 = vld [vmem:[#allocation17_spill] sm:$0xff] }
 0x26b   : > { %15136 = vst [vmem:[#allocation11_spill] sm:$0xff] %v8712_v29 }
 0x26c   : > { %2210 = vmatmul.f32.gmra.mxu0 %v1400_v54  ;;  %15140 = vst [vmem:[#allocation19_spill] sm:$0xff] %v8726_v25  ;;  %v1406_v54 = vmul.f32 %v7219_v7, %v8726_v25 }
 0x26d   : > { %1798 = vmatmul.f32.gmra.mxu1 %v1404_v45  ;;  %6701 = vmatmul.msk.f32.gmra.mxu2 %vm355_vm0, %v1401_v18  ;;  %v7220_v18 = vld [vmem:[%s7582_s24 + $0xb8] sm:$0xff] }
 0x26e   : > { %6639 = vmatmul.msk.f32.gmra.mxu3 %vm355_vm0, %v1405_v53  ;;  %v1407_v43 = vmul.f32 %v7220_v18, %v15143_v23  ;;  %v7221_v18 = vld [vmem:[%s7582_s24 + $0xc0] sm:$0xff]  ;;  %v15149_v23 = vld [vmem:[#allocation24_spill] sm:$0xff] }
 0x270   : > { %v1151_v56 = vpop.f32.mrf.mxu2 }
 0x271   : > { %v8728_v6 = vadd.f32 %v1360_v40, %v1151_v56  ;;  %v1366_v12 = vpop.f32.mrf.mxu3  ;;  %v8730_v24 = vpop.f32.mrf.mxu0  ;;  %v15144_v40 = vld [vmem:[#allocation22_spill] sm:$0xff] }
 0x272   : > { %v8732_v1 = vpop.f32.mrf.mxu1  ;;  %v8742_v47 = vadd.f32 %v15145_v15, %v15144_v40  ;;  %v15151_v40 = vld [vmem:[#allocation20_spill] sm:$0xff] }
 0x273   : > { %15141 = vst [vmem:[#allocation14_spill] sm:$0xff] %v8728_v6 }
 0x274   : > { %15142 = vst [vmem:[#allocation140_spill] sm:$0xff] %v8732_v1  ;;  %2213 = vmatmul.f32.gmra.mxu0 %v1402_v48  ;;  %v1408_v48 = vmul.f32 %v7221_v18, %v8742_v47 }
 0x275   : > { %1801 = vmatmul.f32.gmra.mxu1 %v1406_v54  ;;  %6702 = vmatmul.msk.f32.gmra.mxu2 %vm355_vm0, %v1403_v16  ;;  %15146 = vst [vmem:[#allocation22_spill] sm:$0xff] %v8742_v47  ;;  %v7222_v16 = vld [vmem:[%s7582_s24 + $0xc8] sm:$0xff] }
 0x276   : > { %6640 = vmatmul.msk.f32.gmra.mxu3 %vm355_vm0, %v1407_v43  ;;  %v1409_v25 = vmul.f32 %v7222_v16, %v15149_v23  ;;  %v7223_v16 = vld [vmem:[%s7582_s24 + $0xd0] sm:$0xff]  ;;  %v15156_v47 = vld [vmem:[#allocation27_spill] sm:$0xff] }
 0x278   : > { %v1154_v56 = vpop.f32.mrf.mxu2 }
 0x279   : > { %v8744_v4 = vadd.f32 %v1363_v0, %v1154_v56  ;;  %v1369_v38 = vpop.f32.mrf.mxu3  ;;  %v8746_v60 = vpop.f32.mrf.mxu0  ;;  %v15150_v0 = vld [vmem:[#allocation25_spill] sm:$0xff] }
 0x27a   : > { %v8748_v7 = vpop.f32.mrf.mxu1  ;;  %v8758_v15 = vadd.f32 %v15151_v40, %v15150_v0  ;;  %v15158_v0 = vld [vmem:[#allocation23_spill] sm:$0xff] }
 0x27b   : > { %15147 = vst [vmem:[#allocation17_spill] sm:$0xff] %v8744_v4 }
 0x27c   : > { %15148 = vst [vmem:[#allocation141_spill] sm:$0xff] %v8748_v7  ;;  %2216 = vmatmul.f32.gmra.mxu0 %v1404_v45  ;;  %v1410_v45 = vmul.f32 %v7223_v16, %v8758_v15 }
 0x27d   : > { %1804 = vmatmul.f32.gmra.mxu1 %v1408_v48  ;;  %6703 = vmatmul.msk.f32.gmra.mxu2 %vm355_vm0, %v1405_v53  ;;  %15152 = vst [vmem:[#allocation25_spill] sm:$0xff] %v8758_v15  ;;  %v7224_v53 = vld [vmem:[%s7582_s24 + $0xd8] sm:$0xff]  ;;  %v15163_v15 = vld [vmem:[#allocation30_spill] sm:$0xff] }
 0x27e   : > { %6641 = vmatmul.msk.f32.gmra.mxu3 %vm355_vm0, %v1409_v25  ;;  %v1411_v23 = vmul.f32 %v7224_v53, %v15156_v47  ;;  %v7225_v53 = vld [vmem:[%s7582_s24 + $0xe0] sm:$0xff] }
 0x280   : > { %v1157_v56 = vpop.f32.mrf.mxu2 }
 0x281   : > { %v8760_v27 = vadd.f32 %v1366_v12, %v1157_v56  ;;  %v1372_v52 = vpop.f32.mrf.mxu3  ;;  %v8762_v39 = vpop.f32.mrf.mxu0  ;;  %v15157_v12 = vld [vmem:[#allocation28_spill] sm:$0xff] }
 0x282   : > { %15154 = vst [vmem:[#allocation142_spill] sm:$0xff] %v8762_v39  ;;  %v8764_v18 = vpop.f32.mrf.mxu1  ;;  %v8774_v40 = vadd.f32 %v15158_v0, %v15157_v12  ;;  %v15165_v12 = vld [vmem:[#allocation26_spill] sm:$0xff] }
 0x283   : > { %15153 = vst [vmem:[#allocation20_spill] sm:$0xff] %v8760_v27 }
 0x284   : > { %15155 = vst [vmem:[#allocation143_spill] sm:$0xff] %v8764_v18  ;;  %2219 = vmatmul.f32.gmra.mxu0 %v1406_v54  ;;  %v1412_v54 = vmul.f32 %v7225_v53, %v8774_v40 }
 0x285   : > { %1807 = vmatmul.f32.gmra.mxu1 %v1410_v45  ;;  %6704 = vmatmul.msk.f32.gmra.mxu2 %vm355_vm0, %v1407_v43  ;;  %15159 = vst [vmem:[#allocation28_spill] sm:$0xff] %v8774_v40  ;;  %v7226_v43 = vld [vmem:[%s7582_s24 + $0xe8] sm:$0xff]  ;;  %v15170_v40 = vld [vmem:[#allocation33_spill] sm:$0xff] }
 0x286   : > { %6642 = vmatmul.msk.f32.gmra.mxu3 %vm355_vm0, %v1411_v23  ;;  %v1413_v47 = vmul.f32 %v7226_v43, %v15163_v15  ;;  %v7227_v43 = vld [vmem:[%s7582_s24 + $0xf0] sm:$0xff] }
 0x288   : > { %v1160_v56 = vpop.f32.mrf.mxu2 }
 0x289   : > { %v8776_v3 = vadd.f32 %v1369_v38, %v1160_v56  ;;  %v1375_v18 = vpop.f32.mrf.mxu3  ;;  %v8778_v7 = vpop.f32.mrf.mxu0  ;;  %v15164_v38 = vld [vmem:[#allocation31_spill] sm:$0xff] }
 0x28a   : > { %15161 = vst [vmem:[#allocation144_spill] sm:$0xff] %v8778_v7  ;;  %v8780_v16 = vpop.f32.mrf.mxu1  ;;  %v8790_v0 = vadd.f32 %v15165_v12, %v15164_v38  ;;  %v15172_v38 = vld [vmem:[#allocation29_spill] sm:$0xff] }
 0x28b   : > { %15160 = vst [vmem:[#allocation23_spill] sm:$0xff] %v8776_v3 }
 0x28c   : > { %15162 = vst [vmem:[#allocation145_spill] sm:$0xff] %v8780_v16  ;;  %2222 = vmatmul.f32.gmra.mxu0 %v1408_v48  ;;  %v1414_v48 = vmul.f32 %v7227_v43, %v8790_v0 }
 0x28d   : > { %1810 = vmatmul.f32.gmra.mxu1 %v1412_v54  ;;  %6705 = vmatmul.msk.f32.gmra.mxu2 %vm355_vm0, %v1409_v25  ;;  %15166 = vst [vmem:[#allocation31_spill] sm:$0xff] %v8790_v0  ;;  %v7228_v25 = vld [vmem:[%s7582_s24 + $0xf8] sm:$0xff]  ;;  %v7229_v0 = vld [vmem:[%s7582_s24 + $0x100] sm:$0xff] }
 0x28e   : > { %6643 = vmatmul.msk.f32.gmra.mxu3 %vm355_vm0, %v1413_v47  ;;  %v1415_v15 = vmul.f32 %v7228_v25, %v15170_v40  ;;  %v7230_v25 = vld [vmem:[%s7582_s24 + $0x108] sm:$0xff] }
 0x290   : > { %v1163_v56 = vpop.f32.mrf.mxu2 }
 0x291   : > { %v8792_v7 = vadd.f32 %v1372_v52, %v1163_v56  ;;  %v1378_v16 = vpop.f32.mrf.mxu3  ;;  %v8794_v3 = vpop.f32.mrf.mxu0  ;;  %v15171_v52 = vld [vmem:[#allocation34_spill] sm:$0xff] }
 0x292   : > { %15168 = vst [vmem:[#allocation146_spill] sm:$0xff] %v8794_v3  ;;  %v8796_v53 = vpop.f32.mrf.mxu1  ;;  %v8806_v12 = vadd.f32 %v15172_v38, %v15171_v52  ;;  %v15178_v52 = vld [vmem:[#allocation32_spill] sm:$0xff] }
 0x293   : > { %15167 = vst [vmem:[#allocation26_spill] sm:$0xff] %v8792_v7 }
 0x294   : > { %15169 = vst [vmem:[#allocation147_spill] sm:$0xff] %v8796_v53  ;;  %2225 = vmatmul.f32.gmra.mxu0 %v1410_v45  ;;  %v1416_v45 = vmul.f32 %v7229_v0, %v8806_v12 }
 0x295   : > { %1813 = vmatmul.f32.gmra.mxu1 %v1414_v48  ;;  %6706 = vmatmul.msk.f32.gmra.mxu2 %vm355_vm0, %v1411_v23  ;;  %15173 = vst [vmem:[#allocation34_spill] sm:$0xff] %v8806_v12  ;;  %v15176_v23 = vld [vmem:[#allocation36_spill] sm:$0xff] }
 0x296   : > { %6644 = vmatmul.msk.f32.gmra.mxu3 %vm355_vm0, %v1415_v15  ;;  %v1417_v40 = vmul.f32 %v7230_v25, %v15176_v23  ;;  %v15183_v23 = vld [vmem:[#allocation39_spill] sm:$0xff] }
 0x298   : > { %v1166_v56 = vpop.f32.mrf.mxu2 }
 0x299   : > { %v8808_v3 = vadd.f32 %v1375_v18, %v1166_v56  ;;  %v1381_v53 = vpop.f32.mrf.mxu3  ;;  %v8810_v7 = vpop.f32.mrf.mxu0  ;;  %v15177_v18 = vld [vmem:[#allocation37_spill] sm:$0xff] }
 0x29a   : > { %15175 = vst [vmem:[#allocation148_spill] sm:$0xff] %v8810_v7  ;;  %v1769_v43 = vpop.f32.mrf.mxu1  ;;  %v8820_v38 = vadd.f32 %v15178_v52, %v15177_v18  ;;  %v15185_v18 = vld [vmem:[#allocation35_spill] sm:$0xff] }
 0x29b   : > { %15174 = vst [vmem:[#allocation29_spill] sm:$0xff] %v8808_v3 }
 0x29c   : > { %2228 = vmatmul.f32.gmra.mxu0 %v1412_v54  ;;  %15179 = vst [vmem:[#allocation37_spill] sm:$0xff] %v8820_v38  ;;  %v7231_v54 = vld [vmem:[%s7582_s24 + $0x110] sm:$0xff] }
 0x29d   : > { %1816 = vmatmul.f32.gmra.mxu1 %v1416_v45  ;;  %6707 = vmatmul.msk.f32.gmra.mxu2 %vm355_vm0, %v1413_v47  ;;  %v1418_v25 = vmul.f32 %v7231_v54, %v8820_v38  ;;  %v7232_v47 = vld [vmem:[%s7582_s24 + $0x118] sm:$0xff] }
 0x29e   : > { %6645 = vmatmul.msk.f32.gmra.mxu3 %vm355_vm0, %v1417_v40  ;;  %v1419_v39 = vmul.f32 %v7232_v47, %v15183_v23  ;;  %v7233_v47 = vld [vmem:[%s7582_s24 + $0x120] sm:$0xff] }
 0x29f   : > { %v15189_v23 = vld [vmem:[#allocation42_spill] sm:$0xff] }
 0x2a0   : > { %v1169_v56 = vpop.f32.mrf.mxu2 }
 0x2a1   : > { %v8822_v7 = vadd.f32 %v1378_v16, %v1169_v56  ;;  %v1978_v3 = vpop.f32.mrf.mxu3  ;;  %v8824_v1 = vpop.f32.mrf.mxu0  ;;  %v15184_v16 = vld [vmem:[#allocation40_spill] sm:$0xff] }
 0x2a2   : > { %15181 = vst [vmem:[#allocation149_spill] sm:$0xff] %v8824_v1  ;;  %v8826_v0 = vadd.f32 %v1978_v3, %v1769_v43  ;;  %v1772_v12 = vpop.f32.mrf.mxu1  ;;  %v8836_v52 = vadd.f32 %v15185_v18, %v15184_v16  ;;  %v15191_v16 = vld [vmem:[#allocation38_spill] sm:$0xff] }
 0x2a3   : > { %15180 = vst [vmem:[#allocation32_spill] sm:$0xff] %v8822_v7 }
 0x2a4   : > { %15182 = vst [vmem:[#allocation150_spill] sm:$0xff] %v8826_v0  ;;  %2231 = vmatmul.f32.gmra.mxu0 %v1414_v48  ;;  %v1420_v48 = vmul.f32 %v7233_v47, %v8836_v52 }
 0x2a5   : > { %1819 = vmatmul.f32.gmra.mxu1 %v1418_v25  ;;  %6708 = vmatmul.msk.f32.gmra.mxu2 %vm355_vm0, %v1415_v15  ;;  %15186 = vst [vmem:[#allocation40_spill] sm:$0xff] %v8836_v52  ;;  %v7234_v15 = vld [vmem:[%s7582_s24 + $0x128] sm:$0xff] }
 0x2a6   : > { %6646 = vmatmul.msk.f32.gmra.mxu3 %vm355_vm0, %v1419_v39  ;;  %v1421_v1 = vmul.f32 %v7234_v15, %v15189_v23  ;;  %v7235_v15 = vld [vmem:[%s7582_s24 + $0x130] sm:$0xff]  ;;  %v15195_v23 = vld [vmem:[#allocation45_spill] sm:$0xff] }
 0x2a8   : > { %v1172_v3 = vpop.f32.mrf.mxu2 }
 0x2a9   : > { %v8838_v43 = vadd.f32 %v1381_v53, %v1172_v3  ;;  %v1981_v56 = vpop.f32.mrf.mxu3  ;;  %v2187_v0 = vpop.f32.mrf.mxu0  ;;  %v15190_v53 = vld [vmem:[#allocation43_spill] sm:$0xff] }
 0x2aa   : > { %v8840_v54 = vadd.f32 %v1981_v56, %v1772_v12  ;;  %v1775_v38 = vpop.f32.mrf.mxu1  ;;  %v8850_v18 = vadd.f32 %v15191_v16, %v15190_v53  ;;  %v15197_v53 = vld [vmem:[#allocation41_spill] sm:$0xff] }
 0x2ab   : > { %15187 = vst [vmem:[#allocation35_spill] sm:$0xff] %v8838_v43 }
 0x2ac   : > { %15188 = vst [vmem:[#allocation151_spill] sm:$0xff] %v8840_v54  ;;  %2234 = vmatmul.f32.gmra.mxu0 %v1416_v45  ;;  %v1422_v45 = vmul.f32 %v7235_v15, %v8850_v18 }
 0x2ad   : > { %1822 = vmatmul.f32.gmra.mxu1 %v1420_v48  ;;  %6709 = vmatmul.msk.f32.gmra.mxu2 %vm355_vm0, %v1417_v40  ;;  %15192 = vst [vmem:[#allocation43_spill] sm:$0xff] %v8850_v18  ;;  %v7236_v40 = vld [vmem:[%s7582_s24 + $0x138] sm:$0xff]  ;;  %v15201_v18 = vld [vmem:[#allocation48_spill] sm:$0xff] }
 0x2ae   : > { %6647 = vmatmul.msk.f32.gmra.mxu3 %vm355_vm0, %v1421_v1  ;;  %v1423_v43 = vmul.f32 %v7236_v40, %v15195_v23  ;;  %v7237_v40 = vld [vmem:[%s7582_s24 + $0x140] sm:$0xff] }
 0x2b0   : > { %v2396_v12 = vpop.f32.mrf.mxu2 }
 0x2b1   : > { %v1984_v3 = vpop.f32.mrf.mxu3  ;;  %v8852_v56 = vadd.f32 %v2396_v12, %v2187_v0  ;;  %v2190_v54 = vpop.f32.mrf.mxu0  ;;  %v15196_v0 = vld [vmem:[#allocation46_spill] sm:$0xff] }
 0x2b2   : > { %v8854_v47 = vadd.f32 %v1984_v3, %v1775_v38  ;;  %v1778_v52 = vpop.f32.mrf.mxu1  ;;  %v8864_v16 = vadd.f32 %v15197_v53, %v15196_v0  ;;  %v15203_v0 = vld [vmem:[#allocation44_spill] sm:$0xff] }
 0x2b3   : > { %15193 = vst [vmem:[#allocation38_spill] sm:$0xff] %v8852_v56 }
 0x2b4   : > { %15194 = vst [vmem:[#allocation152_spill] sm:$0xff] %v8854_v47  ;;  %2237 = vmatmul.f32.gmra.mxu0 %v1418_v25  ;;  %v1424_v25 = vmul.f32 %v7237_v40, %v8864_v16 }
 0x2b5   : > { %1825 = vmatmul.f32.gmra.mxu1 %v1422_v45  ;;  %6710 = vmatmul.msk.f32.gmra.mxu2 %vm355_vm0, %v1419_v39  ;;  %15198 = vst [vmem:[#allocation46_spill] sm:$0xff] %v8864_v16  ;;  %v7238_v39 = vld [vmem:[%s7582_s24 + $0x148] sm:$0xff] }
 0x2b6   : > { %6648 = vmatmul.msk.f32.gmra.mxu3 %vm355_vm0, %v1423_v43  ;;  %v1425_v23 = vmul.f32 %v7238_v39, %v15201_v18  ;;  %v7239_v39 = vld [vmem:[%s7582_s24 + $0x150] sm:$0xff]  ;;  %v15207_v16 = vld [vmem:[#allocation51_spill] sm:$0xff] }
 0x2b8   : > { %v2399_v38 = vpop.f32.mrf.mxu2 }
 0x2b9   : > { %v1987_v12 = vpop.f32.mrf.mxu3  ;;  %v8866_v3 = vadd.f32 %v2399_v38, %v2190_v54  ;;  %v2193_v56 = vpop.f32.mrf.mxu0  ;;  %v15202_v54 = vld [vmem:[#allocation49_spill] sm:$0xff] }
 0x2ba   : > { %v8868_v15 = vadd.f32 %v1987_v12, %v1778_v52  ;;  %v1781_v47 = vpop.f32.mrf.mxu1  ;;  %v8878_v53 = vadd.f32 %v15203_v0, %v15202_v54  ;;  %v15209_v54 = vld [vmem:[#allocation47_spill] sm:$0xff] }
 0x2bb   : > { %15199 = vst [vmem:[#allocation41_spill] sm:$0xff] %v8866_v3 }
 0x2bc   : > { %15200 = vst [vmem:[#allocation153_spill] sm:$0xff] %v8868_v15  ;;  %2240 = vmatmul.f32.gmra.mxu0 %v1420_v48  ;;  %v1426_v48 = vmul.f32 %v7239_v39, %v8878_v53 }
 0x2bd   : > { %1828 = vmatmul.f32.gmra.mxu1 %v1424_v25  ;;  %6711 = vmatmul.msk.f32.gmra.mxu2 %vm355_vm0, %v1421_v1  ;;  %15204 = vst [vmem:[#allocation49_spill] sm:$0xff] %v8878_v53  ;;  %v7240_v1 = vld [vmem:[%s7582_s24 + $0x158] sm:$0xff]  ;;  %v15213_v53 = vld [vmem:[#allocation54_spill] sm:$0xff] }
 0x2be   : > { %6649 = vmatmul.msk.f32.gmra.mxu3 %vm355_vm0, %v1425_v23  ;;  %v1427_v18 = vmul.f32 %v7240_v1, %v15207_v16  ;;  %v7241_v1 = vld [vmem:[%s7582_s24 + $0x160] sm:$0xff] }
 0x2c0   : > { %v2402_v52 = vpop.f32.mrf.mxu2 }
 0x2c1   : > { %v1990_v38 = vpop.f32.mrf.mxu3  ;;  %v8880_v12 = vadd.f32 %v2402_v52, %v2193_v56  ;;  %v2196_v15 = vpop.f32.mrf.mxu0  ;;  %v15208_v56 = vld [vmem:[#allocation52_spill] sm:$0xff] }
 0x2c2   : > { %v8882_v40 = vadd.f32 %v1990_v38, %v1781_v47  ;;  %v1784_v3 = vpop.f32.mrf.mxu1  ;;  %v8892_v0 = vadd.f32 %v15209_v54, %v15208_v56  ;;  %v15215_v56 = vld [vmem:[#allocation50_spill] sm:$0xff] }
 0x2c3   : > { %15205 = vst [vmem:[#allocation44_spill] sm:$0xff] %v8880_v12 }
 0x2c4   : > { %15206 = vst [vmem:[#allocation154_spill] sm:$0xff] %v8882_v40  ;;  %2243 = vmatmul.f32.gmra.mxu0 %v1422_v45  ;;  %v1428_v45 = vmul.f32 %v7241_v1, %v8892_v0 }
 0x2c5   : > { %1831 = vmatmul.f32.gmra.mxu1 %v1426_v48  ;;  %6712 = vmatmul.msk.f32.gmra.mxu2 %vm355_vm0, %v1423_v43  ;;  %15210 = vst [vmem:[#allocation52_spill] sm:$0xff] %v8892_v0  ;;  %v7242_v43 = vld [vmem:[%s7582_s24 + $0x168] sm:$0xff] }
 0x2c6   : > { %6650 = vmatmul.msk.f32.gmra.mxu3 %vm355_vm0, %v1427_v18  ;;  %v1429_v16 = vmul.f32 %v7242_v43, %v15213_v53  ;;  %v7243_v43 = vld [vmem:[%s7582_s24 + $0x170] sm:$0xff]  ;;  %v15219_v53 = vld [vmem:[#allocation57_spill] sm:$0xff] }
 0x2c8   : > { %v2405_v47 = vpop.f32.mrf.mxu2 }
 0x2c9   : > { %v1993_v52 = vpop.f32.mrf.mxu3  ;;  %v8894_v38 = vadd.f32 %v2405_v47, %v2196_v15  ;;  %v2199_v12 = vpop.f32.mrf.mxu0  ;;  %v15214_v15 = vld [vmem:[#allocation55_spill] sm:$0xff] }
 0x2ca   : > { %v8896_v39 = vadd.f32 %v1993_v52, %v1784_v3  ;;  %v1787_v40 = vpop.f32.mrf.mxu1  ;;  %v8906_v54 = vadd.f32 %v15215_v56, %v15214_v15  ;;  %v15221_v15 = vld [vmem:[#allocation53_spill] sm:$0xff] }
 0x2cb   : > { %15211 = vst [vmem:[#allocation47_spill] sm:$0xff] %v8894_v38 }
 0x2cc   : > { %15212 = vst [vmem:[#allocation155_spill] sm:$0xff] %v8896_v39  ;;  %2246 = vmatmul.f32.gmra.mxu0 %v1424_v25  ;;  %v1430_v25 = vmul.f32 %v7243_v43, %v8906_v54 }
 0x2cd   : > { %1834 = vmatmul.f32.gmra.mxu1 %v1428_v45  ;;  %6713 = vmatmul.msk.f32.gmra.mxu2 %vm355_vm0, %v1425_v23  ;;  %15216 = vst [vmem:[#allocation55_spill] sm:$0xff] %v8906_v54  ;;  %v7244_v23 = vld [vmem:[%s7582_s24 + $0x178] sm:$0xff]  ;;  %v15225_v54 = vld [vmem:[#allocation60_spill] sm:$0xff] }
 0x2ce   : > { %6651 = vmatmul.msk.f32.gmra.mxu3 %vm355_vm0, %v1429_v16  ;;  %v1431_v0 = vmul.f32 %v7244_v23, %v15219_v53  ;;  %v7245_v23 = vld [vmem:[%s7582_s24 + $0x180] sm:$0xff] }
 0x2d0   : > { %v2408_v3 = vpop.f32.mrf.mxu2 }
 0x2d1   : > { %v1996_v47 = vpop.f32.mrf.mxu3  ;;  %v8908_v52 = vadd.f32 %v2408_v3, %v2199_v12  ;;  %v2202_v38 = vpop.f32.mrf.mxu0  ;;  %v15220_v12 = vld [vmem:[#allocation58_spill] sm:$0xff] }
 0x2d2   : > { %v8910_v1 = vadd.f32 %v1996_v47, %v1787_v40  ;;  %v1790_v39 = vpop.f32.mrf.mxu1  ;;  %v8920_v56 = vadd.f32 %v15221_v15, %v15220_v12  ;;  %v15227_v12 = vld [vmem:[#allocation56_spill] sm:$0xff] }
 0x2d3   : > { %15217 = vst [vmem:[#allocation50_spill] sm:$0xff] %v8908_v52 }
 0x2d4   : > { %15218 = vst [vmem:[#allocation156_spill] sm:$0xff] %v8910_v1  ;;  %2249 = vmatmul.f32.gmra.mxu0 %v1426_v48  ;;  %v1432_v48 = vmul.f32 %v7245_v23, %v8920_v56 }
 0x2d5   : > { %1837 = vmatmul.f32.gmra.mxu1 %v1430_v25  ;;  %6714 = vmatmul.msk.f32.gmra.mxu2 %vm355_vm0, %v1427_v18  ;;  %15222 = vst [vmem:[#allocation58_spill] sm:$0xff] %v8920_v56  ;;  %v7246_v18 = vld [vmem:[%s7582_s24 + $0x188] sm:$0xff] }
 0x2d6   : > { %6652 = vmatmul.msk.f32.gmra.mxu3 %vm355_vm0, %v1431_v0  ;;  %v1433_v53 = vmul.f32 %v7246_v18, %v15225_v54  ;;  %v7247_v18 = vld [vmem:[%s7582_s24 + $0x190] sm:$0xff]  ;;  %v15231_v54 = vld [vmem:[#allocation63_spill] sm:$0xff] }
 0x2d8   : > { %v2411_v40 = vpop.f32.mrf.mxu2 }
 0x2d9   : > { %v1999_v3 = vpop.f32.mrf.mxu3  ;;  %v8922_v47 = vadd.f32 %v2411_v40, %v2202_v38  ;;  %v2205_v1 = vpop.f32.mrf.mxu0  ;;  %v15226_v38 = vld [vmem:[#allocation61_spill] sm:$0xff] }
 0x2da   : > { %v8924_v43 = vadd.f32 %v1999_v3, %v1790_v39  ;;  %v1793_v52 = vpop.f32.mrf.mxu1  ;;  %v8934_v15 = vadd.f32 %v15227_v12, %v15226_v38  ;;  %v15233_v38 = vld [vmem:[#allocation59_spill] sm:$0xff] }
 0x2db   : > { %15223 = vst [vmem:[#allocation53_spill] sm:$0xff] %v8922_v47 }
 0x2dc   : > { %15224 = vst [vmem:[#allocation157_spill] sm:$0xff] %v8924_v43  ;;  %2252 = vmatmul.f32.gmra.mxu0 %v1428_v45  ;;  %v1434_v45 = vmul.f32 %v7247_v18, %v8934_v15 }
 0x2dd   : > { %1840 = vmatmul.f32.gmra.mxu1 %v1432_v48  ;;  %6715 = vmatmul.msk.f32.gmra.mxu2 %vm355_vm0, %v1429_v16  ;;  %15228 = vst [vmem:[#allocation61_spill] sm:$0xff] %v8934_v15  ;;  %v7248_v16 = vld [vmem:[%s7582_s24 + $0x198] sm:$0xff]  ;;  %v15237_v15 = vld [vmem:[#allocation66_spill] sm:$0xff] }
 0x2de   : > { %6653 = vmatmul.msk.f32.gmra.mxu3 %vm355_vm0, %v1433_v53  ;;  %v1435_v56 = vmul.f32 %v7248_v16, %v15231_v54  ;;  %v7249_v16 = vld [vmem:[%s7582_s24 + $0x1a0] sm:$0xff] }
 0x2e0   : > { %v2414_v39 = vpop.f32.mrf.mxu2 }
 0x2e1   : > { %v2002_v40 = vpop.f32.mrf.mxu3  ;;  %v8936_v3 = vadd.f32 %v2414_v39, %v2205_v1  ;;  %v2208_v47 = vpop.f32.mrf.mxu0  ;;  %v15232_v1 = vld [vmem:[#allocation64_spill] sm:$0xff] }
 0x2e2   : > { %v8938_v23 = vadd.f32 %v2002_v40, %v1793_v52  ;;  %v1796_v43 = vpop.f32.mrf.mxu1  ;;  %v8948_v12 = vadd.f32 %v15233_v38, %v15232_v1  ;;  %v15239_v1 = vld [vmem:[#allocation62_spill] sm:$0xff] }
 0x2e3   : > { %15229 = vst [vmem:[#allocation56_spill] sm:$0xff] %v8936_v3 }
 0x2e4   : > { %15230 = vst [vmem:[#allocation158_spill] sm:$0xff] %v8938_v23  ;;  %2255 = vmatmul.f32.gmra.mxu0 %v1430_v25  ;;  %v1436_v25 = vmul.f32 %v7249_v16, %v8948_v12 }
 0x2e5   : > { %1843 = vmatmul.f32.gmra.mxu1 %v1434_v45  ;;  %6716 = vmatmul.msk.f32.gmra.mxu2 %vm355_vm0, %v1431_v0  ;;  %15234 = vst [vmem:[#allocation64_spill] sm:$0xff] %v8948_v12  ;;  %v7250_v0 = vld [vmem:[%s7582_s24 + $0x1a8] sm:$0xff] }
 0x2e6   : > { %6654 = vmatmul.msk.f32.gmra.mxu3 %vm355_vm0, %v1435_v56  ;;  %v1437_v54 = vmul.f32 %v7250_v0, %v15237_v15  ;;  %v7251_v0 = vld [vmem:[%s7582_s24 + $0x1b0] sm:$0xff]  ;;  %v15243_v15 = vld [vmem:[#allocation69_spill] sm:$0xff] }
 0x2e8   : > { %v2417_v52 = vpop.f32.mrf.mxu2 }
 0x2e9   : > { %v2005_v39 = vpop.f32.mrf.mxu3  ;;  %v8950_v40 = vadd.f32 %v2417_v52, %v2208_v47  ;;  %v2211_v3 = vpop.f32.mrf.mxu0  ;;  %v15238_v47 = vld [vmem:[#allocation67_spill] sm:$0xff] }
 0x2ea   : > { %v8952_v18 = vadd.f32 %v2005_v39, %v1796_v43  ;;  %v1799_v23 = vpop.f32.mrf.mxu1  ;;  %v8962_v38 = vadd.f32 %v15239_v1, %v15238_v47  ;;  %v15245_v47 = vld [vmem:[#allocation65_spill] sm:$0xff] }
 0x2eb   : > { %15235 = vst [vmem:[#allocation59_spill] sm:$0xff] %v8950_v40 }
 0x2ec   : > { %15236 = vst [vmem:[#allocation159_spill] sm:$0xff] %v8952_v18  ;;  %2258 = vmatmul.f32.gmra.mxu0 %v1432_v48  ;;  %v1438_v48 = vmul.f32 %v7251_v0, %v8962_v38 }
 0x2ed   : > { %1846 = vmatmul.f32.gmra.mxu1 %v1436_v25  ;;  %6717 = vmatmul.msk.f32.gmra.mxu2 %vm355_vm0, %v1433_v53  ;;  %15240 = vst [vmem:[#allocation67_spill] sm:$0xff] %v8962_v38  ;;  %v7252_v53 = vld [vmem:[%s7582_s24 + $0x1b8] sm:$0xff]  ;;  %v15249_v38 = vld [vmem:[#allocation72_spill] sm:$0xff] }
 0x2ee   : > { %6655 = vmatmul.msk.f32.gmra.mxu3 %vm355_vm0, %v1437_v54  ;;  %v1439_v12 = vmul.f32 %v7252_v53, %v15243_v15  ;;  %v7253_v53 = vld [vmem:[%s7582_s24 + $0x1c0] sm:$0xff] }
 0x2f0   : > { %v2420_v43 = vpop.f32.mrf.mxu2 }
 0x2f1   : > { %v2008_v52 = vpop.f32.mrf.mxu3  ;;  %v8964_v39 = vadd.f32 %v2420_v43, %v2211_v3  ;;  %v2214_v18 = vpop.f32.mrf.mxu0  ;;  %v15244_v3 = vld [vmem:[#allocation70_spill] sm:$0xff] }
 0x2f2   : > { %v8966_v16 = vadd.f32 %v2008_v52, %v1799_v23  ;;  %v1802_v40 = vpop.f32.mrf.mxu1  ;;  %v8976_v1 = vadd.f32 %v15245_v47, %v15244_v3  ;;  %v15251_v3 = vld [vmem:[#allocation68_spill] sm:$0xff] }
 0x2f3   : > { %15241 = vst [vmem:[#allocation62_spill] sm:$0xff] %v8964_v39 }
 0x2f4   : > { %15242 = vst [vmem:[#allocation160_spill] sm:$0xff] %v8966_v16  ;;  %2261 = vmatmul.f32.gmra.mxu0 %v1434_v45  ;;  %v1440_v45 = vmul.f32 %v7253_v53, %v8976_v1 }
 0x2f5   : > { %1849 = vmatmul.f32.gmra.mxu1 %v1438_v48  ;;  %6718 = vmatmul.msk.f32.gmra.mxu2 %vm355_vm0, %v1435_v56  ;;  %15246 = vst [vmem:[#allocation70_spill] sm:$0xff] %v8976_v1  ;;  %v7254_v56 = vld [vmem:[%s7582_s24 + $0x1c8] sm:$0xff] }
 0x2f6   : > { %6656 = vmatmul.msk.f32.gmra.mxu3 %vm355_vm0, %v1439_v12  ;;  %v1441_v15 = vmul.f32 %v7254_v56, %v15249_v38  ;;  %v7255_v56 = vld [vmem:[%s7582_s24 + $0x1d0] sm:$0xff]  ;;  %v15255_v38 = vld [vmem:[#allocation75_spill] sm:$0xff] }
 0x2f8   : > { %v2423_v23 = vpop.f32.mrf.mxu2 }
 0x2f9   : > { %v2011_v43 = vpop.f32.mrf.mxu3  ;;  %v8978_v52 = vadd.f32 %v2423_v23, %v2214_v18  ;;  %v2217_v39 = vpop.f32.mrf.mxu0  ;;  %v15250_v18 = vld [vmem:[#allocation73_spill] sm:$0xff] }
 0x2fa   : > { %v8980_v0 = vadd.f32 %v2011_v43, %v1802_v40  ;;  %v1805_v16 = vpop.f32.mrf.mxu1  ;;  %v8990_v47 = vadd.f32 %v15251_v3, %v15250_v18  ;;  %v15257_v18 = vld [vmem:[#allocation71_spill] sm:$0xff] }
 0x2fb   : > { %15247 = vst [vmem:[#allocation65_spill] sm:$0xff] %v8978_v52 }
 0x2fc   : > { %15248 = vst [vmem:[#allocation161_spill] sm:$0xff] %v8980_v0  ;;  %2264 = vmatmul.f32.gmra.mxu0 %v1436_v25  ;;  %v1442_v25 = vmul.f32 %v7255_v56, %v8990_v47 }
 0x2fd   : > { %1852 = vmatmul.f32.gmra.mxu1 %v1440_v45  ;;  %6719 = vmatmul.msk.f32.gmra.mxu2 %vm355_vm0, %v1437_v54  ;;  %15252 = vst [vmem:[#allocation73_spill] sm:$0xff] %v8990_v47  ;;  %v7256_v54 = vld [vmem:[%s7582_s24 + $0x1d8] sm:$0xff]  ;;  %v15261_v47 = vld [vmem:[#allocation78_spill] sm:$0xff] }
 0x2fe   : > { %6657 = vmatmul.msk.f32.gmra.mxu3 %vm355_vm0, %v1441_v15  ;;  %v1443_v1 = vmul.f32 %v7256_v54, %v15255_v38  ;;  %v7257_v54 = vld [vmem:[%s7582_s24 + $0x1e0] sm:$0xff] }
 0x300   : > { %v2426_v40 = vpop.f32.mrf.mxu2 }
 0x301   : > { %v2014_v23 = vpop.f32.mrf.mxu3  ;;  %v8992_v43 = vadd.f32 %v2426_v40, %v2217_v39  ;;  %v2220_v52 = vpop.f32.mrf.mxu0  ;;  %v15256_v39 = vld [vmem:[#allocation76_spill] sm:$0xff] }
 0x302   : > { %v8994_v53 = vadd.f32 %v2014_v23, %v1805_v16  ;;  %v1808_v0 = vpop.f32.mrf.mxu1  ;;  %v9004_v3 = vadd.f32 %v15257_v18, %v15256_v39  ;;  %v15263_v39 = vld [vmem:[#allocation74_spill] sm:$0xff] }
 0x303   : > { %15253 = vst [vmem:[#allocation68_spill] sm:$0xff] %v8992_v43 }
 0x304   : > { %15254 = vst [vmem:[#allocation162_spill] sm:$0xff] %v8994_v53  ;;  %2267 = vmatmul.f32.gmra.mxu0 %v1438_v48  ;;  %v1444_v48 = vmul.f32 %v7257_v54, %v9004_v3 }
 0x305   : > { %1855 = vmatmul.f32.gmra.mxu1 %v1442_v25  ;;  %6720 = vmatmul.msk.f32.gmra.mxu2 %vm355_vm0, %v1439_v12  ;;  %15258 = vst [vmem:[#allocation76_spill] sm:$0xff] %v9004_v3  ;;  %v7258_v12 = vld [vmem:[%s7582_s24 + $0x1e8] sm:$0xff]  ;;  %v15267_v3 = vld [vmem:[#allocation81_spill] sm:$0xff] }
 0x306   : > { %6658 = vmatmul.msk.f32.gmra.mxu3 %vm355_vm0, %v1443_v1  ;;  %v1445_v38 = vmul.f32 %v7258_v12, %v15261_v47  ;;  %v7259_v12 = vld [vmem:[%s7582_s24 + $0x1f0] sm:$0xff] }
 0x308   : > { %v2429_v16 = vpop.f32.mrf.mxu2 }
 0x309   : > { %v2017_v40 = vpop.f32.mrf.mxu3  ;;  %v9006_v23 = vadd.f32 %v2429_v16, %v2220_v52  ;;  %v2223_v53 = vpop.f32.mrf.mxu0  ;;  %v15262_v52 = vld [vmem:[#allocation79_spill] sm:$0xff] }
 0x30a   : > { %v9008_v56 = vadd.f32 %v2017_v40, %v1808_v0  ;;  %v1811_v43 = vpop.f32.mrf.mxu1  ;;  %v9018_v18 = vadd.f32 %v15263_v39, %v15262_v52  ;;  %v15269_v52 = vld [vmem:[#allocation77_spill] sm:$0xff] }
 0x30b   : > { %15259 = vst [vmem:[#allocation71_spill] sm:$0xff] %v9006_v23 }
 0x30c   : > { %15260 = vst [vmem:[#allocation163_spill] sm:$0xff] %v9008_v56  ;;  %2270 = vmatmul.f32.gmra.mxu0 %v1440_v45  ;;  %v1446_v45 = vmul.f32 %v7259_v12, %v9018_v18 }
 0x30d   : > { %1858 = vmatmul.f32.gmra.mxu1 %v1444_v48  ;;  %6721 = vmatmul.msk.f32.gmra.mxu2 %vm355_vm0, %v1441_v15  ;;  %15264 = vst [vmem:[#allocation79_spill] sm:$0xff] %v9018_v18  ;;  %v7260_v15 = vld [vmem:[%s7582_s24 + $0x1f8] sm:$0xff] }
 0x30e   : > { %6659 = vmatmul.msk.f32.gmra.mxu3 %vm355_vm0, %v1445_v38  ;;  %v1447_v47 = vmul.f32 %v7260_v15, %v15267_v3  ;;  %v7261_v15 = vld [vmem:[%s7582_s24 + $0x200] sm:$0xff]  ;;  %v15273_v3 = vld [vmem:[#allocation84_spill] sm:$0xff] }
 0x310   : > { %v2432_v0 = vpop.f32.mrf.mxu2 }
 0x311   : > { %v2020_v16 = vpop.f32.mrf.mxu3  ;;  %v9020_v40 = vadd.f32 %v2432_v0, %v2223_v53  ;;  %v2226_v23 = vpop.f32.mrf.mxu0  ;;  %v15268_v53 = vld [vmem:[#allocation82_spill] sm:$0xff] }
 0x312   : > { %v9022_v54 = vadd.f32 %v2020_v16, %v1811_v43  ;;  %v1814_v56 = vpop.f32.mrf.mxu1  ;;  %v9032_v39 = vadd.f32 %v15269_v52, %v15268_v53  ;;  %v15275_v53 = vld [vmem:[#allocation80_spill] sm:$0xff] }
 0x313   : > { %15265 = vst [vmem:[#allocation74_spill] sm:$0xff] %v9020_v40 }
 0x314   : > { %15266 = vst [vmem:[#allocation164_spill] sm:$0xff] %v9022_v54  ;;  %2273 = vmatmul.f32.gmra.mxu0 %v1442_v25  ;;  %v1448_v25 = vmul.f32 %v7261_v15, %v9032_v39 }
 0x315   : > { %1861 = vmatmul.f32.gmra.mxu1 %v1446_v45  ;;  %6722 = vmatmul.msk.f32.gmra.mxu2 %vm355_vm0, %v1443_v1  ;;  %15270 = vst [vmem:[#allocation82_spill] sm:$0xff] %v9032_v39  ;;  %v7262_v1 = vld [vmem:[%s7582_s24 + $0x208] sm:$0xff] }
 0x316   : > { %6660 = vmatmul.msk.f32.gmra.mxu3 %vm355_vm0, %v1447_v47  ;;  %v1449_v18 = vmul.f32 %v7262_v1, %v15273_v3  ;;  %v7263_v1 = vld [vmem:[%s7582_s24 + $0x210] sm:$0xff]  ;;  %v15279_v39 = vld [vmem:[#allocation87_spill] sm:$0xff] }
 0x318   : > { %v2435_v43 = vpop.f32.mrf.mxu2 }
 0x319   : > { %v2023_v0 = vpop.f32.mrf.mxu3  ;;  %v9034_v16 = vadd.f32 %v2435_v43, %v2226_v23  ;;  %v2229_v40 = vpop.f32.mrf.mxu0  ;;  %v15274_v23 = vld [vmem:[#allocation85_spill] sm:$0xff] }
 0x31a   : > { %v9036_v12 = vadd.f32 %v2023_v0, %v1814_v56  ;;  %v1817_v54 = vpop.f32.mrf.mxu1  ;;  %v9046_v52 = vadd.f32 %v15275_v53, %v15274_v23  ;;  %v15281_v23 = vld [vmem:[#allocation83_spill] sm:$0xff] }
 0x31b   : > { %15271 = vst [vmem:[#allocation77_spill] sm:$0xff] %v9034_v16 }
 0x31c   : > { %15272 = vst [vmem:[#allocation165_spill] sm:$0xff] %v9036_v12  ;;  %2276 = vmatmul.f32.gmra.mxu0 %v1444_v48  ;;  %v1450_v48 = vmul.f32 %v7263_v1, %v9046_v52 }
 0x31d   : > { %1864 = vmatmul.f32.gmra.mxu1 %v1448_v25  ;;  %6723 = vmatmul.msk.f32.gmra.mxu2 %vm355_vm0, %v1445_v38  ;;  %15276 = vst [vmem:[#allocation85_spill] sm:$0xff] %v9046_v52  ;;  %v7264_v38 = vld [vmem:[%s7582_s24 + $0x218] sm:$0xff] }
 0x31e   : > { %6661 = vmatmul.msk.f32.gmra.mxu3 %vm355_vm0, %v1449_v18  ;;  %v1451_v3 = vmul.f32 %v7264_v38, %v15279_v39  ;;  %v7265_v38 = vld [vmem:[%s7582_s24 + $0x220] sm:$0xff] }
 0x31f   : > { %v15285_v39 = vld [vmem:[#allocation90_spill] sm:$0xff] }
 0x320   : > { %v2438_v56 = vpop.f32.mrf.mxu2 }
 0x321   : > { %v2026_v43 = vpop.f32.mrf.mxu3  ;;  %v9048_v0 = vadd.f32 %v2438_v56, %v2229_v40  ;;  %v2232_v12 = vpop.f32.mrf.mxu0  ;;  %v15280_v40 = vld [vmem:[#allocation88_spill] sm:$0xff] }
 0x322   : > { %v9050_v15 = vadd.f32 %v2026_v43, %v1817_v54  ;;  %v1820_v16 = vpop.f32.mrf.mxu1  ;;  %v9060_v53 = vadd.f32 %v15281_v23, %v15280_v40  ;;  %v15287_v40 = vld [vmem:[#allocation86_spill] sm:$0xff] }
 0x323   : > { %15277 = vst [vmem:[#allocation80_spill] sm:$0xff] %v9048_v0 }
 0x324   : > { %15278 = vst [vmem:[#allocation166_spill] sm:$0xff] %v9050_v15  ;;  %2279 = vmatmul.f32.gmra.mxu0 %v1446_v45  ;;  %v1452_v45 = vmul.f32 %v7265_v38, %v9060_v53 }
 0x325   : > { %1867 = vmatmul.f32.gmra.mxu1 %v1450_v48  ;;  %6724 = vmatmul.msk.f32.gmra.mxu2 %vm355_vm0, %v1447_v47  ;;  %15282 = vst [vmem:[#allocation88_spill] sm:$0xff] %v9060_v53  ;;  %v7266_v47 = vld [vmem:[%s7582_s24 + $0x228] sm:$0xff] }
 0x326   : > { %6662 = vmatmul.msk.f32.gmra.mxu3 %vm355_vm0, %v1451_v3  ;;  %v1453_v52 = vmul.f32 %v7266_v47, %v15285_v39  ;;  %v7267_v47 = vld [vmem:[%s7582_s24 + $0x230] sm:$0xff] }
 0x328   : > { %v2441_v54 = vpop.f32.mrf.mxu2 }
 0x329   : > { %v2029_v56 = vpop.f32.mrf.mxu3  ;;  %v9062_v43 = vadd.f32 %v2441_v54, %v2232_v12  ;;  %v2235_v0 = vpop.f32.mrf.mxu0  ;;  %v15286_v12 = vld [vmem:[#allocation91_spill] sm:$0xff] }
 0x32a   : > { %v9064_v1 = vadd.f32 %v2029_v56, %v1820_v16  ;;  %v1823_v15 = vpop.f32.mrf.mxu1  ;;  %v9074_v23 = vadd.f32 %v15287_v40, %v15286_v12 }
 0x32b   : > { %15283 = vst [vmem:[#allocation83_spill] sm:$0xff] %v9062_v43 }
 0x32c   : > { %15284 = vst [vmem:[#allocation167_spill] sm:$0xff] %v9064_v1  ;;  %2282 = vmatmul.f32.gmra.mxu0 %v1448_v25  ;;  %v1454_v25 = vmul.f32 %v7267_v47, %v9074_v23 }
 0x32d   : > { %1870 = vmatmul.f32.gmra.mxu1 %v1452_v45  ;;  %6725 = vmatmul.msk.f32.gmra.mxu2 %vm355_vm0, %v1449_v18  ;;  %15288 = vst [vmem:[#allocation91_spill] sm:$0xff] %v9074_v23  ;;  %v7268_v18 = vld [vmem:[%s7582_s24 + $0x238] sm:$0xff] }
 0x32e   : > { %6663 = vmatmul.msk.f32.gmra.mxu3 %vm355_vm0, %v1453_v52  ;;  %v1455_v53 = vmul.f32 %v7268_v18, %v8293_v17  ;;  %v7269_v18 = vld [vmem:[%s7582_s24 + $0x240] sm:$0xff] }
 0x330   : > { %v2444_v16 = vpop.f32.mrf.mxu2 }
 0x331   : > { %v2032_v54 = vpop.f32.mrf.mxu3  ;;  %v9076_v56 = vadd.f32 %v2444_v16, %v2235_v0  ;;  %v2238_v43 = vpop.f32.mrf.mxu0  ;;  %v15291_v0 = vld [vmem:[#allocation89_spill] sm:$0xff] }
 0x332   : > { %v9078_v38 = vadd.f32 %v2032_v54, %v1823_v15  ;;  %v1826_v1 = vpop.f32.mrf.mxu1  ;;  %v9088_v12 = vadd.f32 %v15291_v0, %v8295_v55  ;;  %v15296_v55 = vld [vmem:[#allocation96_spill] sm:$0xff] }
 0x333   : > { %15289 = vst [vmem:[#allocation86_spill] sm:$0xff] %v9076_v56  ;;  %v15295_v56 = vld [vmem:[#allocation95_spill] sm:$0xff] }
 0x334   : > { %15290 = vst [vmem:[#allocation168_spill] sm:$0xff] %v9078_v38  ;;  %2285 = vmatmul.f32.gmra.mxu0 %v1450_v48  ;;  %v1456_v48 = vmul.f32 %v7269_v18, %v9088_v12 }
 0x335   : > { %1873 = vmatmul.f32.gmra.mxu1 %v1454_v25  ;;  %6726 = vmatmul.msk.f32.gmra.mxu2 %vm355_vm0, %v1451_v3  ;;  %15292 = vst [vmem:[#allocation89_spill] sm:$0xff] %v9088_v12  ;;  %v7270_v3 = vld [vmem:[%s7582_s24 + $0x248] sm:$0xff]  ;;  %v15301_v12 = vld [vmem:[#allocation98_spill] sm:$0xff] }
 0x336   : > { %6664 = vmatmul.msk.f32.gmra.mxu3 %vm355_vm0, %v1455_v53  ;;  %v1457_v17 = vmul.f32 %v7270_v3, %v15295_v56  ;;  %v7271_v3 = vld [vmem:[%s7582_s24 + $0x250] sm:$0xff] }
 0x338   : > { %v2447_v15 = vpop.f32.mrf.mxu2 }
 0x339   : > { %v2035_v40 = vpop.f32.mrf.mxu3  ;;  %v9090_v16 = vadd.f32 %v2447_v15, %v2238_v43  ;;  %v2241_v54 = vpop.f32.mrf.mxu0  ;;  %v15297_v43 = vld [vmem:[#allocation92_spill] sm:$0xff] }
 0x33a   : > { %v9092_v47 = vadd.f32 %v2035_v40, %v1826_v1  ;;  %v1829_v38 = vpop.f32.mrf.mxu1  ;;  %v9102_v0 = vadd.f32 %v15297_v43, %v15296_v55  ;;  %v15303_v55 = vld [vmem:[#allocation94_spill] sm:$0xff] }
 0x33b   : > { %15293 = vst [vmem:[#allocation169_spill] sm:$0xff] %v9090_v16 }
 0x33c   : > { %15294 = vst [vmem:[#allocation170_spill] sm:$0xff] %v9092_v47  ;;  %2288 = vmatmul.f32.gmra.mxu0 %v1452_v45  ;;  %v1458_v45 = vmul.f32 %v7271_v3, %v9102_v0 }
 0x33d   : > { %1876 = vmatmul.f32.gmra.mxu1 %v1456_v48  ;;  %6727 = vmatmul.msk.f32.gmra.mxu2 %vm355_vm0, %v1453_v52  ;;  %15298 = vst [vmem:[#allocation96_spill] sm:$0xff] %v9102_v0  ;;  %v7272_v52 = vld [vmem:[%s7582_s24 + $0x258] sm:$0xff] }
 0x33e   : > { %6665 = vmatmul.msk.f32.gmra.mxu3 %vm355_vm0, %v1457_v17  ;;  %v1459_v56 = vmul.f32 %v7272_v52, %v15301_v12  ;;  %v7273_v52 = vld [vmem:[%s7582_s24 + $0x260] sm:$0xff]  ;;  %v15307_v0 = vld [vmem:[#allocation101_spill] sm:$0xff] }
 0x340   : > { %v2450_v1 = vpop.f32.mrf.mxu2 }
 0x341   : > { %v2038_v15 = vpop.f32.mrf.mxu3  ;;  %v9104_v40 = vadd.f32 %v2450_v1, %v2241_v54  ;;  %v2244_v16 = vpop.f32.mrf.mxu0  ;;  %v15302_v54 = vld [vmem:[#allocation99_spill] sm:$0xff] }
 0x342   : > { %v9106_v18 = vadd.f32 %v2038_v15, %v1829_v38  ;;  %v1832_v47 = vpop.f32.mrf.mxu1  ;;  %v9116_v43 = vadd.f32 %v15303_v55, %v15302_v54  ;;  %v15309_v54 = vld [vmem:[#allocation97_spill] sm:$0xff] }
 0x343   : > { %15299 = vst [vmem:[#allocation92_spill] sm:$0xff] %v9104_v40 }
 0x344   : > { %15300 = vst [vmem:[#allocation171_spill] sm:$0xff] %v9106_v18  ;;  %2291 = vmatmul.f32.gmra.mxu0 %v1454_v25  ;;  %v1460_v25 = vmul.f32 %v7273_v52, %v9116_v43 }
 0x345   : > { %1879 = vmatmul.f32.gmra.mxu1 %v1458_v45  ;;  %6728 = vmatmul.msk.f32.gmra.mxu2 %vm355_vm0, %v1455_v53  ;;  %15304 = vst [vmem:[#allocation99_spill] sm:$0xff] %v9116_v43  ;;  %v7274_v53 = vld [vmem:[%s7582_s24 + $0x268] sm:$0xff] }
 0x346   : > { %6666 = vmatmul.msk.f32.gmra.mxu3 %vm355_vm0, %v1459_v56  ;;  %v1461_v12 = vmul.f32 %v7274_v53, %v15307_v0  ;;  %v7275_v53 = vld [vmem:[%s7582_s24 + $0x270] sm:$0xff] }
 0x348   : > { %v2453_v38 = vpop.f32.mrf.mxu2 }
 0x349   : > { %v2041_v1 = vpop.f32.mrf.mxu3  ;;  %v9118_v15 = vadd.f32 %v2453_v38, %v2244_v16  ;;  %v2247_v40 = vpop.f32.mrf.mxu0  ;;  %v15308_v16 = vld [vmem:[#allocation102_spill] sm:$0xff] }
 0x34a   : > { %v9120_v3 = vadd.f32 %v2041_v1, %v1832_v47  ;;  %v1835_v18 = vpop.f32.mrf.mxu1  ;;  %v9130_v55 = vadd.f32 %v15309_v54, %v15308_v16  ;;  %v15314_v16 = vld [vmem:[#allocation100_spill] sm:$0xff] }
 0x34b   : > { %15305 = vst [vmem:[#allocation94_spill] sm:$0xff] %v9118_v15 }
 0x34c   : > { %15306 = vst [vmem:[#allocation172_spill] sm:$0xff] %v9120_v3  ;;  %2294 = vmatmul.f32.gmra.mxu0 %v1456_v48  ;;  %v1462_v48 = vmul.f32 %v7275_v53, %v9130_v55 }
 0x34d   : > { %1882 = vmatmul.f32.gmra.mxu1 %v1460_v25  ;;  %6729 = vmatmul.msk.f32.gmra.mxu2 %vm355_vm0, %v1457_v17  ;;  %15310 = vst [vmem:[#allocation102_spill] sm:$0xff] %v9130_v55  ;;  %v7276_v17 = vld [vmem:[%s7582_s24 + $0x278] sm:$0xff] }
 0x34e   : > { %6667 = vmatmul.msk.f32.gmra.mxu3 %vm355_vm0, %v1461_v12  ;;  %v1463_v43 = vmul.f32 %v7276_v17, %v8379_v22  ;;  %v7277_v17 = vld [vmem:[%s7582_s24 + $0x280] sm:$0xff] }
 0x350   : > { %v2456_v47 = vpop.f32.mrf.mxu2 }
 0x351   : > { %v2044_v38 = vpop.f32.mrf.mxu3  ;;  %v9132_v1 = vadd.f32 %v2456_v47, %v2247_v40  ;;  %v2250_v3 = vpop.f32.mrf.mxu0  ;;  %v15313_v40 = vld [vmem:[#allocation105_spill] sm:$0xff] }
 0x352   : > { %v9134_v52 = vadd.f32 %v2044_v38, %v1835_v18  ;;  %v1838_v15 = vpop.f32.mrf.mxu1  ;;  %v9144_v54 = vadd.f32 %v15314_v16, %v15313_v40  ;;  %v15319_v40 = vld [vmem:[#allocation103_spill] sm:$0xff] }
 0x353   : > { %15311 = vst [vmem:[#allocation97_spill] sm:$0xff] %v9132_v1 }
 0x354   : > { %15312 = vst [vmem:[#allocation173_spill] sm:$0xff] %v9134_v52  ;;  %2297 = vmatmul.f32.gmra.mxu0 %v1458_v45  ;;  %v1464_v45 = vmul.f32 %v7277_v17, %v9144_v54 }
 0x355   : > { %1885 = vmatmul.f32.gmra.mxu1 %v1462_v48  ;;  %6730 = vmatmul.msk.f32.gmra.mxu2 %vm355_vm0, %v1459_v56  ;;  %15315 = vst [vmem:[#allocation105_spill] sm:$0xff] %v9144_v54  ;;  %v7278_v56 = vld [vmem:[%s7582_s24 + $0x288] sm:$0xff]  ;;  %v15323_v54 = vld [vmem:[#allocation110_spill] sm:$0xff] }
 0x356   : > { %6668 = vmatmul.msk.f32.gmra.mxu3 %vm355_vm0, %v1463_v43  ;;  %v1465_v55 = vmul.f32 %v7278_v56, %v8401_v10  ;;  %v7279_v56 = vld [vmem:[%s7582_s24 + $0x290] sm:$0xff] }
 0x358   : > { %v2459_v18 = vpop.f32.mrf.mxu2 }
 0x359   : > { %v2047_v47 = vpop.f32.mrf.mxu3  ;;  %v9146_v38 = vadd.f32 %v2459_v18, %v2250_v3  ;;  %v2253_v1 = vpop.f32.mrf.mxu0  ;;  %v15318_v3 = vld [vmem:[#allocation108_spill] sm:$0xff] }
 0x35a   : > { %v9148_v53 = vadd.f32 %v2047_v47, %v1838_v15  ;;  %v1841_v52 = vpop.f32.mrf.mxu1  ;;  %v9158_v16 = vadd.f32 %v15319_v40, %v15318_v3  ;;  %v15325_v3 = vld [vmem:[#allocation106_spill] sm:$0xff] }
 0x35b   : > { %15316 = vst [vmem:[#allocation100_spill] sm:$0xff] %v9146_v38 }
 0x35c   : > { %15317 = vst [vmem:[#allocation174_spill] sm:$0xff] %v9148_v53  ;;  %2300 = vmatmul.f32.gmra.mxu0 %v1460_v25  ;;  %v1466_v25 = vmul.f32 %v7279_v56, %v9158_v16 }
 0x35d   : > { %1888 = vmatmul.f32.gmra.mxu1 %v1464_v45  ;;  %6731 = vmatmul.msk.f32.gmra.mxu2 %vm355_vm0, %v1461_v12  ;;  %15320 = vst [vmem:[#allocation108_spill] sm:$0xff] %v9158_v16  ;;  %v7280_v12 = vld [vmem:[%s7582_s24 + $0x298] sm:$0xff] }
 0x35e   : > { %6669 = vmatmul.msk.f32.gmra.mxu3 %vm355_vm0, %v1465_v55  ;;  %v1467_v10 = vmul.f32 %v7280_v12, %v15323_v54  ;;  %v7281_v12 = vld [vmem:[%s7582_s24 + $0x2a0] sm:$0xff] }
 0x360   : > { %v2462_v15 = vpop.f32.mrf.mxu2 }
 0x361   : > { %v2050_v18 = vpop.f32.mrf.mxu3  ;;  %v9160_v47 = vadd.f32 %v2462_v15, %v2253_v1  ;;  %v2256_v38 = vpop.f32.mrf.mxu0  ;;  %v15324_v1 = vld [vmem:[#allocation111_spill] sm:$0xff] }
 0x362   : > { %v9162_v17 = vadd.f32 %v2050_v18, %v1841_v52  ;;  %v1844_v53 = vpop.f32.mrf.mxu1  ;;  %v9172_v40 = vadd.f32 %v15325_v3, %v15324_v1  ;;  %v15330_v1 = vld [vmem:[#allocation109_spill] sm:$0xff] }
 0x363   : > { %15321 = vst [vmem:[#allocation103_spill] sm:$0xff] %v9160_v47 }
 0x364   : > { %15322 = vst [vmem:[#allocation175_spill] sm:$0xff] %v9162_v17  ;;  %2303 = vmatmul.f32.gmra.mxu0 %v1462_v48  ;;  %v1468_v48 = vmul.f32 %v7281_v12, %v9172_v40 }
 0x365   : > { %1891 = vmatmul.f32.gmra.mxu1 %v1466_v25  ;;  %6732 = vmatmul.msk.f32.gmra.mxu2 %vm355_vm0, %v1463_v43  ;;  %15326 = vst [vmem:[#allocation111_spill] sm:$0xff] %v9172_v40  ;;  %v7282_v43 = vld [vmem:[%s7582_s24 + $0x2a8] sm:$0xff]  ;;  %v15334_v40 = vld [vmem:[#allocation116_spill] sm:$0xff] }
 0x366   : > { %6670 = vmatmul.msk.f32.gmra.mxu3 %vm355_vm0, %v1467_v10  ;;  %v1469_v16 = vmul.f32 %v7282_v43, %v8463_v9  ;;  %v7283_v43 = vld [vmem:[%s7582_s24 + $0x2b0] sm:$0xff] }
 0x368   : > { %v2465_v52 = vpop.f32.mrf.mxu2 }
 0x369   : > { %v2053_v15 = vpop.f32.mrf.mxu3  ;;  %v9174_v18 = vadd.f32 %v2465_v52, %v2256_v38  ;;  %v2259_v17 = vpop.f32.mrf.mxu0  ;;  %v15329_v38 = vld [vmem:[#allocation114_spill] sm:$0xff] }
 0x36a   : > { %v9176_v56 = vadd.f32 %v2053_v15, %v1844_v53  ;;  %v1847_v47 = vpop.f32.mrf.mxu1  ;;  %v9186_v3 = vadd.f32 %v15330_v1, %v15329_v38  ;;  %v15336_v38 = vld [vmem:[#allocation112_spill] sm:$0xff] }
 0x36b   : > { %15327 = vst [vmem:[#allocation106_spill] sm:$0xff] %v9174_v18 }
 0x36c   : > { %15328 = vst [vmem:[#allocation176_spill] sm:$0xff] %v9176_v56  ;;  %2306 = vmatmul.f32.gmra.mxu0 %v1464_v45  ;;  %v1470_v45 = vmul.f32 %v7283_v43, %v9186_v3 }
 0x36d   : > { %1894 = vmatmul.f32.gmra.mxu1 %v1468_v48  ;;  %6733 = vmatmul.msk.f32.gmra.mxu2 %vm355_vm0, %v1465_v55  ;;  %15331 = vst [vmem:[#allocation114_spill] sm:$0xff] %v9186_v3  ;;  %v7284_v55 = vld [vmem:[%s7582_s24 + $0x2b8] sm:$0xff]  ;;  %v15340_v3 = vld [vmem:[#allocation119_spill] sm:$0xff] }
 0x36e   : > { %6671 = vmatmul.msk.f32.gmra.mxu3 %vm355_vm0, %v1469_v16  ;;  %v1471_v9 = vmul.f32 %v7284_v55, %v15334_v40  ;;  %v7285_v55 = vld [vmem:[%s7582_s24 + $0x2c0] sm:$0xff] }
 0x370   : > { %v2468_v53 = vpop.f32.mrf.mxu2 }
 0x371   : > { %v2056_v52 = vpop.f32.mrf.mxu3  ;;  %v9188_v15 = vadd.f32 %v2468_v53, %v2259_v17  ;;  %v2262_v18 = vpop.f32.mrf.mxu0  ;;  %v15335_v17 = vld [vmem:[#allocation117_spill] sm:$0xff] }
 0x372   : > { %v9190_v12 = vadd.f32 %v2056_v52, %v1847_v47  ;;  %v1850_v56 = vpop.f32.mrf.mxu1  ;;  %v9200_v1 = vadd.f32 %v15336_v38, %v15335_v17  ;;  %v15342_v17 = vld [vmem:[#allocation115_spill] sm:$0xff] }
 0x373   : > { %15332 = vst [vmem:[#allocation109_spill] sm:$0xff] %v9188_v15 }
 0x374   : > { %15333 = vst [vmem:[#allocation177_spill] sm:$0xff] %v9190_v12  ;;  %2309 = vmatmul.f32.gmra.mxu0 %v1466_v25  ;;  %v1472_v25 = vmul.f32 %v7285_v55, %v9200_v1 }
 0x375   : > { %1897 = vmatmul.f32.gmra.mxu1 %v1470_v45  ;;  %6734 = vmatmul.msk.f32.gmra.mxu2 %vm355_vm0, %v1467_v10  ;;  %15337 = vst [vmem:[#allocation117_spill] sm:$0xff] %v9200_v1  ;;  %v7286_v10 = vld [vmem:[%s7582_s24 + $0x2c8] sm:$0xff] }
 0x376   : > { %6672 = vmatmul.msk.f32.gmra.mxu3 %vm355_vm0, %v1471_v9  ;;  %v1473_v40 = vmul.f32 %v7286_v10, %v15340_v3  ;;  %v7287_v10 = vld [vmem:[%s7582_s24 + $0x2d0] sm:$0xff] }
 0x378   : > { %v2471_v47 = vpop.f32.mrf.mxu2 }
 0x379   : > { %v2059_v53 = vpop.f32.mrf.mxu3  ;;  %v9202_v52 = vadd.f32 %v2471_v47, %v2262_v18  ;;  %v2265_v15 = vpop.f32.mrf.mxu0  ;;  %v15341_v18 = vld [vmem:[#allocation120_spill] sm:$0xff] }
 0x37a   : > { %v9204_v43 = vadd.f32 %v2059_v53, %v1850_v56  ;;  %v1853_v12 = vpop.f32.mrf.mxu1  ;;  %v9214_v38 = vadd.f32 %v15342_v17, %v15341_v18 }
 0x37b   : > { %15338 = vst [vmem:[#allocation112_spill] sm:$0xff] %v9202_v52 }
 0x37c   : > { %15339 = vst [vmem:[#allocation178_spill] sm:$0xff] %v9204_v43  ;;  %2312 = vmatmul.f32.gmra.mxu0 %v1468_v48  ;;  %v1474_v48 = vmul.f32 %v7287_v10, %v9214_v38 }
 0x37d   : > { %1900 = vmatmul.f32.gmra.mxu1 %v1472_v25  ;;  %6735 = vmatmul.msk.f32.gmra.mxu2 %vm355_vm0, %v1469_v16  ;;  %15343 = vst [vmem:[#allocation120_spill] sm:$0xff] %v9214_v38  ;;  %v7288_v16 = vld [vmem:[%s7582_s24 + $0x2d8] sm:$0xff] }
 0x37e   : > { %6673 = vmatmul.msk.f32.gmra.mxu3 %vm355_vm0, %v1473_v40  ;;  %v1475_v1 = vmul.f32 %v7288_v16, %v8520_v42  ;;  %v7289_v16 = vld [vmem:[%s7582_s24 + $0x2e0] sm:$0xff] }
 0x380   : > { %v2474_v56 = vpop.f32.mrf.mxu2 }
 0x381   : > { %v2062_v47 = vpop.f32.mrf.mxu3  ;;  %v9216_v53 = vadd.f32 %v2474_v56, %v2265_v15  ;;  %v2268_v43 = vpop.f32.mrf.mxu0  ;;  %v15346_v15 = vld [vmem:[#allocation118_spill] sm:$0xff] }
 0x382   : > { %v9218_v55 = vadd.f32 %v2062_v47, %v1853_v12  ;;  %v1856_v52 = vpop.f32.mrf.mxu1  ;;  %v9228_v18 = vadd.f32 %v15346_v15, %v8522_v49  ;;  %v15350_v49 = vld [vmem:[#allocation121_spill] sm:$0xff] }
 0x383   : > { %15344 = vst [vmem:[#allocation115_spill] sm:$0xff] %v9216_v53 }
 0x384   : > { %15345 = vst [vmem:[#allocation179_spill] sm:$0xff] %v9218_v55  ;;  %2315 = vmatmul.f32.gmra.mxu0 %v1470_v45  ;;  %v1476_v45 = vmul.f32 %v7289_v16, %v9228_v18 }
 0x385   : > { %1903 = vmatmul.f32.gmra.mxu1 %v1474_v48  ;;  %6736 = vmatmul.msk.f32.gmra.mxu2 %vm355_vm0, %v1471_v9  ;;  %15347 = vst [vmem:[#allocation118_spill] sm:$0xff] %v9228_v18  ;;  %v7290_v9 = vld [vmem:[%s7582_s24 + $0x2e8] sm:$0xff] }
 0x386   : > { %6674 = vmatmul.msk.f32.gmra.mxu3 %vm355_vm0, %v1475_v1  ;;  %v1477_v53 = vmul.f32 %v7290_v9, %v8540_v50  ;;  %v7291_v9 = vld [vmem:[%s7582_s24 + $0x2f0] sm:$0xff] }
 0x388   : > { %v2477_v12 = vpop.f32.mrf.mxu2 }
 0x389   : > { %v2065_v17 = vpop.f32.mrf.mxu3  ;;  %v9230_v56 = vadd.f32 %v2477_v12, %v2268_v43  ;;  %v2271_v47 = vpop.f32.mrf.mxu0  ;;  %v9242_v43 = vadd.f32 %v15350_v49, %v8542_v33  ;;  %v9256_v33 = vadd.f32 %v8525_v13, %v8569_v34  ;;  %v9270_v13 = vadd.f32 %v8547_v44, %v8594_v63 }
 0x38a   : > { %v9232_v10 = vadd.f32 %v2065_v17, %v1856_v52  ;;  %v1859_v55 = vpop.f32.mrf.mxu1  ;;  %v9284_v44 = vadd.f32 %v8572_v57, %v8615_v46  ;;  %v9298_v57 = vadd.f32 %v8597_v26, %v8634_v37  ;;  %v9312_v26 = vadd.f32 %v8617_v61, %v8650_v28 }
 0x38b   : > { %15348 = vst [vmem:[#allocation180_spill] sm:$0xff] %v9230_v56  ;;  %v9326_v61 = vadd.f32 %v8636_v41, %v8666_v35  ;;  %v9340_v41 = vadd.f32 %v8652_v36, %v8682_v14  ;;  %v9354_v36 = vadd.f32 %v8668_v58, %v8698_v8  ;;  %v9368_v8 = vadd.f32 %v8684_v30, %v8714_v21 }
 0x38c   : > { %15349 = vst [vmem:[#allocation181_spill] sm:$0xff] %v9232_v10  ;;  %2318 = vmatmul.f32.gmra.mxu0 %v1472_v25  ;;  %v1478_v25 = vmul.f32 %v7291_v9, %v9242_v43  ;;  %v9382_v21 = vadd.f32 %v8700_v62, %v8730_v24  ;;  %v9396_v24 = vadd.f32 %v8716_v51, %v8746_v60  ;;  %v15387_v60 = vld [vmem:[#allocation142_spill] sm:$0xff]  ;;  %v15388_v51 = vld [vmem:[#allocation140_spill] sm:$0xff] }
 0x38d   : > { %1906 = vmatmul.f32.gmra.mxu1 %v1476_v45  ;;  %6737 = vmatmul.msk.f32.gmra.mxu2 %vm355_vm0, %v1473_v40  ;;  %15351 = vst [vmem:[#allocation121_spill] sm:$0xff] %v9242_v43  ;;  %v7292_v40 = vld [vmem:[%s7582_s24 + $0x2f8] sm:$0xff] }
 0x38e   : > { %6675 = vmatmul.msk.f32.gmra.mxu3 %vm355_vm0, %v1477_v53  ;;  %v1479_v10 = vmul.f32 %v7292_v40, %v8567_v59  ;;  %15354 = vst [vmem:[#allocation184_spill] sm:$0xff] %v9256_v33  ;;  %v7293_v40 = vld [vmem:[%s7582_s24 + $0x300] sm:$0xff] }
 0x38f   : > { %15357 = vst [vmem:[#allocation187_spill] sm:$0xff] %v9270_v13 }
 0x390   : > { %v2480_v52 = vpop.f32.mrf.mxu2  ;;  %15360 = vst [vmem:[#allocation190_spill] sm:$0xff] %v9284_v44 }
 0x391   : > { %v2068_v15 = vpop.f32.mrf.mxu3  ;;  %v9244_v12 = vadd.f32 %v2480_v52, %v2271_v47  ;;  %v2274_v17 = vpop.f32.mrf.mxu0  ;;  %15363 = vst [vmem:[#allocation193_spill] sm:$0xff] %v9298_v57 }
 0x392   : > { %v9246_v16 = vadd.f32 %v2068_v15, %v1859_v55  ;;  %v1862_v56 = vpop.f32.mrf.mxu1  ;;  %15366 = vst [vmem:[#allocation196_spill] sm:$0xff] %v9312_v26 }
 0x393   : > { %15352 = vst [vmem:[#allocation182_spill] sm:$0xff] %v9244_v12 }
 0x394   : > { %15353 = vst [vmem:[#allocation183_spill] sm:$0xff] %v9246_v16  ;;  %2321 = vmatmul.f32.gmra.mxu0 %v1474_v48  ;;  %v1480_v48 = vmul.f32 %v7293_v40, %v9256_v33 }
 0x395   : > { %1909 = vmatmul.f32.gmra.mxu1 %v1478_v25  ;;  %6738 = vmatmul.msk.f32.gmra.mxu2 %vm355_vm0, %v1475_v1  ;;  %v7294_v1 = vld [vmem:[%s7582_s24 + $0x308] sm:$0xff]  ;;  %15369 = vst [vmem:[#allocation199_spill] sm:$0xff] %v9326_v61 }
 0x396   : > { %6676 = vmatmul.msk.f32.gmra.mxu3 %vm355_vm0, %v1479_v10  ;;  %v1481_v12 = vmul.f32 %v7294_v1, %v8592_v11  ;;  %v7295_v1 = vld [vmem:[%s7582_s24 + $0x310] sm:$0xff]  ;;  %15372 = vst [vmem:[#allocation202_spill] sm:$0xff] %v9340_v41 }
 0x397   : > { %15375 = vst [vmem:[#allocation205_spill] sm:$0xff] %v9354_v36 }
 0x398   : > { %v2483_v55 = vpop.f32.mrf.mxu2  ;;  %15378 = vst [vmem:[#allocation208_spill] sm:$0xff] %v9368_v8 }
 0x399   : > { %v2071_v47 = vpop.f32.mrf.mxu3  ;;  %v9258_v49 = vadd.f32 %v2483_v55, %v2274_v17  ;;  %v2277_v52 = vpop.f32.mrf.mxu0  ;;  %15381 = vst [vmem:[#allocation211_spill] sm:$0xff] %v9382_v21 }
 0x39a   : > { %v9260_v15 = vadd.f32 %v2071_v47, %v1862_v56  ;;  %v1865_v9 = vpop.f32.mrf.mxu1  ;;  %15384 = vst [vmem:[#allocation214_spill] sm:$0xff] %v9396_v24 }
 0x39b   : > { %15355 = vst [vmem:[#allocation185_spill] sm:$0xff] %v9258_v49 }
 0x39c   : > { %15356 = vst [vmem:[#allocation186_spill] sm:$0xff] %v9260_v15  ;;  %2324 = vmatmul.f32.gmra.mxu0 %v1476_v45  ;;  %v1482_v45 = vmul.f32 %v7295_v1, %v9270_v13 }
 0x39d   : > { %1912 = vmatmul.f32.gmra.mxu1 %v1480_v48  ;;  %6739 = vmatmul.msk.f32.gmra.mxu2 %vm355_vm0, %v1477_v53  ;;  %v7296_v53 = vld [vmem:[%s7582_s24 + $0x318] sm:$0xff] }
 0x39e   : > { %6677 = vmatmul.msk.f32.gmra.mxu3 %vm355_vm0, %v1481_v12  ;;  %v1483_v15 = vmul.f32 %v7296_v53, %v8613_v20  ;;  %v7297_v53 = vld [vmem:[%s7582_s24 + $0x320] sm:$0xff] }
 0x3a0   : > { %v2486_v34 = vpop.f32.mrf.mxu2 }
 0x3a1   : > { %v2074_v56 = vpop.f32.mrf.mxu3  ;;  %v9272_v17 = vadd.f32 %v2486_v34, %v2277_v52  ;;  %v2280_v55 = vpop.f32.mrf.mxu0 }
 0x3a2   : > { %v9274_v47 = vadd.f32 %v2074_v56, %v1865_v9  ;;  %v1868_v40 = vpop.f32.mrf.mxu1 }
 0x3a3   : > { %15358 = vst [vmem:[#allocation188_spill] sm:$0xff] %v9272_v17 }
 0x3a4   : > { %15359 = vst [vmem:[#allocation189_spill] sm:$0xff] %v9274_v47  ;;  %2327 = vmatmul.f32.gmra.mxu0 %v1478_v25  ;;  %v1484_v25 = vmul.f32 %v7297_v53, %v9284_v44 }
 0x3a5   : > { %1915 = vmatmul.f32.gmra.mxu1 %v1482_v45  ;;  %6740 = vmatmul.msk.f32.gmra.mxu2 %vm355_vm0, %v1479_v10  ;;  %v7298_v10 = vld [vmem:[%s7582_s24 + $0x328] sm:$0xff] }
 0x3a6   : > { %6678 = vmatmul.msk.f32.gmra.mxu3 %vm355_vm0, %v1483_v15  ;;  %v1485_v17 = vmul.f32 %v7298_v10, %v8632_v5  ;;  %v7299_v10 = vld [vmem:[%s7582_s24 + $0x330] sm:$0xff] }
 0x3a8   : > { %v2489_v63 = vpop.f32.mrf.mxu2 }
 0x3a9   : > { %v2077_v52 = vpop.f32.mrf.mxu3  ;;  %v9286_v9 = vadd.f32 %v2489_v63, %v2280_v55  ;;  %v2283_v34 = vpop.f32.mrf.mxu0 }
 0x3aa   : > { %v9288_v56 = vadd.f32 %v2077_v52, %v1868_v40  ;;  %v1871_v1 = vpop.f32.mrf.mxu1 }
 0x3ab   : > { %15361 = vst [vmem:[#allocation191_spill] sm:$0xff] %v9286_v9 }
 0x3ac   : > { %15362 = vst [vmem:[#allocation192_spill] sm:$0xff] %v9288_v56  ;;  %2330 = vmatmul.f32.gmra.mxu0 %v1480_v48  ;;  %v1486_v48 = vmul.f32 %v7299_v10, %v9298_v57 }
 0x3ad   : > { %1918 = vmatmul.f32.gmra.mxu1 %v1484_v25  ;;  %6741 = vmatmul.msk.f32.gmra.mxu2 %vm355_vm0, %v1481_v12  ;;  %v7300_v12 = vld [vmem:[%s7582_s24 + $0x338] sm:$0xff] }
 0x3ae   : > { %6679 = vmatmul.msk.f32.gmra.mxu3 %vm355_vm0, %v1485_v17  ;;  %v1487_v9 = vmul.f32 %v7300_v12, %v8648_v2  ;;  %v7301_v12 = vld [vmem:[%s7582_s24 + $0x340] sm:$0xff] }
 0x3b0   : > { %v2492_v46 = vpop.f32.mrf.mxu2 }
 0x3b1   : > { %v2080_v55 = vpop.f32.mrf.mxu3  ;;  %v9300_v40 = vadd.f32 %v2492_v46, %v2283_v34  ;;  %v2286_v63 = vpop.f32.mrf.mxu0 }
 0x3b2   : > { %v9302_v52 = vadd.f32 %v2080_v55, %v1871_v1  ;;  %v1874_v53 = vpop.f32.mrf.mxu1 }
 0x3b3   : > { %15364 = vst [vmem:[#allocation194_spill] sm:$0xff] %v9300_v40 }
 0x3b4   : > { %15365 = vst [vmem:[#allocation195_spill] sm:$0xff] %v9302_v52  ;;  %2333 = vmatmul.f32.gmra.mxu0 %v1482_v45  ;;  %v1488_v45 = vmul.f32 %v7301_v12, %v9312_v26 }
 0x3b5   : > { %1921 = vmatmul.f32.gmra.mxu1 %v1486_v48  ;;  %6742 = vmatmul.msk.f32.gmra.mxu2 %vm355_vm0, %v1483_v15  ;;  %v7302_v15 = vld [vmem:[%s7582_s24 + $0x348] sm:$0xff] }
 0x3b6   : > { %6680 = vmatmul.msk.f32.gmra.mxu3 %vm355_vm0, %v1487_v9  ;;  %v1489_v52 = vmul.f32 %v7302_v15, %v8664_v19  ;;  %v7303_v15 = vld [vmem:[%s7582_s24 + $0x350] sm:$0xff] }
 0x3b8   : > { %v2495_v37 = vpop.f32.mrf.mxu2 }
 0x3b9   : > { %v2083_v34 = vpop.f32.mrf.mxu3  ;;  %v9314_v1 = vadd.f32 %v2495_v37, %v2286_v63  ;;  %v2289_v46 = vpop.f32.mrf.mxu0 }
 0x3ba   : > { %v9316_v55 = vadd.f32 %v2083_v34, %v1874_v53  ;;  %v1877_v10 = vpop.f32.mrf.mxu1 }
 0x3bb   : > { %15367 = vst [vmem:[#allocation197_spill] sm:$0xff] %v9314_v1 }
 0x3bc   : > { %15368 = vst [vmem:[#allocation198_spill] sm:$0xff] %v9316_v55  ;;  %2336 = vmatmul.f32.gmra.mxu0 %v1484_v25  ;;  %v1490_v25 = vmul.f32 %v7303_v15, %v9326_v61  ;;  %v15473_v55 = vld [vmem:[#allocation36_spill] sm:$0xff] }
 0x3bd   : > { %1924 = vmatmul.f32.gmra.mxu1 %v1488_v45  ;;  %6743 = vmatmul.msk.f32.gmra.mxu2 %vm355_vm0, %v1485_v17  ;;  %v7304_v17 = vld [vmem:[%s7582_s24 + $0x358] sm:$0xff] }
 0x3be   : > { %6681 = vmatmul.msk.f32.gmra.mxu3 %vm355_vm0, %v1489_v52  ;;  %v1491_v1 = vmul.f32 %v7304_v17, %v8680_v31  ;;  %v7305_v17 = vld [vmem:[%s7582_s24 + $0x360] sm:$0xff] }
 0x3c0   : > { %v2498_v28 = vpop.f32.mrf.mxu2 }
 0x3c1   : > { %v2086_v63 = vpop.f32.mrf.mxu3  ;;  %v9328_v53 = vadd.f32 %v2498_v28, %v2289_v46  ;;  %v2292_v37 = vpop.f32.mrf.mxu0 }
 0x3c2   : > { %v9330_v34 = vadd.f32 %v2086_v63, %v1877_v10  ;;  %v1880_v12 = vpop.f32.mrf.mxu1 }
 0x3c3   : > { %15370 = vst [vmem:[#allocation200_spill] sm:$0xff] %v9328_v53 }
 0x3c4   : > { %15371 = vst [vmem:[#allocation201_spill] sm:$0xff] %v9330_v34  ;;  %2339 = vmatmul.f32.gmra.mxu0 %v1486_v48  ;;  %v1492_v48 = vmul.f32 %v7305_v17, %v9340_v41  ;;  %v15415_v34 = vld [vmem:[#allocation35_spill] sm:$0xff] }
 0x3c5   : > { %1927 = vmatmul.f32.gmra.mxu1 %v1490_v25  ;;  %6744 = vmatmul.msk.f32.gmra.mxu2 %vm355_vm0, %v1487_v9  ;;  %v7306_v9 = vld [vmem:[%s7582_s24 + $0x368] sm:$0xff] }
 0x3c6   : > { %6682 = vmatmul.msk.f32.gmra.mxu3 %vm355_vm0, %v1491_v1  ;;  %v1493_v53 = vmul.f32 %v7306_v9, %v8696_v32  ;;  %v7307_v9 = vld [vmem:[%s7582_s24 + $0x370] sm:$0xff] }
 0x3c8   : > { %v2501_v35 = vpop.f32.mrf.mxu2 }
 0x3c9   : > { %v2089_v46 = vpop.f32.mrf.mxu3  ;;  %v9342_v10 = vadd.f32 %v2501_v35, %v2292_v37  ;;  %v2295_v28 = vpop.f32.mrf.mxu0 }
 0x3ca   : > { %v9344_v63 = vadd.f32 %v2089_v46, %v1880_v12  ;;  %v1883_v15 = vpop.f32.mrf.mxu1 }
 0x3cb   : > { %15373 = vst [vmem:[#allocation203_spill] sm:$0xff] %v9342_v10 }
 0x3cc   : > { %15374 = vst [vmem:[#allocation204_spill] sm:$0xff] %v9344_v63  ;;  %2342 = vmatmul.f32.gmra.mxu0 %v1488_v45  ;;  %v1494_v45 = vmul.f32 %v7307_v9, %v9354_v36 }
 0x3cd   : > { %1930 = vmatmul.f32.gmra.mxu1 %v1492_v48  ;;  %6745 = vmatmul.msk.f32.gmra.mxu2 %vm355_vm0, %v1489_v52  ;;  %v7308_v52 = vld [vmem:[%s7582_s24 + $0x378] sm:$0xff] }
 0x3ce   : > { %6683 = vmatmul.msk.f32.gmra.mxu3 %vm355_vm0, %v1493_v53  ;;  %v1495_v63 = vmul.f32 %v7308_v52, %v8712_v29  ;;  %v7309_v52 = vld [vmem:[%s7582_s24 + $0x380] sm:$0xff] }
 0x3d0   : > { %v2504_v14 = vpop.f32.mrf.mxu2 }
 0x3d1   : > { %v2092_v37 = vpop.f32.mrf.mxu3  ;;  %v9356_v12 = vadd.f32 %v2504_v14, %v2295_v28  ;;  %v2298_v35 = vpop.f32.mrf.mxu0 }
 0x3d2   : > { %v9358_v46 = vadd.f32 %v2092_v37, %v1883_v15  ;;  %v1886_v17 = vpop.f32.mrf.mxu1 }
 0x3d3   : > { %15376 = vst [vmem:[#allocation206_spill] sm:$0xff] %v9356_v12 }
 0x3d4   : > { %15377 = vst [vmem:[#allocation207_spill] sm:$0xff] %v9358_v46  ;;  %2345 = vmatmul.f32.gmra.mxu0 %v1490_v25  ;;  %v1496_v25 = vmul.f32 %v7309_v52, %v9368_v8 }
 0x3d5   : > { %1933 = vmatmul.f32.gmra.mxu1 %v1494_v45  ;;  %6746 = vmatmul.msk.f32.gmra.mxu2 %vm355_vm0, %v1491_v1  ;;  %v7310_v1 = vld [vmem:[%s7582_s24 + $0x388] sm:$0xff] }
 0x3d6   : > { %6684 = vmatmul.msk.f32.gmra.mxu3 %vm355_vm0, %v1495_v63  ;;  %v1497_v12 = vmul.f32 %v7310_v1, %v8728_v6  ;;  %v7311_v1 = vld [vmem:[%s7582_s24 + $0x390] sm:$0xff] }
 0x3d8   : > { %v2507_v58 = vpop.f32.mrf.mxu2 }
 0x3d9   : > { %v2095_v28 = vpop.f32.mrf.mxu3  ;;  %v9370_v15 = vadd.f32 %v2507_v58, %v2298_v35  ;;  %v2301_v14 = vpop.f32.mrf.mxu0 }
 0x3da   : > { %v9372_v37 = vadd.f32 %v2095_v28, %v1886_v17  ;;  %v1889_v9 = vpop.f32.mrf.mxu1 }
 0x3db   : > { %15379 = vst [vmem:[#allocation209_spill] sm:$0xff] %v9370_v15 }
 0x3dc   : > { %15380 = vst [vmem:[#allocation210_spill] sm:$0xff] %v9372_v37  ;;  %2348 = vmatmul.f32.gmra.mxu0 %v1492_v48  ;;  %v1498_v48 = vmul.f32 %v7311_v1, %v9382_v21 }
 0x3dd   : > { %1936 = vmatmul.f32.gmra.mxu1 %v1496_v25  ;;  %6747 = vmatmul.msk.f32.gmra.mxu2 %vm355_vm0, %v1493_v53  ;;  %v7312_v53 = vld [vmem:[%s7582_s24 + $0x398] sm:$0xff] }
 0x3de   : > { %6685 = vmatmul.msk.f32.gmra.mxu3 %vm355_vm0, %v1497_v12  ;;  %v1499_v15 = vmul.f32 %v7312_v53, %v8744_v4  ;;  %v7313_v53 = vld [vmem:[%s7582_s24 + $0x3a0] sm:$0xff] }
 0x3e0   : > { %v2510_v30 = vpop.f32.mrf.mxu2 }
 0x3e1   : > { %v2098_v35 = vpop.f32.mrf.mxu3  ;;  %v9384_v17 = vadd.f32 %v2510_v30, %v2301_v14  ;;  %v2304_v58 = vpop.f32.mrf.mxu0 }
 0x3e2   : > { %v9386_v28 = vadd.f32 %v2098_v35, %v1889_v9  ;;  %v1892_v52 = vpop.f32.mrf.mxu1 }
 0x3e3   : > { %15382 = vst [vmem:[#allocation212_spill] sm:$0xff] %v9384_v17 }
 0x3e4   : > { %15383 = vst [vmem:[#allocation213_spill] sm:$0xff] %v9386_v28  ;;  %2351 = vmatmul.f32.gmra.mxu0 %v1494_v45  ;;  %v1500_v45 = vmul.f32 %v7313_v53, %v9396_v24  ;;  %v15392_v28 = vld [vmem:[#allocation23_spill] sm:$0xff]  ;;  %v15472_v24 = vld [vmem:[#allocation33_spill] sm:$0xff] }
 0x3e5   : > { %1939 = vmatmul.f32.gmra.mxu1 %v1498_v48  ;;  %6748 = vmatmul.msk.f32.gmra.mxu2 %vm355_vm0, %v1495_v63  ;;  %v7314_v63 = vld [vmem:[%s7582_s24 + $0x3a8] sm:$0xff] }
 0x3e6   : > { %6686 = vmatmul.msk.f32.gmra.mxu3 %vm355_vm0, %v1499_v15  ;;  %v1501_v17 = vmul.f32 %v7314_v63, %v8760_v27  ;;  %v7315_v63 = vld [vmem:[%s7582_s24 + $0x3b0] sm:$0xff] }
 0x3e8   : > { %v2513_v62 = vpop.f32.mrf.mxu2 }
 0x3e9   : > { %v2101_v14 = vpop.f32.mrf.mxu3  ;;  %v9398_v9 = vadd.f32 %v2513_v62, %v2304_v58  ;;  %v2307_v30 = vpop.f32.mrf.mxu0  ;;  %v9410_v58 = vadd.f32 %v15388_v51, %v15387_v60  ;;  %v15394_v60 = vld [vmem:[#allocation141_spill] sm:$0xff] }
 0x3ea   : > { %v9400_v35 = vadd.f32 %v2101_v14, %v1892_v52  ;;  %v1895_v1 = vpop.f32.mrf.mxu1 }
 0x3eb   : > { %15385 = vst [vmem:[#allocation215_spill] sm:$0xff] %v9398_v9 }
 0x3ec   : > { %15386 = vst [vmem:[#allocation216_spill] sm:$0xff] %v9400_v35  ;;  %2354 = vmatmul.f32.gmra.mxu0 %v1496_v25  ;;  %v1502_v25 = vmul.f32 %v7315_v63, %v9410_v58 }
 0x3ed   : > { %1942 = vmatmul.f32.gmra.mxu1 %v1500_v45  ;;  %6749 = vmatmul.msk.f32.gmra.mxu2 %vm355_vm0, %v1497_v12  ;;  %15389 = vst [vmem:[#allocation142_spill] sm:$0xff] %v9410_v58  ;;  %v7316_v12 = vld [vmem:[%s7582_s24 + $0x3b8] sm:$0xff]  ;;  %v15398_v58 = vld [vmem:[#allocation26_spill] sm:$0xff] }
 0x3ee   : > { %6687 = vmatmul.msk.f32.gmra.mxu3 %vm355_vm0, %v1501_v17  ;;  %v1503_v37 = vmul.f32 %v7316_v12, %v15392_v28  ;;  %v7317_v12 = vld [vmem:[%s7582_s24 + $0x3c0] sm:$0xff] }
 0x3f0   : > { %v2516_v52 = vpop.f32.mrf.mxu2 }
 0x3f1   : > { %v2104_v62 = vpop.f32.mrf.mxu3  ;;  %v9412_v14 = vadd.f32 %v2516_v52, %v2307_v30  ;;  %v2310_v35 = vpop.f32.mrf.mxu0  ;;  %v15393_v30 = vld [vmem:[#allocation144_spill] sm:$0xff] }
 0x3f2   : > { %v9414_v53 = vadd.f32 %v2104_v62, %v1895_v1  ;;  %v1898_v9 = vpop.f32.mrf.mxu1  ;;  %v9424_v51 = vadd.f32 %v15394_v60, %v15393_v30  ;;  %v15400_v30 = vld [vmem:[#allocation143_spill] sm:$0xff] }
 0x3f3   : > { %15390 = vst [vmem:[#allocation140_spill] sm:$0xff] %v9412_v14 }
 0x3f4   : > { %15391 = vst [vmem:[#allocation217_spill] sm:$0xff] %v9414_v53  ;;  %2357 = vmatmul.f32.gmra.mxu0 %v1498_v48  ;;  %v1504_v48 = vmul.f32 %v7317_v12, %v9424_v51 }
 0x3f5   : > { %1945 = vmatmul.f32.gmra.mxu1 %v1502_v25  ;;  %6750 = vmatmul.msk.f32.gmra.mxu2 %vm355_vm0, %v1499_v15  ;;  %15395 = vst [vmem:[#allocation144_spill] sm:$0xff] %v9424_v51  ;;  %v7318_v15 = vld [vmem:[%s7582_s24 + $0x3c8] sm:$0xff] }
 0x3f6   : > { %6688 = vmatmul.msk.f32.gmra.mxu3 %vm355_vm0, %v1503_v37  ;;  %v1505_v46 = vmul.f32 %v7318_v15, %v15398_v58  ;;  %v7319_v15 = vld [vmem:[%s7582_s24 + $0x3d0] sm:$0xff] }
 0x3f8   : > { %v2519_v1 = vpop.f32.mrf.mxu2 }
 0x3f9   : > { %v2107_v52 = vpop.f32.mrf.mxu3  ;;  %v9426_v62 = vadd.f32 %v2519_v1, %v2310_v35  ;;  %v2313_v14 = vpop.f32.mrf.mxu0  ;;  %v15399_v35 = vld [vmem:[#allocation146_spill] sm:$0xff] }
 0x3fa   : > { %v9428_v63 = vadd.f32 %v2107_v52, %v1898_v9  ;;  %v1901_v53 = vpop.f32.mrf.mxu1  ;;  %v9438_v60 = vadd.f32 %v15400_v30, %v15399_v35  ;;  %v15406_v35 = vld [vmem:[#allocation145_spill] sm:$0xff] }
 0x3fb   : > { %15396 = vst [vmem:[#allocation141_spill] sm:$0xff] %v9426_v62 }
 0x3fc   : > { %15397 = vst [vmem:[#allocation218_spill] sm:$0xff] %v9428_v63  ;;  %2360 = vmatmul.f32.gmra.mxu0 %v1500_v45  ;;  %v1506_v45 = vmul.f32 %v7319_v15, %v9438_v60  ;;  %v15404_v63 = vld [vmem:[#allocation29_spill] sm:$0xff] }
 0x3fd   : > { %1948 = vmatmul.f32.gmra.mxu1 %v1504_v48  ;;  %6751 = vmatmul.msk.f32.gmra.mxu2 %vm355_vm0, %v1501_v17  ;;  %15401 = vst [vmem:[#allocation146_spill] sm:$0xff] %v9438_v60  ;;  %v7320_v17 = vld [vmem:[%s7582_s24 + $0x3d8] sm:$0xff] }
 0x3fe   : > { %6689 = vmatmul.msk.f32.gmra.mxu3 %vm355_vm0, %v1505_v46  ;;  %v1507_v10 = vmul.f32 %v7320_v17, %v15404_v63  ;;  %v7321_v17 = vld [vmem:[%s7582_s24 + $0x3e0] sm:$0xff] }
 0x400   : > { %v2522_v9 = vpop.f32.mrf.mxu2 }
 0x401   : > { %v2110_v1 = vpop.f32.mrf.mxu3  ;;  %v9440_v52 = vadd.f32 %v2522_v9, %v2313_v14  ;;  %v2316_v62 = vpop.f32.mrf.mxu0  ;;  %v15405_v14 = vld [vmem:[#allocation148_spill] sm:$0xff] }
 0x402   : > { %v9442_v12 = vadd.f32 %v2110_v1, %v1901_v53  ;;  %v1904_v51 = vpop.f32.mrf.mxu1  ;;  %v9452_v30 = vadd.f32 %v15406_v35, %v15405_v14  ;;  %v15411_v14 = vld [vmem:[#allocation147_spill] sm:$0xff] }
 0x403   : > { %15402 = vst [vmem:[#allocation143_spill] sm:$0xff] %v9440_v52 }
 0x404   : > { %15403 = vst [vmem:[#allocation219_spill] sm:$0xff] %v9442_v12  ;;  %2363 = vmatmul.f32.gmra.mxu0 %v1502_v25  ;;  %v1508_v25 = vmul.f32 %v7321_v17, %v9452_v30 }
 0x405   : > { %1951 = vmatmul.f32.gmra.mxu1 %v1506_v45  ;;  %6752 = vmatmul.msk.f32.gmra.mxu2 %vm355_vm0, %v1503_v37  ;;  %15407 = vst [vmem:[#allocation148_spill] sm:$0xff] %v9452_v30  ;;  %v7322_v37 = vld [vmem:[%s7582_s24 + $0x3e8] sm:$0xff] }
 0x406   : > { %6690 = vmatmul.msk.f32.gmra.mxu3 %vm355_vm0, %v1507_v10  ;;  %v1509_v52 = vmul.f32 %v7322_v37, %v8822_v7  ;;  %v7324_v37 = vld [vmem:[%s7582_s24 + $0x3f8] sm:$0xff]  ;;  %v15471_v7 = vld [vmem:[#allocation31_spill] sm:$0xff] }
 0x408   : > { %v2525_v53 = vpop.f32.mrf.mxu2 }
 0x409   : > { %v2113_v9 = vpop.f32.mrf.mxu3  ;;  %v9454_v1 = vadd.f32 %v2525_v53, %v2316_v62  ;;  %v2319_v12 = vpop.f32.mrf.mxu0  ;;  %v15410_v62 = vld [vmem:[#allocation149_spill] sm:$0xff] }
 0x40a   : > { %v9456_v15 = vadd.f32 %v2113_v9, %v1904_v51  ;;  %v1907_v60 = vpop.f32.mrf.mxu1  ;;  %v9466_v35 = vadd.f32 %v15411_v14, %v15410_v62 }
 0x40b   : > { %15408 = vst [vmem:[#allocation145_spill] sm:$0xff] %v9454_v1 }
 0x40c   : > { %15409 = vst [vmem:[#allocation220_spill] sm:$0xff] %v9456_v15  ;;  %2366 = vmatmul.f32.gmra.mxu0 %v1504_v48  ;;  %v7323_v15 = vld [vmem:[%s7582_s24 + $0x3f0] sm:$0xff] }
 0x40d   : > { %1954 = vmatmul.f32.gmra.mxu1 %v1508_v25  ;;  %6753 = vmatmul.msk.f32.gmra.mxu2 %vm355_vm0, %v1505_v46  ;;  %15412 = vst [vmem:[#allocation149_spill] sm:$0xff] %v9466_v35  ;;  %v1510_v48 = vmul.f32 %v7323_v15, %v9466_v35  ;;  %v1511_v46 = vmul.f32 %v7324_v37, %v15415_v34  ;;  %v15419_v35 = vld [vmem:[#allocation2_spill] sm:$0xff]  ;;  %v15470_v34 = vld [vmem:[#allocation28_spill] sm:$0xff] }
 0x40e   : > { %6691 = vmatmul.msk.f32.gmra.mxu3 %vm355_vm0, %v1509_v52  ;;  %v2589_v37 = vmul.f32 %v15419_v35, %v15419_v35 }
 0x410   : > { %v2528_v51 = vpop.f32.mrf.mxu2 }
 0x411   : > { %v2116_v53 = vpop.f32.mrf.mxu3  ;;  %v9468_v9 = vadd.f32 %v2528_v51, %v2319_v12  ;;  %v2322_v1 = vpop.f32.mrf.mxu0 }
 0x412   : > { %v9470_v17 = vadd.f32 %v2116_v53, %v1907_v60  ;;  %v1910_v30 = vpop.f32.mrf.mxu1 }
 0x413   : > { %15413 = vst [vmem:[#allocation147_spill] sm:$0xff] %v9468_v9  ;;  %v15418_v9 = vld [vmem:[#allocation122_spill] sm:$0xff] }
 0x414   : > { %15414 = vst [vmem:[#allocation221_spill] sm:$0xff] %v9470_v17  ;;  %2369 = vmatmul.f32.gmra.mxu0 %v1506_v45  ;;  %v2588_v15 = vmul.f32 %v15418_v9, %v15418_v9 }
 0x415   : > { %1957 = vmatmul.f32.gmra.mxu1 %v1510_v48  ;;  %6754 = vmatmul.msk.f32.gmra.mxu2 %vm355_vm0, %v1507_v10 }
 0x416   : > { %6692 = vmatmul.msk.f32.gmra.mxu3 %vm355_vm0, %v1511_v46 }
 0x418   : > { %v2531_v62 = vpop.f32.mrf.mxu2 }
 0x419   : > { %v2119_v14 = vpop.f32.mrf.mxu3  ;;  %v9478_v12 = vadd.f32 %v2531_v62, %v2322_v1  ;;  %v2325_v51 = vpop.f32.mrf.mxu0 }
 0x41a   : > { %v9480_v60 = vadd.f32 %v2119_v14, %v1910_v30  ;;  %v1913_v53 = vpop.f32.mrf.mxu1 }
 0x41b   : > { %15416 = vst [vmem:[#allocation222_spill] sm:$0xff] %v9478_v12  ;;  %v15422_v12 = vld [vmem:[#allocation124_spill] sm:$0xff] }
 0x41c   : > { %15417 = vst [vmem:[#allocation223_spill] sm:$0xff] %v9480_v60  ;;  %2372 = vmatmul.f32.gmra.mxu0 %v1508_v25  ;;  %v2590_v9 = vmul.f32 %v15422_v12, %v15422_v12  ;;  %v15423_v60 = vld [vmem:[#allocation3_spill] sm:$0xff] }
 0x41d   : > { %6755 = vmatmul.msk.f32.gmra.mxu2 %vm355_vm0, %v1509_v52  ;;  %3180 = vmatmul.f32.vlgmr.msra.gmra.mxu1 %v2588_v15  ;;  %v2591_v35 = vmul.f32 %v15423_v60, %v15423_v60 }
 0x41e   : > { %6757 = vmatmul.msk.f32.vlgmr.msra.gmra.mxu3 %vm355_vm0, %v2589_v37 }
 0x420   : > { %v2534_v10 = vpop.f32.mrf.mxu2 }
 0x421   : > { %v2122_v45 = vpop.f32.mrf.mxu3  ;;  %v9488_v1 = vadd.f32 %v2534_v10, %v2325_v51  ;;  %v2328_v62 = vpop.f32.mrf.mxu0 }
 0x422   : > { %v9490_v30 = vadd.f32 %v2122_v45, %v1913_v53  ;;  %v1916_v14 = vpop.f32.mrf.mxu1 }
 0x423   : > { %15420 = vst [vmem:[#allocation224_spill] sm:$0xff] %v9488_v1  ;;  %v15426_v1 = vld [vmem:[#allocation126_spill] sm:$0xff] }
 0x424   : > { %15421 = vst [vmem:[#allocation225_spill] sm:$0xff] %v9490_v30  ;;  %2375 = vmatmul.f32.gmra.mxu0 %v1510_v48  ;;  %v2592_v12 = vmul.f32 %v15426_v1, %v15426_v1  ;;  %v15427_v30 = vld [vmem:[#allocation4_spill] sm:$0xff] }
 0x425   : > { %6756 = vmatmul.msk.f32.gmra.mxu2 %vm355_vm0, %v1511_v46  ;;  %3183 = vmatmul.f32.gmra.mxu1 %v2590_v9  ;;  %v2593_v60 = vmul.f32 %v15427_v30, %v15427_v30 }
 0x426   : > { %6758 = vmatmul.msk.f32.gmra.mxu3 %vm355_vm0, %v2591_v35 }
 0x428   : > { %v2537_v52 = vpop.f32.mrf.mxu2 }
 0x429   : > { %v2125_v25 = vpop.f32.mrf.mxu3  ;;  %v9498_v51 = vadd.f32 %v2537_v52, %v2328_v62  ;;  %v2331_v10 = vpop.f32.mrf.mxu0 }
 0x42a   : > { %v9500_v53 = vadd.f32 %v2125_v25, %v1916_v14  ;;  %v1919_v45 = vpop.f32.mrf.mxu1 }
 0x42b   : > { %15424 = vst [vmem:[#allocation226_spill] sm:$0xff] %v9498_v51  ;;  %v15431_v51 = vld [vmem:[#allocation5_spill] sm:$0xff] }
 0x42c   : > { %15425 = vst [vmem:[#allocation227_spill] sm:$0xff] %v9500_v53  ;;  %3598 = vmatmul.f32.vlgmr.msra.gmra.mxu0 %v2588_v15  ;;  %v15430_v53 = vld [vmem:[#allocation128_spill] sm:$0xff]  ;;  %v2595_v30 = vmul.f32 %v15431_v51, %v15431_v51 }
 0x42d   : > { %3186 = vmatmul.f32.gmra.mxu1 %v2592_v12  ;;  %6821 = vmatmul.msk.f32.vlgmr.msra.gmra.mxu2 %vm355_vm0, %v2589_v37  ;;  %v2594_v1 = vmul.f32 %v15430_v53, %v15430_v53 }
 0x42e   : > { %6759 = vmatmul.msk.f32.gmra.mxu3 %vm355_vm0, %v2593_v60 }
 0x430   : > { %v2540_v48 = vpop.f32.mrf.mxu2 }
 0x431   : > { %v2128_v46 = vpop.f32.mrf.mxu3  ;;  %v9508_v62 = vadd.f32 %v2540_v48, %v2331_v10  ;;  %v2334_v52 = vpop.f32.mrf.mxu0 }
 0x432   : > { %v9510_v14 = vadd.f32 %v2128_v46, %v1919_v45  ;;  %v1922_v25 = vpop.f32.mrf.mxu1 }
 0x433   : > { %15428 = vst [vmem:[#allocation228_spill] sm:$0xff] %v9508_v62  ;;  %v15435_v62 = vld [vmem:[#allocation6_spill] sm:$0xff] }
 0x434   : > { %15429 = vst [vmem:[#allocation229_spill] sm:$0xff] %v9510_v14  ;;  %3601 = vmatmul.f32.gmra.mxu0 %v2590_v9  ;;  %v15434_v14 = vld [vmem:[#allocation130_spill] sm:$0xff]  ;;  %v2597_v51 = vmul.f32 %v15435_v62, %v15435_v62 }
 0x435   : > { %3189 = vmatmul.f32.gmra.mxu1 %v2594_v1  ;;  %6822 = vmatmul.msk.f32.gmra.mxu2 %vm355_vm0, %v2591_v35  ;;  %v2596_v53 = vmul.f32 %v15434_v14, %v15434_v14 }
 0x436   : > { %6760 = vmatmul.msk.f32.gmra.mxu3 %vm355_vm0, %v2595_v30 }
 0x438   : > { %v2543_v15 = vpop.f32.mrf.mxu2 }
 0x439   : > { %v2131_v37 = vpop.f32.mrf.mxu3  ;;  %v9518_v10 = vadd.f32 %v2543_v15, %v2334_v52  ;;  %v2337_v48 = vpop.f32.mrf.mxu0 }
 0x43a   : > { %v9520_v45 = vadd.f32 %v2131_v37, %v1922_v25  ;;  %v1925_v46 = vpop.f32.mrf.mxu1 }
 0x43b   : > { %15432 = vst [vmem:[#allocation230_spill] sm:$0xff] %v9518_v10  ;;  %v15439_v10 = vld [vmem:[#allocation7_spill] sm:$0xff] }
 0x43c   : > { %15433 = vst [vmem:[#allocation231_spill] sm:$0xff] %v9520_v45  ;;  %3604 = vmatmul.f32.gmra.mxu0 %v2592_v12  ;;  %v15438_v45 = vld [vmem:[#allocation132_spill] sm:$0xff]  ;;  %v2599_v62 = vmul.f32 %v15439_v10, %v15439_v10 }
 0x43d   : > { %3192 = vmatmul.f32.gmra.mxu1 %v2596_v53  ;;  %6823 = vmatmul.msk.f32.gmra.mxu2 %vm355_vm0, %v2593_v60  ;;  %v2598_v14 = vmul.f32 %v15438_v45, %v15438_v45 }
 0x43e   : > { %6761 = vmatmul.msk.f32.gmra.mxu3 %vm355_vm0, %v2597_v51 }
 0x440   : > { %v2546_v35 = vpop.f32.mrf.mxu2 }
 0x441   : > { %v2134_v9 = vpop.f32.mrf.mxu3  ;;  %v9528_v52 = vadd.f32 %v2546_v35, %v2337_v48  ;;  %v2340_v15 = vpop.f32.mrf.mxu0 }
 0x442   : > { %v9530_v25 = vadd.f32 %v2134_v9, %v1925_v46  ;;  %v1928_v37 = vpop.f32.mrf.mxu1 }
 0x443   : > { %15436 = vst [vmem:[#allocation232_spill] sm:$0xff] %v9528_v52  ;;  %v15442_v52 = vld [vmem:[#allocation134_spill] sm:$0xff] }
 0x444   : > { %15437 = vst [vmem:[#allocation233_spill] sm:$0xff] %v9530_v25  ;;  %3607 = vmatmul.f32.gmra.mxu0 %v2594_v1  ;;  %v2600_v45 = vmul.f32 %v15442_v52, %v15442_v52  ;;  %v15443_v25 = vld [vmem:[#allocation8_spill] sm:$0xff] }
 0x445   : > { %3195 = vmatmul.f32.gmra.mxu1 %v2598_v14  ;;  %6824 = vmatmul.msk.f32.gmra.mxu2 %vm355_vm0, %v2595_v30  ;;  %v2601_v10 = vmul.f32 %v15443_v25, %v15443_v25 }
 0x446   : > { %6762 = vmatmul.msk.f32.gmra.mxu3 %vm355_vm0, %v2599_v62 }
 0x448   : > { %v2549_v12 = vpop.f32.mrf.mxu2 }
 0x449   : > { %v2137_v60 = vpop.f32.mrf.mxu3  ;;  %v9538_v48 = vadd.f32 %v2549_v12, %v2340_v15  ;;  %v2343_v35 = vpop.f32.mrf.mxu0 }
 0x44a   : > { %v9540_v46 = vadd.f32 %v2137_v60, %v1928_v37  ;;  %v1931_v9 = vpop.f32.mrf.mxu1 }
 0x44b   : > { %15440 = vst [vmem:[#allocation234_spill] sm:$0xff] %v9538_v48  ;;  %v15446_v48 = vld [vmem:[#allocation136_spill] sm:$0xff] }
 0x44c   : > { %15441 = vst [vmem:[#allocation235_spill] sm:$0xff] %v9540_v46  ;;  %3610 = vmatmul.f32.gmra.mxu0 %v2596_v53  ;;  %v2602_v52 = vmul.f32 %v15446_v48, %v15446_v48  ;;  %v15447_v46 = vld [vmem:[#allocation10_spill] sm:$0xff] }
 0x44d   : > { %3198 = vmatmul.f32.gmra.mxu1 %v2600_v45  ;;  %6825 = vmatmul.msk.f32.gmra.mxu2 %vm355_vm0, %v2597_v51  ;;  %v2603_v25 = vmul.f32 %v15447_v46, %v15447_v46 }
 0x44e   : > { %6763 = vmatmul.msk.f32.gmra.mxu3 %vm355_vm0, %v2601_v10 }
 0x450   : > { %v2552_v1 = vpop.f32.mrf.mxu2 }
 0x451   : > { %v2140_v30 = vpop.f32.mrf.mxu3  ;;  %v9548_v15 = vadd.f32 %v2552_v1, %v2343_v35  ;;  %v2346_v12 = vpop.f32.mrf.mxu0 }
 0x452   : > { %v9550_v37 = vadd.f32 %v2140_v30, %v1931_v9  ;;  %v1934_v60 = vpop.f32.mrf.mxu1 }
 0x453   : > { %15444 = vst [vmem:[#allocation236_spill] sm:$0xff] %v9548_v15  ;;  %v15451_v15 = vld [vmem:[#allocation12_spill] sm:$0xff] }
 0x454   : > { %15445 = vst [vmem:[#allocation237_spill] sm:$0xff] %v9550_v37  ;;  %3613 = vmatmul.f32.gmra.mxu0 %v2598_v14  ;;  %v15450_v37 = vld [vmem:[#allocation138_spill] sm:$0xff]  ;;  %v2605_v46 = vmul.f32 %v15451_v15, %v15451_v15 }
 0x455   : > { %3201 = vmatmul.f32.gmra.mxu1 %v2602_v52  ;;  %6826 = vmatmul.msk.f32.gmra.mxu2 %vm355_vm0, %v2599_v62  ;;  %v2604_v48 = vmul.f32 %v15450_v37, %v15450_v37  ;;  %v15455_v37 = vld [vmem:[#allocation15_spill] sm:$0xff] }
 0x456   : > { %6764 = vmatmul.msk.f32.gmra.mxu3 %vm355_vm0, %v2603_v25  ;;  %v2607_v15 = vmul.f32 %v15455_v37, %v15455_v37 }
 0x458   : > { %v2555_v51 = vpop.f32.mrf.mxu2 }
 0x459   : > { %v2143_v53 = vpop.f32.mrf.mxu3  ;;  %v9558_v35 = vadd.f32 %v2555_v51, %v2346_v12  ;;  %v2349_v1 = vpop.f32.mrf.mxu0 }
 0x45a   : > { %v9560_v9 = vadd.f32 %v2143_v53, %v1934_v60  ;;  %v1937_v30 = vpop.f32.mrf.mxu1 }
 0x45b   : > { %15448 = vst [vmem:[#allocation238_spill] sm:$0xff] %v9558_v35 }
 0x45c   : > { %15449 = vst [vmem:[#allocation239_spill] sm:$0xff] %v9560_v9  ;;  %3616 = vmatmul.f32.gmra.mxu0 %v2600_v45  ;;  %v15454_v9 = vld [vmem:[#allocation13_spill] sm:$0xff] }
 0x45d   : > { %3204 = vmatmul.f32.gmra.mxu1 %v2604_v48  ;;  %6827 = vmatmul.msk.f32.gmra.mxu2 %vm355_vm0, %v2601_v10  ;;  %v2606_v35 = vmul.f32 %v15454_v9, %v15454_v9  ;;  %v15459_v9 = vld [vmem:[#allocation18_spill] sm:$0xff] }
 0x45e   : > { %6765 = vmatmul.msk.f32.gmra.mxu3 %vm355_vm0, %v2605_v46  ;;  %v2609_v37 = vmul.f32 %v15459_v9, %v15459_v9 }
 0x460   : > { %v2558_v62 = vpop.f32.mrf.mxu2 }
 0x461   : > { %v2146_v14 = vpop.f32.mrf.mxu3  ;;  %v9568_v12 = vadd.f32 %v2558_v62, %v2349_v1  ;;  %v2352_v51 = vpop.f32.mrf.mxu0 }
 0x462   : > { %v9570_v60 = vadd.f32 %v2146_v14, %v1937_v30  ;;  %v1940_v53 = vpop.f32.mrf.mxu1 }
 0x463   : > { %15452 = vst [vmem:[#allocation240_spill] sm:$0xff] %v9568_v12 }
 0x464   : > { %15453 = vst [vmem:[#allocation241_spill] sm:$0xff] %v9570_v60  ;;  %3619 = vmatmul.f32.gmra.mxu0 %v2602_v52  ;;  %v15458_v60 = vld [vmem:[#allocation16_spill] sm:$0xff] }
 0x465   : > { %3207 = vmatmul.f32.gmra.mxu1 %v2606_v35  ;;  %6828 = vmatmul.msk.f32.gmra.mxu2 %vm355_vm0, %v2603_v25  ;;  %v2608_v12 = vmul.f32 %v15458_v60, %v15458_v60  ;;  %v15463_v60 = vld [vmem:[#allocation21_spill] sm:$0xff] }
 0x466   : > { %6766 = vmatmul.msk.f32.gmra.mxu3 %vm355_vm0, %v2607_v15 }
 0x468   : > { %v2561_v10 = vpop.f32.mrf.mxu2 }
 0x469   : > { %v2149_v45 = vpop.f32.mrf.mxu3  ;;  %v9578_v1 = vadd.f32 %v2561_v10, %v2352_v51  ;;  %v2355_v62 = vpop.f32.mrf.mxu0 }
 0x46a   : > { %v9580_v30 = vadd.f32 %v2149_v45, %v1940_v53  ;;  %v1943_v14 = vpop.f32.mrf.mxu1 }
 0x46b   : > { %15456 = vst [vmem:[#allocation242_spill] sm:$0xff] %v9578_v1 }
 0x46c   : > { %15457 = vst [vmem:[#allocation243_spill] sm:$0xff] %v9580_v30  ;;  %3622 = vmatmul.f32.gmra.mxu0 %v2604_v48  ;;  %v15462_v30 = vld [vmem:[#allocation19_spill] sm:$0xff]  ;;  %v9598_v48 = vmul.f32 %v15463_v60, %v15463_v60 }
 0x46d   : > { %3210 = vmatmul.f32.gmra.mxu1 %v2608_v12  ;;  %6829 = vmatmul.msk.f32.gmra.mxu2 %vm355_vm0, %v2605_v46  ;;  %v9594_v1 = vmul.f32 %v15462_v30, %v15462_v30  ;;  %v15464_v46 = vld [vmem:[#allocation24_spill] sm:$0xff] }
 0x46e   : > { %6767 = vmatmul.msk.f32.gmra.mxu3 %vm355_vm0, %v2609_v37 }
 0x470   : > { %v2564_v52 = vpop.f32.mrf.mxu2 }
 0x471   : > { %v2152_v25 = vpop.f32.mrf.mxu3  ;;  %v9588_v51 = vadd.f32 %v2564_v52, %v2355_v62  ;;  %v2358_v10 = vpop.f32.mrf.mxu0  ;;  %v9606_v62 = vmul.f32 %v15464_v46, %v15464_v46 }
 0x472   : > { %v9590_v53 = vadd.f32 %v2152_v25, %v1943_v14  ;;  %v1946_v45 = vpop.f32.mrf.mxu1  ;;  %v15465_v14 = vld [vmem:[#allocation27_spill] sm:$0xff] }
 0x473   : > { %15460 = vst [vmem:[#allocation244_spill] sm:$0xff] %v9588_v51  ;;  %v9610_v52 = vmul.f32 %v15465_v14, %v15465_v14  ;;  %v9628_v14 = vmul.f32 %v15470_v34, %v15470_v34  ;;  %v15476_v34 = vld [vmem:[#allocation39_spill] sm:$0xff] }
 0x474   : > { %15461 = vst [vmem:[#allocation245_spill] sm:$0xff] %v9590_v53  ;;  %3625 = vmatmul.f32.gmra.mxu0 %v2606_v35  ;;  %v15466_v53 = vld [vmem:[#allocation22_spill] sm:$0xff]  ;;  %v15467_v35 = vld [vmem:[#allocation25_spill] sm:$0xff]  ;;  %v9650_v56 = vmul.f32 %v15476_v34, %v15476_v34 }
 0x475   : > { %3213 = vmatmul.f32.gmra.mxu1 %v9594_v1  ;;  %6830 = vmatmul.msk.f32.gmra.mxu2 %vm355_vm0, %v2607_v15  ;;  %v9614_v51 = vmul.f32 %v15466_v53, %v15466_v53  ;;  %v9618_v60 = vmul.f32 %v15467_v35, %v15467_v35  ;;  %v15468_v15 = vld [vmem:[#allocation30_spill] sm:$0xff]  ;;  %v9632_v53 = vmul.f32 %v15471_v7, %v15471_v7 }
 0x476   : > { %6768 = vmatmul.msk.f32.gmra.mxu3 %vm355_vm0, %v9598_v48  ;;  %v9622_v9 = vmul.f32 %v15468_v15, %v15468_v15  ;;  %v9636_v35 = vmul.f32 %v15472_v24, %v15472_v24  ;;  %v9640_v15 = vmul.f32 %v15473_v55, %v15473_v55  ;;  %15477 = vst [vmem:[#allocation248_spill] sm:$0xff] %v9650_v56  ;;  %v15478_v7 = vld [vmem:[#allocation42_spill] sm:$0xff]  ;;  %v15480_v24 = vld [vmem:[#allocation37_spill] sm:$0xff]  ;;  %v15482_v55 = vld [vmem:[#allocation40_spill] sm:$0xff] }
 0x477   : > { %v9654_v47 = vmul.f32 %v15478_v7, %v15478_v7  ;;  %v9658_v63 = vmul.f32 %v15480_v24, %v15480_v24  ;;  %v15488_v56 = vld [vmem:[#allocation43_spill] sm:$0xff] }
 0x478   : > { %v2567_v25 = vpop.f32.mrf.mxu2  ;;  %v9674_v7 = vmul.f32 %v15488_v56, %v15488_v56 }
 0x479   : > { %v2155_v30 = vpop.f32.mrf.mxu3  ;;  %v9624_v46 = vadd.f32 %v2567_v25, %v2358_v10  ;;  %v2361_v17 = vpop.f32.mrf.mxu0  ;;  %v15475_v25 = vld [vmem:[#allocation34_spill] sm:$0xff]  ;;  %15479 = vst [vmem:[#allocation249_spill] sm:$0xff] %v9654_v47 }
 0x47a   : > { %v9642_v40 = vadd.f32 %v2155_v30, %v1946_v45  ;;  %v1949_v10 = vpop.f32.mrf.mxu1  ;;  %15481 = vst [vmem:[#allocation250_spill] sm:$0xff] %v9658_v63  ;;  %v9662_v30 = vmul.f32 %v15482_v55, %v15482_v55  ;;  %v15484_v45 = vld [vmem:[#allocation45_spill] sm:$0xff]  ;;  %v15490_v47 = vld [vmem:[#allocation46_spill] sm:$0xff]  ;;  %v15492_v63 = vld [vmem:[#allocation51_spill] sm:$0xff] }
 0x47b   : > { %15469 = vst [vmem:[#allocation246_spill] sm:$0xff] %v9624_v46  ;;  %v9646_v46 = vmul.f32 %v15475_v25, %v15475_v25  ;;  %v15486_v25 = vld [vmem:[#allocation48_spill] sm:$0xff]  ;;  %v9678_v24 = vmul.f32 %v15490_v47, %v15490_v47  ;;  %v9682_v55 = vmul.f32 %v15492_v63, %v15492_v63 }
 0x47c   : > { %15474 = vst [vmem:[#allocation247_spill] sm:$0xff] %v9642_v40  ;;  %v9666_v40 = vmul.f32 %v15484_v45, %v15484_v45  ;;  %v9670_v34 = vmul.f32 %v15486_v25, %v15486_v25  ;;  %3628 = vmatmul.f32.gmra.mxu0 %v2608_v12  ;;  %v15494_v45 = vld [vmem:[#allocation49_spill] sm:$0xff]  ;;  %v15496_v12 = vld [vmem:[#allocation52_spill] sm:$0xff] }
 0x47d   : > { %15483 = vst [vmem:[#allocation251_spill] sm:$0xff] %v9662_v30  ;;  %3216 = vmatmul.f32.gmra.mxu1 %v9614_v51  ;;  %6831 = vmatmul.msk.f32.gmra.mxu2 %vm355_vm0, %v2609_v37  ;;  %v9688_v25 = vmul.f32 %v15494_v45, %v15494_v45  ;;  %v9692_v56 = vmul.f32 %v15496_v12, %v15496_v12  ;;  %v15502_v37 = vld [vmem:[#allocation55_spill] sm:$0xff]  ;;  %v15504_v45 = vld [vmem:[#allocation58_spill] sm:$0xff]  ;;  %v15506_v12 = vld [vmem:[#allocation60_spill] sm:$0xff] }
 0x47e   : > { %15485 = vst [vmem:[#allocation252_spill] sm:$0xff] %v9666_v40  ;;  %6769 = vmatmul.msk.f32.gmra.mxu3 %vm355_vm0, %v9606_v62  ;;  %v15512_v40 = vld [vmem:[#allocation64_spill] sm:$0xff]  ;;  %v15527_v30 = vld [vmem:[#allocation73_spill] sm:$0xff] }
 0x47f   : > { %15487 = vst [vmem:[#allocation253_spill] sm:$0xff] %v9670_v34  ;;  %v15498_v34 = vld [vmem:[#allocation54_spill] sm:$0xff] }
 0x480   : > { %15489 = vst [vmem:[#allocation254_spill] sm:$0xff] %v9674_v7  ;;  %v9696_v47 = vmul.f32 %v15498_v34, %v15498_v34  ;;  %v15508_v34 = vld [vmem:[#allocation63_spill] sm:$0xff] }
 0x481   : > { %15491 = vst [vmem:[#allocation255_spill] sm:$0xff] %v9678_v24  ;;  %v15500_v24 = vld [vmem:[#allocation57_spill] sm:$0xff]  ;;  %v15518_v7 = vld [vmem:[#allocation67_spill] sm:$0xff] }
 0x482   : > { %15493 = vst [vmem:[#allocation256_spill] sm:$0xff] %v9682_v55  ;;  %v9700_v63 = vmul.f32 %v15500_v24, %v15500_v24  ;;  %v9706_v55 = vmul.f32 %v15502_v37, %v15502_v37  ;;  %v15510_v24 = vld [vmem:[#allocation61_spill] sm:$0xff]  ;;  %v9726_v37 = vmul.f32 %v15512_v40, %v15512_v40 }
 0x483   : > { %15495 = vst [vmem:[#allocation257_spill] sm:$0xff] %v9688_v25  ;;  %v9710_v25 = vmul.f32 %v15504_v45, %v15504_v45 }
 0x484   : > { %15497 = vst [vmem:[#allocation258_spill] sm:$0xff] %v9692_v56  ;;  %v9714_v56 = vmul.f32 %v15506_v12, %v15506_v12  ;;  %3631 = vmatmul.f32.gmra.mxu0 %v9594_v1  ;;  %v15554_v1 = vld [vmem:[#allocation89_spill] sm:$0xff] }
 0x485   : > { %15499 = vst [vmem:[#allocation259_spill] sm:$0xff] %v9696_v47  ;;  %v9718_v47 = vmul.f32 %v15508_v34, %v15508_v34  ;;  %v9738_v34 = vmul.f32 %v15518_v7, %v15518_v7  ;;  %v9756_v7 = vmul.f32 %v15527_v30, %v15527_v30  ;;  %v15538_v30 = vld [vmem:[#allocation84_spill] sm:$0xff]  ;;  %3219 = vmatmul.f32.gmra.mxu1 %v9618_v60 }
 0x486   : > { %15501 = vst [vmem:[#allocation260_spill] sm:$0xff] %v9700_v63  ;;  %v9722_v63 = vmul.f32 %v15510_v24, %v15510_v24  ;;  %6832 = vmatmul.msk.f32.gmra.mxu2 %vm355_vm0, %v9598_v48  ;;  %6770 = vmatmul.msk.f32.gmra.mxu3 %vm355_vm0, %v9610_v52  ;;  %v15561_v48 = vld [vmem:[#allocation99_spill] sm:$0xff] }
 0x487   : > { %15503 = vst [vmem:[#allocation261_spill] sm:$0xff] %v9706_v55  ;;  %v15514_v55 = vld [vmem:[#allocation66_spill] sm:$0xff] }
 0x488   : > { %15505 = vst [vmem:[#allocation262_spill] sm:$0xff] %v9710_v25  ;;  %v9730_v45 = vmul.f32 %v15514_v55, %v15514_v55  ;;  %v15516_v25 = vld [vmem:[#allocation69_spill] sm:$0xff] }
 0x489   : > { %15507 = vst [vmem:[#allocation263_spill] sm:$0xff] %v9714_v56  ;;  %v9734_v12 = vmul.f32 %v15516_v25, %v15516_v25  ;;  %v2570_v56 = vpop.f32.mrf.mxu2 }
 0x48a   : > { %15509 = vst [vmem:[#allocation264_spill] sm:$0xff] %v9718_v47  ;;  %v15520_v47 = vld [vmem:[#allocation70_spill] sm:$0xff]  ;;  %v9752_v25 = vadd.f32 %v2570_v56, %v2361_v17  ;;  %v15536_v17 = vld [vmem:[#allocation81_spill] sm:$0xff] }
 0x48b   : > { %15511 = vst [vmem:[#allocation265_spill] sm:$0xff] %v9722_v63  ;;  %v9742_v24 = vmul.f32 %v15520_v47, %v15520_v47  ;;  %v15522_v63 = vld [vmem:[#allocation72_spill] sm:$0xff] }
 0x48c   : > { %15513 = vst [vmem:[#allocation266_spill] sm:$0xff] %v9726_v37  ;;  %v9746_v40 = vmul.f32 %v15522_v63, %v15522_v63  ;;  %v15524_v37 = vld [vmem:[#allocation75_spill] sm:$0xff]  ;;  %v1952_v63 = vpop.f32.mrf.mxu1  ;;  %3634 = vmatmul.f32.gmra.mxu0 %v9614_v51  ;;  %v9940_v51 = vmul.f32 %v9270_v13, %v9270_v13  ;;  %v15604_v13 = vld [vmem:[#allocation152_spill] sm:$0xff] }
 0x48d   : > { %15515 = vst [vmem:[#allocation267_spill] sm:$0xff] %v9730_v45  ;;  %v9750_v55 = vmul.f32 %v15524_v37, %v15524_v37  ;;  %v2158_v45 = vpop.f32.mrf.mxu3  ;;  %v15534_v37 = vld [vmem:[#allocation79_spill] sm:$0xff]  ;;  %3222 = vmatmul.f32.gmra.mxu1 %v9628_v14  ;;  %vm2720_vm14 = vcmp.lt.f32.partialorder %v15604_v13, 0.0 }
 0x48e   : > { %15517 = vst [vmem:[#allocation268_spill] sm:$0xff] %v9734_v12  ;;  %v2364_v12 = vpop.f32.mrf.mxu0  ;;  %v9770_v56 = vmul.f32 %v15534_v37, %v15534_v37  ;;  %6833 = vmatmul.msk.f32.gmra.mxu2 %vm355_vm0, %v9606_v62  ;;  %6771 = vmatmul.msk.f32.gmra.mxu3 %vm355_vm0, %v9622_v9  ;;  %v9960_v62 = vmul.f32 %v9298_v57, %v9298_v57 }
 0x48f   : > { %15519 = vst [vmem:[#allocation269_spill] sm:$0xff] %v9738_v34  ;;  %v15529_v34 = vld [vmem:[#allocation78_spill] sm:$0xff] }
 0x490   : > { %15521 = vst [vmem:[#allocation270_spill] sm:$0xff] %v9742_v24  ;;  %v9760_v47 = vmul.f32 %v15529_v34, %v15529_v34  ;;  %v9762_v24 = vadd.f32 %v2158_v45, %v1949_v10  ;;  %v15540_v34 = vld [vmem:[#allocation82_spill] sm:$0xff]  ;;  %v15542_v45 = vld [vmem:[#allocation85_spill] sm:$0xff] }
 0x491   : > { %15523 = vst [vmem:[#allocation271_spill] sm:$0xff] %v9746_v40  ;;  %v15532_v40 = vld [vmem:[#allocation76_spill] sm:$0xff]  ;;  %v9782_v10 = vmul.f32 %v15540_v34, %v15540_v34  ;;  %v9803_v34 = vmul.f32 %v9074_v23, %v9074_v23 }
 0x492   : > { %15525 = vst [vmem:[#allocation272_spill] sm:$0xff] %v9750_v55  ;;  %v9766_v49 = vmul.f32 %v15532_v40, %v15532_v40  ;;  %v9778_v55 = vmul.f32 %v15538_v30, %v15538_v30  ;;  %v15544_v40 = vld [vmem:[#allocation87_spill] sm:$0xff]  ;;  %v15547_v30 = vld [vmem:[#allocation88_spill] sm:$0xff] }
 0x493   : > { %15526 = vst [vmem:[#allocation273_spill] sm:$0xff] %v9752_v25  ;;  %v9774_v25 = vmul.f32 %v15536_v17, %v15536_v17  ;;  %v9790_v37 = vmul.f32 %v15544_v40, %v15544_v40  ;;  %v9794_v17 = vmul.f32 %v15285_v39, %v15285_v39  ;;  %v15552_v40 = vld [vmem:[#allocation95_spill] sm:$0xff]  ;;  %v9818_v39 = vmul.f32 %v15554_v1, %v15554_v1 }
 0x494   : > { %15528 = vst [vmem:[#allocation274_spill] sm:$0xff] %v9756_v7  ;;  %v9840_v1 = vmul.f32 %v8379_v22, %v8379_v22  ;;  %v15630_v7 = vld [vmem:[#allocation62_spill] sm:$0xff]  ;;  %3637 = vmatmul.f32.gmra.mxu0 %v9618_v60  ;;  %v10055_v60 = vmul.f32 %v8728_v6, %v8728_v6  ;;  %v15650_v6 = vld [vmem:[#allocation77_spill] sm:$0xff] }
 0x495   : > { %15530 = vst [vmem:[#allocation275_spill] sm:$0xff] %v9760_v47  ;;  %v10025_v47 = vmul.f32 %v8712_v29, %v8712_v29  ;;  %3225 = vmatmul.f32.gmra.mxu1 %v9632_v53 }
 0x496   : > { %15531 = vst [vmem:[#allocation276_spill] sm:$0xff] %v9762_v24  ;;  %v9786_v24 = vmul.f32 %v15542_v45, %v15542_v45  ;;  %v15550_v45 = vld [vmem:[#allocation93_spill] sm:$0xff]  ;;  %6834 = vmatmul.msk.f32.gmra.mxu2 %vm355_vm0, %v9610_v52  ;;  %6772 = vmatmul.msk.f32.gmra.mxu3 %vm355_vm0, %v9636_v35  ;;  %v15646_v52 = vld [vmem:[#allocation164_spill] sm:$0xff] }
 0x497   : > { %15533 = vst [vmem:[#allocation277_spill] sm:$0xff] %v9766_v49 }
 0x498   : > { %15535 = vst [vmem:[#allocation278_spill] sm:$0xff] %v9770_v56 }
 0x499   : > { %15537 = vst [vmem:[#allocation279_spill] sm:$0xff] %v9774_v25  ;;  %v15621_v25 = vld [vmem:[#allocation56_spill] sm:$0xff] }
 0x49a   : > { %15539 = vst [vmem:[#allocation280_spill] sm:$0xff] %v9778_v55  ;;  %v9799_v55 = vmul.f32 %v15547_v30, %v15547_v30  ;;  %v15556_v30 = vld [vmem:[#allocation98_spill] sm:$0xff]  ;;  %v10014_v56 = vmul.f32 0.99, %v15621_v25 }
 0x49b   : > { %15541 = vst [vmem:[#allocation281_spill] sm:$0xff] %v9782_v10  ;;  %v9822_v23 = vmul.f32 %v15556_v30, %v15556_v30  ;;  %v15564_v30 = vld [vmem:[#allocation107_spill] sm:$0xff] }
 0x49c   : > { %15543 = vst [vmem:[#allocation282_spill] sm:$0xff] %v9786_v24  ;;  %v9807_v24 = vmul.f32 %v15550_v45, %v15550_v45  ;;  %v9826_v45 = vmul.f32 %v15307_v0, %v15307_v0  ;;  %v15566_v0 = vld [vmem:[#allocation102_spill] sm:$0xff]  ;;  %3640 = vmatmul.f32.gmra.mxu0 %v9628_v14  ;;  %v10161_v14 = vmul.f32 %v15392_v28, %v15392_v28  ;;  %v15705_v28 = vld [vmem:[#allocation109_spill] sm:$0xff] }
 0x49d   : > { %15545 = vst [vmem:[#allocation283_spill] sm:$0xff] %v9790_v37  ;;  %v9811_v37 = vmul.f32 %v15552_v40, %v15552_v40  ;;  %v15559_v40 = vld [vmem:[#allocation96_spill] sm:$0xff]  ;;  %3228 = vmatmul.f32.gmra.mxu1 %v9646_v46 }
 0x49e   : > { %15546 = vst [vmem:[#allocation284_spill] sm:$0xff] %v9794_v17  ;;  %6835 = vmatmul.msk.f32.gmra.mxu2 %vm355_vm0, %v9622_v9  ;;  %6773 = vmatmul.msk.f32.gmra.mxu3 %vm355_vm0, %v9640_v15  ;;  %v10176_v9 = vmul.f32 %v15398_v58, %v15398_v58  ;;  %v10195_v58 = vmul.f32 %v9382_v21, %v9382_v21  ;;  %v15724_v21 = vld [vmem:[#allocation185_spill] sm:$0xff] }
 0x49f   : > { %15548 = vst [vmem:[#allocation285_spill] sm:$0xff] %v9799_v55  ;;  %v15619_v55 = vld [vmem:[#allocation158_spill] sm:$0xff] }
 0x4a0   : > { %15549 = vst [vmem:[#allocation286_spill] sm:$0xff] %v9803_v34  ;;  %v10011_v10 = vmul.f32 0.99, %v15619_v55 }
 0x4a1   : > { %15551 = vst [vmem:[#allocation287_spill] sm:$0xff] %v9807_v24  ;;  %v9836_v24 = vmul.f32 %v15561_v48, %v15561_v48  ;;  %v9856_v48 = vmul.f32 %v15323_v54, %v15323_v54  ;;  %v9876_v54 = vmul.f32 %v15340_v3, %v15340_v3  ;;  %v1955_v3 = vpop.f32.mrf.mxu1 }
 0x4a2   : > { %15553 = vst [vmem:[#allocation288_spill] sm:$0xff] %v9811_v37  ;;  %v9832_v37 = vmul.f32 %v15559_v40, %v15559_v40 }
 0x4a3   : > { %15555 = vst [vmem:[#allocation289_spill] sm:$0xff] %v9818_v39  ;;  %v15568_v39 = vld [vmem:[#allocation105_spill] sm:$0xff] }
 0x4a4   : > { %15557 = vst [vmem:[#allocation290_spill] sm:$0xff] %v9822_v23  ;;  %v9844_v23 = vmul.f32 %v15564_v30, %v15564_v30  ;;  %v9852_v40 = vmul.f32 %v15568_v39, %v15568_v39  ;;  %3643 = vmatmul.f32.gmra.mxu0 %v9632_v53 }
 0x4a5   : > { %15558 = vst [vmem:[#allocation291_spill] sm:$0xff] %v9826_v45  ;;  %v9848_v45 = vmul.f32 %v15566_v0, %v15566_v0 }
 0x4a6   : > { %15560 = vst [vmem:[#allocation292_spill] sm:$0xff] %v9832_v37  ;;  %v15573_v37 = vld [vmem:[#allocation108_spill] sm:$0xff]  ;;  %6836 = vmatmul.msk.f32.gmra.mxu2 %vm355_vm0, %v9636_v35 }
 0x4a7   : > { %15562 = vst [vmem:[#allocation293_spill] sm:$0xff] %v9836_v24  ;;  %v15571_v24 = vld [vmem:[#allocation113_spill] sm:$0xff]  ;;  %v9864_v30 = vmul.f32 %v15573_v37, %v15573_v37  ;;  %v15758_v35 = vld [vmem:[#allocation204_spill] sm:$0xff] }
 0x4a8   : > { %15563 = vst [vmem:[#allocation294_spill] sm:$0xff] %v9840_v1  ;;  %v9860_v22 = vmul.f32 %v15571_v24, %v15571_v24  ;;  %v2573_v1 = vpop.f32.mrf.mxu2 }
 0x4a9   : > { %15565 = vst [vmem:[#allocation295_spill] sm:$0xff] %v9844_v23  ;;  %v15575_v23 = vld [vmem:[#allocation111_spill] sm:$0xff]  ;;  %v9878_v24 = vadd.f32 %v2573_v1, %v2364_v12  ;;  %v9900_v1 = vmul.f32 %v8567_v59, %v8567_v59  ;;  %v9929_v59 = vmul.f32 %v9256_v33, %v9256_v33  ;;  %v15600_v33 = vld [vmem:[#allocation150_spill] sm:$0xff]  ;;  %v1958_v17 = vpop.f32.mrf.mxu1 }
 0x4aa   : > { %15567 = vst [vmem:[#allocation296_spill] sm:$0xff] %v9848_v45  ;;  %v9868_v0 = vmul.f32 %v15575_v23, %v15575_v23  ;;  %v15577_v45 = vld [vmem:[#allocation116_spill] sm:$0xff]  ;;  %v9886_v23 = vmul.f32 %v8520_v42, %v8520_v42  ;;  %v9908_v42 = vmul.f32 %v9214_v38, %v9214_v38  ;;  %v15605_v38 = vld [vmem:[#allocation38_spill] sm:$0xff]  ;;  %vm2716_vm1 = vcmp.lt.f32.partialorder %v15600_v33, 0.0 }
 0x4ab   : > { %15569 = vst [vmem:[#allocation297_spill] sm:$0xff] %v9852_v40  ;;  %v9872_v39 = vmul.f32 %v15577_v45, %v15577_v45  ;;  %v15581_v40 = vld [vmem:[#allocation114_spill] sm:$0xff]  ;;  %v9890_v45 = vmul.f32 %v8540_v50, %v8540_v50  ;;  %v9933_v50 = vmul.f32 %v8648_v2, %v8648_v2  ;;  %v9951_v2 = vmul.f32 0.99, %v15600_v33 }
 0x4ac   : > { %15570 = vst [vmem:[#allocation298_spill] sm:$0xff] %v9856_v48  ;;  %v2161_v48 = vpop.f32.mrf.mxu3  ;;  %v9882_v37 = vmul.f32 %v15581_v40, %v15581_v40  ;;  %v15606_v40 = vld [vmem:[#allocation41_spill] sm:$0xff]  ;;  %3646 = vmatmul.f32.gmra.mxu0 %v9646_v46  ;;  %vm2717_vm11 = vcmp.lt.f32.partialorder %v15605_v38, 0.0 }
 0x4ad   : > { %15572 = vst [vmem:[#allocation299_spill] sm:$0xff] %v9860_v22  ;;  %v2367_v22 = vpop.f32.mrf.mxu0 }
 0x4ae   : > { %15574 = vst [vmem:[#allocation300_spill] sm:$0xff] %v9864_v30  ;;  %6837 = vmatmul.msk.f32.gmra.mxu2 %vm355_vm0, %v9640_v15 }
 0x4af   : > { %15576 = vst [vmem:[#allocation301_spill] sm:$0xff] %v9868_v0  ;;  %v15617_v0 = vld [vmem:[#allocation53_spill] sm:$0xff] }
 0x4b0   : > { %15578 = vst [vmem:[#allocation302_spill] sm:$0xff] %v9872_v39  ;;  %v9892_v39 = vadd.f32 %v2161_v48, %v1952_v63  ;;  %v9912_v63 = vmul.f32 %v9228_v18, %v9228_v18  ;;  %v9916_v48 = vmul.f32 %v8613_v20, %v8613_v20  ;;  %v9948_v20 = vmul.f32 %v8664_v19, %v8664_v19 }
 0x4b1   : > { %15579 = vst [vmem:[#allocation303_spill] sm:$0xff] %v9876_v54  ;;  %v15586_v54 = vld [vmem:[#allocation117_spill] sm:$0xff]  ;;  %v9967_v19 = vmul.f32 0.99, %v15604_v13  ;;  %v10006_v30 = vmul.f32 0.99, %v15617_v0 }
 0x4b2   : > { %15580 = vst [vmem:[#allocation304_spill] sm:$0xff] %v9878_v24  ;;  %v9896_v12 = vmul.f32 %v15586_v54, %v15586_v54  ;;  %v9904_v24 = vmul.f32 %v8592_v11, %v8592_v11  ;;  %v9925_v11 = vmul.f32 %v9242_v43, %v9242_v43  ;;  %v15601_v43 = vld [vmem:[#allocation151_spill] sm:$0xff]  ;;  %v9970_v54 = vmul.f32 0.99, %v15605_v38  ;;  %v15852_v38 = vld [vmem:[#allocation126_spill] sm:$0xff] }
 0x4b3   : > { %15582 = vst [vmem:[#allocation305_spill] sm:$0xff] %v9882_v37  ;;  %v9954_v18 = vmul.f32 0.99, %v15601_v43  ;;  %vm2718_vm6 = vcmp.lt.f32.partialorder %v15601_v43, 0.0 }
 0x4b4   : > { %15583 = vst [vmem:[#allocation306_spill] sm:$0xff] %v9886_v23  ;;  %v15615_v23 = vld [vmem:[#allocation156_spill] sm:$0xff] }
 0x4b5   : > { %15584 = vst [vmem:[#allocation307_spill] sm:$0xff] %v9890_v45 }
 0x4b6   : > { %15585 = vst [vmem:[#allocation308_spill] sm:$0xff] %v9892_v39  ;;  %v9920_v39 = vmul.f32 %v8632_v5, %v8632_v5  ;;  %v9944_v5 = vmul.f32 %v9284_v44, %v9284_v44  ;;  %v9964_v44 = vmul.f32 %v8680_v31, %v8680_v31  ;;  %v15610_v31 = vld [vmem:[#allocation44_spill] sm:$0xff] }
 0x4b7   : > { %15587 = vst [vmem:[#allocation309_spill] sm:$0xff] %v9896_v12  ;;  %v15616_v12 = vld [vmem:[#allocation157_spill] sm:$0xff] }
 0x4b8   : > { %15588 = vst [vmem:[#allocation310_spill] sm:$0xff] %v9900_v1  ;;  %v10003_v37 = vmul.f32 0.99, %v15616_v12 }
 0x4b9   : > { %15589 = vst [vmem:[#allocation311_spill] sm:$0xff] %v9904_v24 }
 0x4ba   : > { %15590 = vst [vmem:[#allocation312_spill] sm:$0xff] %v9908_v42  ;;  %v10000_v42 = vmul.f32 0.99, %v15615_v23 }
 0x4bb   : > { %15591 = vst [vmem:[#allocation313_spill] sm:$0xff] %v9912_v63  ;;  %v2370_v63 = vpop.f32.mrf.mxu0 }
 0x4bc   : > { %15592 = vst [vmem:[#allocation314_spill] sm:$0xff] %v9916_v48  ;;  %v2576_v48 = vpop.f32.mrf.mxu2 }
 0x4bd   : > { %15593 = vst [vmem:[#allocation315_spill] sm:$0xff] %v9920_v39  ;;  %v15608_v39 = vld [vmem:[#allocation153_spill] sm:$0xff] }
 0x4be   : > { %15594 = vst [vmem:[#allocation316_spill] sm:$0xff] %v9925_v11  ;;  %v9980_v57 = vmul.f32 0.99, %v15608_v39  ;;  %v15613_v11 = vld [vmem:[#allocation50_spill] sm:$0xff] }
 0x4bf   : > { %15595 = vst [vmem:[#allocation317_spill] sm:$0xff] %v9929_v59  ;;  %v15612_v59 = vld [vmem:[#allocation47_spill] sm:$0xff]  ;;  %v9995_v45 = vmul.f32 0.99, %v15613_v11 }
 0x4c0   : > { %15596 = vst [vmem:[#allocation318_spill] sm:$0xff] %v9933_v50  ;;  %v9977_v50 = vmul.f32 %v8696_v32, %v8696_v32  ;;  %v9992_v1 = vmul.f32 0.99, %v15612_v59  ;;  %v2164_v32 = vpop.f32.mrf.mxu3 }
 0x4c1   : > { %15597 = vst [vmem:[#allocation319_spill] sm:$0xff] %v9940_v51  ;;  %v15611_v51 = vld [vmem:[#allocation155_spill] sm:$0xff]  ;;  %v10008_v34 = vadd.f32 %v2164_v32, %v1955_v3 }
 0x4c2   : > { %15598 = vst [vmem:[#allocation320_spill] sm:$0xff] %v9944_v5  ;;  %v9989_v24 = vmul.f32 0.99, %v15611_v51  ;;  %v15627_v32 = vld [vmem:[#allocation159_spill] sm:$0xff] }
 0x4c3   : > { %15599 = vst [vmem:[#allocation321_spill] sm:$0xff] %v9948_v20  ;;  %v9973_v20 = vmul.f32 0.99, %v15606_v40  ;;  %v10028_v3 = vmul.f32 0.99, %v15627_v32 }
 0x4c4   : > { %15602 = vst [vmem:[#allocation150_spill] sm:$0xff] %v9960_v62  ;;  %v15609_v62 = vld [vmem:[#allocation154_spill] sm:$0xff] }
 0x4c5   : > { %15603 = vst [vmem:[#allocation151_spill] sm:$0xff] %v9964_v44  ;;  %v9983_v5 = vmul.f32 0.99, %v15609_v62  ;;  %v9986_v44 = vmul.f32 0.99, %v15610_v31 }
 0x4c6   : > { %15607 = vst [vmem:[#allocation152_spill] sm:$0xff] %v9977_v50  ;;  %v9997_v50 = vadd.f32 %v2576_v48, %v2367_v22  ;;  %v15623_v22 = vld [vmem:[#allocation59_spill] sm:$0xff] }
 0x4c7   : > { %15618 = vst [vmem:[#allocation41_spill] sm:$0xff] %v10008_v34  ;;  %v10017_v48 = vmul.f32 0.99, %v15623_v22  ;;  %v15628_v34 = vld [vmem:[#allocation160_spill] sm:$0xff] }
 0x4c8   : > { %15614 = vst [vmem:[#allocation38_spill] sm:$0xff] %v9997_v50  ;;  %v10021_v50 = vmul.f32 %v9312_v26, %v9312_v26  ;;  %v10031_v49 = vmul.f32 0.99, %v15628_v34  ;;  %v15634_v26 = vld [vmem:[#allocation65_spill] sm:$0xff] }
 0x4c9   : > { %15620 = vst [vmem:[#allocation153_spill] sm:$0xff] %v10011_v10  ;;  %v10034_v10 = vmul.f32 0.99, %v15630_v7 }
 0x4ca   : > { %15622 = vst [vmem:[#allocation154_spill] sm:$0xff] %v10014_v56  ;;  %v15636_v56 = vld [vmem:[#allocation68_spill] sm:$0xff] }
 0x4cb   : > { %15624 = vst [vmem:[#allocation44_spill] sm:$0xff] %v10017_v48  ;;  %v15632_v48 = vld [vmem:[#allocation161_spill] sm:$0xff]  ;;  %v10044_v29 = vmul.f32 0.99, %v15636_v56 }
 0x4cc   : > { %15625 = vst [vmem:[#allocation155_spill] sm:$0xff] %v10021_v50  ;;  %v10038_v22 = vmul.f32 0.99, %v15632_v48  ;;  %v10041_v50 = vmul.f32 0.99, %v15634_v26 }
 0x4cd   : > { %15626 = vst [vmem:[#allocation47_spill] sm:$0xff] %v10025_v47  ;;  %v10051_v47 = vmul.f32 %v9326_v61, %v9326_v61  ;;  %v15648_v61 = vld [vmem:[#allocation74_spill] sm:$0xff] }
 0x4ce   : > { %15629 = vst [vmem:[#allocation50_spill] sm:$0xff] %v10031_v49 }
 0x4cf   : > { %15631 = vst [vmem:[#allocation156_spill] sm:$0xff] %v10034_v10  ;;  %v10069_v10 = vmul.f32 0.99, %v15646_v52 }
 0x4d0   : > { %15633 = vst [vmem:[#allocation157_spill] sm:$0xff] %v10038_v22  ;;  %v15640_v22 = vld [vmem:[#allocation162_spill] sm:$0xff] }
 0x4d1   : > { %15635 = vst [vmem:[#allocation53_spill] sm:$0xff] %v10041_v50  ;;  %v10058_v48 = vmul.f32 0.99, %v15640_v22  ;;  %v15642_v50 = vld [vmem:[#allocation163_spill] sm:$0xff] }
 0x4d2   : > { %15637 = vst [vmem:[#allocation158_spill] sm:$0xff] %v10044_v29  ;;  %v10061_v26 = vmul.f32 0.99, %v15642_v50  ;;  %v15644_v29 = vld [vmem:[#allocation71_spill] sm:$0xff]  ;;  %v15656_v50 = vld [vmem:[#allocation166_spill] sm:$0xff] }
 0x4d3   : > { %15638 = vst [vmem:[#allocation56_spill] sm:$0xff] %v10051_v47  ;;  %v10064_v56 = vmul.f32 0.99, %v15644_v29  ;;  %v10072_v47 = vmul.f32 0.99, %v15648_v61  ;;  %v15662_v22 = vld [vmem:[#allocation83_spill] sm:$0xff] }
 0x4d4   : > { %15639 = vst [vmem:[#allocation159_spill] sm:$0xff] %v10055_v60  ;;  %v10075_v60 = vmul.f32 0.99, %v15650_v6  ;;  %v10089_v52 = vmul.f32 0.99, %v15656_v50  ;;  %v15660_v6 = vld [vmem:[#allocation167_spill] sm:$0xff] }
 0x4d5   : > { %15641 = vst [vmem:[#allocation160_spill] sm:$0xff] %v10058_v48  ;;  %v10079_v48 = vmul.f32 %v9340_v41, %v9340_v41  ;;  %v10098_v41 = vmul.f32 0.99, %v15662_v22  ;;  %v3181_v22 = vpop.f32.mrf.mxu1 }
 0x4d6   : > { %15643 = vst [vmem:[#allocation322_spill] sm:$0xff] %v10061_v26  ;;  %v10083_v26 = vmul.f32 %v8744_v4, %v8744_v4  ;;  %v2167_v4 = vpop.f32.mrf.mxu3 }
 0x4d7   : > { %15645 = vst [vmem:[#allocation323_spill] sm:$0xff] %v10064_v56  ;;  %v15654_v56 = vld [vmem:[#allocation165_spill] sm:$0xff] }
 0x4d8   : > { %15647 = vst [vmem:[#allocation324_spill] sm:$0xff] %v10069_v10  ;;  %v10086_v29 = vmul.f32 0.99, %v15654_v56  ;;  %v15658_v10 = vld [vmem:[#allocation80_spill] sm:$0xff] }
 0x4d9   : > { %15649 = vst [vmem:[#allocation325_spill] sm:$0xff] %v10072_v47  ;;  %v10092_v61 = vmul.f32 0.99, %v15658_v10  ;;  %v2579_v47 = vpop.f32.mrf.mxu2  ;;  %v15667_v56 = vld [vmem:[#allocation168_spill] sm:$0xff] }
 0x4da   : > { %15651 = vst [vmem:[#allocation326_spill] sm:$0xff] %v10075_v60  ;;  %v10095_v60 = vmul.f32 0.99, %v15660_v6  ;;  %v10106_v50 = vmul.f32 0.99, %v15667_v56 }
 0x4db   : > { %15652 = vst [vmem:[#allocation327_spill] sm:$0xff] %v10079_v48  ;;  %v15664_v48 = vld [vmem:[#allocation86_spill] sm:$0xff] }
 0x4dc   : > { %15653 = vst [vmem:[#allocation328_spill] sm:$0xff] %v10083_v26  ;;  %v10101_v49 = vmul.f32 0.99, %v15664_v48  ;;  %v10103_v26 = vadd.f32 %v2579_v47, %v2370_v63  ;;  %v15678_v47 = vld [vmem:[#allocation94_spill] sm:$0xff] }
 0x4dd   : > { %15655 = vst [vmem:[#allocation329_spill] sm:$0xff] %v10086_v29  ;;  %v2373_v29 = vpop.f32.mrf.mxu0  ;;  %v10123_v63 = vmul.f32 0.99, %v15678_v47  ;;  %v15692_v47 = vld [vmem:[#allocation103_spill] sm:$0xff] }
 0x4de   : > { %15657 = vst [vmem:[#allocation330_spill] sm:$0xff] %v10089_v52  ;;  %v15669_v52 = vld [vmem:[#allocation170_spill] sm:$0xff] }
 0x4df   : > { %15659 = vst [vmem:[#allocation331_spill] sm:$0xff] %v10092_v61  ;;  %v10109_v10 = vmul.f32 0.99, %v15669_v52  ;;  %v15671_v61 = vld [vmem:[#allocation169_spill] sm:$0xff] }
 0x4e0   : > { %15661 = vst [vmem:[#allocation332_spill] sm:$0xff] %v10095_v60  ;;  %v10112_v7 = vmul.f32 0.99, %v15671_v61  ;;  %v10114_v60 = vadd.f32 %v2167_v4, %v1958_v17  ;;  %v15682_v4 = vld [vmem:[#allocation172_spill] sm:$0xff] }
 0x4e1   : > { %15663 = vst [vmem:[#allocation333_spill] sm:$0xff] %v10098_v41  ;;  %v15674_v41 = vld [vmem:[#allocation171_spill] sm:$0xff]  ;;  %v10134_v17 = vmul.f32 0.99, %v15682_v4 }
 0x4e2   : > { %15665 = vst [vmem:[#allocation334_spill] sm:$0xff] %v10101_v49  ;;  %v10117_v6 = vmul.f32 0.99, %v15674_v41  ;;  %v15676_v49 = vld [vmem:[#allocation92_spill] sm:$0xff]  ;;  %v15819_v4 = vld [vmem:[#allocation227_spill] sm:$0xff] }
 0x4e3   : > { %15666 = vst [vmem:[#allocation335_spill] sm:$0xff] %v10103_v26  ;;  %v10120_v48 = vmul.f32 0.99, %v15676_v49  ;;  %v10127_v26 = vmul.f32 %v9354_v36, %v9354_v36  ;;  %v15690_v36 = vld [vmem:[#allocation100_spill] sm:$0xff] }
 0x4e4   : > { %15668 = vst [vmem:[#allocation168_spill] sm:$0xff] %v10106_v50 }
 0x4e5   : > { %15670 = vst [vmem:[#allocation336_spill] sm:$0xff] %v10109_v10  ;;  %v10131_v10 = vmul.f32 %v8760_v27, %v8760_v27  ;;  %v10150_v27 = vmul.f32 0.99, %v15692_v47 }
 0x4e6   : > { %15672 = vst [vmem:[#allocation337_spill] sm:$0xff] %v10112_v7 }
 0x4e7   : > { %15673 = vst [vmem:[#allocation338_spill] sm:$0xff] %v10114_v60  ;;  %v15684_v60 = vld [vmem:[#allocation173_spill] sm:$0xff] }
 0x4e8   : > { %15675 = vst [vmem:[#allocation339_spill] sm:$0xff] %v10117_v6  ;;  %v10137_v7 = vmul.f32 0.99, %v15684_v60  ;;  %v15686_v6 = vld [vmem:[#allocation97_spill] sm:$0xff] }
 0x4e9   : > { %15677 = vst [vmem:[#allocation340_spill] sm:$0xff] %v10120_v48  ;;  %v10140_v49 = vmul.f32 0.99, %v15686_v6 }
 0x4ea   : > { %15679 = vst [vmem:[#allocation341_spill] sm:$0xff] %v10123_v63  ;;  %v15688_v63 = vld [vmem:[#allocation174_spill] sm:$0xff] }
 0x4eb   : > { %15680 = vst [vmem:[#allocation342_spill] sm:$0xff] %v10127_v26  ;;  %v10144_v48 = vmul.f32 0.99, %v15688_v63  ;;  %v10147_v26 = vmul.f32 0.99, %v15690_v36 }
 0x4ec   : > { %15681 = vst [vmem:[#allocation343_spill] sm:$0xff] %v10131_v10  ;;  %v10157_v10 = vmul.f32 %v9368_v8, %v9368_v8  ;;  %v15703_v8 = vld [vmem:[#allocation177_spill] sm:$0xff]  ;;  %v3182_v63 = vadd.f32 1e-06, %v3181_v22  ;;  %v10209_v22 = vmul.f32 0.99, %v9246_v16 }
 0x4ed   : > { %15683 = vst [vmem:[#allocation344_spill] sm:$0xff] %v10134_v17  ;;  %v15817_v17 = vld [vmem:[#allocation226_spill] sm:$0xff] }
 0x4ee   : > { %15685 = vst [vmem:[#allocation345_spill] sm:$0xff] %v10137_v7  ;;  %v2582_v7 = vpop.f32.mrf.mxu2 }
 0x4ef   : > { %15687 = vst [vmem:[#allocation346_spill] sm:$0xff] %v10140_v49 }
 0x4f0   : > { %15689 = vst [vmem:[#allocation347_spill] sm:$0xff] %v10144_v48  ;;  %v15696_v48 = vld [vmem:[#allocation175_spill] sm:$0xff] }
 0x4f1   : > { %15691 = vst [vmem:[#allocation348_spill] sm:$0xff] %v10147_v26  ;;  %v10164_v49 = vmul.f32 0.99, %v15696_v48  ;;  %v15698_v26 = vld [vmem:[#allocation176_spill] sm:$0xff] }
 0x4f2   : > { %15693 = vst [vmem:[#allocation349_spill] sm:$0xff] %v10150_v27  ;;  %v10167_v36 = vmul.f32 0.99, %v15698_v26  ;;  %v15700_v27 = vld [vmem:[#allocation106_spill] sm:$0xff] }
 0x4f3   : > { %15694 = vst [vmem:[#allocation350_spill] sm:$0xff] %v10157_v10  ;;  %v10170_v47 = vmul.f32 0.99, %v15700_v27  ;;  %v10179_v10 = vmul.f32 0.99, %v15703_v8 }
 0x4f4   : > { %15695 = vst [vmem:[#allocation351_spill] sm:$0xff] %v10161_v14  ;;  %v10182_v14 = vmul.f32 0.99, %v15705_v28  ;;  %v15716_v28 = vld [vmem:[#allocation181_spill] sm:$0xff] }
 0x4f5   : > { %15697 = vst [vmem:[#allocation352_spill] sm:$0xff] %v10164_v49  ;;  %v15707_v49 = vld [vmem:[#allocation112_spill] sm:$0xff] }
 0x4f6   : > { %15699 = vst [vmem:[#allocation353_spill] sm:$0xff] %v10167_v36  ;;  %v10185_v48 = vmul.f32 0.99, %v15707_v49  ;;  %v15709_v36 = vld [vmem:[#allocation178_spill] sm:$0xff]  ;;  %v15718_v49 = vld [vmem:[#allocation180_spill] sm:$0xff] }
 0x4f7   : > { %15701 = vst [vmem:[#allocation354_spill] sm:$0xff] %v10170_v47  ;;  %v10188_v26 = vmul.f32 0.99, %v15709_v36  ;;  %v15711_v47 = vld [vmem:[#allocation115_spill] sm:$0xff]  ;;  %v10206_v36 = vadd.f32 %v2582_v7, %v2373_v29  ;;  %v15728_v29 = vld [vmem:[#allocation186_spill] sm:$0xff] }
 0x4f8   : > { %15702 = vst [vmem:[#allocation355_spill] sm:$0xff] %v10176_v9  ;;  %v10191_v27 = vmul.f32 0.99, %v15711_v47  ;;  %v15714_v9 = vld [vmem:[#allocation179_spill] sm:$0xff]  ;;  %v2376_v47 = vpop.f32.mrf.mxu0  ;;  %v10224_v7 = vmul.f32 0.99, %v15728_v29 }
 0x4f9   : > { %15704 = vst [vmem:[#allocation356_spill] sm:$0xff] %v10179_v10  ;;  %v10198_v10 = vmul.f32 0.99, %v15714_v9 }
 0x4fa   : > { %15706 = vst [vmem:[#allocation357_spill] sm:$0xff] %v10182_v14  ;;  %v10201_v14 = vmul.f32 0.99, %v15716_v28  ;;  %v3184_v28 = vpop.f32.mrf.mxu1 }
 0x4fb   : > { %15708 = vst [vmem:[#allocation358_spill] sm:$0xff] %v10185_v48  ;;  %v10204_v48 = vmul.f32 0.99, %v15718_v49 }
 0x4fc   : > { %15710 = vst [vmem:[#allocation359_spill] sm:$0xff] %v10188_v26  ;;  %v3390_v26 = vpop.f32.mrf.mxu3 }
 0x4fd   : > { %15712 = vst [vmem:[#allocation360_spill] sm:$0xff] %v10191_v27  ;;  %v15722_v27 = vld [vmem:[#allocation182_spill] sm:$0xff] }
 0x4fe   : > { %15713 = vst [vmem:[#allocation361_spill] sm:$0xff] %v10195_v58  ;;  %v10212_v8 = vmul.f32 0.99, %v15722_v27  ;;  %v10215_v58 = vmul.f32 0.99, %v15724_v21 }
 0x4ff   : > { %15715 = vst [vmem:[#allocation362_spill] sm:$0xff] %v10198_v10  ;;  %v10217_v10 = vadd.f32 %v3390_v26, %v3182_v63  ;;  %v15738_v63 = vld [vmem:[#allocation194_spill] sm:$0xff] }
 0x500   : > { %15717 = vst [vmem:[#allocation363_spill] sm:$0xff] %v10201_v14  ;;  %v15726_v14 = vld [vmem:[#allocation29_spill] sm:$0xff]  ;;  %v10239_v21 = vmul.f32 0.99, %v15738_v63  ;;  %v15747_v63 = vld [vmem:[#allocation214_spill] sm:$0xff] }
 0x501   : > { %15719 = vst [vmem:[#allocation364_spill] sm:$0xff] %v10204_v48  ;;  %v10221_v49 = vmul.f32 %v15726_v14, %v15726_v14  ;;  %6921 = vrcp.f32 %v10217_v10  ;;  %v15740_v14 = vld [vmem:[#allocation195_spill] sm:$0xff]  ;;  %vm4005_vm3 = vweird.f32 %v10217_v10 }
 0x502   : > { %15720 = vst [vmem:[#allocation365_spill] sm:$0xff] %v10206_v36  ;;  %v15730_v36 = vld [vmem:[#allocation189_spill] sm:$0xff] }
 0x503   : > { %15721 = vst [vmem:[#allocation366_spill] sm:$0xff] %v10209_v22  ;;  %v10227_v48 = vmul.f32 0.99, %v15730_v36  ;;  %v15732_v22 = vld [vmem:[#allocation188_spill] sm:$0xff] }
 0x504   : > { %15723 = vst [vmem:[#allocation367_spill] sm:$0xff] %v10212_v8  ;;  %v10230_v16 = vmul.f32 0.99, %v15732_v22  ;;  %v15734_v8 = vld [vmem:[#allocation192_spill] sm:$0xff] }
 0x505   : > { %15725 = vst [vmem:[#allocation368_spill] sm:$0xff] %v10215_v58  ;;  %v10233_v27 = vmul.f32 0.99, %v15734_v8  ;;  %v15736_v58 = vld [vmem:[#allocation191_spill] sm:$0xff]  ;;  %v10275_v8 = vmul.f32 0.99, %v15758_v35 }
 0x506   : > { %15727 = vst [vmem:[#allocation369_spill] sm:$0xff] %v10221_v49  ;;  %v10236_v26 = vmul.f32 0.99, %v15736_v58  ;;  %v10244_v49 = vmul.f32 0.99, %v15740_v14  ;;  %v15757_v58 = vld [vmem:[#allocation248_spill] sm:$0xff] }
 0x507   : > { %15729 = vst [vmem:[#allocation370_spill] sm:$0xff] %v10224_v7  ;;  %6774 = vmatmul.msk.f32.gmra.mxu3 %vm355_vm0, %v15757_v58  ;;  %v15770_v7 = vld [vmem:[#allocation209_spill] sm:$0xff]  ;;  %6838 = vmatmul.msk.f32.gmra.mxu2 %vm355_vm0, %v15757_v58 }
 0x508   : > { %15731 = vst [vmem:[#allocation371_spill] sm:$0xff] %v10227_v48  ;;  %v15742_v48 = vld [vmem:[#allocation198_spill] sm:$0xff]  ;;  %v10295_v35 = vmul.f32 0.99, %v15770_v7  ;;  %v15783_v7 = vld [vmem:[#allocation140_spill] sm:$0xff] }
 0x509   : > { %15733 = vst [vmem:[#allocation372_spill] sm:$0xff] %v10230_v16  ;;  %v10247_v36 = vmul.f32 0.99, %v15742_v48  ;;  %v15744_v16 = vld [vmem:[#allocation197_spill] sm:$0xff] }
 0x50a   : > { %15735 = vst [vmem:[#allocation373_spill] sm:$0xff] %v10233_v27  ;;  %v10250_v22 = vmul.f32 0.99, %v15744_v16  ;;  %v15746_v27 = vld [vmem:[#allocation250_spill] sm:$0xff] }
 0x50b   : > { %15737 = vst [vmem:[#allocation374_spill] sm:$0xff] %v10236_v26  ;;  %3231 = vmatmul.f32.gmra.mxu1 %v15746_v27  ;;  %v15749_v26 = vld [vmem:[#allocation32_spill] sm:$0xff]  ;;  %3649 = vmatmul.f32.gmra.mxu0 %v15746_v27  ;;  %v15830_v27 = vld [vmem:[#allocation233_spill] sm:$0xff] }
 0x50c   : > { %15739 = vst [vmem:[#allocation375_spill] sm:$0xff] %v10239_v21  ;;  %v10257_v21 = vmul.f32 %v15747_v63, %v15747_v63  ;;  %v10261_v53 = vmul.f32 %v15749_v26, %v15749_v26  ;;  %v15760_v63 = vld [vmem:[#allocation207_spill] sm:$0xff]  ;;  %v15762_v26 = vld [vmem:[#allocation206_spill] sm:$0xff] }
 0x50d   : > { %15741 = vst [vmem:[#allocation376_spill] sm:$0xff] %v10244_v49  ;;  %v15751_v49 = vld [vmem:[#allocation201_spill] sm:$0xff] }
 0x50e   : > { %15743 = vst [vmem:[#allocation377_spill] sm:$0xff] %v10247_v36  ;;  %v10264_v14 = vmul.f32 0.99, %v15751_v49  ;;  %v15753_v36 = vld [vmem:[#allocation200_spill] sm:$0xff]  ;;  %v15764_v49 = vld [vmem:[#allocation142_spill] sm:$0xff] }
 0x50f   : > { %15745 = vst [vmem:[#allocation378_spill] sm:$0xff] %v10250_v22  ;;  %v10267_v48 = vmul.f32 0.99, %v15753_v36  ;;  %v15755_v22 = vld [vmem:[#allocation203_spill] sm:$0xff] }
 0x510   : > { %15748 = vst [vmem:[#allocation250_spill] sm:$0xff] %v10257_v21  ;;  %v10270_v16 = vmul.f32 0.99, %v15755_v22  ;;  %v10278_v21 = vmul.f32 0.99, %v15760_v63  ;;  %v2585_v63 = vpop.f32.mrf.mxu2 }
 0x511   : > { %15750 = vst [vmem:[#allocation379_spill] sm:$0xff] %v10261_v53  ;;  %v10281_v53 = vmul.f32 0.99, %v15762_v26  ;;  %v10306_v9 = vadd.f32 %v2585_v63, %v2376_v47  ;;  %v15787_v47 = vld [vmem:[#allocation141_spill] sm:$0xff] }
 0x512   : > { %15752 = vst [vmem:[#allocation380_spill] sm:$0xff] %v10264_v14  ;;  %v10285_v14 = vmul.f32 %v15764_v49, %v15764_v49  ;;  %v15776_v49 = vld [vmem:[#allocation215_spill] sm:$0xff]  ;;  %v10323_v63 = vmul.f32 0.99, %v15787_v47 }
 0x513   : > { %15754 = vst [vmem:[#allocation381_spill] sm:$0xff] %v10267_v48  ;;  %v15766_v48 = vld [vmem:[#allocation35_spill] sm:$0xff] }
 0x514   : > { %15756 = vst [vmem:[#allocation382_spill] sm:$0xff] %v10270_v16  ;;  %v10289_v22 = vmul.f32 %v15766_v48, %v15766_v48  ;;  %v15768_v16 = vld [vmem:[#allocation210_spill] sm:$0xff]  ;;  %v3393_v48 = vpop.f32.mrf.mxu3 }
 0x515   : > { %15759 = vst [vmem:[#allocation248_spill] sm:$0xff] %v10275_v8  ;;  %v10292_v36 = vmul.f32 0.99, %v15768_v16  ;;  %v3185_v8 = vadd.f32 1e-06, %v3184_v28  ;;  %v6922_v16 = vpop.eup %6921 }
 0x516   : > { %15761 = vst [vmem:[#allocation383_spill] sm:$0xff] %v10278_v21  ;;  %v15772_v21 = vld [vmem:[#allocation213_spill] sm:$0xff]  ;;  %vm4006_vm2 = vweird.f32 %v6922_v16 }
 0x517   : > { %15763 = vst [vmem:[#allocation384_spill] sm:$0xff] %v10281_v53  ;;  %v10298_v29 = vmul.f32 0.99, %v15772_v21  ;;  %v15774_v53 = vld [vmem:[#allocation212_spill] sm:$0xff]  ;;  %v10315_v21 = vmul.f32 0.99, %v15783_v7  ;;  %vm4007_vm4 = vmor %vm4005_vm3, %vm4006_vm2 }
 0x518   : > { %15765 = vst [vmem:[#allocation385_spill] sm:$0xff] %v10285_v14  ;;  %v10301_v26 = vmul.f32 0.99, %v15774_v53  ;;  %v10304_v14 = vmul.f32 0.99, %v15776_v49  ;;  %v15785_v53 = vld [vmem:[#allocation218_spill] sm:$0xff] }
 0x519   : > { %15767 = vst [vmem:[#allocation386_spill] sm:$0xff] %v10289_v22  ;;  %v3599_v22 = vpop.f32.mrf.mxu0  ;;  %v10320_v49 = vmul.f32 0.99, %v15785_v53  ;;  %v3808_v53 = vpop.f32.mrf.mxu2 }
 0x51a   : > { %15769 = vst [vmem:[#allocation387_spill] sm:$0xff] %v10292_v36  ;;  %v15779_v36 = vld [vmem:[#allocation216_spill] sm:$0xff] }
 0x51b   : > { %15771 = vst [vmem:[#allocation388_spill] sm:$0xff] %v10295_v35  ;;  %v10309_v6 = vmul.f32 0.99, %v15779_v36  ;;  %v15781_v35 = vld [vmem:[#allocation217_spill] sm:$0xff]  ;;  %v15791_v36 = vld [vmem:[#allocation219_spill] sm:$0xff] }
 0x51c   : > { %15773 = vst [vmem:[#allocation389_spill] sm:$0xff] %v10298_v29  ;;  %v10312_v28 = vmul.f32 0.99, %v15781_v35  ;;  %v10317_v29 = vadd.f32 %v3393_v48, %v3185_v8  ;;  %v10330_v35 = vmul.f32 0.99, %v15791_v36  ;;  %v15795_v8 = vld [vmem:[#allocation145_spill] sm:$0xff] }
 0x51d   : > { %15775 = vst [vmem:[#allocation390_spill] sm:$0xff] %v10301_v26  ;;  %v3187_v26 = vpop.f32.mrf.mxu1  ;;  %v10336_v48 = vmul.f32 0.99, %v15795_v8  ;;  %v15811_v36 = vld [vmem:[#allocation225_spill] sm:$0xff] }
 0x51e   : > { %15777 = vst [vmem:[#allocation391_spill] sm:$0xff] %v10304_v14  ;;  %6923 = vrcp.f32 %v10317_v29  ;;  %vm4035_vm8 = vweird.f32 %v10317_v29 }
 0x51f   : > { %15778 = vst [vmem:[#allocation392_spill] sm:$0xff] %v10306_v9  ;;  %v15789_v9 = vld [vmem:[#allocation143_spill] sm:$0xff] }
 0x520   : > { %15780 = vst [vmem:[#allocation393_spill] sm:$0xff] %v10309_v6  ;;  %v10326_v14 = vmul.f32 0.99, %v15789_v9  ;;  %v4001_v6 = vmul.f32 %v6922_v16, %v10217_v10  ;;  %v15799_v9 = vld [vmem:[#allocation147_spill] sm:$0xff] }
 0x521   : > { %15782 = vst [vmem:[#allocation394_spill] sm:$0xff] %v10312_v28  ;;  %v15793_v28 = vld [vmem:[#allocation220_spill] sm:$0xff] }
 0x522   : > { %15784 = vst [vmem:[#allocation395_spill] sm:$0xff] %v10315_v21  ;;  %v10333_v7 = vmul.f32 0.99, %v15793_v28  ;;  %v4002_v47 = vsub.f32 1.0, %v4001_v6  ;;  %v15801_v21 = vld [vmem:[#allocation251_spill] sm:$0xff]  ;;  %v15808_v6 = vld [vmem:[#allocation249_spill] sm:$0xff] }
 0x523   : > { %15786 = vst [vmem:[#allocation396_spill] sm:$0xff] %v10320_v49  ;;  %v15797_v49 = vld [vmem:[#allocation221_spill] sm:$0xff]  ;;  %3234 = vmatmul.f32.gmra.mxu1 %v15801_v21  ;;  %6775 = vmatmul.msk.f32.gmra.mxu3 %vm355_vm0, %v15808_v6 }
 0x524   : > { %15788 = vst [vmem:[#allocation397_spill] sm:$0xff] %v10323_v63  ;;  %v10341_v63 = vmul.f32 0.99, %v15797_v49  ;;  %v15806_v49 = vld [vmem:[#allocation222_spill] sm:$0xff]  ;;  %v4003_v28 = vmul.f32 %v6922_v16, %v4002_v47  ;;  %3652 = vmatmul.f32.gmra.mxu0 %v15801_v21  ;;  %6839 = vmatmul.msk.f32.gmra.mxu2 %vm355_vm0, %v15808_v6 }
 0x525   : > { %15790 = vst [vmem:[#allocation398_spill] sm:$0xff] %v10326_v14  ;;  %v10344_v14 = vmul.f32 0.99, %v15799_v9  ;;  %v15809_v9 = vld [vmem:[#allocation146_spill] sm:$0xff] }
 0x526   : > { %15792 = vst [vmem:[#allocation399_spill] sm:$0xff] %v10330_v35  ;;  %v10365_v15 = vmul.f32 %v15809_v9, %v15809_v9  ;;  %v3600_v35 = vadd.f32 1e-06, %v3599_v22  ;;  %v10379_v9 = vmul.f32 0.99, %v15817_v17  ;;  %v4004_v47 = vadd.f32 %v6922_v16, %v4003_v28 }
 0x527   : > { %15794 = vst [vmem:[#allocation400_spill] sm:$0xff] %v10333_v7  ;;  %v15802_v7 = vld [vmem:[#allocation144_spill] sm:$0xff] }
 0x528   : > { %15796 = vst [vmem:[#allocation401_spill] sm:$0xff] %v10336_v48  ;;  %v10351_v8 = vmul.f32 %v15802_v7, %v15802_v7  ;;  %v15804_v48 = vld [vmem:[#allocation223_spill] sm:$0xff]  ;;  %v4009_v7 = vand.u32 2147483647, %v10217_v10  ;;  %v10382_v22 = vadd.f32 %v3808_v53, %v3600_v35  ;;  %v4008_v28 = vsel %vm4007_vm4, %v6922_v16, %v4004_v47  ;;  %v15823_v53 = vld [vmem:[#allocation229_spill] sm:$0xff]  ;;  %v15827_v47 = vld [vmem:[#allocation254_spill] sm:$0xff] }
 0x529   : > { %15798 = vst [vmem:[#allocation402_spill] sm:$0xff] %v10341_v63  ;;  %v10355_v46 = vmul.f32 0.99, %v15804_v48  ;;  %v10358_v63 = vmul.f32 0.99, %v15806_v49 }
 0x52a   : > { %15800 = vst [vmem:[#allocation403_spill] sm:$0xff] %v10344_v14  ;;  %v4011_v14 = vand.u32 2147483648, %v10217_v10  ;;  %v10369_v48 = vmul.f32 0.99, %v15811_v36  ;;  %v3602_v36 = vpop.f32.mrf.mxu0  ;;  %vm4010_vm5 = vcmp.eq.f32.partialorder %v4009_v7, 8.507059e+37  ;;  %6925 = vrcp.f32 %v10382_v22 }
 0x52b   : > { %15803 = vst [vmem:[#allocation251_spill] sm:$0xff] %v10351_v8  ;;  %v15815_v8 = vld [vmem:[#allocation148_spill] sm:$0xff]  ;;  %v10396_v35 = vmul.f32 0.99, %v15823_v53  ;;  %3237 = vmatmul.f32.gmra.mxu1 %v15827_v47  ;;  %vm4020_vm13 = vweird.f32 %v10382_v22 }
 0x52c   : > { %15805 = vst [vmem:[#allocation404_spill] sm:$0xff] %v10355_v46  ;;  %v15813_v46 = vld [vmem:[#allocation224_spill] sm:$0xff]  ;;  %v10376_v60 = vmul.f32 %v15815_v8, %v15815_v8  ;;  %v4012_v8 = vor.u32 1.1754944e-38, %v4011_v14  ;;  %v15825_v14 = vld [vmem:[#allocation230_spill] sm:$0xff]  ;;  %3655 = vmatmul.f32.gmra.mxu0 %v15827_v47 }
 0x52d   : > { %15807 = vst [vmem:[#allocation405_spill] sm:$0xff] %v10358_v63  ;;  %v10372_v49 = vmul.f32 0.99, %v15813_v46  ;;  %v3188_v63 = vadd.f32 1e-06, %v3187_v26  ;;  %v15821_v26 = vld [vmem:[#allocation228_spill] sm:$0xff] }
 0x52e   : > { %15810 = vst [vmem:[#allocation249_spill] sm:$0xff] %v10365_v15  ;;  %v3396_v15 = vpop.f32.mrf.mxu3  ;;  %v10385_v46 = vmul.f32 0.99, %v15819_v4  ;;  %v4013_v17 = vsel %vm4010_vm5, %v4012_v8, %v4008_v28  ;;  %v15828_v8 = vld [vmem:[#allocation231_spill] sm:$0xff] }
 0x52f   : > { %15812 = vst [vmem:[#allocation406_spill] sm:$0xff] %v10369_v48  ;;  %v6924_v48 = vpop.eup %6923  ;;  %v4014_v16 = vmul.f32 %v4013_v17, %v9951_v2  ;;  %v10411_v28 = vmul.f32 0.99, %v15828_v8  ;;  %v15834_v2 = vld [vmem:[#allocation252_spill] sm:$0xff]  ;;  %v15835_v17 = vld [vmem:[#allocation149_spill] sm:$0xff]  ;;  %v15837_v8 = vld [vmem:[#allocation122_spill] sm:$0xff] }
 0x530   : > { %15814 = vst [vmem:[#allocation407_spill] sm:$0xff] %v10372_v49  ;;  %v10388_v49 = vmul.f32 0.99, %v15821_v26  ;;  %v4031_v10 = vmul.f32 %v6924_v48, %v10317_v29  ;;  %6776 = vmatmul.msk.f32.gmra.mxu3 %vm355_vm0, %v15834_v2  ;;  %vm4036_vm7 = vweird.f32 %v6924_v48  ;;  %v10433_v26 = vpop.eup %6925  ;;  %6840 = vmatmul.msk.f32.gmra.mxu2 %vm355_vm0, %v15834_v2 }
 0x531   : > { %15816 = vst [vmem:[#allocation408_spill] sm:$0xff] %v10376_v60  ;;  %v10391_v60 = vadd.f32 %v3396_v15, %v3188_v63  ;;  %v10402_v63 = vmul.f32 0.99, %v15825_v14  ;;  %v4041_v15 = vand.u32 2147483648, %v10317_v29  ;;  %v5920_v58 = vsel %vm2716_vm1, %v4014_v16, 0.0  ;;  %vm4037_vm10 = vmor %vm4035_vm8, %vm4036_vm7 }
 0x532   : > { %15818 = vst [vmem:[#allocation409_spill] sm:$0xff] %v10379_v9  ;;  %v3190_v9 = vpop.f32.mrf.mxu1  ;;  %v4032_v7 = vsub.f32 1.0, %v4031_v10  ;;  %v10423_v10 = vmul.f32 %v15835_v17, %v15835_v17  ;;  %vm4021_vm1 = vweird.f32 %v10433_v26  ;;  %vm2719_vm8 = vcmp.lt.f32.partialorder %v15606_v40, 0.0 }
 0x533   : > { %15820 = vst [vmem:[#allocation410_spill] sm:$0xff] %v10385_v46  ;;  %v4039_v46 = vand.u32 2147483647, %v10317_v29  ;;  %6927 = vrcp.f32 %v10391_v60  ;;  %v4069_v16 = vand.u32 2147483647, %v10391_v60  ;;  %v4071_v53 = vand.u32 2147483648, %v10391_v60  ;;  %vm10498_vm4 = vmor %vm4020_vm13, %vm4021_vm1 }
 0x534   : > { %15822 = vst [vmem:[#allocation411_spill] sm:$0xff] %v10388_v49  ;;  %v10414_v49 = vmul.f32 0.99, %v15830_v27  ;;  %v6048_v27 = vmul.f32 %v5920_v58, %v15837_v8  ;;  %v3605_v8 = vpop.f32.mrf.mxu0  ;;  %vm4065_vm12 = vweird.f32 %v10391_v60 }
 0x535   : > { %15824 = vst [vmem:[#allocation412_spill] sm:$0xff] %v10396_v35  ;;  %v4033_v35 = vmul.f32 %v6924_v48, %v4032_v7  ;;  %vm10429_vm9 = vcmp.eq.f32.partialorder %v4039_v46, 8.507059e+37  ;;  %vm10474_vm15 = vcmp.eq.f32.partialorder %v4069_v16, 8.507059e+37  ;;  %v4072_v21 = vor.u32 1.1754944e-38, %v4071_v53  ;;  %v15846_v16 = vld [vmem:[#allocation124_spill] sm:$0xff] }
 0x536   : > { %15826 = vst [vmem:[#allocation413_spill] sm:$0xff] %v10402_v63  ;;  %v15832_v63 = vld [vmem:[#allocation232_spill] sm:$0xff]  ;;  %v3399_v7 = vpop.f32.mrf.mxu3 }
 0x537   : > { %15829 = vst [vmem:[#allocation254_spill] sm:$0xff] %v10411_v28  ;;  %v10417_v14 = vmul.f32 0.99, %v15832_v63  ;;  %v3603_v28 = vadd.f32 1e-06, %v3602_v36  ;;  %v3811_v63 = vpop.f32.mrf.mxu2  ;;  %v4034_v33 = vadd.f32 %v6924_v48, %v4033_v35  ;;  %v4042_v36 = vor.u32 1.1754944e-38, %v4041_v15 }
 0x538   : > { %15831 = vst [vmem:[#allocation414_spill] sm:$0xff] %v10414_v49  ;;  %v3191_v49 = vadd.f32 1e-06, %v3190_v9  ;;  %v7325_v9 = vld [vmem:[%s7582_s24] sm:$0xff]  ;;  %v4016_v35 = vmul.f32 %v10433_v26, %v10382_v22 }
 0x539   : > { %15833 = vst [vmem:[#allocation415_spill] sm:$0xff] %v10417_v14  ;;  %v10443_v46 = vadd.f32 %v3811_v63, %v3603_v28  ;;  %v10445_v58 = vpop.eup %6927  ;;  %v6176_v17 = vsub.f32 %v7325_v9, %v6048_v27  ;;  %v4024_v28 = vand.u32 2147483647, %v10382_v22  ;;  %v4026_v9 = vand.u32 2147483648, %v10382_v22 }
 0x53a   : > { %15836 = vst [vmem:[#allocation252_spill] sm:$0xff] %v10423_v10  ;;  %v10454_v15 = vadd.f32 %v3399_v7, %v3191_v49  ;;  %v3193_v4 = vpop.f32.mrf.mxu1  ;;  %v4038_v10 = vsel %vm4037_vm10, %v6924_v48, %v4034_v33  ;;  %v4061_v63 = vmul.f32 %v10445_v58, %v10391_v60  ;;  %v4017_v27 = vsub.f32 1.0, %v4016_v35 }
 0x53b   : > { %6929 = vrcp.f32 %v10443_v46  ;;  %6304 = vst [vmem:[%s10440_s17] sm:$0xff] %v6176_v17  ;;  %v4043_v29 = vsel %vm10429_vm9, %v4042_v36, %v4038_v10  ;;  %v15840_v17 = vld [vmem:[#allocation255_spill] sm:$0xff]  ;;  %vm4066_vm2 = vweird.f32 %v10445_v58  ;;  %vm10486_vm3 = vcmp.eq.f32.partialorder %v4024_v28, 8.507059e+37 }
 0x53c   : > { %6931 = vrcp.f32 %v10454_v15  ;;  %v4044_v49 = vmul.f32 %v4043_v29, %v9954_v18  ;;  %v4062_v48 = vsub.f32 1.0, %v4061_v63  ;;  %3240 = vmatmul.f32.gmra.mxu1 %v15840_v17  ;;  %v4018_v10 = vmul.f32 %v10433_v26, %v4017_v27  ;;  %v15843_v18 = vld [vmem:[#allocation253_spill] sm:$0xff]  ;;  %vm4067_vm7 = vmor %vm4065_vm12, %vm4066_vm2  ;;  %3658 = vmatmul.f32.gmra.mxu0 %v15840_v17 }
 0x53d   : > { %6777 = vmatmul.msk.f32.gmra.mxu3 %vm355_vm0, %v15843_v18  ;;  %v4027_v35 = vor.u32 1.1754944e-38, %v4026_v9  ;;  %vm4095_vm5 = vweird.f32 %v10454_v15  ;;  %v4054_v9 = vand.u32 2147483647, %v10443_v46  ;;  %v3194_v41 = vadd.f32 1e-06, %v3193_v4  ;;  %6841 = vmatmul.msk.f32.gmra.mxu2 %vm355_vm0, %v15843_v18 }
 0x53e   : > { %v5922_v33 = vsel %vm2718_vm6, %v4044_v49, 0.0  ;;  %v4063_v36 = vmul.f32 %v10445_v58, %v4062_v48  ;;  %v4019_v7 = vadd.f32 %v10433_v26, %v4018_v10  ;;  %v4101_v49 = vand.u32 2147483648, %v10454_v15  ;;  %v3402_v48 = vpop.f32.mrf.mxu3  ;;  %v10506_v10 = vpop.f32.mrf.mxu0 }
 0x53f   : > { %v6050_v53 = vmul.f32 %v5922_v33, %v15846_v16  ;;  %v3814_v29 = vpop.f32.mrf.mxu2  ;;  %vm4050_vm6 = vweird.f32 %v10443_v46  ;;  %v10529_v28 = vadd.f32 %v3402_v48, %v3194_v41  ;;  %v4056_v6 = vand.u32 2147483648, %v10443_v46 }
 0x540   : > { %v4064_v43 = vadd.f32 %v10445_v58, %v4063_v36  ;;  %v7326_v36 = vld [vmem:[%s7582_s24 + $0x10] sm:$0xff]  ;;  %v4023_v16 = vsel %vm10498_vm4, %v10433_v26, %v4019_v7  ;;  %vm2722_vm9 = vcmp.lt.f32.partialorder %v15608_v39, 0.0  ;;  %vm2724_vm4 = vcmp.lt.f32.partialorder %v15609_v62, 0.0 }
 0x541   : > { %v10493_v27 = vpop.eup %6929  ;;  %v6178_v22 = vsub.f32 %v7326_v36, %v6050_v53  ;;  %v4028_v50 = vsel %vm10486_vm3, %v4027_v35, %v4023_v16  ;;  %v3606_v36 = vadd.f32 1e-06, %v3605_v8  ;;  %v15849_v8 = vld [vmem:[#allocation257_spill] sm:$0xff]  ;;  %6933 = vrcp.f32 %v10529_v28 }
 0x542   : > { %v10508_v33 = vpop.eup %6931  ;;  %v4046_v63 = vmul.f32 %v10493_v27, %v10443_v46  ;;  %v3196_v61 = vpop.f32.mrf.mxu1  ;;  %v4068_v52 = vsel %vm4067_vm7, %v10445_v58, %v4064_v43  ;;  %v4029_v26 = vmul.f32 %v4028_v50, %v9970_v54  ;;  %vm4051_vm10 = vweird.f32 %v10493_v27  ;;  %v7327_v43 = vld [vmem:[%s7582_s24 + $0x8] sm:$0xff] }
 0x543   : > { %v4091_v53 = vmul.f32 %v10508_v33, %v10454_v15  ;;  %6306 = vst [vmem:[%s10440_s17 + $0x10] sm:$0xff] %v6178_v22  ;;  %v4073_v60 = vsel %vm10474_vm15, %v4072_v21, %v4068_v52  ;;  %v10535_v35 = vadd.f32 %v3814_v29, %v3606_v36  ;;  %v15851_v52 = vld [vmem:[#allocation2_spill] sm:$0xff]  ;;  %vm4096_vm12 = vweird.f32 %v10508_v33 }
 0x544   : > { %v4047_v7 = vsub.f32 1.0, %v4046_v63  ;;  %v4074_v4 = vmul.f32 %v4073_v60, %v9967_v19  ;;  %3243 = vmatmul.f32.gmra.mxu1 %v15849_v8  ;;  %v5921_v50 = vsel %vm2717_vm11, %v4029_v26, 0.0  ;;  %v15850_v19 = vld [vmem:[#allocation256_spill] sm:$0xff]  ;;  %v4102_v21 = vor.u32 1.1754944e-38, %v4101_v49  ;;  %vm10562_vm11 = vmor %vm4050_vm6, %vm4051_vm10  ;;  %v7328_v60 = vld [vmem:[%s7582_s24 + $0x20] sm:$0xff]  ;;  %3661 = vmatmul.f32.gmra.mxu0 %v15849_v8 }
 0x545   : > { %v4092_v58 = vsub.f32 1.0, %v4091_v53  ;;  %6778 = vmatmul.msk.f32.gmra.mxu3 %vm355_vm0, %v15850_v19  ;;  %v6049_v47 = vmul.f32 %v5921_v50, %v15851_v52  ;;  %6935 = vrcp.f32 %v10535_v35  ;;  %v4057_v16 = vor.u32 1.1754944e-38, %v4056_v6  ;;  %vm4097_vm13 = vmor %vm4095_vm5, %vm4096_vm12  ;;  %6842 = vmatmul.msk.f32.gmra.mxu2 %vm355_vm0, %v15850_v19 }
 0x546   : > { %v4048_v54 = vmul.f32 %v10493_v27, %v4047_v7  ;;  %v5924_v41 = vsel %vm2720_vm14, %v4074_v4, 0.0  ;;  %v4129_v49 = vand.u32 2147483647, %v10529_v28  ;;  %v3405_v53 = vpop.f32.mrf.mxu3  ;;  %v3611_v36 = vpop.f32.mrf.mxu0  ;;  %vm4055_vm14 = vcmp.eq.f32.partialorder %v4054_v9, 8.507059e+37 }
 0x547   : > { %v4093_v2 = vmul.f32 %v10508_v33, %v4092_v58  ;;  %v6052_v14 = vmul.f32 %v5924_v41, %v15852_v38  ;;  %v3817_v29 = vpop.f32.mrf.mxu2  ;;  %v6177_v48 = vsub.f32 %v7327_v43, %v6049_v47  ;;  %v3197_v7 = vadd.f32 1e-06, %v3196_v61  ;;  %v15858_v47 = vld [vmem:[#allocation258_spill] sm:$0xff]  ;;  %v15859_v38 = vld [vmem:[#allocation259_spill] sm:$0xff]  ;;  %v15861_v43 = vld [vmem:[#allocation128_spill] sm:$0xff] }
 0x548   : > { %v4049_v63 = vadd.f32 %v10493_v27, %v4048_v54  ;;  %v15855_v6 = vand.u32 2147483647, %v10454_v15  ;;  %vm4125_vm1 = vweird.f32 %v10529_v28  ;;  %v10581_v54 = vpop.eup %6933  ;;  %vm10592_vm2 = vcmp.eq.f32.partialorder %v4129_v49, 8.507059e+37 }
 0x549   : > { %v4094_v13 = vadd.f32 %v10508_v33, %v4093_v2  ;;  %v6180_v26 = vsub.f32 %v7328_v60, %v6052_v14  ;;  %6305 = vst.msk [vmem:[%s10440_s17 + $0x8] sm:$0xff] %vm355_vm0, %v6177_v48  ;;  %v10586_v61 = vadd.f32 %v3405_v53, %v3197_v7  ;;  %v4121_v15 = vmul.f32 %v10581_v54, %v10529_v28  ;;  %v7330_v7 = vld [vmem:[%s7582_s24 + $0x30] sm:$0xff] }
 0x54a   : > { %v4053_v46 = vsel %vm10562_vm11, %v10493_v27, %v4049_v63  ;;  %v3199_v4 = vpop.f32.mrf.mxu1  ;;  %vm4100_vm15 = vcmp.eq.f32.partialorder %v15855_v6, 8.507059e+37  ;;  %v4131_v27 = vand.u32 2147483648, %v10529_v28  ;;  %vm4080_vm3 = vweird.f32 %v10535_v35 }
 0x54b   : > { %v4098_v58 = vsel %vm4097_vm13, %v10508_v33, %v4094_v13  ;;  %v4058_v50 = vsel %vm4055_vm14, %v4057_v16, %v4053_v46  ;;  %6308 = vst [vmem:[%s10440_s17 + $0x20] sm:$0xff] %v6180_v26  ;;  %v3609_v2 = vadd.f32 1e-06, %v10506_v10  ;;  %6937 = vrcp.f32 %v10586_v61  ;;  %v7329_v16 = vld [vmem:[%s7582_s24 + $0x18] sm:$0xff] }
 0x54c   : > { %v4103_v41 = vsel %vm4100_vm15, %v4102_v21, %v4098_v58  ;;  %v4059_v52 = vmul.f32 %v4058_v50, %v9973_v20  ;;  %3246 = vmatmul.f32.gmra.mxu1 %v15858_v47  ;;  %v6936_v20 = vpop.eup %6935  ;;  %v15860_v21 = vld [vmem:[#allocation3_spill] sm:$0xff]  ;;  %v4122_v18 = vsub.f32 1.0, %v4121_v15  ;;  %vm4126_vm5 = vweird.f32 %v10581_v54  ;;  %3664 = vmatmul.f32.gmra.mxu0 %v15858_v47 }
 0x54d   : > { %v4104_v9 = vmul.f32 %v4103_v41, %v9980_v57  ;;  %v4084_v57 = vand.u32 2147483647, %v10535_v35  ;;  %6779 = vmatmul.msk.f32.gmra.mxu3 %vm355_vm0, %v15859_v38  ;;  %v4076_v40 = vmul.f32 %v6936_v20, %v10535_v35  ;;  %v4132_v10 = vor.u32 1.1754944e-38, %v4131_v27  ;;  %6843 = vmatmul.msk.f32.gmra.mxu2 %vm355_vm0, %v15859_v38 }
 0x54e   : > { %v5923_v17 = vsel %vm2719_vm8, %v4059_v52, 0.0  ;;  %v4086_v13 = vand.u32 2147483648, %v10535_v35  ;;  %v4123_v49 = vmul.f32 %v10581_v54, %v4122_v18  ;;  %v10617_v60 = vadd.f32 %v3817_v29, %v3609_v2  ;;  %v3408_v26 = vpop.f32.mrf.mxu3  ;;  %v10619_v46 = vpop.f32.mrf.mxu0 }
 0x54f   : > { %v5926_v14 = vsel %vm2722_vm9, %v4104_v9, 0.0  ;;  %v6051_v63 = vmul.f32 %v5923_v17, %v15860_v21  ;;  %v3820_v22 = vpop.f32.mrf.mxu2  ;;  %v4077_v53 = vsub.f32 1.0, %v4076_v40  ;;  %vm2721_vm6 = vcmp.lt.f32.partialorder %v15610_v31, 0.0  ;;  %vm4127_vm9 = vmor %vm4125_vm1, %vm4126_vm5  ;;  %v7333_v31 = vld [vmem:[%s7582_s24 + $0x50] sm:$0xff] }
 0x550   : > { %v6054_v48 = vmul.f32 %v5926_v14, %v15861_v43  ;;  %vm10623_vm7 = vcmp.eq.f32.partialorder %v4084_v57, 8.507059e+37  ;;  %v3200_v50 = vadd.f32 1e-06, %v3199_v4  ;;  %v3612_v41 = vadd.f32 1e-06, %v3611_v36 }
 0x551   : > { %v6179_v39 = vsub.f32 %v7329_v16, %v6051_v63  ;;  %v4124_v29 = vadd.f32 %v10581_v54, %v4123_v49  ;;  %v4078_v27 = vmul.f32 %v6936_v20, %v4077_v53  ;;  %vm4081_vm8 = vweird.f32 %v6936_v20  ;;  %v10633_v9 = vpop.eup %6937  ;;  %v15864_v63 = vld [vmem:[#allocation261_spill] sm:$0xff]  ;;  %v15868_v49 = vld [vmem:[#allocation130_spill] sm:$0xff] }
 0x552   : > { %v6182_v58 = vsub.f32 %v7330_v7, %v6054_v48  ;;  %v10627_v52 = vpop.f32.mrf.mxu1  ;;  %6939 = vrcp.f32 %v10617_v60  ;;  %v4159_v36 = vand.u32 2147483647, %v10586_v61  ;;  %v4161_v4 = vand.u32 2147483648, %v10586_v61  ;;  %vm4082_vm10 = vmor %vm4080_vm3, %vm4081_vm8 }
 0x553   : > { %6307 = vst.msk [vmem:[%s10440_s17 + $0x18] sm:$0xff] %vm355_vm0, %v6179_v39  ;;  %v10642_v15 = vadd.f32 %v3408_v26, %v3200_v50  ;;  %v10644_v17 = vadd.f32 %v3820_v22, %v3612_v41  ;;  %v4128_v57 = vsel %vm4127_vm9, %v10581_v54, %v4124_v29  ;;  %v4079_v2 = vadd.f32 %v6936_v20, %v4078_v27  ;;  %v15865_v54 = vld [vmem:[#allocation260_spill] sm:$0xff]  ;;  %v7331_v41 = vld [vmem:[%s7582_s24 + $0x40] sm:$0xff] }
 0x554   : > { %6310 = vst [vmem:[%s10440_s17 + $0x30] sm:$0xff] %v6182_v58  ;;  %v4087_v14 = vor.u32 1.1754944e-38, %v4086_v13  ;;  %v4151_v21 = vmul.f32 %v10633_v9, %v10586_v61  ;;  %3249 = vmatmul.f32.gmra.mxu1 %v15864_v63  ;;  %v4133_v28 = vsel %vm10592_vm2, %v4132_v10, %v4128_v57  ;;  %vm4155_vm12 = vweird.f32 %v10586_v61  ;;  %v15871_v27 = vld [vmem:[#allocation4_spill] sm:$0xff]  ;;  %3667 = vmatmul.f32.gmra.mxu0 %v15864_v63 }
 0x555   : > { %v4114_v8 = vand.u32 2147483647, %v10617_v60  ;;  %6941 = vrcp.f32 %v10642_v15  ;;  %6780 = vmatmul.msk.f32.gmra.mxu3 %vm355_vm0, %v15865_v54  ;;  %v4134_v18 = vmul.f32 %v4133_v28, %v9983_v5  ;;  %v4083_v40 = vsel %vm4082_vm10, %v6936_v20, %v4079_v2  ;;  %v7332_v28 = vld [vmem:[%s7582_s24 + $0x28] sm:$0xff]  ;;  %6844 = vmatmul.msk.f32.gmra.mxu2 %vm355_vm0, %v15865_v54 }
 0x556   : > { %v4152_v19 = vsub.f32 1.0, %v4151_v21  ;;  %v4116_v33 = vand.u32 2147483648, %v10617_v60  ;;  %vm2726_vm11 = vcmp.lt.f32.partialorder %v15611_v51, 0.0  ;;  %v4088_v35 = vsel %vm10623_vm7, %v4087_v14, %v4083_v40  ;;  %v3411_v16 = vpop.f32.mrf.mxu3  ;;  %v10680_v39 = vpop.f32.mrf.mxu0  ;;  %v15874_v21 = vld [vmem:[#allocation262_spill] sm:$0xff]  ;;  %v15875_v40 = vld [vmem:[#allocation263_spill] sm:$0xff] }
 0x557   : > { %vm10668_vm13 = vcmp.eq.f32.partialorder %v4159_v36, 8.507059e+37  ;;  %v4162_v48 = vor.u32 1.1754944e-38, %v4161_v4  ;;  %6943 = vrcp.f32 %v10644_v17  ;;  %v3823_v10 = vpop.f32.mrf.mxu2  ;;  %v5928_v5 = vsel %vm2724_vm4, %v4134_v18, 0.0 }
 0x558   : > { %v10673_v13 = vpop.eup %6939  ;;  %v4089_v20 = vmul.f32 %v4088_v35, %v9986_v44  ;;  %v4153_v22 = vmul.f32 %v10633_v9, %v4152_v19  ;;  %vm4156_vm14 = vweird.f32 %v10633_v9  ;;  %v6056_v53 = vmul.f32 %v5928_v5, %v15868_v49 }
 0x559   : > { %v4106_v26 = vmul.f32 %v10673_v13, %v10617_v60  ;;  %vm4110_vm15 = vweird.f32 %v10617_v60  ;;  %vm10686_vm1 = vcmp.eq.f32.partialorder %v4114_v8, 8.507059e+37  ;;  %v4117_v6 = vor.u32 1.1754944e-38, %v4116_v33  ;;  %vm10704_vm3 = vmor %vm4155_vm12, %vm4156_vm14 }
 0x55a   : > { %v10690_v7 = vpop.f32.mrf.mxu1  ;;  %v5925_v44 = vsel %vm2721_vm6, %v4089_v20, 0.0  ;;  %v4154_v58 = vadd.f32 %v10633_v9, %v4153_v22  ;;  %vm4185_vm2 = vweird.f32 %v10642_v15  ;;  %v6184_v29 = vsub.f32 %v7331_v41, %v6056_v53 }
 0x55b   : > { %v10696_v50 = vpop.eup %6941  ;;  %v6053_v36 = vmul.f32 %v5925_v44, %v15871_v27  ;;  %v4107_v4 = vsub.f32 1.0, %v4106_v26  ;;  %v4189_v57 = vand.u32 2147483647, %v10642_v15  ;;  %vm2723_vm4 = vcmp.lt.f32.partialorder %v15612_v59, 0.0 }
 0x55c   : > { %v4158_v2 = vsel %vm10704_vm3, %v10633_v9, %v4154_v58  ;;  %v4181_v14 = vmul.f32 %v10696_v50, %v10642_v15  ;;  %v4191_v61 = vand.u32 2147483648, %v10642_v15  ;;  %vm4140_vm5 = vweird.f32 %v10644_v17  ;;  %3252 = vmatmul.f32.gmra.mxu1 %v15874_v21  ;;  %6312 = vst [vmem:[%s10440_s17 + $0x40] sm:$0xff] %v6184_v29  ;;  %3670 = vmatmul.f32.gmra.mxu0 %v15874_v21 }
 0x55d   : > { %v10721_v47 = vpop.eup %6943  ;;  %v6181_v8 = vsub.f32 %v7332_v28, %v6053_v36  ;;  %v4163_v9 = vsel %vm10668_vm13, %v4162_v48, %v4158_v2  ;;  %v4108_v18 = vmul.f32 %v10673_v13, %v4107_v4  ;;  %vm4111_vm6 = vweird.f32 %v10673_v13  ;;  %6781 = vmatmul.msk.f32.gmra.mxu3 %vm355_vm0, %v15875_v40  ;;  %v15881_v2 = vld [vmem:[#allocation5_spill] sm:$0xff]  ;;  %v15882_v28 = vld [vmem:[#allocation235_spill] sm:$0xff]  ;;  %6845 = vmatmul.msk.f32.gmra.mxu2 %vm355_vm0, %v15875_v40 }
 0x55e   : > { %v4164_v19 = vmul.f32 %v4163_v9, %v9989_v24  ;;  %v4182_v33 = vsub.f32 1.0, %v4181_v14  ;;  %v4136_v38 = vmul.f32 %v10721_v47, %v10644_v17  ;;  %v4144_v35 = vand.u32 2147483647, %v10644_v17  ;;  %vm4112_vm8 = vmor %vm4110_vm15, %vm4111_vm6  ;;  %v3414_v26 = vpop.f32.mrf.mxu3  ;;  %v10748_v44 = vpop.f32.mrf.mxu0  ;;  %v15883_v9 = vld [vmem:[#allocation234_spill] sm:$0xff] }
 0x55f   : > { %vm2728_vm7 = vcmp.lt.f32.partialorder %v15615_v23, 0.0  ;;  %6309 = vst.msk [vmem:[%s10440_s17 + $0x28] sm:$0xff] %vm355_vm0, %v6181_v8  ;;  %v4109_v43 = vadd.f32 %v10673_v13, %v4108_v18  ;;  %v4146_v48 = vand.u32 2147483648, %v10644_v17  ;;  %v3203_v5 = vadd.f32 1e-06, %v10627_v52  ;;  %v3826_v22 = vpop.f32.mrf.mxu2  ;;  %v15876_v52 = vld [vmem:[#allocation132_spill] sm:$0xff] }
 0x560   : > { %v3615_v20 = vadd.f32 1e-06, %v10619_v46  ;;  %v5930_v24 = vsel %vm2726_vm11, %v4164_v19, 0.0  ;;  %v4183_v49 = vmul.f32 %v10696_v50, %v4182_v33  ;;  %vm4186_vm9 = vweird.f32 %v10696_v50 }
 0x561   : > { %v4137_v53 = vsub.f32 1.0, %v4136_v38  ;;  %vm2725_vm10 = vcmp.lt.f32.partialorder %v15613_v11, 0.0  ;;  %v6058_v46 = vmul.f32 %v5930_v24, %v15876_v52  ;;  %v4113_v58 = vsel %vm4112_vm8, %v10673_v13, %v4109_v43  ;;  %vm4187_vm11 = vmor %vm4185_vm2, %vm4186_vm9  ;;  %v7334_v38 = vld [vmem:[%s7582_s24 + $0x38] sm:$0xff] }
 0x562   : > { %v10753_v51 = vadd.f32 %v3411_v16, %v3203_v5  ;;  %v10755_v41 = vadd.f32 %v3823_v10, %v3615_v20  ;;  %v10757_v60 = vpop.f32.mrf.mxu1  ;;  %v4118_v29 = vsel %vm10686_vm1, %v4117_v6, %v4113_v58  ;;  %v4184_v27 = vadd.f32 %v10696_v50, %v4183_v49  ;;  %v15884_v20 = vld [vmem:[#allocation236_spill] sm:$0xff] }
 0x563   : > { %v4138_v36 = vmul.f32 %v10721_v47, %v4137_v53  ;;  %vm4141_vm12 = vweird.f32 %v10721_v47  ;;  %v6186_v4 = vsub.f32 %v7333_v31, %v6058_v46  ;;  %v4119_v13 = vmul.f32 %v4118_v29, %v9992_v1  ;;  %v15879_v1 = vld [vmem:[#allocation265_spill] sm:$0xff] }
 0x564   : > { %v4192_v10 = vor.u32 1.1754944e-38, %v4191_v61  ;;  %6945 = vrcp.f32 %v10753_v51  ;;  %v4188_v16 = vsel %vm4187_vm11, %v10696_v50, %v4184_v27  ;;  %vm4190_vm13 = vcmp.eq.f32.partialorder %v4189_v57, 8.507059e+37  ;;  %3255 = vmatmul.f32.gmra.mxu1 %v15879_v1  ;;  %vm4142_vm15 = vmor %vm4140_vm5, %vm4141_vm12  ;;  %v15880_v57 = vld [vmem:[#allocation264_spill] sm:$0xff]  ;;  %v15886_v27 = vld [vmem:[#allocation6_spill] sm:$0xff]  ;;  %3673 = vmatmul.f32.gmra.mxu0 %v15879_v1 }
 0x565   : > { %v4139_v62 = vadd.f32 %v10721_v47, %v4138_v36  ;;  %vm10774_vm14 = vcmp.eq.f32.partialorder %v4144_v35, 8.507059e+37  ;;  %6314 = vst [vmem:[%s10440_s17 + $0x50] sm:$0xff] %v6186_v4  ;;  %v5927_v15 = vsel %vm2723_vm4, %v4119_v13, 0.0  ;;  %v4147_v50 = vor.u32 1.1754944e-38, %v4146_v48  ;;  %6782 = vmatmul.msk.f32.gmra.mxu3 %vm355_vm0, %v15880_v57  ;;  %6846 = vmatmul.msk.f32.gmra.mxu2 %vm355_vm0, %v15880_v57  ;;  %v15897_v57 = vld [vmem:[#allocation136_spill] sm:$0xff] }
 0x566   : > { %v4193_v63 = vsel %vm4190_vm13, %v4192_v10, %v4188_v16  ;;  %6947 = vrcp.f32 %v10755_v41  ;;  %v6055_v14 = vmul.f32 %v5927_v15, %v15881_v2  ;;  %v3206_v61 = vadd.f32 1e-06, %v10690_v7  ;;  %v3417_v43 = vpop.f32.mrf.mxu3  ;;  %v10812_v48 = vpop.f32.mrf.mxu0  ;;  %v15887_v10 = vld [vmem:[#allocation266_spill] sm:$0xff]  ;;  %v7336_v16 = vld [vmem:[%s7582_s24 + $0x48] sm:$0xff]  ;;  %v7337_v2 = vld [vmem:[%s7582_s24 + $0x70] sm:$0xff] }
 0x567   : > { %v4194_v54 = vmul.f32 %v4193_v63, %v10000_v42  ;;  %v4143_v59 = vsel %vm4142_vm15, %v10721_v47, %v4139_v62  ;;  %v10796_v8 = vmul.f32 0.99, %v15882_v28  ;;  %v10799_v17 = vmul.f32 0.99, %v15883_v9  ;;  %v10804_v33 = vpop.f32.mrf.mxu2  ;;  %v15890_v15 = vld [vmem:[#allocation267_spill] sm:$0xff] }
 0x568   : > { %v4148_v18 = vsel %vm10774_vm14, %v4147_v50, %v4143_v59  ;;  %v3618_v19 = vadd.f32 1e-06, %v10680_v39  ;;  %v6183_v42 = vsub.f32 %v7334_v38, %v6055_v14  ;;  %v10810_v35 = vadd.f32 %v3414_v26, %v3206_v61  ;;  %v15885_v39 = vld [vmem:[#allocation134_spill] sm:$0xff] }
 0x569   : > { %v5932_v47 = vsel %vm2728_vm7, %v4194_v54, 0.0  ;;  %v4149_v7 = vmul.f32 %v4148_v18, %v9995_v45  ;;  %v10817_v24 = vmul.f32 0.99, %v15884_v20  ;;  %v4219_v53 = vand.u32 2147483647, %v10753_v51 }
 0x56a   : > { %v10814_v5 = vpop.eup %6945  ;;  %v6060_v49 = vmul.f32 %v5932_v47, %v15885_v39  ;;  %v10821_v52 = vadd.f32 %v3826_v22, %v3618_v19  ;;  %v10823_v23 = vpop.f32.mrf.mxu1  ;;  %6311 = vst.msk [vmem:[%s10440_s17 + $0x38] sm:$0xff] %vm355_vm0, %v6183_v42  ;;  %v4221_v46 = vand.u32 2147483648, %v10753_v51  ;;  %6949 = vrcp.f32 %v10810_v35  ;;  %v7335_v22 = vld [vmem:[%s7582_s24 + $0x60] sm:$0xff] }
 0x56b   : > { %v5929_v45 = vsel %vm2725_vm10, %v4149_v7, 0.0  ;;  %v4211_v26 = vmul.f32 %v10814_v5, %v10753_v51  ;;  %v4174_v31 = vand.u32 2147483647, %v10755_v41  ;;  %v4176_v11 = vand.u32 2147483648, %v10755_v41 }
 0x56c   : > { %v10833_v58 = vpop.eup %6947  ;;  %v6188_v29 = vsub.f32 %v7335_v22, %v6060_v49  ;;  %v6057_v36 = vmul.f32 %v5929_v45, %v15886_v27  ;;  %vm4215_vm1 = vweird.f32 %v10753_v51  ;;  %vm4170_vm2 = vweird.f32 %v10755_v41  ;;  %3258 = vmatmul.f32.gmra.mxu1 %v15887_v10  ;;  %3676 = vmatmul.f32.gmra.mxu0 %v15887_v10 }
 0x56d   : > { %v4212_v4 = vsub.f32 1.0, %v4211_v26  ;;  %v4166_v13 = vmul.f32 %v10833_v58, %v10755_v41  ;;  %vm2730_vm3 = vcmp.lt.f32.partialorder %v15616_v12, 0.0  ;;  %vm10850_vm4 = vcmp.eq.f32.partialorder %v4219_v53, 8.507059e+37  ;;  %6783 = vmatmul.msk.f32.gmra.mxu3 %vm355_vm0, %v15890_v15  ;;  %v15895_v41 = vld [vmem:[#allocation269_spill] sm:$0xff]  ;;  %6847 = vmatmul.msk.f32.gmra.mxu2 %vm355_vm0, %v15890_v15  ;;  %v15904_v15 = vld [vmem:[#allocation138_spill] sm:$0xff] }
 0x56e   : > { %6316 = vst [vmem:[%s10440_s17 + $0x60] sm:$0xff] %v6188_v29  ;;  %v6185_v62 = vsub.f32 %v7336_v16, %v6057_v36  ;;  %v4249_v6 = vand.u32 2147483647, %v10810_v35  ;;  %6951 = vrcp.f32 %v10821_v52  ;;  %vm4216_vm5 = vweird.f32 %v10814_v5  ;;  %v10875_v42 = vpop.f32.mrf.mxu3  ;;  %v10877_v47 = vpop.f32.mrf.mxu0 }
 0x56f   : > { %v4213_v63 = vmul.f32 %v10814_v5, %v4212_v4  ;;  %v4222_v40 = vor.u32 1.1754944e-38, %v4221_v46  ;;  %v4167_v50 = vsub.f32 1.0, %v4166_v13  ;;  %vm2727_vm6 = vcmp.lt.f32.partialorder %v15617_v0, 0.0  ;;  %v10869_v59 = vpop.f32.mrf.mxu2  ;;  %vm4217_vm10 = vmor %vm4215_vm1, %vm4216_vm5  ;;  %v15900_v0 = vld [vmem:[#allocation7_spill] sm:$0xff] }
 0x570   : > { %6313 = vst.msk [vmem:[%s10440_s17 + $0x48] sm:$0xff] %vm355_vm0, %v6185_v62  ;;  %vm10863_vm7 = vcmp.eq.f32.partialorder %v4174_v31, 8.507059e+37  ;;  %v4177_v14 = vor.u32 1.1754944e-38, %v4176_v11  ;;  %vm4245_vm8 = vweird.f32 %v10810_v35  ;;  %v3209_v54 = vadd.f32 1e-06, %v10757_v60  ;;  %v6950_v61 = vpop.eup %6949  ;;  %v15896_v11 = vld [vmem:[#allocation268_spill] sm:$0xff] }
 0x571   : > { %v4214_v18 = vadd.f32 %v10814_v5, %v4213_v63  ;;  %v4168_v19 = vmul.f32 %v10833_v58, %v4167_v50  ;;  %vm4171_vm9 = vweird.f32 %v10833_v58  ;;  %v3621_v38 = vadd.f32 1e-06, %v10748_v44  ;;  %v7339_v62 = vld [vmem:[%s7582_s24 + $0x80] sm:$0xff] }
 0x572   : > { %v4241_v60 = vmul.f32 %v6950_v61, %v10810_v35  ;;  %vm10884_vm12 = vcmp.eq.f32.partialorder %v4249_v6, 8.507059e+37  ;;  %v4251_v39 = vand.u32 2147483648, %v10810_v35  ;;  %v10889_v49 = vadd.f32 %v3417_v43, %v3209_v54  ;;  %v10891_v44 = vpop.f32.mrf.mxu1  ;;  %vm4172_vm13 = vmor %vm4170_vm2, %vm4171_vm9 }
 0x573   : > { %v4218_v53 = vsel %vm4217_vm10, %v10814_v5, %v4214_v18  ;;  %v4169_v45 = vadd.f32 %v10833_v58, %v4168_v19  ;;  %vm4200_vm11 = vweird.f32 %v10821_v52  ;;  %v10897_v51 = vadd.f32 %v10804_v33, %v3621_v38 }
 0x574   : > { %v10899_v26 = vpop.eup %6951  ;;  %v4223_v46 = vsel %vm10850_vm4, %v4222_v40, %v4218_v53  ;;  %v4242_v43 = vsub.f32 1.0, %v4241_v60  ;;  %v4204_v5 = vand.u32 2147483647, %v10821_v52  ;;  %6953 = vrcp.f32 %v10889_v49  ;;  %3261 = vmatmul.f32.gmra.mxu1 %v15895_v41  ;;  %3679 = vmatmul.f32.gmra.mxu0 %v15895_v41 }
 0x575   : > { %vm2732_vm14 = vcmp.lt.f32.partialorder %v15619_v55, 0.0  ;;  %v4224_v33 = vmul.f32 %v4223_v46, %v10003_v37  ;;  %v4173_v22 = vsel %vm4172_vm13, %v10833_v58, %v4169_v45  ;;  %v4196_v29 = vmul.f32 %v10899_v26, %v10821_v52  ;;  %6784 = vmatmul.msk.f32.gmra.mxu3 %vm355_vm0, %v15896_v11  ;;  %v7338_v45 = vld [vmem:[%s7582_s24 + $0x58] sm:$0xff]  ;;  %6848 = vmatmul.msk.f32.gmra.mxu2 %vm355_vm0, %v15896_v11 }
 0x576   : > { %v4206_v27 = vand.u32 2147483648, %v10821_v52  ;;  %v4178_v36 = vsel %vm10863_vm7, %v4177_v14, %v4173_v22  ;;  %v4243_v1 = vmul.f32 %v6950_v61, %v4242_v43  ;;  %vm4246_vm15 = vweird.f32 %v6950_v61  ;;  %v10942_v40 = vpop.f32.mrf.mxu3  ;;  %v10944_v50 = vpop.f32.mrf.mxu0  ;;  %v15901_v43 = vld [vmem:[#allocation153_spill] sm:$0xff] }
 0x577   : > { %v4252_v31 = vor.u32 1.1754944e-38, %v4251_v39  ;;  %v5934_v37 = vsel %vm2730_vm3, %v4224_v33, 0.0  ;;  %v4179_v58 = vmul.f32 %v4178_v36, %v10006_v30  ;;  %v4197_v4 = vsub.f32 1.0, %v4196_v29  ;;  %v10934_v6 = vpop.f32.mrf.mxu2  ;;  %vm4247_vm3 = vmor %vm4245_vm8, %vm4246_vm15  ;;  %v15902_v36 = vld [vmem:[#allocation270_spill] sm:$0xff]  ;;  %v15906_v55 = vld [vmem:[#allocation237_spill] sm:$0xff] }
 0x578   : > { %6955 = vrcp.f32 %v10897_v51  ;;  %vm2729_vm1 = vcmp.lt.f32.partialorder %v15621_v25, 0.0  ;;  %v6062_v13 = vmul.f32 %v5934_v37, %v15897_v57  ;;  %v4244_v16 = vadd.f32 %v6950_v61, %v4243_v1  ;;  %v15905_v1 = vld [vmem:[#allocation154_spill] sm:$0xff] }
 0x579   : > { %vm10929_vm2 = vcmp.eq.f32.partialorder %v4204_v5, 8.507059e+37  ;;  %v3212_v21 = vadd.f32 1e-06, %v10823_v23  ;;  %v5931_v30 = vsel %vm2727_vm6, %v4179_v58, 0.0  ;;  %v4198_v12 = vmul.f32 %v10899_v26, %v4197_v4 }
 0x57a   : > { %vm4201_vm4 = vweird.f32 %v10899_v26  ;;  %v4207_v63 = vor.u32 1.1754944e-38, %v4206_v27  ;;  %v10946_v23 = vpop.eup %6953  ;;  %v6190_v14 = vsub.f32 %v7337_v2, %v6062_v13  ;;  %v6059_v54 = vmul.f32 %v5931_v30, %v15900_v0  ;;  %v10951_v19 = vpop.f32.mrf.mxu1  ;;  %v15908_v2 = vld [vmem:[#allocation8_spill] sm:$0xff] }
 0x57b   : > { %v4248_v18 = vsel %vm4247_vm3, %v6950_v61, %v4244_v16  ;;  %v3624_v35 = vadd.f32 1e-06, %v10812_v48  ;;  %v4199_v60 = vadd.f32 %v10899_v26, %v4198_v12  ;;  %v4271_v39 = vmul.f32 %v10946_v23, %v10889_v49  ;;  %vm4202_vm5 = vmor %vm4200_vm11, %vm4201_vm4  ;;  %v15907_v16 = vld [vmem:[#allocation59_spill] sm:$0xff] }
 0x57c   : > { %v4253_v38 = vsel %vm10884_vm12, %v4252_v31, %v4248_v18  ;;  %v4279_v53 = vand.u32 2147483647, %v10889_v49  ;;  %6318 = vst [vmem:[%s10440_s17 + $0x70] sm:$0xff] %v6190_v14  ;;  %v6187_v46 = vsub.f32 %v7338_v45, %v6059_v54  ;;  %v4281_v48 = vand.u32 2147483648, %v10889_v49  ;;  %3264 = vmatmul.f32.gmra.mxu1 %v15902_v36  ;;  %3682 = vmatmul.f32.gmra.mxu0 %v15902_v36 }
 0x57d   : > { %v4254_v61 = vmul.f32 %v4253_v38, %v15901_v43  ;;  %v4234_v7 = vand.u32 2147483647, %v10897_v51  ;;  %v4203_v33 = vsel %vm4202_vm5, %v10899_v26, %v4199_v60  ;;  %v4272_v22 = vsub.f32 1.0, %v4271_v39  ;;  %v7340_v38 = vld [vmem:[%s7582_s24 + $0x68] sm:$0xff] }
 0x57e   : > { %v10969_v5 = vpop.eup %6955  ;;  %v10973_v29 = vadd.f32 %v10875_v42, %v3212_v21  ;;  %v10976_v27 = vadd.f32 %v10869_v59, %v3624_v35  ;;  %vm2734_vm6 = vcmp.lt.f32.partialorder %v15627_v32, 0.0  ;;  %6315 = vst.msk [vmem:[%s10440_s17 + $0x58] sm:$0xff] %vm355_vm0, %v6187_v46  ;;  %v4208_v10 = vsel %vm10929_vm2, %v4207_v63, %v4203_v33  ;;  %v15903_v42 = vld [vmem:[#allocation271_spill] sm:$0xff]  ;;  %v11010_v63 = vpop.f32.mrf.mxu3 }
 0x57f   : > { %v5936_v52 = vsel %vm2732_vm14, %v4254_v61, 0.0  ;;  %vm4276_vm7 = vweird.f32 %v10946_v23  ;;  %v4226_v59 = vmul.f32 %v10969_v5, %v10897_v51  ;;  %6785 = vmatmul.msk.f32.gmra.mxu3 %vm355_vm0, %v15903_v42  ;;  %v4209_v31 = vmul.f32 %v4208_v10, %v15905_v1  ;;  %v11002_v13 = vpop.f32.mrf.mxu2  ;;  %v15914_v10 = vld [vmem:[#allocation44_spill] sm:$0xff]  ;;  %6849 = vmatmul.msk.f32.gmra.mxu2 %vm355_vm0, %v15903_v42 }
 0x580   : > { %v6064_v26 = vmul.f32 %v5936_v52, %v15904_v15  ;;  %v4273_v37 = vmul.f32 %v10946_v23, %v4272_v22  ;;  %6957 = vrcp.f32 %v10973_v29  ;;  %v10998_v58 = vmul.f32 0.99, %v15906_v55  ;;  %v15913_v52 = vld [vmem:[#allocation13_spill] sm:$0xff] }
 0x581   : > { %vm4275_vm8 = vweird.f32 %v10889_v49  ;;  %v4227_v4 = vsub.f32 1.0, %v4226_v59  ;;  %v4236_v57 = vand.u32 2147483648, %v10897_v51  ;;  %vm2731_vm9 = vcmp.lt.f32.partialorder %v15907_v16, 0.0  ;;  %v11012_v49 = vpop.f32.mrf.mxu0 }
 0x582   : > { %v6192_v21 = vsub.f32 %v7339_v62, %v6064_v26  ;;  %v5933_v30 = vsel %vm2729_vm1, %v4209_v31, 0.0  ;;  %v4274_v12 = vadd.f32 %v10946_v23, %v4273_v37  ;;  %6959 = vrcp.f32 %v10976_v27  ;;  %vm4277_vm10 = vmor %vm4275_vm8, %vm4276_vm7  ;;  %v11019_v25 = vpop.f32.mrf.mxu1 }
 0x583   : > { %v6061_v14 = vmul.f32 %v5933_v30, %v15908_v2  ;;  %v4282_v0 = vor.u32 1.1754944e-38, %v4281_v48  ;;  %v4228_v54 = vmul.f32 %v10969_v5, %v4227_v4  ;;  %vm4231_vm12 = vweird.f32 %v10969_v5  ;;  %v15911_v48 = vld [vmem:[#allocation274_spill] sm:$0xff]  ;;  %v7341_v4 = vld [vmem:[%s7582_s24 + $0x90] sm:$0xff] }
 0x584   : > { %6320 = vst [vmem:[%s10440_s17 + $0x80] sm:$0xff] %v6192_v21  ;;  %v4278_v18 = vsel %vm4277_vm10, %v10946_v23, %v4274_v12  ;;  %vm4280_vm11 = vcmp.eq.f32.partialorder %v4279_v53, 8.507059e+37  ;;  %vm4230_vm13 = vweird.f32 %v10897_v51  ;;  %vm11024_vm14 = vcmp.eq.f32.partialorder %v4234_v7, 8.507059e+37  ;;  %3267 = vmatmul.f32.gmra.mxu1 %v15911_v48  ;;  %v15912_v7 = vld [vmem:[#allocation272_spill] sm:$0xff]  ;;  %v15917_v2 = vld [vmem:[#allocation62_spill] sm:$0xff]  ;;  %3685 = vmatmul.f32.gmra.mxu0 %v15911_v48 }
 0x585   : > { %v6189_v60 = vsub.f32 %v7340_v38, %v6061_v14  ;;  %v4283_v39 = vsel %vm4280_vm11, %v4282_v0, %v4278_v18  ;;  %v4229_v45 = vadd.f32 %v10969_v5, %v4228_v54  ;;  %v3215_v46 = vadd.f32 1e-06, %v10891_v44  ;;  %vm4232_vm15 = vmor %vm4230_vm13, %vm4231_vm12  ;;  %v15918_v14 = vld [vmem:[#allocation10_spill] sm:$0xff] }
 0x586   : > { %v11032_v43 = vpop.eup %6957  ;;  %v4284_v23 = vmul.f32 %v4283_v39, %v10028_v3  ;;  %v4237_v51 = vor.u32 1.1754944e-38, %v4236_v57  ;;  %v4309_v53 = vand.u32 2147483647, %v10973_v29  ;;  %v3627_v61 = vadd.f32 1e-06, %v10877_v47  ;;  %v11077_v31 = vpop.f32.mrf.mxu3 }
 0x587   : > { %6317 = vst.msk [vmem:[%s10440_s17 + $0x68] sm:$0xff] %vm355_vm0, %v6189_v60  ;;  %v4233_v44 = vsel %vm4232_vm15, %v10969_v5, %v4229_v45  ;;  %v4301_v3 = vmul.f32 %v11032_v43, %v10973_v29  ;;  %vm4305_vm1 = vweird.f32 %v10973_v29  ;;  %v11049_v41 = vadd.f32 %v10942_v40, %v3215_v46  ;;  %6786 = vmatmul.msk.f32.gmra.mxu3 %vm355_vm0, %v15912_v7  ;;  %v11067_v1 = vpop.f32.mrf.mxu2  ;;  %v7342_v60 = vld [vmem:[%s7582_s24 + $0x78] sm:$0xff] }
 0x588   : > { %v11053_v47 = vpop.eup %6959  ;;  %v5938_v11 = vsel %vm2734_vm6, %v4284_v23, 0.0  ;;  %v4238_v5 = vsel %vm11024_vm14, %v4237_v51, %v4233_v44  ;;  %v4311_v33 = vand.u32 2147483648, %v10973_v29  ;;  %v11061_v22 = vadd.f32 %v10934_v6, %v3627_v61  ;;  %v15921_v46 = vld [vmem:[#allocation277_spill] sm:$0xff]  ;;  %6850 = vmatmul.msk.f32.gmra.mxu2 %vm355_vm0, %v15912_v7 }
 0x589   : > { %v6066_v40 = vmul.f32 %v5938_v11, %v15913_v52  ;;  %v4239_v59 = vmul.f32 %v4238_v5, %v15914_v10  ;;  %v4302_v15 = vsub.f32 1.0, %v4301_v3  ;;  %v4256_v26 = vmul.f32 %v11053_v47, %v10976_v27  ;;  %v11079_v37 = vpop.f32.mrf.mxu0  ;;  %v15937_v11 = vld [vmem:[#allocation157_spill] sm:$0xff] }
 0x58a   : > { %vm2736_vm2 = vcmp.lt.f32.partialorder %v15628_v34, 0.0  ;;  %vm4306_vm3 = vweird.f32 %v11032_v43  ;;  %vm11071_vm4 = vcmp.eq.f32.partialorder %v4309_v53, 8.507059e+37  ;;  %v4264_v6 = vand.u32 2147483647, %v10976_v27  ;;  %v11085_v12 = vpop.f32.mrf.mxu1  ;;  %v15922_v53 = vld [vmem:[#allocation275_spill] sm:$0xff] }
 0x58b   : > { %6961 = vrcp.f32 %v11049_v41  ;;  %v6194_v57 = vsub.f32 %v7341_v4, %v6066_v40  ;;  %v5935_v62 = vsel %vm2731_vm9, %v4239_v59, 0.0  ;;  %v4303_v21 = vmul.f32 %v11032_v43, %v4302_v15  ;;  %vm4307_vm7 = vmor %vm4305_vm1, %vm4306_vm3  ;;  %v15926_v15 = vld [vmem:[#allocation156_spill] sm:$0xff] }
 0x58c   : > { %v4257_v30 = vsub.f32 1.0, %v4256_v26  ;;  %vm2733_vm5 = vcmp.lt.f32.partialorder %v15917_v2, 0.0  ;;  %v6063_v0 = vmul.f32 %v5935_v62, %v15918_v14  ;;  %v4266_v54 = vand.u32 2147483648, %v10976_v27  ;;  %3270 = vmatmul.f32.gmra.mxu1 %v15921_v46  ;;  %v15928_v62 = vld [vmem:[#allocation16_spill] sm:$0xff]  ;;  %3688 = vmatmul.f32.gmra.mxu0 %v15921_v46 }
 0x58d   : > { %6963 = vrcp.f32 %v11061_v22  ;;  %v3218_v18 = vadd.f32 1e-06, %v10951_v19  ;;  %6322 = vst [vmem:[%s10440_s17 + $0x90] sm:$0xff] %v6194_v57  ;;  %v4304_v16 = vadd.f32 %v11032_v43, %v4303_v21  ;;  %vm4261_vm6 = vweird.f32 %v11053_v47  ;;  %v15927_v57 = vld [vmem:[#allocation161_spill] sm:$0xff] }
 0x58e   : > { %v4258_v35 = vmul.f32 %v11053_v47, %v4257_v30  ;;  %v4339_v38 = vand.u32 2147483647, %v11049_v41  ;;  %v6191_v39 = vsub.f32 %v7342_v60, %v6063_v0  ;;  %v4312_v19 = vor.u32 1.1754944e-38, %v4311_v33  ;;  %v11149_v10 = vpop.f32.mrf.mxu3 }
 0x58f   : > { %vm4260_vm8 = vweird.f32 %v10976_v27  ;;  %vm11104_vm9 = vcmp.eq.f32.partialorder %v4264_v6, 8.507059e+37  ;;  %v4308_v36 = vsel %vm4307_vm7, %v11032_v43, %v4304_v16  ;;  %v3630_v51 = vadd.f32 1e-06, %v10944_v50  ;;  %6787 = vmatmul.msk.f32.gmra.mxu3 %vm355_vm0, %v15922_v53  ;;  %v11140_v33 = vpop.f32.mrf.mxu2  ;;  %v7343_v16 = vld [vmem:[%s7582_s24 + $0xa0] sm:$0xff] }
 0x590   : > { %v4259_v23 = vadd.f32 %v11053_v47, %v4258_v35  ;;  %v11115_v29 = vadd.f32 %v11010_v63, %v3218_v18  ;;  %6319 = vst.msk [vmem:[%s10440_s17 + $0x78] sm:$0xff] %vm355_vm0, %v6191_v39  ;;  %v4313_v61 = vsel %vm11071_vm4, %v4312_v19, %v4308_v36  ;;  %vm4262_vm10 = vmor %vm4260_vm8, %vm4261_vm6  ;;  %v4267_v42 = vor.u32 1.1754944e-38, %v4266_v54  ;;  %v15923_v63 = vld [vmem:[#allocation50_spill] sm:$0xff]  ;;  %v15929_v18 = vld [vmem:[#allocation65_spill] sm:$0xff]  ;;  %6851 = vmatmul.msk.f32.gmra.mxu2 %vm355_vm0, %v15922_v53 }
 0x591   : > { %v11119_v27 = vpop.eup %6961  ;;  %vm4335_vm12 = vweird.f32 %v11049_v41  ;;  %v4341_v50 = vand.u32 2147483648, %v11049_v41  ;;  %v4314_v43 = vmul.f32 %v4313_v61, %v15923_v63  ;;  %vm11133_vm11 = vcmp.eq.f32.partialorder %v4339_v38, 8.507059e+37  ;;  %v11151_v59 = vpop.f32.mrf.mxu0  ;;  %v15930_v38 = vld [vmem:[#allocation12_spill] sm:$0xff]  ;;  %v15931_v39 = vld [vmem:[#allocation278_spill] sm:$0xff]  ;;  %v15932_v36 = vld [vmem:[#allocation279_spill] sm:$0xff] }
 0x592   : > { %v4263_v44 = vsel %vm4262_vm10, %v11053_v47, %v4259_v23  ;;  %v4331_v3 = vmul.f32 %v11119_v27, %v11049_v41  ;;  %v11138_v5 = vadd.f32 %v11002_v13, %v3630_v51  ;;  %vm4290_vm13 = vweird.f32 %v11061_v22  ;;  %v11158_v4 = vpop.f32.mrf.mxu1  ;;  %v7344_v51 = vld [vmem:[%s7582_s24 + $0x88] sm:$0xff] }
 0x593   : > { %v11142_v52 = vpop.eup %6963  ;;  %v4268_v40 = vsel %vm11104_vm9, %v4267_v42, %v4263_v44  ;;  %v4294_v47 = vand.u32 2147483647, %v11061_v22  ;;  %6965 = vrcp.f32 %v11115_v29  ;;  %v5940_v13 = vsel %vm2736_vm2, %v4314_v43, 0.0 }
 0x594   : > { %v4269_v26 = vmul.f32 %v4268_v40, %v15926_v15  ;;  %v4332_v32 = vsub.f32 1.0, %v4331_v3  ;;  %v4286_v6 = vmul.f32 %v11142_v52, %v11061_v22  ;;  %vm2738_vm14 = vcmp.lt.f32.partialorder %v15927_v57, 0.0  ;;  %3273 = vmatmul.f32.gmra.mxu1 %v15931_v39  ;;  %v15942_v57 = vld [vmem:[#allocation68_spill] sm:$0xff]  ;;  %3691 = vmatmul.f32.gmra.mxu0 %v15931_v39 }
 0x595   : > { %v6068_v21 = vmul.f32 %v5940_v13, %v15928_v62  ;;  %vm4336_vm15 = vweird.f32 %v11119_v27  ;;  %v4296_v30 = vand.u32 2147483648, %v11061_v22  ;;  %v3221_v34 = vadd.f32 1e-06, %v11019_v25 }
 0x596   : > { %v5937_v14 = vsel %vm2733_vm5, %v4269_v26, 0.0  ;;  %v4333_v0 = vmul.f32 %v11119_v27, %v4332_v32  ;;  %v4287_v54 = vsub.f32 1.0, %v4286_v6  ;;  %6967 = vrcp.f32 %v11138_v5  ;;  %vm4337_vm3 = vmor %vm4335_vm12, %vm4336_vm15  ;;  %v11218_v40 = vpop.f32.mrf.mxu3  ;;  %v15938_v6 = vld [vmem:[#allocation162_spill] sm:$0xff] }
 0x597   : > { %vm2735_vm1 = vcmp.lt.f32.partialorder %v15929_v18, 0.0  ;;  %v6196_v35 = vsub.f32 %v7343_v16, %v6068_v21  ;;  %v6065_v60 = vmul.f32 %v5937_v14, %v15930_v38  ;;  %v4369_v25 = vand.u32 2147483647, %v11115_v29  ;;  %6788 = vmatmul.msk.f32.gmra.mxu3 %vm355_vm0, %v15932_v36  ;;  %v11203_v3 = vpop.f32.mrf.mxu2  ;;  %v15939_v14 = vld [vmem:[#allocation53_spill] sm:$0xff]  ;;  %v15940_v16 = vld [vmem:[#allocation19_spill] sm:$0xff] }
 0x598   : > { %v4371_v2 = vand.u32 2147483648, %v11115_v29  ;;  %v4334_v19 = vadd.f32 %v11119_v27, %v4333_v0  ;;  %v4342_v45 = vor.u32 1.1754944e-38, %v4341_v50  ;;  %v4288_v48 = vmul.f32 %v11142_v52, %v4287_v54  ;;  %6852 = vmatmul.msk.f32.gmra.mxu2 %vm355_vm0, %v15932_v36 }
 0x599   : > { %vm4291_vm2 = vweird.f32 %v11142_v52  ;;  %v11183_v23 = vpop.eup %6965  ;;  %6324 = vst [vmem:[%s10440_s17 + $0xa0] sm:$0xff] %v6196_v35  ;;  %v6193_v61 = vsub.f32 %v7344_v51, %v6065_v60  ;;  %vm11191_vm4 = vcmp.eq.f32.partialorder %v4294_v47, 8.507059e+37  ;;  %v4297_v42 = vor.u32 1.1754944e-38, %v4296_v30  ;;  %v11220_v47 = vpop.f32.mrf.mxu0  ;;  %v15944_v51 = vld [vmem:[#allocation15_spill] sm:$0xff] }
 0x59a   : > { %v11196_v50 = vadd.f32 %v11077_v31, %v3221_v34  ;;  %v4338_v63 = vsel %vm4337_vm3, %v11119_v27, %v4334_v19  ;;  %v4289_v43 = vadd.f32 %v11142_v52, %v4288_v48  ;;  %v4361_v44 = vmul.f32 %v11183_v23, %v11115_v29  ;;  %vm4292_vm6 = vmor %vm4290_vm13, %vm4291_vm2  ;;  %v11227_v22 = vpop.f32.mrf.mxu1  ;;  %v7345_v48 = vld [vmem:[%s7582_s24 + $0xb0] sm:$0xff] }
 0x59b   : > { %vm4365_vm5 = vweird.f32 %v11115_v29  ;;  %6321 = vst.msk [vmem:[%s10440_s17 + $0x88] sm:$0xff] %vm355_vm0, %v6193_v61  ;;  %v4343_v41 = vsel %vm11133_vm11, %v4342_v45, %v4338_v63  ;;  %vm11213_vm7 = vcmp.eq.f32.partialorder %v4369_v25, 8.507059e+37  ;;  %v4372_v27 = vor.u32 1.1754944e-38, %v4371_v2 }
 0x59c   : > { %6969 = vrcp.f32 %v11196_v50  ;;  %v11222_v13 = vpop.eup %6967  ;;  %v4344_v15 = vmul.f32 %v4343_v41, %v15937_v11  ;;  %v4293_v26 = vsel %vm4292_vm6, %v11142_v52, %v4289_v43  ;;  %v4362_v32 = vsub.f32 1.0, %v4361_v44  ;;  %v7346_v44 = vld [vmem:[%s7582_s24 + $0x98] sm:$0xff] }
 0x59d   : > { %vm4320_vm8 = vweird.f32 %v11138_v5  ;;  %vm2740_vm9 = vcmp.lt.f32.partialorder %v15938_v6, 0.0  ;;  %v4298_v62 = vsel %vm11191_vm4, %v4297_v42, %v4293_v26  ;;  %v4316_v21 = vmul.f32 %v11222_v13, %v11138_v5  ;;  %v15949_v6 = vld [vmem:[#allocation282_spill] sm:$0xff] }
 0x59e   : > { %v4326_v30 = vand.u32 2147483648, %v11138_v5  ;;  %v3633_v34 = vadd.f32 1e-06, %v11012_v49  ;;  %v5942_v52 = vsel %vm2738_vm14, %v4344_v15, 0.0  ;;  %v4299_v0 = vmul.f32 %v4298_v62, %v15939_v14  ;;  %v15941_v49 = vld [vmem:[#allocation281_spill] sm:$0xff] }
 0x59f   : > { %v4363_v54 = vmul.f32 %v11183_v23, %v4362_v32  ;;  %vm4366_vm10 = vweird.f32 %v11183_v23  ;;  %v6070_v35 = vmul.f32 %v5942_v52, %v15940_v16  ;;  %v4317_v38 = vsub.f32 1.0, %v4316_v21  ;;  %3276 = vmatmul.f32.gmra.mxu1 %v15941_v49  ;;  %v11272_v43 = vpop.f32.mrf.mxu2  ;;  %v15945_v32 = vld [vmem:[#allocation160_spill] sm:$0xff]  ;;  %v15948_v16 = vld [vmem:[#allocation158_spill] sm:$0xff]  ;;  %3694 = vmatmul.f32.gmra.mxu0 %v15941_v49 }
 0x5a0   : > { %v4324_v60 = vand.u32 2147483647, %v11138_v5  ;;  %v11245_v25 = vadd.f32 %v11067_v1, %v3633_v34  ;;  %vm2737_vm12 = vcmp.lt.f32.partialorder %v15942_v57, 0.0  ;;  %v5939_v2 = vsel %vm2735_vm1, %v4299_v0, 0.0  ;;  %v15943_v1 = vld [vmem:[#allocation280_spill] sm:$0xff]  ;;  %vm4367_vm13 = vmor %vm4365_vm5, %vm4366_vm10  ;;  %v15954_v57 = vld [vmem:[#allocation71_spill] sm:$0xff] }
 0x5a1   : > { %v4364_v46 = vadd.f32 %v11183_v23, %v4363_v54  ;;  %vm4321_vm11 = vweird.f32 %v11222_v13  ;;  %v3224_v19 = vadd.f32 1e-06, %v11085_v12  ;;  %6789 = vmatmul.msk.f32.gmra.mxu3 %vm355_vm0, %v15943_v1  ;;  %v6198_v53 = vsub.f32 %v7345_v48, %v6070_v35  ;;  %v11282_v26 = vpop.f32.mrf.mxu0  ;;  %6853 = vmatmul.msk.f32.gmra.mxu2 %vm355_vm0, %v15943_v1 }
 0x5a2   : > { %v11258_v45 = vpop.eup %6969  ;;  %v6067_v61 = vmul.f32 %v5939_v2, %v15944_v51  ;;  %v4318_v18 = vmul.f32 %v11222_v13, %v4317_v38  ;;  %6971 = vrcp.f32 %v11245_v25  ;;  %v4327_v7 = vor.u32 1.1754944e-38, %v4326_v30  ;;  %vm4322_vm14 = vmor %vm4320_vm8, %vm4321_vm11  ;;  %v15953_v51 = vld [vmem:[#allocation18_spill] sm:$0xff] }
 0x5a3   : > { %v4368_v12 = vsel %vm4367_vm13, %v11183_v23, %v4364_v46  ;;  %v4391_v42 = vmul.f32 %v11258_v45, %v11196_v50  ;;  %v4399_v63 = vand.u32 2147483647, %v11196_v50  ;;  %6326 = vst [vmem:[%s10440_s17 + $0xb0] sm:$0xff] %v6198_v53  ;;  %v3636_v15 = vadd.f32 1e-06, %v11079_v37  ;;  %v11280_v23 = vpop.f32.mrf.mxu3  ;;  %v15946_v37 = vld [vmem:[#allocation163_spill] sm:$0xff] }
 0x5a4   : > { %v6195_v41 = vsub.f32 %v7346_v44, %v6067_v61  ;;  %v4373_v29 = vsel %vm11213_vm7, %v4372_v27, %v4368_v12  ;;  %v4319_v11 = vadd.f32 %v11222_v13, %v4318_v18  ;;  %v4401_v30 = vand.u32 2147483648, %v11196_v50  ;;  %v11293_v27 = vpop.f32.mrf.mxu1  ;;  %v15952_v46 = vld [vmem:[#allocation283_spill] sm:$0xff] }
 0x5a5   : > { %v4374_v62 = vmul.f32 %v4373_v29, %v15945_v32  ;;  %v4392_v21 = vsub.f32 1.0, %v4391_v42  ;;  %v11291_v31 = vadd.f32 %v11149_v10, %v3224_v19  ;;  %vm2742_vm15 = vcmp.lt.f32.partialorder %v15946_v37, 0.0  ;;  %v7347_v19 = vld [vmem:[%s7582_s24 + $0xc0] sm:$0xff] }
 0x5a6   : > { %6323 = vst.msk [vmem:[%s10440_s17 + $0x98] sm:$0xff] %vm355_vm0, %v6195_v41  ;;  %v4323_v34 = vsel %vm4322_vm14, %v11222_v13, %v4319_v11  ;;  %vm4325_vm1 = vcmp.eq.f32.partialorder %v4324_v60, 8.507059e+37  ;;  %vm4395_vm2 = vweird.f32 %v11196_v50  ;;  %v11301_v5 = vadd.f32 %v11140_v33, %v3636_v15  ;;  %v15947_v13 = vld [vmem:[#allocation22_spill] sm:$0xff]  ;;  %v7348_v41 = vld [vmem:[%s7582_s24 + $0xa8] sm:$0xff] }
 0x5a7   : > { %v5944_v52 = vsel %vm2740_vm9, %v4374_v62, 0.0  ;;  %v4328_v14 = vsel %vm4325_vm1, %v4327_v7, %v4323_v34  ;;  %v4393_v10 = vmul.f32 %v11258_v45, %v4392_v21  ;;  %vm4396_vm3 = vweird.f32 %v11258_v45  ;;  %3279 = vmatmul.f32.gmra.mxu1 %v15949_v6  ;;  %v11338_v42 = vpop.f32.mrf.mxu2  ;;  %v15957_v11 = vld [vmem:[#allocation322_spill] sm:$0xff]  ;;  %3697 = vmatmul.f32.gmra.mxu0 %v15949_v6  ;;  %v15970_v6 = vld [vmem:[#allocation324_spill] sm:$0xff] }
 0x5a8   : > { %v11308_v0 = vpop.eup %6971  ;;  %v6072_v54 = vmul.f32 %v5944_v52, %v15947_v13  ;;  %v4329_v35 = vmul.f32 %v4328_v14, %v15948_v16  ;;  %v4354_v33 = vand.u32 2147483647, %v11245_v25  ;;  %6973 = vrcp.f32 %v11291_v31  ;;  %vm4397_vm5 = vmor %vm4395_vm2, %vm4396_vm3  ;;  %v15960_v16 = vld [vmem:[#allocation25_spill] sm:$0xff] }
 0x5a9   : > { %v4394_v38 = vadd.f32 %v11258_v45, %v4393_v10  ;;  %vm11318_vm4 = vcmp.eq.f32.partialorder %v4399_v63, 8.507059e+37  ;;  %v4402_v39 = vor.u32 1.1754944e-38, %v4401_v30  ;;  %v4346_v2 = vmul.f32 %v11308_v0, %v11245_v25  ;;  %6790 = vmatmul.msk.f32.gmra.mxu3 %vm355_vm0, %v15952_v46  ;;  %6854 = vmatmul.msk.f32.gmra.mxu2 %vm355_vm0, %v15952_v46 }
 0x5aa   : > { %v6200_v48 = vsub.f32 %v7347_v19, %v6072_v54  ;;  %v5941_v53 = vsel %vm2737_vm12, %v4329_v35, 0.0  ;;  %v4356_v36 = vand.u32 2147483648, %v11245_v25  ;;  %6975 = vrcp.f32 %v11301_v5  ;;  %v15963_v19 = vld [vmem:[#allocation164_spill] sm:$0xff] }
 0x5ab   : > { %v6069_v61 = vmul.f32 %v5941_v53, %v15953_v51  ;;  %v4398_v18 = vsel %vm4397_vm5, %v11258_v45, %v4394_v38  ;;  %v4347_v12 = vsub.f32 1.0, %v4346_v2  ;;  %v4429_v7 = vand.u32 2147483647, %v11291_v31  ;;  %v11350_v44 = vpop.f32.mrf.mxu3  ;;  %v15961_v38 = vld [vmem:[#allocation285_spill] sm:$0xff]  ;;  %v15962_v2 = vld [vmem:[#allocation284_spill] sm:$0xff] }
 0x5ac   : > { %vm2739_vm6 = vcmp.lt.f32.partialorder %v15954_v57, 0.0  ;;  %6328 = vst [vmem:[%s10440_s17 + $0xc0] sm:$0xff] %v6200_v48  ;;  %v4403_v50 = vsel %vm11318_vm4, %v4402_v39, %v4398_v18  ;;  %vm4350_vm7 = vweird.f32 %v11245_v25  ;;  %vm11345_vm8 = vcmp.eq.f32.partialorder %v4354_v33, 8.507059e+37  ;;  %v11376_v54 = vpop.f32.mrf.mxu1  ;;  %v7349_v48 = vld [vmem:[%s7582_s24 + $0xd0] sm:$0xff] }
 0x5ad   : > { %v3227_v45 = vadd.f32 1e-06, %v11158_v4  ;;  %v6197_v29 = vsub.f32 %v7348_v41, %v6069_v61  ;;  %v4404_v15 = vmul.f32 %v4403_v50, %v15957_v11  ;;  %v4348_v32 = vmul.f32 %v11308_v0, %v4347_v12  ;;  %v11363_v4 = vpop.f32.mrf.mxu0  ;;  %v15966_v11 = vld [vmem:[#allocation21_spill] sm:$0xff] }
 0x5ae   : > { %vm4351_vm9 = vweird.f32 %v11308_v0  ;;  %v11356_v62 = vpop.eup %6973  ;;  %v4357_v21 = vor.u32 1.1754944e-38, %v4356_v36  ;;  %vm4425_vm10 = vweird.f32 %v11291_v31  ;;  %v4431_v30 = vand.u32 2147483648, %v11291_v31 }
 0x5af   : > { %v11361_v34 = vadd.f32 %v11218_v40, %v3227_v45  ;;  %6325 = vst.msk [vmem:[%s10440_s17 + $0xa8] sm:$0xff] %vm355_vm0, %v6197_v29  ;;  %v5946_v52 = vsel %vm2742_vm15, %v4404_v15, 0.0  ;;  %v4349_v14 = vadd.f32 %v11308_v0, %v4348_v32  ;;  %v4421_v10 = vmul.f32 %v11356_v62, %v11291_v31  ;;  %vm4352_vm11 = vmor %vm4350_vm7, %vm4351_vm9  ;;  %3282 = vmatmul.f32.gmra.mxu1 %v15961_v38  ;;  %v11409_v12 = vpop.f32.mrf.mxu2  ;;  %v7350_v31 = vld [vmem:[%s7582_s24 + $0xb8] sm:$0xff] }
 0x5b0   : > { %vm11372_vm12 = vcmp.eq.f32.partialorder %v4429_v7, 8.507059e+37  ;;  %v11379_v40 = vpop.eup %6975  ;;  %v6074_v35 = vmul.f32 %v5946_v52, %v15960_v16  ;;  %v4384_v37 = vand.u32 2147483647, %v11301_v5  ;;  %v4386_v33 = vand.u32 2147483648, %v11301_v5  ;;  %v15965_v7 = vld [vmem:[#allocation74_spill] sm:$0xff]  ;;  %3700 = vmatmul.f32.gmra.mxu0 %v15961_v38  ;;  %v15983_v38 = vld [vmem:[#allocation288_spill] sm:$0xff] }
 0x5b1   : > { %6977 = vrcp.f32 %v11361_v34  ;;  %v4353_v49 = vsel %vm4352_vm11, %v11308_v0, %v4349_v14  ;;  %v4422_v60 = vsub.f32 1.0, %v4421_v10  ;;  %v4376_v39 = vmul.f32 %v11379_v40, %v11301_v5  ;;  %6791 = vmatmul.msk.f32.gmra.mxu3 %vm355_vm0, %v15962_v2  ;;  %v15964_v0 = vld [vmem:[#allocation323_spill] sm:$0xff]  ;;  %6855 = vmatmul.msk.f32.gmra.mxu2 %vm355_vm0, %v15962_v2 }
 0x5b2   : > { %v3639_v25 = vadd.f32 1e-06, %v11151_v59  ;;  %vm2744_vm13 = vcmp.lt.f32.partialorder %v15963_v19, 0.0  ;;  %v6202_v53 = vsub.f32 %v7349_v48, %v6074_v35  ;;  %v4358_v36 = vsel %vm11345_vm8, %v4357_v21, %v4353_v49  ;;  %v15987_v2 = vld [vmem:[#allocation31_spill] sm:$0xff] }
 0x5b3   : > { %vm4426_vm14 = vweird.f32 %v11356_v62  ;;  %v3230_v1 = vadd.f32 1e-06, %v11227_v22  ;;  %v4359_v51 = vmul.f32 %v4358_v36, %v15964_v0  ;;  %v4423_v61 = vmul.f32 %v11356_v62, %v4422_v60  ;;  %v11418_v63 = vpop.f32.mrf.mxu3  ;;  %v15971_v60 = vld [vmem:[#allocation287_spill] sm:$0xff] }
 0x5b4   : > { %v4377_v18 = vsub.f32 1.0, %v4376_v39  ;;  %v11407_v59 = vadd.f32 %v11203_v3, %v3639_v25  ;;  %vm2741_vm15 = vcmp.lt.f32.partialorder %v15965_v7, 0.0  ;;  %6330 = vst [vmem:[%s10440_s17 + $0xd0] sm:$0xff] %v6202_v53  ;;  %v4432_v50 = vor.u32 1.1754944e-38, %v4431_v30  ;;  %vm4427_vm3 = vmor %vm4425_vm10, %vm4426_vm14  ;;  %v15975_v53 = vld [vmem:[#allocation325_spill] sm:$0xff] }
 0x5b5   : > { %vm4380_vm1 = vweird.f32 %v11301_v5  ;;  %vm4381_vm2 = vweird.f32 %v11379_v40  ;;  %v11416_v22 = vadd.f32 %v11280_v23, %v3230_v1  ;;  %v5943_v3 = vsel %vm2739_vm6, %v4359_v51, 0.0  ;;  %v11452_v35 = vpop.f32.mrf.mxu0  ;;  %v11460_v5 = vpop.f32.mrf.mxu1  ;;  %v15977_v23 = vld [vmem:[#allocation24_spill] sm:$0xff] }
 0x5b6   : > { %v4424_v45 = vadd.f32 %v11356_v62, %v4423_v61  ;;  %v4378_v41 = vmul.f32 %v11379_v40, %v4377_v18  ;;  %6979 = vrcp.f32 %v11407_v59  ;;  %v6071_v15 = vmul.f32 %v5943_v3, %v15966_v11  ;;  %vm4382_vm5 = vmor %vm4380_vm1, %vm4381_vm2  ;;  %v15976_v61 = vld [vmem:[#allocation28_spill] sm:$0xff]  ;;  %v7351_v11 = vld [vmem:[%s7582_s24 + $0xe0] sm:$0xff] }
 0x5b7   : > { %v11425_v29 = vpop.eup %6977  ;;  %vm11432_vm4 = vcmp.eq.f32.partialorder %v4384_v37, 8.507059e+37  ;;  %v4459_v57 = vand.u32 2147483647, %v11361_v34  ;;  %v4461_v32 = vand.u32 2147483648, %v11361_v34  ;;  %v4387_v52 = vor.u32 1.1754944e-38, %v4386_v33  ;;  %v15969_v37 = vld [vmem:[#allocation286_spill] sm:$0xff]  ;;  %v11481_v51 = vpop.f32.mrf.mxu2 }
 0x5b8   : > { %v4428_v21 = vsel %vm4427_vm3, %v11356_v62, %v4424_v45  ;;  %v4379_v30 = vadd.f32 %v11379_v40, %v4378_v41  ;;  %v4451_v14 = vmul.f32 %v11425_v29, %v11361_v34  ;;  %v6199_v10 = vsub.f32 %v7350_v31, %v6071_v15  ;;  %3285 = vmatmul.f32.gmra.mxu1 %v15969_v37 }
 0x5b9   : > { %v4433_v16 = vsel %vm11372_vm12, %v4432_v50, %v4428_v21  ;;  %vm4455_vm6 = vweird.f32 %v11361_v34  ;;  %v3642_v62 = vadd.f32 1e-06, %v11220_v47  ;;  %6981 = vrcp.f32 %v11416_v22  ;;  %6792 = vmatmul.msk.f32.gmra.mxu3 %vm355_vm0, %v15971_v60  ;;  %v15972_v47 = vld [vmem:[#allocation165_spill] sm:$0xff]  ;;  %v7352_v34 = vld [vmem:[%s7582_s24 + $0xc8] sm:$0xff]  ;;  %3703 = vmatmul.f32.gmra.mxu0 %v15969_v37  ;;  %v15991_v37 = vld [vmem:[#allocation292_spill] sm:$0xff] }
 0x5ba   : > { %v4434_v33 = vmul.f32 %v4433_v16, %v15970_v6  ;;  %v4383_v13 = vsel %vm4382_vm5, %v11379_v40, %v4379_v30  ;;  %v4452_v49 = vsub.f32 1.0, %v4451_v14  ;;  %vm2746_vm7 = vcmp.lt.f32.partialorder %v15972_v47, 0.0  ;;  %6327 = vst.msk [vmem:[%s10440_s17 + $0xb8] sm:$0xff] %vm355_vm0, %v6199_v10  ;;  %v15978_v30 = vld [vmem:[#allocation77_spill] sm:$0xff]  ;;  %6856 = vmatmul.msk.f32.gmra.mxu2 %vm355_vm0, %v15971_v60 }
 0x5bb   : > { %v4388_v39 = vsel %vm11432_vm4, %v4387_v52, %v4383_v13  ;;  %vm4456_vm8 = vweird.f32 %v11425_v29  ;;  %vm11470_vm9 = vcmp.eq.f32.partialorder %v4459_v57, 8.507059e+37  ;;  %v4462_v40 = vor.u32 1.1754944e-38, %v4461_v32  ;;  %v11487_v45 = vpop.f32.mrf.mxu3 }
 0x5bc   : > { %v6980_v25 = vpop.eup %6979  ;;  %v5948_v48 = vsel %vm2744_vm13, %v4434_v33, 0.0  ;;  %v4389_v36 = vmul.f32 %v4388_v39, %v15975_v53  ;;  %v4453_v1 = vmul.f32 %v11425_v29, %v4452_v49  ;;  %v11479_v0 = vadd.f32 %v11272_v43, %v3642_v62  ;;  %vm4457_vm12 = vmor %vm4455_vm6, %vm4456_vm8  ;;  %v15979_v33 = vld [vmem:[#allocation329_spill] sm:$0xff] }
 0x5bd   : > { %v6076_v18 = vmul.f32 %v5948_v48, %v15976_v61  ;;  %v4406_v50 = vmul.f32 %v6980_v25, %v11407_v59  ;;  %vm4410_vm10 = vweird.f32 %v11407_v59  ;;  %v4414_v3 = vand.u32 2147483647, %v11407_v59  ;;  %v11532_v53 = vpop.f32.mrf.mxu0 }
 0x5be   : > { %v5945_v19 = vsel %vm2741_vm15, %v4389_v36, 0.0  ;;  %v4454_v41 = vadd.f32 %v11425_v29, %v4453_v1  ;;  %v4416_v43 = vand.u32 2147483648, %v11407_v59  ;;  %6983 = vrcp.f32 %v11479_v0  ;;  %v15986_v1 = vld [vmem:[#allocation166_spill] sm:$0xff] }
 0x5bf   : > { %v6204_v15 = vsub.f32 %v7351_v11, %v6076_v18  ;;  %v6073_v57 = vmul.f32 %v5945_v19, %v15977_v23  ;;  %v4407_v32 = vsub.f32 1.0, %v4406_v50  ;;  %v4489_v7 = vand.u32 2147483647, %v11416_v22  ;;  %v11501_v21 = vpop.eup %6981  ;;  %v11546_v50 = vpop.f32.mrf.mxu1  ;;  %v7353_v23 = vld [vmem:[%s7582_s24 + $0xf0] sm:$0xff] }
 0x5c0   : > { %vm2743_vm11 = vcmp.lt.f32.partialorder %v15978_v30, 0.0  ;;  %v4458_v52 = vsel %vm4457_vm12, %v11425_v29, %v4454_v41  ;;  %vm4411_vm13 = vweird.f32 %v6980_v25  ;;  %v4491_v14 = vand.u32 2147483648, %v11416_v22  ;;  %v15993_v30 = vld [vmem:[#allocation330_spill] sm:$0xff] }
 0x5c1   : > { %v3233_v31 = vadd.f32 1e-06, %v11293_v27  ;;  %6332 = vst [vmem:[%s10440_s17 + $0xe0] sm:$0xff] %v6204_v15  ;;  %v6201_v10 = vsub.f32 %v7352_v34, %v6073_v57  ;;  %v4463_v16 = vsel %vm11470_vm9, %v4462_v40, %v4458_v52  ;;  %v4408_v62 = vmul.f32 %v6980_v25, %v4407_v32  ;;  %v15982_v27 = vld [vmem:[#allocation289_spill] sm:$0xff]  ;;  %6793 = vmatmul.msk.f32.gmra.mxu3 %vm355_vm0, %v15983_v38  ;;  %vm4412_vm3 = vmor %vm4410_vm10, %vm4411_vm13 }
 0x5c2   : > { %v4481_v6 = vmul.f32 %v11501_v21, %v11416_v22  ;;  %v4464_v29 = vmul.f32 %v4463_v16, %v15979_v33  ;;  %vm11515_vm14 = vcmp.eq.f32.partialorder %v4414_v3, 8.507059e+37  ;;  %v4417_v49 = vor.u32 1.1754944e-38, %v4416_v43  ;;  %3288 = vmatmul.f32.gmra.mxu1 %v15982_v27  ;;  %v11552_v43 = vpop.f32.mrf.mxu2  ;;  %3706 = vmatmul.f32.gmra.mxu0 %v15982_v27 }
 0x5c3   : > { %vm4485_vm15 = vweird.f32 %v11416_v22  ;;  %6329 = vst.msk [vmem:[%s10440_s17 + $0xc8] sm:$0xff] %vm355_vm0, %v6201_v10  ;;  %v4409_v39 = vadd.f32 %v6980_v25, %v4408_v62  ;;  %vm11525_vm1 = vcmp.eq.f32.partialorder %v4489_v7, 8.507059e+37  ;;  %v11530_v48 = vadd.f32 %v11350_v44, %v3233_v31  ;;  %v15989_v31 = vld [vmem:[#allocation80_spill] sm:$0xff]  ;;  %v15990_v62 = vld [vmem:[#allocation27_spill] sm:$0xff]  ;;  %6857 = vmatmul.msk.f32.gmra.mxu2 %vm355_vm0, %v15983_v38 }
 0x5c4   : > { %v4482_v46 = vsub.f32 1.0, %v4481_v6  ;;  %v11536_v36 = vpop.eup %6983  ;;  %vm2748_vm2 = vcmp.lt.f32.partialorder %v15986_v1, 0.0  ;;  %v5950_v61 = vsel %vm2746_vm7, %v4464_v29, 0.0  ;;  %vm4486_vm4 = vweird.f32 %v11501_v21  ;;  %v15992_v29 = vld [vmem:[#allocation290_spill] sm:$0xff] }
 0x5c5   : > { %v4492_v44 = vor.u32 1.1754944e-38, %v4491_v14  ;;  %v4446_v18 = vand.u32 2147483648, %v11479_v0  ;;  %v6078_v3 = vmul.f32 %v5950_v61, %v15987_v2  ;;  %v4413_v19 = vsel %vm4412_vm3, %v6980_v25, %v4409_v39  ;;  %v15988_v25 = vld [vmem:[#allocation326_spill] sm:$0xff]  ;;  %v11562_v14 = vpop.f32.mrf.mxu3  ;;  %vm4487_vm6 = vmor %vm4485_vm15, %vm4486_vm4  ;;  %v11614_v2 = vpop.f32.mrf.mxu0 }
 0x5c6   : > { %v4483_v41 = vmul.f32 %v11501_v21, %v4482_v46  ;;  %v4436_v47 = vmul.f32 %v11536_v36, %v11479_v0  ;;  %v4418_v59 = vsel %vm11515_vm14, %v4417_v49, %v4413_v19  ;;  %v3645_v11 = vadd.f32 1e-06, %v11282_v26  ;;  %v15995_v19 = vld [vmem:[#allocation34_spill] sm:$0xff] }
 0x5c7   : > { %6985 = vrcp.f32 %v11530_v48  ;;  %v3236_v15 = vadd.f32 1e-06, %v11376_v54  ;;  %v6206_v57 = vsub.f32 %v7353_v23, %v6078_v3  ;;  %v4419_v32 = vmul.f32 %v4418_v59, %v15988_v25  ;;  %v7355_v25 = vld [vmem:[%s7582_s24 + $0x100] sm:$0xff] }
 0x5c8   : > { %v4484_v7 = vadd.f32 %v11501_v21, %v4483_v41  ;;  %v4437_v52 = vsub.f32 1.0, %v4436_v47  ;;  %vm2745_vm5 = vcmp.lt.f32.partialorder %v15989_v31, 0.0  ;;  %vm4440_vm7 = vweird.f32 %v11479_v0  ;;  %v11623_v47 = vpop.f32.mrf.mxu1  ;;  %v16014_v31 = vld [vmem:[#allocation168_spill] sm:$0xff] }
 0x5c9   : > { %v4444_v26 = vand.u32 2147483647, %v11479_v0  ;;  %v11572_v54 = vadd.f32 %v11338_v42, %v3645_v11  ;;  %v11575_v34 = vadd.f32 %v11418_v63, %v3236_v15  ;;  %6334 = vst [vmem:[%s10440_s17 + $0xf0] sm:$0xff] %v6206_v57  ;;  %v5947_v10 = vsel %vm2743_vm11, %v4419_v32, 0.0  ;;  %6794 = vmatmul.msk.f32.gmra.mxu3 %vm355_vm0, %v15992_v29  ;;  %v15994_v0 = vld [vmem:[#allocation238_spill] sm:$0xff]  ;;  %v15997_v57 = vld [vmem:[#allocation167_spill] sm:$0xff] }
 0x5ca   : > { %v4488_v22 = vsel %vm4487_vm6, %v11501_v21, %v4484_v7  ;;  %v4438_v16 = vmul.f32 %v11536_v36, %v4437_v52  ;;  %vm4441_vm8 = vweird.f32 %v11536_v36  ;;  %v6075_v6 = vmul.f32 %v5947_v10, %v15990_v62  ;;  %3291 = vmatmul.f32.gmra.mxu1 %v15991_v37  ;;  %v11628_v23 = vpop.f32.mrf.mxu2  ;;  %3709 = vmatmul.f32.gmra.mxu0 %v15991_v37 }
 0x5cb   : > { %v4493_v42 = vsel %vm11525_vm1, %v4492_v44, %v4488_v22  ;;  %v4447_v63 = vor.u32 1.1754944e-38, %v4446_v18  ;;  %v3648_v33 = vadd.f32 1e-06, %v11363_v4  ;;  %v4519_v49 = vand.u32 2147483647, %v11530_v48  ;;  %v7354_v4 = vld [vmem:[%s7582_s24 + $0xd8] sm:$0xff]  ;;  %vm4442_vm9 = vmor %vm4440_vm7, %vm4441_vm8  ;;  %6858 = vmatmul.msk.f32.gmra.mxu2 %vm355_vm0, %v15992_v29 }
 0x5cc   : > { %v4494_v13 = vmul.f32 %v4493_v42, %v15993_v30  ;;  %v4439_v21 = vadd.f32 %v11536_v36, %v4438_v16  ;;  %6987 = vrcp.f32 %v11572_v54  ;;  %v6203_v46 = vsub.f32 %v7354_v4, %v6075_v6  ;;  %v16000_v42 = vld [vmem:[#allocation30_spill] sm:$0xff]  ;;  %v16004_v30 = vld [vmem:[#allocation291_spill] sm:$0xff] }
 0x5cd   : > { %v11597_v39 = vpop.eup %6985  ;;  %v4521_v40 = vand.u32 2147483648, %v11530_v48  ;;  %6989 = vrcp.f32 %v11575_v34  ;;  %v11607_v61 = vadd.f32 %v11409_v12, %v3648_v33  ;;  %vm4445_vm10 = vcmp.eq.f32.partialorder %v4444_v26, 8.507059e+37  ;;  %v11645_v62 = vpop.f32.mrf.mxu3  ;;  %v16003_v33 = vld [vmem:[#allocation293_spill] sm:$0xff]  ;;  %v7356_v4 = vld [vmem:[%s7582_s24 + $0xe8] sm:$0xff] }
 0x5ce   : > { %v5952_v44 = vsel %vm2748_vm2, %v4494_v13, 0.0  ;;  %v4443_v60 = vsel %vm4442_vm9, %v11536_v36, %v4439_v21  ;;  %v4511_v18 = vmul.f32 %v11597_v39, %v11530_v48  ;;  %v11617_v3 = vmul.f32 0.99, %v15994_v0  ;;  %6331 = vst.msk [vmem:[%s10440_s17 + $0xd8] sm:$0xff] %vm355_vm0, %v6203_v46  ;;  %v15996_v36 = vld [vmem:[#allocation331_spill] sm:$0xff] }
 0x5cf   : > { %v6080_v12 = vmul.f32 %v5952_v44, %v15995_v19  ;;  %v4448_v41 = vsel %vm4445_vm10, %v4447_v63, %v4443_v60  ;;  %v4474_v1 = vand.u32 2147483647, %v11572_v54  ;;  %vm4515_vm12 = vweird.f32 %v11530_v48 }
 0x5d0   : > { %v4449_v59 = vmul.f32 %v4448_v41, %v15996_v36  ;;  %v4512_v11 = vsub.f32 1.0, %v4511_v18  ;;  %v4476_v15 = vand.u32 2147483648, %v11572_v54  ;;  %vm2750_vm11 = vcmp.lt.f32.partialorder %v15997_v57, 0.0  ;;  %v16005_v18 = vld [vmem:[#allocation83_spill] sm:$0xff]  ;;  %v16008_v36 = vld [vmem:[#allocation332_spill] sm:$0xff] }
 0x5d1   : > { %v6208_v32 = vsub.f32 %v7355_v25, %v6080_v12  ;;  %vm11632_vm13 = vcmp.eq.f32.partialorder %v4519_v49, 8.507059e+37  ;;  %v4522_v52 = vor.u32 1.1754944e-38, %v4521_v40  ;;  %6991 = vrcp.f32 %v11607_v61  ;;  %6795 = vmatmul.msk.f32.gmra.mxu3 %vm355_vm0, %v16004_v30  ;;  %v11696_v25 = vpop.f32.mrf.mxu0 }
 0x5d2   : > { %v11638_v26 = vpop.eup %6987  ;;  %v5949_v10 = vsel %vm2745_vm5, %v4449_v59, 0.0  ;;  %v4513_v22 = vmul.f32 %v11597_v39, %v4512_v11  ;;  %vm4516_vm14 = vweird.f32 %v11597_v39  ;;  %v4549_v16 = vand.u32 2147483647, %v11575_v34  ;;  %3294 = vmatmul.f32.gmra.mxu1 %v16003_v33  ;;  %3712 = vmatmul.f32.gmra.mxu0 %v16003_v33 }
 0x5d3   : > { %v11647_v6 = vpop.eup %6989  ;;  %6336 = vst [vmem:[%s10440_s17 + $0x100] sm:$0xff] %v6208_v32  ;;  %v6077_v63 = vmul.f32 %v5949_v10, %v16000_v42  ;;  %v4466_v27 = vmul.f32 %v11638_v26, %v11572_v54  ;;  %vm4470_vm15 = vweird.f32 %v11572_v54  ;;  %vm11654_vm1 = vcmp.eq.f32.partialorder %v4474_v1, 8.507059e+37  ;;  %vm4517_vm3 = vmor %vm4515_vm12, %vm4516_vm14  ;;  %v11701_v10 = vpop.f32.mrf.mxu1  ;;  %6859 = vmatmul.msk.f32.gmra.mxu2 %vm355_vm0, %v16004_v30  ;;  %v16025_v30 = vld [vmem:[#allocation169_spill] sm:$0xff] }
 0x5d4   : > { %v4514_v13 = vadd.f32 %v11597_v39, %v4513_v22  ;;  %v4477_v21 = vor.u32 1.1754944e-38, %v4476_v15  ;;  %v4541_v49 = vmul.f32 %v11647_v6, %v11575_v34  ;;  %vm4545_vm2 = vweird.f32 %v11575_v34 }
 0x5d5   : > { %v6205_v46 = vsub.f32 %v7356_v4, %v6077_v63  ;;  %v4467_v40 = vsub.f32 1.0, %v4466_v27  ;;  %v4551_v44 = vand.u32 2147483648, %v11575_v34  ;;  %v3239_v60 = vadd.f32 1e-06, %v11460_v5  ;;  %v11710_v63 = vpop.f32.mrf.mxu2  ;;  %v16010_v27 = vld [vmem:[#allocation37_spill] sm:$0xff]  ;;  %v16012_v4 = vld [vmem:[#allocation294_spill] sm:$0xff]  ;;  %v11729_v34 = vpop.f32.mrf.mxu3 }
 0x5d6   : > { %vm2747_vm4 = vcmp.lt.f32.partialorder %v16005_v18, 0.0  ;;  %v4518_v19 = vsel %vm4517_vm3, %v11597_v39, %v4514_v13  ;;  %v4542_v12 = vsub.f32 1.0, %v4541_v49  ;;  %vm11676_vm5 = vcmp.eq.f32.partialorder %v4549_v16, 8.507059e+37  ;;  %v16011_v49 = vld [vmem:[#allocation296_spill] sm:$0xff] }
 0x5d7   : > { %vm4500_vm6 = vweird.f32 %v11607_v61  ;;  %v4504_v38 = vand.u32 2147483647, %v11607_v61  ;;  %v6992_v48 = vpop.eup %6991  ;;  %vm2752_vm7 = vcmp.lt.f32.partialorder %v15667_v56, 0.0  ;;  %6333 = vst.msk [vmem:[%s10440_s17 + $0xe8] sm:$0xff] %vm355_vm0, %v6205_v46  ;;  %v4523_v5 = vsel %vm11632_vm13, %v4522_v52, %v4518_v19  ;;  %v16018_v56 = vld [vmem:[#allocation334_spill] sm:$0xff] }
 0x5d8   : > { %v4468_v1 = vmul.f32 %v11638_v26, %v4467_v40  ;;  %vm4471_vm8 = vweird.f32 %v11638_v26  ;;  %v11690_v39 = vadd.f32 %v11487_v45, %v3239_v60  ;;  %v4524_v59 = vmul.f32 %v4523_v5, %v16008_v36 }
 0x5d9   : > { %v4543_v11 = vmul.f32 %v11647_v6, %v4542_v12  ;;  %vm4546_vm9 = vweird.f32 %v11647_v6  ;;  %v4496_v15 = vmul.f32 %v6992_v48, %v11607_v61  ;;  %v4552_v7 = vor.u32 1.1754944e-38, %v4551_v44  ;;  %vm4472_vm10 = vmor %vm4470_vm15, %vm4471_vm8  ;;  %6796 = vmatmul.msk.f32.gmra.mxu3 %vm355_vm0, %v16012_v4  ;;  %v16013_v44 = vld [vmem:[#allocation333_spill] sm:$0xff] }
 0x5da   : > { %v4469_v32 = vadd.f32 %v11638_v26, %v4468_v1  ;;  %v3651_v52 = vadd.f32 1e-06, %v11452_v35  ;;  %6993 = vrcp.f32 %v11690_v39  ;;  %v5954_v45 = vsel %vm2750_vm11, %v4524_v59, 0.0  ;;  %v16009_v35 = vld [vmem:[#allocation86_spill] sm:$0xff]  ;;  %vm4547_vm11 = vmor %vm4545_vm2, %vm4546_vm9  ;;  %3297 = vmatmul.f32.gmra.mxu1 %v16011_v49  ;;  %3715 = vmatmul.f32.gmra.mxu0 %v16011_v49  ;;  %v16033_v49 = vld [vmem:[#allocation300_spill] sm:$0xff] }
 0x5db   : > { %v4544_v22 = vadd.f32 %v11647_v6, %v4543_v11  ;;  %v4497_v16 = vsub.f32 1.0, %v4496_v15  ;;  %v4506_v42 = vand.u32 2147483648, %v11607_v61  ;;  %vm2749_vm12 = vcmp.lt.f32.partialorder %v16009_v35, 0.0  ;;  %v16017_v61 = vld [vmem:[#allocation40_spill] sm:$0xff]  ;;  %6860 = vmatmul.msk.f32.gmra.mxu2 %vm355_vm0, %v16012_v4 }
 0x5dc   : > { %v6082_v13 = vmul.f32 %v5954_v45, %v16010_v27  ;;  %v4473_v37 = vsel %vm4472_vm10, %v11638_v26, %v4469_v32  ;;  %v11720_v54 = vadd.f32 %v11481_v51, %v3651_v52  ;;  %v3242_v57 = vadd.f32 1e-06, %v11546_v50  ;;  %v7357_v51 = vld [vmem:[%s7582_s24 + $0x110] sm:$0xff]  ;;  %v16016_v32 = vld [vmem:[#allocation239_spill] sm:$0xff]  ;;  %v11769_v27 = vpop.f32.mrf.mxu0 }
 0x5dd   : > { %v4478_v46 = vsel %vm11654_vm1, %v4477_v21, %v4473_v37  ;;  %v4548_v26 = vsel %vm4547_vm11, %v11647_v6, %v4544_v22  ;;  %v4498_v40 = vmul.f32 %v6992_v48, %v4497_v16  ;;  %vm4501_vm13 = vweird.f32 %v6992_v48  ;;  %v16021_v37 = vld [vmem:[#allocation170_spill] sm:$0xff] }
 0x5de   : > { %v6210_v50 = vsub.f32 %v7357_v51, %v6082_v13  ;;  %v4479_v60 = vmul.f32 %v4478_v46, %v16013_v44  ;;  %v4553_v19 = vsel %vm11676_vm5, %v4552_v7, %v4548_v26  ;;  %6995 = vrcp.f32 %v11720_v54  ;;  %vm4502_vm15 = vmor %vm4500_vm6, %vm4501_vm13  ;;  %v16022_v51 = vld [vmem:[#allocation297_spill] sm:$0xff] }
 0x5df   : > { %v4554_v21 = vmul.f32 %v4553_v19, %v16014_v31  ;;  %v4499_v12 = vadd.f32 %v6992_v48, %v4498_v40  ;;  %vm4505_vm14 = vcmp.eq.f32.partialorder %v4504_v38, 8.507059e+37  ;;  %v4579_v6 = vand.u32 2147483647, %v11690_v39  ;;  %v16015_v38 = vld [vmem:[#allocation33_spill] sm:$0xff]  ;;  %v11777_v40 = vpop.f32.mrf.mxu1  ;;  %v11790_v19 = vpop.f32.mrf.mxu2  ;;  %v16024_v31 = vld [vmem:[#allocation36_spill] sm:$0xff] }
 0x5e0   : > { %v11740_v5 = vpop.eup %6993  ;;  %6338 = vst [vmem:[%s10440_s17 + $0x110] sm:$0xff] %v6210_v50  ;;  %v5951_v29 = vsel %vm2747_vm4, %v4479_v60, 0.0  ;;  %v4507_v41 = vor.u32 1.1754944e-38, %v4506_v42  ;;  %v4581_v1 = vand.u32 2147483648, %v11690_v39  ;;  %v11750_v36 = vadd.f32 %v11562_v14, %v3242_v57  ;;  %v7358_v14 = vld [vmem:[%s7582_s24 + $0xf8] sm:$0xff]  ;;  %v7359_v57 = vld [vmem:[%s7582_s24 + $0x120] sm:$0xff] }
 0x5e1   : > { %v6079_v59 = vmul.f32 %v5951_v29, %v16015_v38  ;;  %v5956_v11 = vsel %vm2752_vm7, %v4554_v21, 0.0  ;;  %v4503_v15 = vsel %vm4502_vm15, %v6992_v48, %v4499_v12  ;;  %v4571_v18 = vmul.f32 %v11740_v5, %v11690_v39  ;;  %v16023_v50 = vld [vmem:[#allocation295_spill] sm:$0xff]  ;;  %v16034_v48 = vld [vmem:[#allocation298_spill] sm:$0xff] }
 0x5e2   : > { %v11758_v7 = vmul.f32 0.99, %v16016_v32  ;;  %v6084_v52 = vmul.f32 %v5956_v11, %v16017_v61  ;;  %v4508_v45 = vsel %vm4505_vm14, %v4507_v41, %v4503_v15  ;;  %vm4575_vm1 = vweird.f32 %v11690_v39  ;;  %3300 = vmatmul.f32.gmra.mxu1 %v16022_v51  ;;  %6797 = vmatmul.msk.f32.gmra.mxu3 %vm355_vm0, %v16023_v50  ;;  %v7360_v11 = vld [vmem:[%s7582_s24 + $0x108] sm:$0xff] }
 0x5e3   : > { %v6207_v22 = vsub.f32 %v7358_v14, %v6079_v59  ;;  %v4509_v16 = vmul.f32 %v4508_v45, %v16018_v56  ;;  %v4572_v42 = vsub.f32 1.0, %v4571_v18  ;;  %vm11765_vm2 = vcmp.eq.f32.partialorder %v4579_v6, 8.507059e+37  ;;  %v11804_v59 = vpop.f32.mrf.mxu3  ;;  %3718 = vmatmul.f32.gmra.mxu0 %v16022_v51  ;;  %6861 = vmatmul.msk.f32.gmra.mxu2 %vm355_vm0, %v16023_v50 }
 0x5e4   : > { %v11771_v13 = vpop.eup %6995  ;;  %vm2754_vm3 = vcmp.lt.f32.partialorder %v16021_v37, 0.0  ;;  %v6212_v46 = vsub.f32 %v7359_v57, %v6084_v52  ;;  %v4582_v33 = vor.u32 1.1754944e-38, %v4581_v1  ;;  %v3654_v26 = vadd.f32 1e-06, %v11532_v53 }
 0x5e5   : > { %6997 = vrcp.f32 %v11750_v36  ;;  %6335 = vst.msk [vmem:[%s10440_s17 + $0xf8] sm:$0xff] %vm355_vm0, %v6207_v22  ;;  %v5953_v44 = vsel %vm2749_vm12, %v4509_v16, 0.0  ;;  %v4573_v60 = vmul.f32 %v11740_v5, %v4572_v42  ;;  %vm4576_vm4 = vweird.f32 %v11740_v5 }
 0x5e6   : > { %v4526_v53 = vmul.f32 %v11771_v13, %v11720_v54  ;;  %6340 = vst [vmem:[%s10440_s17 + $0x120] sm:$0xff] %v6212_v46  ;;  %v6081_v21 = vmul.f32 %v5953_v44, %v16024_v31  ;;  %v4534_v12 = vand.u32 2147483647, %v11720_v54  ;;  %v4536_v35 = vand.u32 2147483648, %v11720_v54  ;;  %vm4577_vm6 = vmor %vm4575_vm1, %vm4576_vm4  ;;  %v11859_v44 = vpop.f32.mrf.mxu0  ;;  %v16036_v31 = vld [vmem:[#allocation43_spill] sm:$0xff] }
 0x5e7   : > { %v11799_v6 = vadd.f32 %v11552_v43, %v3654_v26  ;;  %v4574_v29 = vadd.f32 %v11740_v5, %v4573_v60  ;;  %v4609_v1 = vand.u32 2147483647, %v11750_v36  ;;  %v4611_v38 = vand.u32 2147483648, %v11750_v36 }
 0x5e8   : > { %v4527_v41 = vsub.f32 1.0, %v4526_v53  ;;  %vm2751_vm5 = vcmp.lt.f32.partialorder %v16025_v30, 0.0  ;;  %v6209_v15 = vsub.f32 %v7360_v11, %v6081_v21  ;;  %v3245_v43 = vadd.f32 1e-06, %v11623_v47  ;;  %v16035_v53 = vld [vmem:[#allocation171_spill] sm:$0xff] }
 0x5e9   : > { %6999 = vrcp.f32 %v11799_v6  ;;  %v3657_v18 = vadd.f32 1e-06, %v11614_v2  ;;  %v4578_v61 = vsel %vm4577_vm6, %v11740_v5, %v4574_v29  ;;  %vm4530_vm7 = vweird.f32 %v11720_v54  ;;  %v16028_v54 = vld [vmem:[#allocation336_spill] sm:$0xff] }
 0x5ea   : > { %v4528_v52 = vmul.f32 %v11771_v13, %v4527_v41  ;;  %vm4531_vm8 = vweird.f32 %v11771_v13  ;;  %6337 = vst.msk [vmem:[%s10440_s17 + $0x108] sm:$0xff] %vm355_vm0, %v6209_v15  ;;  %v4583_v39 = vsel %vm11765_vm2, %v4582_v33, %v4578_v61  ;;  %vm11825_vm9 = vcmp.eq.f32.partialorder %v4534_v12, 8.507059e+37  ;;  %3303 = vmatmul.f32.gmra.mxu1 %v16033_v49  ;;  %6798 = vmatmul.msk.f32.gmra.mxu3 %vm355_vm0, %v16034_v48  ;;  %v11871_v12 = vpop.f32.mrf.mxu1 }
 0x5eb   : > { %v11819_v45 = vpop.eup %6997  ;;  %v11830_v2 = vadd.f32 %v11645_v62, %v3245_v43  ;;  %v11833_v47 = vadd.f32 %v11628_v23, %v3657_v18  ;;  %v4584_v5 = vmul.f32 %v4583_v39, %v16028_v54  ;;  %v4537_v56 = vor.u32 1.1754944e-38, %v4536_v35  ;;  %vm11840_vm10 = vmor %vm4530_vm7, %vm4531_vm8  ;;  %v16037_v35 = vld [vmem:[#allocation337_spill] sm:$0xff]  ;;  %v11891_v14 = vpop.f32.mrf.mxu3  ;;  %v7363_v39 = vld [vmem:[%s7582_s24 + $0x140] sm:$0xff]  ;;  %3721 = vmatmul.f32.gmra.mxu0 %v16033_v49  ;;  %6862 = vmatmul.msk.f32.gmra.mxu2 %vm355_vm0, %v16034_v48 }
 0x5ec   : > { %v4529_v22 = vadd.f32 %v11771_v13, %v4528_v52  ;;  %v4601_v16 = vmul.f32 %v11819_v45, %v11750_v36  ;;  %vm4605_vm12 = vweird.f32 %v11750_v36  ;;  %vm11845_vm11 = vcmp.eq.f32.partialorder %v4609_v1, 8.507059e+37  ;;  %v11878_v1 = vpop.f32.mrf.mxu2  ;;  %v16058_v48 = vld [vmem:[#allocation173_spill] sm:$0xff] }
 0x5ed   : > { %v4612_v23 = vor.u32 1.1754944e-38, %v4611_v38  ;;  %7001 = vrcp.f32 %v11830_v2  ;;  %v5958_v57 = vsel %vm2754_vm3, %v4584_v5, 0.0  ;;  %v4564_v26 = vand.u32 2147483647, %v11799_v6  ;;  %v7361_v38 = vld [vmem:[%s7582_s24 + $0x130] sm:$0xff] }
 0x5ee   : > { %v4533_v46 = vsel %vm11840_vm10, %v11771_v13, %v4529_v22  ;;  %v4602_v33 = vsub.f32 1.0, %v4601_v16  ;;  %vm2756_vm13 = vcmp.lt.f32.partialorder %v16035_v53, 0.0  ;;  %v6086_v37 = vmul.f32 %v5958_v57, %v16036_v31  ;;  %v16040_v5 = vld [vmem:[#allocation92_spill] sm:$0xff]  ;;  %v16041_v22 = vld [vmem:[#allocation39_spill] sm:$0xff] }
 0x5ef   : > { %v11863_v60 = vpop.eup %6999  ;;  %v4538_v21 = vsel %vm11825_vm9, %v4537_v56, %v4533_v46  ;;  %v4566_v13 = vand.u32 2147483648, %v11799_v6  ;;  %7003 = vrcp.f32 %v11833_v47  ;;  %vm4606_vm14 = vweird.f32 %v11819_v45  ;;  %v7362_v46 = vld [vmem:[%s7582_s24 + $0x118] sm:$0xff]  ;;  %v16045_v31 = vld [vmem:[#allocation299_spill] sm:$0xff] }
 0x5f0   : > { %v4539_v29 = vmul.f32 %v4538_v21, %v16037_v35  ;;  %v4603_v41 = vmul.f32 %v11819_v45, %v4602_v33  ;;  %v4556_v4 = vmul.f32 %v11863_v60, %v11799_v6  ;;  %v6214_v11 = vsub.f32 %v7361_v38, %v6086_v37  ;;  %vm4607_vm3 = vmor %vm4605_vm12, %vm4606_vm14  ;;  %v16046_v37 = vld [vmem:[#allocation339_spill] sm:$0xff] }
 0x5f1   : > { %vm4560_vm15 = vweird.f32 %v11799_v6  ;;  %v4639_v15 = vand.u32 2147483647, %v11830_v2  ;;  %v3248_v43 = vadd.f32 1e-06, %v11701_v10  ;;  %vm11887_vm1 = vcmp.eq.f32.partialorder %v4564_v26, 8.507059e+37  ;;  %v16048_v6 = vld [vmem:[#allocation94_spill] sm:$0xff] }
 0x5f2   : > { %v5955_v18 = vsel %vm2751_vm5, %v4539_v29, 0.0  ;;  %v4604_v61 = vadd.f32 %v11819_v45, %v4603_v41  ;;  %v4557_v52 = vsub.f32 1.0, %v4556_v4  ;;  %vm2753_vm2 = vcmp.lt.f32.partialorder %v16040_v5, 0.0  ;;  %6342 = vst [vmem:[%s10440_s17 + $0x130] sm:$0xff] %v6214_v11  ;;  %6799 = vmatmul.msk.f32.gmra.mxu3 %vm355_vm0, %v16045_v31 }
 0x5f3   : > { %v11893_v54 = vpop.eup %7001  ;;  %v6083_v10 = vmul.f32 %v5955_v18, %v16041_v22  ;;  %v4567_v30 = vor.u32 1.1754944e-38, %v4566_v13  ;;  %vm4635_vm4 = vweird.f32 %v11830_v2  ;;  %v11904_v56 = vadd.f32 %v11729_v34, %v3248_v43  ;;  %v16049_v43 = vld [vmem:[#allocation46_spill] sm:$0xff]  ;;  %6863 = vmatmul.msk.f32.gmra.mxu2 %vm355_vm0, %v16045_v31 }
 0x5f4   : > { %v4608_v16 = vsel %vm4607_vm3, %v11819_v45, %v4604_v61  ;;  %v4558_v42 = vmul.f32 %v11863_v60, %v4557_v52  ;;  %vm4561_vm5 = vweird.f32 %v11863_v60  ;;  %v4631_v57 = vmul.f32 %v11893_v54, %v11830_v2  ;;  %v16044_v45 = vld [vmem:[#allocation301_spill] sm:$0xff]  ;;  %v11954_v61 = vpop.f32.mrf.mxu1  ;;  %v16050_v52 = vld [vmem:[#allocation340_spill] sm:$0xff] }
 0x5f5   : > { %v11912_v36 = vpop.eup %7003  ;;  %v6211_v33 = vsub.f32 %v7362_v46, %v6083_v10  ;;  %v4613_v34 = vsel %vm11845_vm11, %v4612_v23, %v4608_v16  ;;  %vm11917_vm6 = vcmp.eq.f32.partialorder %v4639_v15, 8.507059e+37  ;;  %v4641_v51 = vand.u32 2147483648, %v11830_v2  ;;  %3306 = vmatmul.f32.gmra.mxu1 %v16044_v45  ;;  %v16047_v23 = vld [vmem:[#allocation172_spill] sm:$0xff]  ;;  %vm4562_vm8 = vmor %vm4560_vm15, %vm4561_vm5  ;;  %v11946_v15 = vpop.f32.mrf.mxu0  ;;  %3724 = vmatmul.f32.gmra.mxu0 %v16044_v45 }
 0x5f6   : > { %v4614_v21 = vmul.f32 %v4613_v34, %v16046_v37  ;;  %v4559_v13 = vadd.f32 %v11863_v60, %v4558_v42  ;;  %v4632_v35 = vsub.f32 1.0, %v4631_v57  ;;  %v4586_v62 = vmul.f32 %v11912_v36, %v11833_v47  ;;  %v11962_v42 = vpop.f32.mrf.mxu2  ;;  %v11980_v2 = vpop.f32.mrf.mxu3 }
 0x5f7   : > { %vm2758_vm7 = vcmp.lt.f32.partialorder %v16047_v23, 0.0  ;;  %6339 = vst.msk [vmem:[%s10440_s17 + $0x118] sm:$0xff] %vm355_vm0, %v6211_v33  ;;  %vm4636_vm9 = vweird.f32 %v11893_v54  ;;  %v4594_v29 = vand.u32 2147483647, %v11833_v47  ;;  %v3660_v41 = vadd.f32 1e-06, %v11696_v25 }
 0x5f8   : > { %7005 = vrcp.f32 %v11904_v56  ;;  %v5960_v50 = vsel %vm2756_vm13, %v4614_v21, 0.0  ;;  %v4563_v4 = vsel %vm4562_vm8, %v11863_v60, %v4559_v13  ;;  %v4633_v38 = vmul.f32 %v11893_v54, %v4632_v35  ;;  %vm4637_vm11 = vmor %vm4635_vm4, %vm4636_vm9  ;;  %v16054_v21 = vld [vmem:[#allocation305_spill] sm:$0xff]  ;;  %v16055_v13 = vld [vmem:[#allocation302_spill] sm:$0xff] }
 0x5f9   : > { %v4587_v11 = vsub.f32 1.0, %v4586_v62  ;;  %vm2755_vm10 = vcmp.lt.f32.partialorder %v16048_v6, 0.0  ;;  %v6088_v18 = vmul.f32 %v5960_v50, %v16049_v43  ;;  %v4568_v25 = vsel %vm11887_vm1, %v4567_v30, %v4563_v4  ;;  %v16056_v35 = vld [vmem:[#allocation344_spill] sm:$0xff]  ;;  %v7364_v50 = vld [vmem:[%s7582_s24 + $0x128] sm:$0xff] }
 0x5fa   : > { %vm4591_vm12 = vweird.f32 %v11912_v36  ;;  %v4596_v53 = vand.u32 2147483648, %v11833_v47  ;;  %v4569_v60 = vmul.f32 %v4568_v25, %v16050_v52  ;;  %v4634_v22 = vadd.f32 %v11893_v54, %v4633_v38  ;;  %6800 = vmatmul.msk.f32.gmra.mxu3 %vm355_vm0, %v16055_v13  ;;  %v16059_v52 = vld [vmem:[#allocation49_spill] sm:$0xff] }
 0x5fb   : > { %v4588_v10 = vmul.f32 %v11912_v36, %v4587_v11  ;;  %v11960_v16 = vadd.f32 %v11710_v63, %v3660_v41  ;;  %v6216_v30 = vsub.f32 %v7363_v39, %v6088_v18  ;;  %v4642_v57 = vor.u32 1.1754944e-38, %v4641_v51  ;;  %v16057_v18 = vld [vmem:[#allocation341_spill] sm:$0xff]  ;;  %6864 = vmatmul.msk.f32.gmra.mxu2 %vm355_vm0, %v16055_v13 }
 0x5fc   : > { %vm4590_vm13 = vweird.f32 %v11833_v47  ;;  %vm11970_vm14 = vcmp.eq.f32.partialorder %v4594_v29, 8.507059e+37  ;;  %v5957_v63 = vsel %vm2753_vm2, %v4569_v60, 0.0  ;;  %v4638_v33 = vsel %vm4637_vm11, %v11893_v54, %v4634_v22  ;;  %v16053_v47 = vld [vmem:[#allocation42_spill] sm:$0xff] }
 0x5fd   : > { %v4589_v34 = vadd.f32 %v11912_v36, %v4588_v10  ;;  %7007 = vrcp.f32 %v11960_v16  ;;  %6344 = vst [vmem:[%s10440_s17 + $0x140] sm:$0xff] %v6216_v30  ;;  %v6085_v37 = vmul.f32 %v5957_v63, %v16053_v47  ;;  %v4643_v49 = vsel %vm11917_vm6, %v4642_v57, %v4638_v33  ;;  %vm4592_vm15 = vmor %vm4590_vm13, %vm4591_vm12  ;;  %3309 = vmatmul.f32.gmra.mxu1 %v16054_v21  ;;  %v12026_v30 = vpop.f32.mrf.mxu0  ;;  %v16060_v57 = vld [vmem:[#allocation240_spill] sm:$0xff]  ;;  %v16061_v33 = vld [vmem:[#allocation45_spill] sm:$0xff]  ;;  %v12034_v47 = vpop.f32.mrf.mxu1 }
 0x5fe   : > { %v11982_v51 = vpop.eup %7005  ;;  %v4597_v5 = vor.u32 1.1754944e-38, %v4596_v53  ;;  %v4669_v54 = vand.u32 2147483647, %v11904_v56  ;;  %v4644_v62 = vmul.f32 %v4643_v49, %v16056_v35  ;;  %v3251_v41 = vadd.f32 1e-06, %v11777_v40  ;;  %v7365_v63 = vld [vmem:[%s7582_s24 + $0x150] sm:$0xff]  ;;  %3727 = vmatmul.f32.gmra.mxu0 %v16054_v21 }
 0x5ff   : > { %v4593_v29 = vsel %vm4592_vm15, %v11912_v36, %v4589_v34  ;;  %v4661_v26 = vmul.f32 %v11982_v51, %v11904_v56  ;;  %v6213_v4 = vsub.f32 %v7364_v50, %v6085_v37  ;;  %v4671_v11 = vand.u32 2147483648, %v11904_v56  ;;  %v7366_v35 = vld [vmem:[%s7582_s24 + $0x138] sm:$0xff]  ;;  %v16076_v50 = vld [vmem:[#allocation306_spill] sm:$0xff] }
 0x600   : > { %v4598_v38 = vsel %vm11970_vm14, %v4597_v5, %v4593_v29  ;;  %v3663_v43 = vadd.f32 1e-06, %v11769_v27  ;;  %v5962_v36 = vsel %vm2758_vm7, %v4644_v62, 0.0  ;;  %v12010_v40 = vadd.f32 %v11804_v59, %v3251_v41  ;;  %v12044_v5 = vpop.f32.mrf.mxu2 }
 0x601   : > { %v4599_v25 = vmul.f32 %v4598_v38, %v16057_v18  ;;  %v4662_v53 = vsub.f32 1.0, %v4661_v26  ;;  %vm2760_vm1 = vcmp.lt.f32.partialorder %v16058_v48, 0.0  ;;  %6341 = vst.msk [vmem:[%s10440_s17 + $0x128] sm:$0xff] %vm355_vm0, %v6213_v4  ;;  %v6090_v60 = vmul.f32 %v5962_v36, %v16059_v52  ;;  %v16066_v26 = vld [vmem:[#allocation97_spill] sm:$0xff]  ;;  %v16071_v48 = vld [vmem:[#allocation174_spill] sm:$0xff] }
 0x602   : > { %vm4666_vm2 = vweird.f32 %v11982_v51  ;;  %v4624_v27 = vand.u32 2147483647, %v11960_v16  ;;  %v12019_v23 = vadd.f32 %v11790_v19, %v3663_v43  ;;  %v4626_v39 = vand.u32 2147483648, %v11960_v16  ;;  %v16069_v18 = vld [vmem:[#allocation345_spill] sm:$0xff] }
 0x603   : > { %v7008_v22 = vpop.eup %7007  ;;  %v5959_v10 = vsel %vm2755_vm10, %v4599_v25, 0.0  ;;  %v4663_v59 = vmul.f32 %v11982_v51, %v4662_v53  ;;  %7009 = vrcp.f32 %v12010_v40  ;;  %v12029_v46 = vmul.f32 0.99, %v16060_v57 }
 0x604   : > { %v6218_v19 = vsub.f32 %v7365_v63, %v6090_v60  ;;  %v6087_v34 = vmul.f32 %v5959_v10, %v16061_v33  ;;  %v4616_v6 = vmul.f32 %v7008_v22, %v11960_v16  ;;  %vm4665_vm3 = vweird.f32 %v11904_v56  ;;  %v16064_v56 = vld [vmem:[#allocation309_spill] sm:$0xff] }
 0x605   : > { %v4664_v37 = vadd.f32 %v11982_v51, %v4663_v59  ;;  %vm12039_vm4 = vcmp.eq.f32.partialorder %v4669_v54, 8.507059e+37  ;;  %7011 = vrcp.f32 %v12019_v23  ;;  %vm4667_vm5 = vmor %vm4665_vm3, %vm4666_vm2  ;;  %v4672_v45 = vor.u32 1.1754944e-38, %v4671_v11  ;;  %3312 = vmatmul.f32.gmra.mxu1 %v16064_v56  ;;  %v16065_v54 = vld [vmem:[#allocation303_spill] sm:$0xff]  ;;  %v12061_v11 = vpop.f32.mrf.mxu3 }
 0x606   : > { %6346 = vst [vmem:[%s10440_s17 + $0x150] sm:$0xff] %v6218_v19  ;;  %v6215_v62 = vsub.f32 %v7366_v35, %v6087_v34  ;;  %v4617_v29 = vsub.f32 1.0, %v4616_v6  ;;  %vm4620_vm6 = vweird.f32 %v11960_v16  ;;  %6801 = vmatmul.msk.f32.gmra.mxu3 %vm355_vm0, %v16065_v54  ;;  %vm2757_vm7 = vcmp.lt.f32.partialorder %v16066_v26, 0.0  ;;  %v16074_v35 = vld [vmem:[#allocation346_spill] sm:$0xff]  ;;  %3730 = vmatmul.f32.gmra.mxu0 %v16064_v56 }
 0x607   : > { %v4668_v41 = vsel %vm4667_vm5, %v11982_v51, %v4664_v37  ;;  %vm12056_vm8 = vcmp.eq.f32.partialorder %v4624_v27, 8.507059e+37  ;;  %v4627_v4 = vor.u32 1.1754944e-38, %v4626_v39  ;;  %v3254_v38 = vadd.f32 1e-06, %v11871_v12  ;;  %v16070_v39 = vld [vmem:[#allocation52_spill] sm:$0xff]  ;;  %v12102_v37 = vpop.f32.mrf.mxu0  ;;  %6865 = vmatmul.msk.f32.gmra.mxu2 %vm355_vm0, %v16065_v54 }
 0x608   : > { %6343 = vst.msk [vmem:[%s10440_s17 + $0x138] sm:$0xff] %vm355_vm0, %v6215_v62  ;;  %v4673_v43 = vsel %vm12039_vm4, %v4672_v45, %v4668_v41  ;;  %v4618_v36 = vmul.f32 %v7008_v22, %v4617_v29  ;;  %vm4621_vm9 = vweird.f32 %v7008_v22  ;;  %vm4695_vm10 = vweird.f32 %v12010_v40  ;;  %v12106_v29 = vpop.f32.mrf.mxu1  ;;  %v16075_v41 = vld [vmem:[#allocation312_spill] sm:$0xff] }
 0x609   : > { %v7010_v51 = vpop.eup %7009  ;;  %v4674_v25 = vmul.f32 %v4673_v43, %v16069_v18  ;;  %v4699_v53 = vand.u32 2147483647, %v12010_v40  ;;  %v3666_v12 = vadd.f32 1e-06, %v11859_v44  ;;  %v12074_v52 = vadd.f32 %v11891_v14, %v3254_v38  ;;  %vm4622_vm11 = vmor %vm4620_vm6, %vm4621_vm9  ;;  %v12118_v18 = vpop.f32.mrf.mxu2  ;;  %v16087_v43 = vld [vmem:[#allocation307_spill] sm:$0xff] }
 0x60a   : > { %v4619_v31 = vadd.f32 %v7008_v22, %v4618_v36  ;;  %v4691_v60 = vmul.f32 %v7010_v51, %v12010_v40  ;;  %v4701_v27 = vand.u32 2147483648, %v12010_v40  ;;  %vm4650_vm12 = vweird.f32 %v12019_v23 }
 0x60b   : > { %v12079_v10 = vpop.eup %7011  ;;  %v5964_v59 = vsel %vm2760_vm1, %v4674_v25, 0.0  ;;  %v4654_v44 = vand.u32 2147483647, %v12019_v23  ;;  %7013 = vrcp.f32 %v12074_v52  ;;  %v12088_v14 = vadd.f32 %v11878_v1, %v3666_v12 }
 0x60c   : > { %v6092_v63 = vmul.f32 %v5964_v59, %v16070_v39  ;;  %v4623_v19 = vsel %vm4622_vm11, %v7008_v22, %v4619_v31  ;;  %v4692_v33 = vsub.f32 1.0, %v4691_v60  ;;  %v4646_v34 = vmul.f32 %v12079_v10, %v12019_v23  ;;  %v7367_v22 = vld [vmem:[%s7582_s24 + $0x160] sm:$0xff]  ;;  %v16080_v60 = vld [vmem:[#allocation48_spill] sm:$0xff] }
 0x60d   : > { %vm2762_vm13 = vcmp.lt.f32.partialorder %v16071_v48, 0.0  ;;  %v4628_v16 = vsel %vm12056_vm8, %v4627_v4, %v4623_v19  ;;  %vm4696_vm14 = vweird.f32 %v7010_v51  ;;  %vm12097_vm15 = vcmp.eq.f32.partialorder %v4699_v53, 8.507059e+37  ;;  %3315 = vmatmul.f32.gmra.mxu1 %v16075_v41  ;;  %v16077_v4 = vld [vmem:[#allocation100_spill] sm:$0xff]  ;;  %v12137_v59 = vpop.f32.mrf.mxu3 }
 0x60e   : > { %v4656_v1 = vand.u32 2147483648, %v12019_v23  ;;  %v6220_v49 = vsub.f32 %v7367_v22, %v6092_v63  ;;  %v4629_v62 = vmul.f32 %v4628_v16, %v16074_v35  ;;  %v4693_v21 = vmul.f32 %v7010_v51, %v4692_v33  ;;  %6802 = vmatmul.msk.f32.gmra.mxu3 %vm355_vm0, %v16076_v50  ;;  %vm4697_vm4 = vmor %vm4695_vm10, %vm4696_vm14  ;;  %v7368_v33 = vld [vmem:[%s7582_s24 + $0x148] sm:$0xff]  ;;  %v16085_v35 = vld [vmem:[#allocation348_spill] sm:$0xff]  ;;  %3733 = vmatmul.f32.gmra.mxu0 %v16075_v41 }
 0x60f   : > { %v4647_v45 = vsub.f32 1.0, %v4646_v34  ;;  %vm2759_vm1 = vcmp.lt.f32.partialorder %v16077_v4, 0.0  ;;  %v4702_v38 = vor.u32 1.1754944e-38, %v4701_v27  ;;  %vm12112_vm2 = vcmp.eq.f32.partialorder %v4654_v44, 8.507059e+37  ;;  %6866 = vmatmul.msk.f32.gmra.mxu2 %vm355_vm0, %v16076_v50 }
 0x610   : > { %7015 = vrcp.f32 %v12088_v14  ;;  %v3257_v36 = vadd.f32 1e-06, %v11954_v61  ;;  %6348 = vst [vmem:[%s10440_s17 + $0x160] sm:$0xff] %v6220_v49  ;;  %v5961_v25 = vsel %vm2757_vm7, %v4629_v62, 0.0  ;;  %v4694_v53 = vadd.f32 %v7010_v51, %v4693_v21  ;;  %v16082_v49 = vld [vmem:[#allocation175_spill] sm:$0xff] }
 0x611   : > { %v4648_v12 = vmul.f32 %v12079_v10, %v4647_v45  ;;  %vm4651_vm3 = vweird.f32 %v12079_v10  ;;  %v12127_v31 = vpop.eup %7013  ;;  %v6089_v27 = vmul.f32 %v5961_v25, %v16080_v60  ;;  %v4657_v61 = vor.u32 1.1754944e-38, %v4656_v1 }
 0x612   : > { %v4729_v13 = vand.u32 2147483647, %v12074_v52  ;;  %v12135_v26 = vadd.f32 %v11980_v2, %v3257_v36  ;;  %v4698_v44 = vsel %vm4697_vm4, %v7010_v51, %v4694_v53  ;;  %v4721_v63 = vmul.f32 %v12127_v31, %v12074_v52  ;;  %vm4652_vm5 = vmor %vm4650_vm12, %vm4651_vm3  ;;  %v16081_v51 = vld [vmem:[#allocation347_spill] sm:$0xff]  ;;  %v12183_v53 = vpop.f32.mrf.mxu0 }
 0x613   : > { %v4649_v39 = vadd.f32 %v12079_v10, %v4648_v12  ;;  %v4731_v19 = vand.u32 2147483648, %v12074_v52  ;;  %v6217_v40 = vsub.f32 %v7368_v33, %v6089_v27  ;;  %v4703_v34 = vsel %vm12097_vm15, %v4702_v38, %v4698_v44  ;;  %v16086_v38 = vld [vmem:[#allocation313_spill] sm:$0xff]  ;;  %v16088_v36 = vld [vmem:[#allocation55_spill] sm:$0xff] }
 0x614   : > { %v3669_v2 = vadd.f32 1e-06, %v11946_v15  ;;  %7017 = vrcp.f32 %v12135_v26  ;;  %v4704_v16 = vmul.f32 %v4703_v34, %v16081_v51  ;;  %v4722_v22 = vsub.f32 1.0, %v4721_v63  ;;  %v16089_v44 = vld [vmem:[#allocation103_spill] sm:$0xff] }
 0x615   : > { %v4653_v1 = vsel %vm4652_vm5, %v12079_v10, %v4649_v39  ;;  %vm4725_vm6 = vweird.f32 %v12074_v52  ;;  %vm2764_vm7 = vcmp.lt.f32.partialorder %v16082_v49, 0.0  ;;  %6345 = vst.msk [vmem:[%s10440_s17 + $0x148] sm:$0xff] %vm355_vm0, %v6217_v40  ;;  %vm4726_vm8 = vweird.f32 %v12127_v31  ;;  %3318 = vmatmul.f32.gmra.mxu1 %v16086_v38  ;;  %v7369_v39 = vld [vmem:[%s7582_s24 + $0x170] sm:$0xff]  ;;  %v12204_v40 = vpop.f32.mrf.mxu2 }
 0x616   : > { %v12156_v6 = vpop.eup %7015  ;;  %v4658_v15 = vsel %vm12112_vm2, %v4657_v61, %v4653_v1  ;;  %vm12164_vm9 = vcmp.eq.f32.partialorder %v4729_v13, 8.507059e+37  ;;  %v12169_v10 = vadd.f32 %v11962_v42, %v3669_v2  ;;  %v5966_v56 = vsel %vm2762_vm13, %v4704_v16, 0.0  ;;  %6803 = vmatmul.msk.f32.gmra.mxu3 %vm355_vm0, %v16087_v43  ;;  %v12191_v61 = vpop.f32.mrf.mxu1  ;;  %vm4727_vm11 = vmor %vm4725_vm6, %vm4726_vm8  ;;  %v7370_v16 = vld [vmem:[%s7582_s24 + $0x158] sm:$0xff]  ;;  %3736 = vmatmul.f32.gmra.mxu0 %v16086_v38 }
 0x617   : > { %v4659_v62 = vmul.f32 %v4658_v15, %v16085_v35  ;;  %v4723_v21 = vmul.f32 %v12127_v31, %v4722_v22  ;;  %v4676_v45 = vmul.f32 %v12156_v6, %v12088_v14  ;;  %v6094_v25 = vmul.f32 %v5966_v56, %v16088_v36  ;;  %v12220_v15 = vpop.f32.mrf.mxu3  ;;  %v16093_v56 = vld [vmem:[#allocation352_spill] sm:$0xff]  ;;  %6867 = vmatmul.msk.f32.gmra.mxu2 %vm355_vm0, %v16087_v43 }
 0x618   : > { %v4732_v42 = vor.u32 1.1754944e-38, %v4731_v19  ;;  %vm4680_vm10 = vweird.f32 %v12088_v14  ;;  %v4684_v48 = vand.u32 2147483647, %v12088_v14  ;;  %7019 = vrcp.f32 %v12169_v10  ;;  %v16090_v19 = vld [vmem:[#allocation51_spill] sm:$0xff]  ;;  %v16094_v36 = vld [vmem:[#allocation176_spill] sm:$0xff] }
 0x619   : > { %v5963_v12 = vsel %vm2759_vm1, %v4659_v62, 0.0  ;;  %v4724_v60 = vadd.f32 %v12127_v31, %v4723_v21  ;;  %v4677_v27 = vsub.f32 1.0, %v4676_v45  ;;  %vm2761_vm12 = vcmp.lt.f32.partialorder %v16089_v44, 0.0 }
 0x61a   : > { %v12193_v13 = vpop.eup %7017  ;;  %v6222_v63 = vsub.f32 %v7369_v39, %v6094_v25  ;;  %v6091_v54 = vmul.f32 %v5963_v12, %v16090_v19  ;;  %v4686_v4 = vand.u32 2147483648, %v12088_v14  ;;  %v4759_v33 = vand.u32 2147483647, %v12135_v26  ;;  %v16097_v12 = vld [vmem:[#allocation316_spill] sm:$0xff] }
 0x61b   : > { %v4728_v34 = vsel %vm4727_vm11, %v12127_v31, %v4724_v60  ;;  %v4678_v2 = vmul.f32 %v12156_v6, %v4677_v27  ;;  %vm4681_vm13 = vweird.f32 %v12156_v6  ;;  %v4751_v51 = vmul.f32 %v12193_v13, %v12135_v26  ;;  %v16098_v60 = vld [vmem:[#allocation310_spill] sm:$0xff] }
 0x61c   : > { %6350 = vst [vmem:[%s10440_s17 + $0x170] sm:$0xff] %v6222_v63  ;;  %v6219_v52 = vsub.f32 %v7370_v16, %v6091_v54  ;;  %v4733_v1 = vsel %vm12164_vm9, %v4732_v42, %v4728_v34  ;;  %vm12215_vm14 = vcmp.eq.f32.partialorder %v4684_v48, 8.507059e+37  ;;  %v4761_v31 = vand.u32 2147483648, %v12135_v26  ;;  %vm4682_vm1 = vmor %vm4680_vm10, %vm4681_vm13  ;;  %v16099_v27 = vld [vmem:[#allocation58_spill] sm:$0xff] }
 0x61d   : > { %v4734_v35 = vmul.f32 %v4733_v1, %v16093_v56  ;;  %v4679_v62 = vadd.f32 %v12156_v6, %v4678_v2  ;;  %v4752_v21 = vsub.f32 1.0, %v4751_v51  ;;  %v3260_v45 = vadd.f32 1e-06, %v12034_v47  ;;  %3321 = vmatmul.f32.gmra.mxu1 %v16097_v12  ;;  %v12269_v51 = vpop.f32.mrf.mxu0  ;;  %v16101_v16 = vld [vmem:[#allocation106_spill] sm:$0xff]  ;;  %v12287_v44 = vpop.f32.mrf.mxu2 }
 0x61e   : > { %vm2766_vm15 = vcmp.lt.f32.partialorder %v16094_v36, 0.0  ;;  %6347 = vst.msk [vmem:[%s10440_s17 + $0x158] sm:$0xff] %vm355_vm0, %v6219_v52  ;;  %v4687_v23 = vor.u32 1.1754944e-38, %v4686_v4  ;;  %vm4755_vm2 = vweird.f32 %v12135_v26  ;;  %vm4756_vm3 = vweird.f32 %v12193_v13  ;;  %v12239_v47 = vpop.eup %7019  ;;  %6804 = vmatmul.msk.f32.gmra.mxu3 %vm355_vm0, %v16098_v60  ;;  %v12279_v22 = vpop.f32.mrf.mxu1  ;;  %v16106_v36 = vld [vmem:[#allocation61_spill] sm:$0xff]  ;;  %3739 = vmatmul.f32.gmra.mxu0 %v16097_v12 }
 0x61f   : > { %vm12235_vm4 = vcmp.eq.f32.partialorder %v4759_v33, 8.507059e+37  ;;  %v5968_v41 = vsel %vm2764_vm7, %v4734_v35, 0.0  ;;  %v4683_v42 = vsel %vm4682_vm1, %v12156_v6, %v4679_v62  ;;  %v4753_v14 = vmul.f32 %v12193_v13, %v4752_v21  ;;  %v16100_v6 = vld [vmem:[#allocation349_spill] sm:$0xff]  ;;  %v7371_v33 = vld [vmem:[%s7582_s24 + $0x180] sm:$0xff]  ;;  %vm4757_vm5 = vmor %vm4755_vm2, %vm4756_vm3  ;;  %6868 = vmatmul.msk.f32.gmra.mxu2 %vm355_vm0, %v16098_v60 }
 0x620   : > { %v12246_v48 = vadd.f32 %v12061_v11, %v3260_v45  ;;  %v6096_v39 = vmul.f32 %v5968_v41, %v16099_v27  ;;  %v4688_v63 = vsel %vm12215_vm14, %v4687_v23, %v4683_v42  ;;  %v4762_v49 = vor.u32 1.1754944e-38, %v4761_v31  ;;  %v16102_v31 = vld [vmem:[#allocation54_spill] sm:$0xff]  ;;  %v7372_v23 = vld [vmem:[%s7582_s24 + $0x168] sm:$0xff]  ;;  %v12297_v27 = vpop.f32.mrf.mxu3 }
 0x621   : > { %v4706_v19 = vmul.f32 %v12239_v47, %v12169_v10  ;;  %v4689_v11 = vmul.f32 %v4688_v63, %v16100_v6  ;;  %v4754_v54 = vadd.f32 %v12193_v13, %v4753_v14  ;;  %v3672_v4 = vadd.f32 1e-06, %v12026_v30 }
 0x622   : > { %7021 = vrcp.f32 %v12246_v48  ;;  %v6224_v34 = vsub.f32 %v7371_v33, %v6096_v39  ;;  %vm4710_vm6 = vweird.f32 %v12169_v10  ;;  %v4716_v50 = vand.u32 2147483648, %v12169_v10  ;;  %v7373_v33 = vld [vmem:[%s7582_s24 + $0x190] sm:$0xff] }
 0x623   : > { %v4707_v2 = vsub.f32 1.0, %v4706_v19  ;;  %vm2763_vm7 = vcmp.lt.f32.partialorder %v16101_v16, 0.0  ;;  %v5965_v30 = vsel %vm2761_vm12, %v4689_v11, 0.0  ;;  %v4758_v52 = vsel %vm4757_vm5, %v12193_v13, %v4754_v54  ;;  %v16103_v13 = vld [vmem:[#allocation353_spill] sm:$0xff]  ;;  %v16105_v19 = vld [vmem:[#allocation311_spill] sm:$0xff] }
 0x624   : > { %v4714_v1 = vand.u32 2147483647, %v12169_v10  ;;  %v12277_v26 = vadd.f32 %v12044_v5, %v3672_v4  ;;  %6352 = vst [vmem:[%s10440_s17 + $0x180] sm:$0xff] %v6224_v34  ;;  %v6093_v56 = vmul.f32 %v5965_v30, %v16102_v31  ;;  %v4763_v35 = vsel %vm12235_vm4, %v4762_v49, %v4758_v52  ;;  %v16104_v49 = vld [vmem:[#allocation317_spill] sm:$0xff] }
 0x625   : > { %v4708_v62 = vmul.f32 %v12239_v47, %v4707_v2  ;;  %vm4711_vm8 = vweird.f32 %v12239_v47  ;;  %v4764_v21 = vmul.f32 %v4763_v35, %v16103_v13  ;;  %v3263_v5 = vadd.f32 1e-06, %v12106_v29  ;;  %3324 = vmatmul.f32.gmra.mxu1 %v16104_v49  ;;  %v16108_v2 = vld [vmem:[#allocation354_spill] sm:$0xff]  ;;  %v12349_v13 = vpop.f32.mrf.mxu0 }
 0x626   : > { %7023 = vrcp.f32 %v12277_v26  ;;  %v3675_v45 = vadd.f32 1e-06, %v12102_v37  ;;  %v6221_v25 = vsub.f32 %v7372_v23, %v6093_v56  ;;  %v4717_v42 = vor.u32 1.1754944e-38, %v4716_v50  ;;  %vm4712_vm9 = vmor %vm4710_vm6, %vm4711_vm8  ;;  %6805 = vmatmul.msk.f32.gmra.mxu3 %vm355_vm0, %v16105_v19  ;;  %v12355_v16 = vpop.f32.mrf.mxu1  ;;  %3742 = vmatmul.f32.gmra.mxu0 %v16104_v49  ;;  %v16139_v49 = vld [vmem:[#allocation67_spill] sm:$0xff] }
 0x627   : > { %v4709_v41 = vadd.f32 %v12239_v47, %v4708_v62  ;;  %v4789_v14 = vand.u32 2147483647, %v12246_v48  ;;  %v5970_v63 = vsel %vm2766_vm15, %v4764_v21, 0.0  ;;  %v4791_v37 = vand.u32 2147483648, %v12246_v48  ;;  %v16112_v21 = vld [vmem:[#allocation57_spill] sm:$0xff]  ;;  %6869 = vmatmul.msk.f32.gmra.mxu2 %vm355_vm0, %v16105_v19 }
 0x628   : > { %v12299_v39 = vpop.eup %7021  ;;  %v12309_v29 = vadd.f32 %v12137_v59, %v3263_v5  ;;  %v12312_v38 = vadd.f32 %v12118_v18, %v3675_v45  ;;  %6349 = vst.msk [vmem:[%s10440_s17 + $0x168] sm:$0xff] %vm355_vm0, %v6221_v25  ;;  %v6098_v6 = vmul.f32 %v5970_v63, %v16106_v36  ;;  %vm4715_vm10 = vcmp.eq.f32.partialorder %v4714_v1, 8.507059e+37  ;;  %v16107_v18 = vld [vmem:[#allocation241_spill] sm:$0xff]  ;;  %v12363_v63 = vpop.f32.mrf.mxu2 }
 0x629   : > { %v4713_v10 = vsel %vm4712_vm9, %v12239_v47, %v4709_v41  ;;  %v4781_v11 = vmul.f32 %v12299_v39, %v12246_v48  ;;  %v12326_v59 = vmul.f32 0.99, %v16107_v18  ;;  %v4744_v4 = vand.u32 2147483647, %v12277_v26  ;;  %v16109_v1 = vld [vmem:[#allocation177_spill] sm:$0xff] }
 0x62a   : > { %v4718_v54 = vsel %vm4715_vm10, %v4717_v42, %v4713_v10  ;;  %7025 = vrcp.f32 %v12309_v29  ;;  %v6226_v34 = vsub.f32 %v7373_v33, %v6098_v6  ;;  %v4746_v30 = vand.u32 2147483648, %v12277_v26  ;;  %v16115_v36 = vld [vmem:[#allocation109_spill] sm:$0xff]  ;;  %v7375_v42 = vld [vmem:[%s7582_s24 + $0x1a0] sm:$0xff] }
 0x62b   : > { %v4719_v47 = vmul.f32 %v4718_v54, %v16108_v2  ;;  %v4782_v50 = vsub.f32 1.0, %v4781_v11  ;;  %vm2768_vm12 = vcmp.lt.f32.partialorder %v16109_v1, 0.0  ;;  %vm4785_vm11 = vweird.f32 %v12246_v48  ;;  %v7374_v6 = vld [vmem:[%s7582_s24 + $0x178] sm:$0xff]  ;;  %v16118_v54 = vld [vmem:[#allocation319_spill] sm:$0xff] }
 0x62c   : > { %v12333_v52 = vpop.eup %7023  ;;  %vm12337_vm13 = vcmp.eq.f32.partialorder %v4789_v14, 8.507059e+37  ;;  %v4792_v31 = vor.u32 1.1754944e-38, %v4791_v37  ;;  %7027 = vrcp.f32 %v12312_v38  ;;  %6354 = vst [vmem:[%s10440_s17 + $0x190] sm:$0xff] %v6226_v34  ;;  %vm4786_vm14 = vweird.f32 %v12299_v39  ;;  %v16126_v1 = vld [vmem:[#allocation357_spill] sm:$0xff] }
 0x62d   : > { %v5967_v56 = vsel %vm2763_vm7, %v4719_v47, 0.0  ;;  %v4783_v35 = vmul.f32 %v12299_v39, %v4782_v50  ;;  %v4736_v62 = vmul.f32 %v12333_v52, %v12277_v26  ;;  %vm4740_vm15 = vweird.f32 %v12277_v26  ;;  %vm12373_vm3 = vmor %vm4785_vm11, %vm4786_vm14  ;;  %3327 = vmatmul.f32.gmra.mxu1 %v16118_v54  ;;  %v16125_v26 = vld [vmem:[#allocation64_spill] sm:$0xff]  ;;  %v16135_v47 = vld [vmem:[#allocation179_spill] sm:$0xff] }
 0x62e   : > { %v6095_v5 = vmul.f32 %v5967_v56, %v16112_v21  ;;  %v4819_v45 = vand.u32 2147483647, %v12309_v29  ;;  %v3266_v23 = vadd.f32 1e-06, %v12191_v61  ;;  %vm12359_vm1 = vcmp.eq.f32.partialorder %v4744_v4, 8.507059e+37  ;;  %v16119_v4 = vld [vmem:[#allocation314_spill] sm:$0xff]  ;;  %3745 = vmatmul.f32.gmra.mxu0 %v16118_v54 }
 0x62f   : > { %v4784_v25 = vadd.f32 %v12299_v39, %v4783_v35  ;;  %v4737_v41 = vsub.f32 1.0, %v4736_v62  ;;  %v4747_v14 = vor.u32 1.1754944e-38, %v4746_v30  ;;  %vm2765_vm2 = vcmp.lt.f32.partialorder %v16115_v36, 0.0  ;;  %6806 = vmatmul.msk.f32.gmra.mxu3 %vm355_vm0, %v16119_v4  ;;  %v16122_v30 = vld [vmem:[#allocation356_spill] sm:$0xff]  ;;  %v16123_v21 = vld [vmem:[#allocation178_spill] sm:$0xff]  ;;  %6870 = vmatmul.msk.f32.gmra.mxu2 %vm355_vm0, %v16119_v4 }
 0x630   : > { %v12365_v37 = vpop.eup %7025  ;;  %v6223_v61 = vsub.f32 %v7374_v6, %v6095_v5  ;;  %vm4815_vm4 = vweird.f32 %v12309_v29  ;;  %v4821_v10 = vand.u32 2147483648, %v12309_v29  ;;  %v12380_v11 = vadd.f32 %v12220_v15, %v3266_v23  ;;  %v12393_v15 = vpop.f32.mrf.mxu3 }
 0x631   : > { %v4788_v48 = vsel %vm12373_vm3, %v12299_v39, %v4784_v25  ;;  %v4738_v33 = vmul.f32 %v12333_v52, %v4737_v41  ;;  %vm4741_vm5 = vweird.f32 %v12333_v52  ;;  %v4811_v34 = vmul.f32 %v12365_v37, %v12309_v29  ;;  %v16124_v41 = vld [vmem:[#allocation112_spill] sm:$0xff] }
 0x632   : > { %vm4770_vm6 = vweird.f32 %v12312_v38  ;;  %v12397_v2 = vpop.eup %7027  ;;  %6351 = vst.msk [vmem:[%s10440_s17 + $0x178] sm:$0xff] %vm355_vm0, %v6223_v61  ;;  %v4793_v39 = vsel %vm12337_vm13, %v4792_v31, %v4788_v48  ;;  %vm12403_vm7 = vcmp.eq.f32.partialorder %v4819_v45, 8.507059e+37  ;;  %v3678_v50 = vadd.f32 1e-06, %v12183_v53  ;;  %vm4742_vm9 = vmor %vm4740_vm15, %vm4741_vm5  ;;  %v12438_v48 = vpop.f32.mrf.mxu0 }
 0x633   : > { %7029 = vrcp.f32 %v12380_v11  ;;  %v4794_v56 = vmul.f32 %v4793_v39, %v16122_v30  ;;  %v4739_v35 = vadd.f32 %v12333_v52, %v4738_v33  ;;  %v4812_v60 = vsub.f32 1.0, %v4811_v34  ;;  %v12457_v30 = vpop.f32.mrf.mxu1 }
 0x634   : > { %v4766_v62 = vmul.f32 %v12397_v2, %v12312_v38  ;;  %vm2770_vm8 = vcmp.lt.f32.partialorder %v16123_v21, 0.0  ;;  %vm4816_vm10 = vweird.f32 %v12365_v37  ;;  %v4822_v53 = vor.u32 1.1754944e-38, %v4821_v10 }
 0x635   : > { %v4774_v43 = vand.u32 2147483647, %v12312_v38  ;;  %v12421_v31 = vadd.f32 %v12204_v40, %v3678_v50  ;;  %v5972_v5 = vsel %vm2768_vm12, %v4794_v56, 0.0  ;;  %v4743_v45 = vsel %vm4742_vm9, %v12333_v52, %v4739_v35  ;;  %vm12447_vm12 = vmor %vm4815_vm4, %vm4816_vm10  ;;  %v16131_v56 = vld [vmem:[#allocation320_spill] sm:$0xff]  ;;  %v16132_v35 = vld [vmem:[#allocation315_spill] sm:$0xff] }
 0x636   : > { %v4813_v23 = vmul.f32 %v12365_v37, %v4812_v60  ;;  %v4767_v25 = vsub.f32 1.0, %v4766_v62  ;;  %vm2767_vm11 = vcmp.lt.f32.partialorder %v16124_v41, 0.0  ;;  %v6100_v6 = vmul.f32 %v5972_v5, %v16125_v26  ;;  %3330 = vmatmul.f32.gmra.mxu1 %v16131_v56  ;;  %v16133_v5 = vld [vmem:[#allocation60_spill] sm:$0xff]  ;;  %3748 = vmatmul.f32.gmra.mxu0 %v16131_v56  ;;  %v16153_v56 = vld [vmem:[#allocation321_spill] sm:$0xff] }
 0x637   : > { %v4748_v61 = vsel %vm12359_vm1, %v4747_v14, %v4743_v45  ;;  %vm4771_vm13 = vweird.f32 %v12397_v2  ;;  %v4776_v40 = vand.u32 2147483648, %v12312_v38  ;;  %7031 = vrcp.f32 %v12421_v31  ;;  %6807 = vmatmul.msk.f32.gmra.mxu3 %vm355_vm0, %v16132_v35  ;;  %6871 = vmatmul.msk.f32.gmra.mxu2 %vm355_vm0, %v16132_v35 }
 0x638   : > { %v4749_v12 = vmul.f32 %v4748_v61, %v16126_v1  ;;  %v4814_v52 = vadd.f32 %v12365_v37, %v4813_v23  ;;  %v4768_v10 = vmul.f32 %v12397_v2, %v4767_v25  ;;  %v6228_v14 = vsub.f32 %v7375_v42, %v6100_v6  ;;  %vm4772_vm15 = vmor %vm4770_vm6, %vm4771_vm13  ;;  %v16134_v25 = vld [vmem:[#allocation359_spill] sm:$0xff]  ;;  %v12486_v61 = vpop.f32.mrf.mxu3 }
 0x639   : > { %v12440_v33 = vpop.eup %7029  ;;  %vm12451_vm14 = vcmp.eq.f32.partialorder %v4774_v43, 8.507059e+37  ;;  %v4849_v39 = vand.u32 2147483647, %v12380_v11  ;;  %v3269_v50 = vadd.f32 1e-06, %v12279_v22  ;;  %v12470_v43 = vpop.f32.mrf.mxu2  ;;  %v4851_v23 = vand.u32 2147483648, %v12380_v11 }
 0x63a   : > { %v5969_v29 = vsel %vm2765_vm2, %v4749_v12, 0.0  ;;  %v4818_v60 = vsel %vm12447_vm12, %v12365_v37, %v4814_v52  ;;  %v4769_v62 = vadd.f32 %v12397_v2, %v4768_v10  ;;  %v4841_v22 = vmul.f32 %v12440_v33, %v12380_v11  ;;  %6356 = vst [vmem:[%s10440_s17 + $0x1a0] sm:$0xff] %v6228_v14  ;;  %v16138_v10 = vld [vmem:[#allocation358_spill] sm:$0xff] }
 0x63b   : > { %v6097_v45 = vmul.f32 %v5969_v29, %v16133_v5  ;;  %v4823_v36 = vsel %vm12403_vm7, %v4822_v53, %v4818_v60  ;;  %v4777_v37 = vor.u32 1.1754944e-38, %v4776_v40  ;;  %vm4845_vm1 = vweird.f32 %v12380_v11  ;;  %v7376_v53 = vld [vmem:[%s7582_s24 + $0x188] sm:$0xff] }
 0x63c   : > { %v4824_v26 = vmul.f32 %v4823_v36, %v16134_v25  ;;  %v4773_v6 = vsel %vm4772_vm15, %v12397_v2, %v4769_v62  ;;  %v4842_v19 = vsub.f32 1.0, %v4841_v22  ;;  %vm2772_vm2 = vcmp.lt.f32.partialorder %v16135_v47, 0.0  ;;  %v7377_v62 = vld [vmem:[%s7582_s24 + $0x1b0] sm:$0xff]  ;;  %v16140_v5 = vld [vmem:[#allocation63_spill] sm:$0xff]  ;;  %v7379_v36 = vld [vmem:[%s7582_s24 + $0x1c0] sm:$0xff] }
 0x63d   : > { %v6225_v1 = vsub.f32 %v7376_v53, %v6097_v45  ;;  %v4778_v38 = vsel %vm12451_vm14, %v4777_v37, %v4773_v6  ;;  %vm12492_vm3 = vcmp.eq.f32.partialorder %v4849_v39, 8.507059e+37  ;;  %v12497_v12 = vadd.f32 %v12297_v27, %v3269_v50  ;;  %v7032_v2 = vpop.eup %7031  ;;  %v16143_v37 = vld [vmem:[#allocation150_spill] sm:$0xff]  ;;  %v12535_v6 = vpop.f32.mrf.mxu0 }
 0x63e   : > { %v5974_v52 = vsel %vm2770_vm8, %v4824_v26, 0.0  ;;  %v4779_v42 = vmul.f32 %v4778_v38, %v16138_v10  ;;  %v4843_v14 = vmul.f32 %v12440_v33, %v4842_v19  ;;  %vm4846_vm4 = vweird.f32 %v12440_v33  ;;  %3333 = vmatmul.f32.gmra.mxu1 %v16143_v37  ;;  %v7378_v19 = vld [vmem:[%s7582_s24 + $0x198] sm:$0xff]  ;;  %3751 = vmatmul.f32.gmra.mxu0 %v16143_v37 }
 0x63f   : > { %6353 = vst.msk [vmem:[%s10440_s17 + $0x188] sm:$0xff] %vm355_vm0, %v6225_v1  ;;  %v6102_v34 = vmul.f32 %v5974_v52, %v16139_v49  ;;  %v4852_v39 = vor.u32 1.1754944e-38, %v4851_v23  ;;  %v4796_v29 = vmul.f32 %v7032_v2, %v12421_v31  ;;  %7033 = vrcp.f32 %v12497_v12  ;;  %vm12519_vm5 = vmor %vm4845_vm1, %vm4846_vm4  ;;  %v16144_v23 = vld [vmem:[#allocation318_spill] sm:$0xff]  ;;  %v12544_v52 = vpop.f32.mrf.mxu1 }
 0x640   : > { %v5971_v27 = vsel %vm2767_vm11, %v4779_v42, 0.0  ;;  %v4844_v21 = vadd.f32 %v12440_v33, %v4843_v14  ;;  %v4804_v50 = vand.u32 2147483647, %v12421_v31  ;;  %v3681_v60 = vadd.f32 1e-06, %v12269_v51  ;;  %6808 = vmatmul.msk.f32.gmra.mxu3 %vm355_vm0, %v16144_v23  ;;  %v16145_v51 = vld [vmem:[#allocation115_spill] sm:$0xff]  ;;  %6872 = vmatmul.msk.f32.gmra.mxu2 %vm355_vm0, %v16144_v23 }
 0x641   : > { %v6230_v22 = vsub.f32 %v7377_v62, %v6102_v34  ;;  %v6099_v45 = vmul.f32 %v5971_v27, %v16140_v5  ;;  %v4797_v54 = vsub.f32 1.0, %v4796_v29  ;;  %v4806_v41 = vand.u32 2147483648, %v12421_v31  ;;  %v12552_v4 = vpop.f32.mrf.mxu2  ;;  %v12567_v27 = vpop.f32.mrf.mxu3 }
 0x642   : > { %vm2769_vm6 = vcmp.lt.f32.partialorder %v16145_v51, 0.0  ;;  %v4848_v25 = vsel %vm12519_vm5, %v12440_v33, %v4844_v21  ;;  %vm4801_vm7 = vweird.f32 %v7032_v2  ;;  %v12532_v11 = vadd.f32 %v12287_v44, %v3681_v60  ;;  %v16146_v44 = vld [vmem:[#allocation242_spill] sm:$0xff] }
 0x643   : > { %v3272_v26 = vadd.f32 1e-06, %v12355_v16  ;;  %6358 = vst [vmem:[%s10440_s17 + $0x1b0] sm:$0xff] %v6230_v22  ;;  %v6227_v53 = vsub.f32 %v7378_v19, %v6099_v45  ;;  %v4853_v1 = vsel %vm12492_vm3, %v4852_v39, %v4848_v25  ;;  %v4798_v38 = vmul.f32 %v7032_v2, %v4797_v54  ;;  %v16147_v16 = vld [vmem:[#allocation362_spill] sm:$0xff]  ;;  %v16150_v45 = vld [vmem:[#allocation181_spill] sm:$0xff] }
 0x644   : > { %v3684_v33 = vadd.f32 1e-06, %v12349_v13  ;;  %v12547_v10 = vmul.f32 0.99, %v16146_v44  ;;  %v4854_v42 = vmul.f32 %v4853_v1, %v16147_v16  ;;  %vm4800_vm8 = vweird.f32 %v12421_v31  ;;  %v16148_v21 = vld [vmem:[#allocation70_spill] sm:$0xff] }
 0x645   : > { %7035 = vrcp.f32 %v12532_v11  ;;  %v7034_v14 = vpop.eup %7033  ;;  %6355 = vst.msk [vmem:[%s10440_s17 + $0x198] sm:$0xff] %vm355_vm0, %v6227_v53  ;;  %v4799_v40 = vadd.f32 %v7032_v2, %v4798_v38  ;;  %vm4805_vm9 = vcmp.eq.f32.partialorder %v4804_v50, 8.507059e+37  ;;  %v12557_v13 = vadd.f32 %v12393_v15, %v3272_v26  ;;  %vm4802_vm10 = vmor %vm4800_vm8, %vm4801_vm7  ;;  %v16152_v26 = vld [vmem:[#allocation155_spill] sm:$0xff]  ;;  %v12603_v35 = vpop.f32.mrf.mxu0 }
 0x646   : > { %v12560_v49 = vadd.f32 %v12363_v63, %v3684_v33  ;;  %v5976_v34 = vsel %vm2772_vm2, %v4854_v42, 0.0  ;;  %v4807_v31 = vor.u32 1.1754944e-38, %v4806_v41  ;;  %v4871_v39 = vmul.f32 %v7034_v14, %v12497_v12  ;;  %v16149_v63 = vld [vmem:[#allocation243_spill] sm:$0xff]  ;;  %v16151_v41 = vld [vmem:[#allocation360_spill] sm:$0xff]  ;;  %3336 = vmatmul.f32.gmra.mxu1 %v16152_v26  ;;  %v16156_v42 = vld [vmem:[#allocation66_spill] sm:$0xff]  ;;  %3754 = vmatmul.f32.gmra.mxu0 %v16152_v26 }
 0x647   : > { %v4879_v29 = vand.u32 2147483647, %v12497_v12  ;;  %v6104_v50 = vmul.f32 %v5976_v34, %v16148_v21  ;;  %v4803_v15 = vsel %vm4802_vm10, %v7032_v2, %v4799_v40  ;;  %v4881_v60 = vand.u32 2147483648, %v12497_v12  ;;  %v16173_v26 = vld [vmem:[#allocation327_spill] sm:$0xff] }
 0x648   : > { %7037 = vrcp.f32 %v12557_v13  ;;  %v12574_v47 = vmul.f32 0.99, %v16149_v63  ;;  %v4808_v62 = vsel %vm4805_vm9, %v4807_v31, %v4803_v15  ;;  %v4872_v22 = vsub.f32 1.0, %v4871_v39  ;;  %6809 = vmatmul.msk.f32.gmra.mxu3 %vm355_vm0, %v16153_v56  ;;  %v12611_v15 = vpop.f32.mrf.mxu1  ;;  %6873 = vmatmul.msk.f32.gmra.mxu2 %vm355_vm0, %v16153_v56 }
 0x649   : > { %v4834_v5 = vand.u32 2147483647, %v12532_v11  ;;  %vm2774_vm11 = vcmp.lt.f32.partialorder %v16150_v45, 0.0  ;;  %v6232_v54 = vsub.f32 %v7379_v36, %v6104_v50  ;;  %v4809_v2 = vmul.f32 %v4808_v62, %v16151_v41  ;;  %v7380_v62 = vld [vmem:[%s7582_s24 + $0x1a8] sm:$0xff]  ;;  %v12634_v1 = vpop.f32.mrf.mxu3 }
 0x64a   : > { %v4836_v25 = vand.u32 2147483648, %v12532_v11  ;;  %7039 = vrcp.f32 %v12560_v49  ;;  %v4873_v53 = vmul.f32 %v7034_v14, %v4872_v22  ;;  %vm4875_vm13 = vweird.f32 %v12497_v12 }
 0x64b   : > { %v7036_v19 = vpop.eup %7035  ;;  %vm4876_vm12 = vweird.f32 %v7034_v14  ;;  %vm12586_vm14 = vcmp.eq.f32.partialorder %v4879_v29, 8.507059e+37  ;;  %6360 = vst [vmem:[%s10440_s17 + $0x1c0] sm:$0xff] %v6232_v54  ;;  %v5973_v38 = vsel %vm2769_vm6, %v4809_v2, 0.0  ;;  %v4882_v33 = vor.u32 1.1754944e-38, %v4881_v60  ;;  %v16159_v60 = vld [vmem:[#allocation180_spill] sm:$0xff]  ;;  %v12618_v54 = vpop.f32.mrf.mxu2 }
 0x64c   : > { %v4826_v16 = vmul.f32 %v7036_v19, %v12532_v11  ;;  %vm4830_vm15 = vweird.f32 %v12532_v11  ;;  %v6101_v40 = vmul.f32 %v5973_v38, %v16156_v42  ;;  %v4874_v34 = vadd.f32 %v7034_v14, %v4873_v53  ;;  %vm4877_vm2 = vmor %vm4875_vm13, %vm4876_vm12 }
 0x64d   : > { %vm12598_vm1 = vcmp.eq.f32.partialorder %v4834_v5, 8.507059e+37  ;;  %v4909_v39 = vand.u32 2147483647, %v12557_v13  ;;  %v4837_v21 = vor.u32 1.1754944e-38, %v4836_v25  ;;  %vm4905_vm3 = vweird.f32 %v12557_v13 }
 0x64e   : > { %v12605_v29 = vpop.eup %7037  ;;  %v4827_v51 = vsub.f32 1.0, %v4826_v16  ;;  %v3275_v50 = vadd.f32 1e-06, %v12457_v30  ;;  %vm2771_vm4 = vcmp.lt.f32.partialorder %v16159_v60, 0.0  ;;  %v6229_v22 = vsub.f32 %v7380_v62, %v6101_v40  ;;  %v16166_v62 = vld [vmem:[#allocation182_spill] sm:$0xff] }
 0x64f   : > { %v4878_v5 = vsel %vm4877_vm2, %v7034_v14, %v4874_v34  ;;  %v4901_v36 = vmul.f32 %v12605_v29, %v12557_v13  ;;  %v4911_v12 = vand.u32 2147483648, %v12557_v13  ;;  %vm4831_vm5 = vweird.f32 %v7036_v19  ;;  %v16160_v14 = vld [vmem:[#allocation363_spill] sm:$0xff]  ;;  %v16164_v34 = vld [vmem:[#allocation56_spill] sm:$0xff] }
 0x650   : > { %v7040_v41 = vpop.eup %7039  ;;  %v4883_v2 = vsel %vm12586_vm14, %v4882_v33, %v4878_v5  ;;  %v4828_v25 = vmul.f32 %v7036_v19, %v4827_v51  ;;  %v12623_v30 = vadd.f32 %v12486_v61, %v3275_v50  ;;  %6357 = vst.msk [vmem:[%s10440_s17 + $0x1a8] sm:$0xff] %vm355_vm0, %v6229_v22  ;;  %vm12629_vm6 = vcmp.eq.f32.partialorder %v4909_v39, 8.507059e+37  ;;  %v16163_v33 = vld [vmem:[#allocation183_spill] sm:$0xff]  ;;  %3339 = vmatmul.f32.gmra.mxu1 %v16164_v34  ;;  %vm4832_vm8 = vmor %vm4830_vm15, %vm4831_vm5  ;;  %v16167_v22 = vld [vmem:[#allocation73_spill] sm:$0xff] }
 0x651   : > { %v4884_v53 = vmul.f32 %v4883_v2, %v16160_v14  ;;  %v4902_v38 = vsub.f32 1.0, %v4901_v36  ;;  %v4856_v42 = vmul.f32 %v7040_v41, %v12560_v49  ;;  %vm2776_vm7 = vcmp.lt.f32.partialorder %v16163_v33, 0.0  ;;  %v16165_v51 = vld [vmem:[#allocation151_spill] sm:$0xff]  ;;  %3757 = vmatmul.f32.gmra.mxu0 %v16164_v34 }
 0x652   : > { %v4829_v40 = vadd.f32 %v7036_v19, %v4828_v25  ;;  %v4864_v61 = vand.u32 2147483647, %v12560_v49  ;;  %v3687_v37 = vadd.f32 1e-06, %v12438_v48  ;;  %7041 = vrcp.f32 %v12623_v30  ;;  %6810 = vmatmul.msk.f32.gmra.mxu3 %vm355_vm0, %v16165_v51  ;;  %6874 = vmatmul.msk.f32.gmra.mxu2 %vm355_vm0, %v16165_v51 }
 0x653   : > { %v5978_v39 = vsel %vm2774_vm11, %v4884_v53, 0.0  ;;  %v4903_v50 = vmul.f32 %v12605_v29, %v4902_v38  ;;  %vm4906_vm9 = vweird.f32 %v12605_v29  ;;  %v4857_v48 = vsub.f32 1.0, %v4856_v42  ;;  %v7381_v53 = vld [vmem:[%s7582_s24 + $0x1d0] sm:$0xff]  ;;  %v12692_v16 = vpop.f32.mrf.mxu2 }
 0x654   : > { %vm2773_vm10 = vcmp.lt.f32.partialorder %v16166_v62, 0.0  ;;  %v6106_v5 = vmul.f32 %v5978_v39, %v16167_v22  ;;  %v4833_v36 = vsel %vm4832_vm8, %v7036_v19, %v4829_v40  ;;  %v4866_v45 = vand.u32 2147483648, %v12560_v49  ;;  %v16168_v38 = vld [vmem:[#allocation364_spill] sm:$0xff]  ;;  %vm4907_vm13 = vmor %vm4905_vm3, %vm4906_vm9  ;;  %v12674_v40 = vpop.f32.mrf.mxu0  ;;  %v16171_v39 = vld [vmem:[#allocation69_spill] sm:$0xff] }
 0x655   : > { %v12656_v2 = vadd.f32 %v12470_v43, %v3687_v37  ;;  %v4838_v11 = vsel %vm12598_vm1, %v4837_v21, %v4833_v36  ;;  %v4904_v25 = vadd.f32 %v12605_v29, %v4903_v50  ;;  %v4858_v14 = vmul.f32 %v7040_v41, %v4857_v48  ;;  %v16172_v48 = vld [vmem:[#allocation366_spill] sm:$0xff] }
 0x656   : > { %vm4861_vm11 = vweird.f32 %v7040_v41  ;;  %v6234_v23 = vsub.f32 %v7381_v53, %v6106_v5  ;;  %v4839_v42 = vmul.f32 %v4838_v11, %v16168_v38  ;;  %v4912_v19 = vor.u32 1.1754944e-38, %v4911_v12  ;;  %v16175_v38 = vld [vmem:[#allocation367_spill] sm:$0xff] }
 0x657   : > { %7043 = vrcp.f32 %v12656_v2  ;;  %v4908_v43 = vsel %vm4907_vm13, %v12605_v29, %v4904_v25  ;;  %v4859_v31 = vadd.f32 %v7040_v41, %v4858_v14  ;;  %vm4860_vm12 = vweird.f32 %v12560_v49  ;;  %v16174_v14 = vld [vmem:[#allocation152_spill] sm:$0xff] }
 0x658   : > { %vm12670_vm14 = vcmp.eq.f32.partialorder %v4864_v61, 8.507059e+37  ;;  %v12676_v37 = vpop.eup %7041  ;;  %6362 = vst [vmem:[%s10440_s17 + $0x1d0] sm:$0xff] %v6234_v23  ;;  %v5975_v13 = vsel %vm2771_vm4, %v4839_v42, 0.0  ;;  %v4913_v12 = vsel %vm12629_vm6, %v4912_v19, %v4908_v43  ;;  %vm4862_vm15 = vmor %vm4860_vm12, %vm4861_vm11  ;;  %v4867_v29 = vor.u32 1.1754944e-38, %v4866_v45  ;;  %v12685_v61 = vpop.f32.mrf.mxu1  ;;  %3342 = vmatmul.f32.gmra.mxu1 %v16173_v26 }
 0x659   : > { %v4939_v49 = vand.u32 2147483647, %v12623_v30  ;;  %v6103_v50 = vmul.f32 %v5975_v13, %v16171_v39  ;;  %v4914_v22 = vmul.f32 %v4913_v12, %v16172_v48  ;;  %v4863_v5 = vsel %vm4862_vm15, %v7040_v41, %v4859_v31  ;;  %v7382_v41 = vld [vmem:[%s7582_s24 + $0x1b8] sm:$0xff]  ;;  %v12706_v43 = vpop.f32.mrf.mxu3  ;;  %v16177_v31 = vld [vmem:[#allocation76_spill] sm:$0xff]  ;;  %v7383_v39 = vld [vmem:[%s7582_s24 + $0x1e0] sm:$0xff]  ;;  %3760 = vmatmul.f32.gmra.mxu0 %v16173_v26 }
 0x65a   : > { %v4931_v60 = vmul.f32 %v12676_v37, %v12623_v30  ;;  %v4868_v36 = vsel %vm12670_vm14, %v4867_v29, %v4863_v5  ;;  %v4941_v45 = vand.u32 2147483648, %v12623_v30  ;;  %v3278_v11 = vadd.f32 1e-06, %v12544_v52  ;;  %6811 = vmatmul.msk.f32.gmra.mxu3 %vm355_vm0, %v16174_v14  ;;  %v16176_v52 = vld [vmem:[#allocation186_spill] sm:$0xff]  ;;  %6875 = vmatmul.msk.f32.gmra.mxu2 %vm355_vm0, %v16174_v14 }
 0x65b   : > { %v3690_v25 = vadd.f32 1e-06, %v12535_v6  ;;  %v6231_v53 = vsub.f32 %v7382_v41, %v6103_v50  ;;  %v5980_v23 = vsel %vm2776_vm7, %v4914_v22, 0.0  ;;  %v4869_v42 = vmul.f32 %v4868_v36, %v16175_v38  ;;  %v16178_v50 = vld [vmem:[#allocation72_spill] sm:$0xff]  ;;  %v16181_v36 = vld [vmem:[#allocation185_spill] sm:$0xff]  ;;  %v16196_v26 = vld [vmem:[#allocation350_spill] sm:$0xff] }
 0x65c   : > { %v4932_v19 = vsub.f32 1.0, %v4931_v60  ;;  %vm2778_vm1 = vcmp.lt.f32.partialorder %v16176_v52, 0.0  ;;  %v6108_v21 = vmul.f32 %v5980_v23, %v16177_v31  ;;  %vm4935_vm2 = vweird.f32 %v12623_v30  ;;  %v12753_v38 = vpop.f32.mrf.mxu0  ;;  %v16186_v31 = vld [vmem:[#allocation370_spill] sm:$0xff] }
 0x65d   : > { %v12710_v6 = vpop.eup %7043  ;;  %v12716_v33 = vadd.f32 %v12567_v27, %v3278_v11  ;;  %v12719_v13 = vadd.f32 %v12552_v4, %v3690_v25  ;;  %6359 = vst.msk [vmem:[%s10440_s17 + $0x1b8] sm:$0xff] %vm355_vm0, %v6231_v53  ;;  %v5977_v56 = vsel %vm2773_vm10, %v4869_v42, 0.0  ;;  %vm4936_vm3 = vweird.f32 %v12676_v37  ;;  %v7384_v11 = vld [vmem:[%s7582_s24 + $0x1c8] sm:$0xff]  ;;  %v16184_v42 = vld [vmem:[#allocation342_spill] sm:$0xff] }
 0x65e   : > { %v4933_v12 = vmul.f32 %v12676_v37, %v4932_v19  ;;  %v4886_v29 = vmul.f32 %v12710_v6, %v12656_v2  ;;  %v6236_v27 = vsub.f32 %v7383_v39, %v6108_v21  ;;  %v6105_v48 = vmul.f32 %v5977_v56, %v16178_v50  ;;  %vm4937_vm6 = vmor %vm4935_vm2, %vm4936_vm3  ;;  %v16185_v19 = vld [vmem:[#allocation47_spill] sm:$0xff] }
 0x65f   : > { %v4894_v4 = vand.u32 2147483647, %v12656_v2  ;;  %7045 = vrcp.f32 %v12716_v33  ;;  %vm12734_vm4 = vcmp.eq.f32.partialorder %v4939_v49, 8.507059e+37  ;;  %v4942_v5 = vor.u32 1.1754944e-38, %v4941_v45 }
 0x660   : > { %v4934_v22 = vadd.f32 %v12676_v37, %v4933_v12  ;;  %v4887_v60 = vsub.f32 1.0, %v4886_v29  ;;  %vm2775_vm5 = vcmp.lt.f32.partialorder %v16181_v36, 0.0  ;;  %6364 = vst [vmem:[%s10440_s17 + $0x1e0] sm:$0xff] %v6236_v27  ;;  %v6233_v25 = vsub.f32 %v7384_v11, %v6105_v48  ;;  %3345 = vmatmul.f32.gmra.mxu1 %v16184_v42  ;;  %v12774_v29 = vpop.f32.mrf.mxu2  ;;  %v16197_v36 = vld [vmem:[#allocation159_spill] sm:$0xff] }
 0x661   : > { %v4896_v41 = vand.u32 2147483648, %v12656_v2  ;;  %7047 = vrcp.f32 %v12719_v13  ;;  %v3281_v49 = vadd.f32 1e-06, %v12611_v15  ;;  %vm4891_vm7 = vweird.f32 %v12710_v6  ;;  %3763 = vmatmul.f32.gmra.mxu0 %v16184_v42  ;;  %v16207_v42 = vld [vmem:[#allocation361_spill] sm:$0xff] }
 0x662   : > { %v4938_v45 = vsel %vm4937_vm6, %v12676_v37, %v4934_v22  ;;  %v4888_v53 = vmul.f32 %v12710_v6, %v4887_v60  ;;  %v4969_v23 = vand.u32 2147483647, %v12716_v33  ;;  %6361 = vst.msk [vmem:[%s10440_s17 + $0x1c8] sm:$0xff] %vm355_vm0, %v6233_v25  ;;  %vm4890_vm8 = vweird.f32 %v12656_v2  ;;  %v3286_v37 = vpop.f32.mrf.mxu1  ;;  %6812 = vmatmul.msk.f32.gmra.mxu3 %vm355_vm0, %v16185_v19  ;;  %v12797_v22 = vpop.f32.mrf.mxu3  ;;  %6876 = vmatmul.msk.f32.gmra.mxu2 %vm355_vm0, %v16185_v19 }
 0x663   : > { %v4943_v30 = vsel %vm12734_vm4, %v4942_v5, %v4938_v45  ;;  %vm12760_vm9 = vcmp.eq.f32.partialorder %v4894_v4, 8.507059e+37  ;;  %v3693_v34 = vadd.f32 1e-06, %v12603_v35  ;;  %v4971_v12 = vand.u32 2147483648, %v12716_v33  ;;  %vm4892_vm10 = vmor %vm4890_vm8, %vm4891_vm7  ;;  %v16191_v45 = vld [vmem:[#allocation189_spill] sm:$0xff] }
 0x664   : > { %v4944_v21 = vmul.f32 %v4943_v30, %v16186_v31  ;;  %v4889_v56 = vadd.f32 %v12710_v6, %v4888_v53  ;;  %v12772_v2 = vadd.f32 %v12634_v1, %v3281_v49  ;;  %v4897_v39 = vor.u32 1.1754944e-38, %v4896_v41  ;;  %v7385_v53 = vld [vmem:[%s7582_s24 + $0x1f0] sm:$0xff] }
 0x665   : > { %v12778_v35 = vpop.eup %7045  ;;  %vm4965_vm11 = vweird.f32 %v12716_v33  ;;  %v4924_v27 = vand.u32 2147483647, %v12719_v13  ;;  %v12785_v50 = vadd.f32 %v12618_v54, %v3693_v34  ;;  %vm12792_vm13 = vcmp.eq.f32.partialorder %v4969_v23, 8.507059e+37  ;;  %v16189_v54 = vld [vmem:[#allocation79_spill] sm:$0xff] }
 0x666   : > { %v5982_v1 = vsel %vm2778_vm1, %v4944_v21, 0.0  ;;  %v4893_v48 = vsel %vm4892_vm10, %v12710_v6, %v4889_v56  ;;  %v4961_v51 = vmul.f32 %v12778_v35, %v12716_v33  ;;  %vm4920_vm12 = vweird.f32 %v12719_v13  ;;  %v16190_v6 = vld [vmem:[#allocation368_spill] sm:$0xff] }
 0x667   : > { %v7048_v62 = vpop.eup %7047  ;;  %v6110_v5 = vmul.f32 %v5982_v1, %v16189_v54  ;;  %v4898_v52 = vsel %vm12760_vm9, %v4897_v39, %v4893_v48  ;;  %v4926_v60 = vand.u32 2147483648, %v12719_v13  ;;  %7049 = vrcp.f32 %v12772_v2  ;;  %v16194_v56 = vld [vmem:[#allocation188_spill] sm:$0xff] }
 0x668   : > { %v4899_v11 = vmul.f32 %v4898_v52, %v16190_v6  ;;  %v4962_v25 = vsub.f32 1.0, %v4961_v51  ;;  %v4972_v41 = vor.u32 1.1754944e-38, %v4971_v12  ;;  %v4916_v49 = vmul.f32 %v7048_v62, %v12719_v13  ;;  %v16195_v12 = vld [vmem:[#allocation75_spill] sm:$0xff]  ;;  %3348 = vmatmul.f32.gmra.mxu1 %v16196_v26 }
 0x669   : > { %vm2780_vm14 = vcmp.lt.f32.partialorder %v16191_v45, 0.0  ;;  %v6238_v23 = vsub.f32 %v7385_v53, %v6110_v5  ;;  %vm12808_vm15 = vcmp.eq.f32.partialorder %v4924_v27, 8.507059e+37  ;;  %7051 = vrcp.f32 %v12785_v50  ;;  %v12832_v5 = vpop.f32.mrf.mxu0  ;;  %v16208_v45 = vld [vmem:[#allocation328_spill] sm:$0xff]  ;;  %3766 = vmatmul.f32.gmra.mxu0 %v16196_v26  ;;  %v16216_v26 = vld [vmem:[#allocation250_spill] sm:$0xff] }
 0x66a   : > { %v3284_v15 = vadd.f32 1e-06, %v12685_v61  ;;  %v5979_v34 = vsel %vm2775_vm5, %v4899_v11, 0.0  ;;  %v4963_v31 = vmul.f32 %v12778_v35, %v4962_v25  ;;  %vm4966_vm1 = vweird.f32 %v12778_v35  ;;  %6813 = vmatmul.msk.f32.gmra.mxu3 %vm355_vm0, %v16197_v36  ;;  %v12846_v6 = vpop.f32.mrf.mxu1  ;;  %v12871_v4 = vpop.f32.mrf.mxu3  ;;  %6877 = vmatmul.msk.f32.gmra.mxu2 %vm355_vm0, %v16197_v36 }
 0x66b   : > { %v4917_v21 = vsub.f32 1.0, %v4916_v49  ;;  %vm2777_vm2 = vcmp.lt.f32.partialorder %v16194_v56, 0.0  ;;  %6366 = vst [vmem:[%s10440_s17 + $0x1f0] sm:$0xff] %v6238_v23  ;;  %v6107_v39 = vmul.f32 %v5979_v34, %v16195_v12  ;;  %v4927_v27 = vor.u32 1.1754944e-38, %v4926_v60  ;;  %vm4967_vm4 = vmor %vm4965_vm11, %vm4966_vm1  ;;  %v12852_v49 = vpop.f32.mrf.mxu2 }
 0x66c   : > { %v3696_v1 = vadd.f32 1e-06, %v12674_v40  ;;  %v12823_v61 = vadd.f32 1e-06, %v3286_v37  ;;  %v4964_v48 = vadd.f32 %v12778_v35, %v4963_v31  ;;  %vm4921_vm3 = vweird.f32 %v7048_v62  ;;  %v7386_v37 = vld [vmem:[%s7582_s24 + $0x1d8] sm:$0xff] }
 0x66d   : > { %v4918_v51 = vmul.f32 %v7048_v62, %v4917_v21  ;;  %v12830_v54 = vadd.f32 %v12706_v43, %v3284_v15  ;;  %v12836_v40 = vpop.eup %7049  ;;  %v6235_v52 = vsub.f32 %v7386_v37, %v6107_v39  ;;  %vm4995_vm5 = vweird.f32 %v12772_v2  ;;  %vm4922_vm7 = vmor %vm4920_vm12, %vm4921_vm3  ;;  %v16198_v15 = vld [vmem:[#allocation371_spill] sm:$0xff]  ;;  %v16204_v37 = vld [vmem:[#allocation82_spill] sm:$0xff] }
 0x66e   : > { %v4999_v43 = vand.u32 2147483647, %v12772_v2  ;;  %v5001_v60 = vand.u32 2147483648, %v12772_v2  ;;  %v4968_v11 = vsel %vm4967_vm4, %v12778_v35, %v4964_v48  ;;  %v4991_v25 = vmul.f32 %v12836_v40, %v12772_v2 }
 0x66f   : > { %v4919_v14 = vadd.f32 %v7048_v62, %v4918_v51  ;;  %vm4950_vm6 = vweird.f32 %v12785_v50  ;;  %v12854_v33 = vpop.eup %7051  ;;  %6363 = vst.msk [vmem:[%s10440_s17 + $0x1d8] sm:$0xff] %vm355_vm0, %v6235_v52  ;;  %v4973_v53 = vsel %vm12792_vm13, %v4972_v41, %v4968_v11  ;;  %v4954_v35 = vand.u32 2147483647, %v12785_v50  ;;  %v16199_v41 = vld [vmem:[#allocation192_spill] sm:$0xff] }
 0x670   : > { %7053 = vrcp.f32 %v12830_v54  ;;  %v12866_v23 = vadd.f32 %v12692_v16, %v3696_v1  ;;  %v4974_v34 = vmul.f32 %v4973_v53, %v16198_v15  ;;  %v4992_v21 = vsub.f32 1.0, %v4991_v25  ;;  %v16202_v1 = vld [vmem:[#allocation372_spill] sm:$0xff]  ;;  %3351 = vmatmul.f32.gmra.mxu1 %v16207_v42 }
 0x671   : > { %v4923_v31 = vsel %vm4922_vm7, %v7048_v62, %v4919_v14  ;;  %v4946_v12 = vmul.f32 %v12854_v33, %v12785_v50  ;;  %vm2782_vm8 = vcmp.lt.f32.partialorder %v16199_v41, 0.0  ;;  %vm4996_vm9 = vweird.f32 %v12836_v40  ;;  %v16217_v41 = vld [vmem:[#allocation343_spill] sm:$0xff]  ;;  %3769 = vmatmul.f32.gmra.mxu0 %v16207_v42 }
 0x672   : > { %v4928_v13 = vsel %vm12808_vm15, %v4927_v27, %v4923_v31  ;;  %vm12877_vm10 = vcmp.eq.f32.partialorder %v4999_v43, 8.507059e+37  ;;  %v4956_v16 = vand.u32 2147483648, %v12785_v50  ;;  %v5984_v62 = vsel %vm2780_vm14, %v4974_v34, 0.0  ;;  %v16203_v27 = vld [vmem:[#allocation191_spill] sm:$0xff]  ;;  %6814 = vmatmul.msk.f32.gmra.mxu3 %vm355_vm0, %v16208_v45  ;;  %v16209_v34 = vld [vmem:[#allocation78_spill] sm:$0xff]  ;;  %vm4997_vm14 = vmor %vm4995_vm5, %vm4996_vm9  ;;  %6878 = vmatmul.msk.f32.gmra.mxu2 %vm355_vm0, %v16208_v45 }
 0x673   : > { %v4929_v48 = vmul.f32 %v4928_v13, %v16202_v1  ;;  %v4993_v51 = vmul.f32 %v12836_v40, %v4992_v21  ;;  %v4947_v30 = vsub.f32 1.0, %v4946_v12  ;;  %vm2779_vm11 = vcmp.lt.f32.partialorder %v16203_v27, 0.0  ;;  %v12918_v1 = vpop.f32.mrf.mxu0  ;;  %v16211_v50 = vld [vmem:[#allocation195_spill] sm:$0xff]  ;;  %v16231_v45 = vld [vmem:[#allocation197_spill] sm:$0xff] }
 0x674   : > { %v6112_v52 = vmul.f32 %v5984_v62, %v16204_v37  ;;  %v5002_v43 = vor.u32 1.1754944e-38, %v5001_v60  ;;  %vm12889_vm13 = vcmp.eq.f32.partialorder %v4954_v35, 8.507059e+37  ;;  %7055 = vrcp.f32 %v12866_v23  ;;  %v7387_v35 = vld [vmem:[%s7582_s24 + $0x200] sm:$0xff] }
 0x675   : > { %v5981_v14 = vsel %vm2777_vm2, %v4929_v48, 0.0  ;;  %v4994_v25 = vadd.f32 %v12836_v40, %v4993_v51  ;;  %v4948_v53 = vmul.f32 %v12854_v33, %v4947_v30  ;;  %vm4951_vm12 = vweird.f32 %v12854_v33  ;;  %v7388_v48 = vld [vmem:[%s7582_s24 + $0x1e8] sm:$0xff] }
 0x676   : > { %v12904_v60 = vpop.eup %7053  ;;  %v6240_v15 = vsub.f32 %v7387_v35, %v6112_v52  ;;  %v6109_v31 = vmul.f32 %v5981_v14, %v16209_v34  ;;  %v5029_v56 = vand.u32 2147483647, %v12830_v54  ;;  %v3699_v21 = vadd.f32 1e-06, %v12753_v38  ;;  %vm4952_vm15 = vmor %vm4950_vm6, %vm4951_vm12  ;;  %v12962_v34 = vpop.f32.mrf.mxu3 }
 0x677   : > { %v4998_v12 = vsel %vm4997_vm14, %v12836_v40, %v4994_v25  ;;  %v4949_v13 = vadd.f32 %v12854_v33, %v4948_v53  ;;  %v4957_v19 = vor.u32 1.1754944e-38, %v4956_v16  ;;  %v5021_v62 = vmul.f32 %v12904_v60, %v12830_v54  ;;  %v12930_v40 = vpop.f32.mrf.mxu1  ;;  %v16210_v16 = vld [vmem:[#allocation373_spill] sm:$0xff]  ;;  %v16214_v53 = vld [vmem:[#allocation374_spill] sm:$0xff] }
 0x678   : > { %6368 = vst [vmem:[%s10440_s17 + $0x200] sm:$0xff] %v6240_v15  ;;  %v6237_v51 = vsub.f32 %v7388_v48, %v6109_v31  ;;  %v5003_v2 = vsel %vm12877_vm10, %v5002_v43, %v4998_v12  ;;  %vm5025_vm1 = vweird.f32 %v12830_v54  ;;  %v5031_v38 = vand.u32 2147483648, %v12830_v54  ;;  %v12938_v43 = vpop.f32.mrf.mxu2  ;;  %v16215_v31 = vld [vmem:[#allocation85_spill] sm:$0xff]  ;;  %3354 = vmatmul.f32.gmra.mxu1 %v16216_v26  ;;  %v16218_v48 = vld [vmem:[#allocation194_spill] sm:$0xff] }
 0x679   : > { %v5004_v30 = vmul.f32 %v5003_v2, %v16210_v16  ;;  %v4953_v37 = vsel %vm4952_vm15, %v12854_v33, %v4949_v13  ;;  %v5022_v52 = vsub.f32 1.0, %v5021_v62  ;;  %v12936_v39 = vadd.f32 %v12797_v22, %v12823_v61  ;;  %3772 = vmatmul.f32.gmra.mxu0 %v16216_v26 }
 0x67a   : > { %v12940_v14 = vpop.eup %7055  ;;  %vm2784_vm2 = vcmp.lt.f32.partialorder %v16211_v50, 0.0  ;;  %6365 = vst.msk [vmem:[%s10440_s17 + $0x1e8] sm:$0xff] %vm355_vm0, %v6237_v51  ;;  %v4958_v25 = vsel %vm12889_vm13, %v4957_v19, %v4953_v37  ;;  %vm5026_vm3 = vweird.f32 %v12904_v60  ;;  %vm12948_vm4 = vcmp.eq.f32.partialorder %v5029_v56, 8.507059e+37  ;;  %6815 = vmatmul.msk.f32.gmra.mxu3 %vm355_vm0, %v16217_v41  ;;  %v7389_v51 = vld [vmem:[%s7582_s24 + $0x210] sm:$0xff]  ;;  %6879 = vmatmul.msk.f32.gmra.mxu2 %vm355_vm0, %v16217_v41 }
 0x67b   : > { %v12953_v22 = vadd.f32 %v12774_v29, %v3699_v21  ;;  %v5986_v61 = vsel %vm2782_vm8, %v5004_v30, 0.0  ;;  %v4959_v35 = vmul.f32 %v4958_v25, %v16214_v53  ;;  %v5023_v11 = vmul.f32 %v12904_v60, %v5022_v52  ;;  %vm5027_vm6 = vmor %vm5025_vm1, %vm5026_vm3  ;;  %v7390_v52 = vld [vmem:[%s7582_s24 + $0x1f8] sm:$0xff] }
 0x67c   : > { %v4976_v15 = vmul.f32 %v12940_v14, %v12866_v23  ;;  %v6114_v56 = vmul.f32 %v5986_v61, %v16215_v31  ;;  %v5032_v12 = vor.u32 1.1754944e-38, %v5031_v38  ;;  %v4984_v29 = vand.u32 2147483647, %v12866_v23  ;;  %v16219_v38 = vld [vmem:[#allocation81_spill] sm:$0xff] }
 0x67d   : > { %7057 = vrcp.f32 %v12936_v39  ;;  %v5983_v21 = vsel %vm2779_vm11, %v4959_v35, 0.0  ;;  %v5024_v13 = vadd.f32 %v12904_v60, %v5023_v11  ;;  %v4986_v62 = vand.u32 2147483648, %v12866_v23 }
 0x67e   : > { %v4977_v19 = vsub.f32 1.0, %v4976_v15  ;;  %vm2781_vm5 = vcmp.lt.f32.partialorder %v16218_v48, 0.0  ;;  %v6242_v2 = vsub.f32 %v7389_v51, %v6114_v56  ;;  %v6111_v16 = vmul.f32 %v5983_v21, %v16219_v38  ;;  %v13001_v15 = vpop.f32.mrf.mxu0  ;;  %v16221_v56 = vld [vmem:[#allocation244_spill] sm:$0xff]  ;;  %v16227_v38 = vld [vmem:[#allocation385_spill] sm:$0xff] }
 0x67f   : > { %7059 = vrcp.f32 %v12953_v22  ;;  %v3290_v27 = vadd.f32 1e-06, %v12846_v6  ;;  %v5028_v30 = vsel %vm5027_vm6, %v12904_v60, %v5024_v13  ;;  %vm4981_vm7 = vweird.f32 %v12940_v14  ;;  %v16220_v6 = vld [vmem:[#allocation376_spill] sm:$0xff] }
 0x680   : > { %v4978_v37 = vmul.f32 %v12940_v14, %v4977_v19  ;;  %v5059_v36 = vand.u32 2147483647, %v12936_v39  ;;  %6370 = vst [vmem:[%s10440_s17 + $0x210] sm:$0xff] %v6242_v2  ;;  %v6239_v25 = vsub.f32 %v7390_v52, %v6111_v16  ;;  %v5033_v54 = vsel %vm12948_vm4, %v5032_v12, %v5028_v30  ;;  %v13035_v42 = vpop.f32.mrf.mxu2  ;;  %3357 = vmatmul.f32.gmra.mxu1 %v16227_v38  ;;  %v16228_v16 = vld [vmem:[#allocation351_spill] sm:$0xff]  ;;  %v13048_v52 = vpop.f32.mrf.mxu3 }
 0x681   : > { %vm4980_vm8 = vweird.f32 %v12866_v23  ;;  %v3702_v61 = vadd.f32 1e-06, %v12832_v5  ;;  %v5034_v53 = vmul.f32 %v5033_v54, %v16220_v6  ;;  %v5061_v35 = vand.u32 2147483648, %v12936_v39  ;;  %v7391_v54 = vld [vmem:[%s7582_s24 + $0x220] sm:$0xff]  ;;  %v16240_v19 = vld [vmem:[#allocation355_spill] sm:$0xff]  ;;  %3775 = vmatmul.f32.gmra.mxu0 %v16227_v38  ;;  %v16249_v38 = vld [vmem:[#allocation249_spill] sm:$0xff] }
 0x682   : > { %v4979_v60 = vadd.f32 %v12940_v14, %v4978_v37  ;;  %v12999_v11 = vadd.f32 %v12871_v4, %v3290_v27  ;;  %v13006_v33 = vmul.f32 0.99, %v16221_v56  ;;  %6367 = vst.msk [vmem:[%s10440_s17 + $0x1f8] sm:$0xff] %vm355_vm0, %v6239_v25  ;;  %vm13012_vm9 = vmor %vm4980_vm8, %vm4981_vm7  ;;  %vm4985_vm10 = vcmp.eq.f32.partialorder %v4984_v29, 8.507059e+37  ;;  %v13017_v4 = vpop.f32.mrf.mxu1  ;;  %6816 = vmatmul.msk.f32.gmra.mxu3 %vm355_vm0, %v16228_v16  ;;  %v16229_v27 = vld [vmem:[#allocation375_spill] sm:$0xff]  ;;  %v16230_v25 = vld [vmem:[#allocation198_spill] sm:$0xff]  ;;  %6880 = vmatmul.msk.f32.gmra.mxu2 %vm355_vm0, %v16228_v16 }
 0x683   : > { %v13003_v31 = vpop.eup %7057  ;;  %v4987_v23 = vor.u32 1.1754944e-38, %v4986_v62  ;;  %vm5055_vm11 = vweird.f32 %v12936_v39  ;;  %v5988_v12 = vsel %vm2784_vm2, %v5034_v53, 0.0  ;;  %vm13027_vm13 = vcmp.eq.f32.partialorder %v5059_v36, 8.507059e+37  ;;  %v16226_v62 = vld [vmem:[#allocation88_spill] sm:$0xff] }
 0x684   : > { %v4983_v21 = vsel %vm13012_vm9, %v12940_v14, %v4979_v60  ;;  %v5051_v13 = vmul.f32 %v13003_v31, %v12936_v39  ;;  %vm5010_vm12 = vweird.f32 %v12953_v22  ;;  %v13033_v29 = vadd.f32 %v12852_v49, %v3702_v61 }
 0x685   : > { %v13037_v50 = vpop.eup %7059  ;;  %v6116_v51 = vmul.f32 %v5988_v12, %v16226_v62  ;;  %v4988_v14 = vsel %vm4985_vm10, %v4987_v23, %v4983_v21  ;;  %v5014_v2 = vand.u32 2147483647, %v12953_v22  ;;  %7061 = vrcp.f32 %v12999_v11  ;;  %v16232_v23 = vld [vmem:[#allocation84_spill] sm:$0xff]  ;;  %v16244_v21 = vld [vmem:[#allocation91_spill] sm:$0xff] }
 0x686   : > { %v4989_v49 = vmul.f32 %v4988_v14, %v16229_v27  ;;  %v5052_v30 = vsub.f32 1.0, %v5051_v13  ;;  %v5062_v37 = vor.u32 1.1754944e-38, %v5061_v35  ;;  %v5006_v36 = vmul.f32 %v13037_v50, %v12953_v22  ;;  %v13094_v39 = vpop.f32.mrf.mxu0 }
 0x687   : > { %vm2786_vm14 = vcmp.lt.f32.partialorder %v16230_v25, 0.0  ;;  %v6244_v61 = vsub.f32 %v7391_v54, %v6116_v51  ;;  %vm5056_vm15 = vweird.f32 %v13003_v31  ;;  %v5016_v6 = vand.u32 2147483648, %v12953_v22  ;;  %v16241_v22 = vld [vmem:[#allocation377_spill] sm:$0xff] }
 0x688   : > { %v5089_v53 = vand.u32 2147483647, %v12999_v11  ;;  %v5985_v60 = vsel %vm2781_vm5, %v4989_v49, 0.0  ;;  %v5053_v35 = vmul.f32 %v13003_v31, %v5052_v30  ;;  %v5007_v5 = vsub.f32 1.0, %v5006_v36  ;;  %v7392_v49 = vld [vmem:[%s7582_s24 + $0x208] sm:$0xff]  ;;  %vm5057_vm4 = vmor %vm5055_vm11, %vm5056_vm15 }
 0x689   : > { %7063 = vrcp.f32 %v13033_v29  ;;  %vm2783_vm1 = vcmp.lt.f32.partialorder %v16231_v45, 0.0  ;;  %6372 = vst [vmem:[%s10440_s17 + $0x220] sm:$0xff] %v6244_v61  ;;  %v6113_v12 = vmul.f32 %v5985_v60, %v16232_v23  ;;  %vm13064_vm2 = vcmp.eq.f32.partialorder %v5014_v2, 8.507059e+37  ;;  %v16239_v60 = vld [vmem:[#allocation251_spill] sm:$0xff] }
 0x68a   : > { %v5091_v13 = vand.u32 2147483648, %v12999_v11  ;;  %v3293_v48 = vadd.f32 1e-06, %v12930_v40  ;;  %v5054_v62 = vadd.f32 %v13003_v31, %v5053_v35  ;;  %v5008_v51 = vmul.f32 %v13037_v50, %v5007_v5  ;;  %3360 = vmatmul.f32.gmra.mxu1 %v16239_v60  ;;  %6817 = vmatmul.msk.f32.gmra.mxu3 %vm355_vm0, %v16240_v19 }
 0x68b   : > { %vm5011_vm3 = vweird.f32 %v13037_v50  ;;  %v3705_v14 = vadd.f32 1e-06, %v12918_v1  ;;  %v13074_v27 = vpop.eup %7061  ;;  %v6241_v2 = vsub.f32 %v7392_v49, %v6113_v12  ;;  %v5017_v30 = vor.u32 1.1754944e-38, %v5016_v6  ;;  %v16242_v12 = vld [vmem:[#allocation201_spill] sm:$0xff]  ;;  %3778 = vmatmul.f32.gmra.mxu0 %v16239_v60  ;;  %v7396_v60 = vld [vmem:[%s7582_s24 + $0x228] sm:$0xff]  ;;  %6881 = vmatmul.msk.f32.gmra.mxu2 %vm355_vm0, %v16240_v19 }
 0x68c   : > { %vm5085_vm5 = vweird.f32 %v12999_v11  ;;  %v13083_v40 = vadd.f32 %v12962_v34, %v3293_v48  ;;  %v5058_v36 = vsel %vm5057_vm4, %v13003_v31, %v5054_v62  ;;  %v5009_v1 = vadd.f32 %v13037_v50, %v5008_v51  ;;  %vm13104_vm7 = vmor %vm5010_vm12, %vm5011_vm3 }
 0x68d   : > { %v5081_v54 = vmul.f32 %v13074_v27, %v12999_v11  ;;  %vm13090_vm6 = vcmp.eq.f32.partialorder %v5089_v53, 8.507059e+37  ;;  %6369 = vst.msk [vmem:[%s10440_s17 + $0x208] sm:$0xff] %vm355_vm0, %v6241_v2  ;;  %v5063_v34 = vsel %vm13027_vm13, %v5062_v37, %v5058_v36  ;;  %v5092_v31 = vor.u32 1.1754944e-38, %v5091_v13  ;;  %v13112_v53 = vpop.f32.mrf.mxu1  ;;  %v13140_v2 = vpop.f32.mrf.mxu3 }
 0x68e   : > { %7065 = vrcp.f32 %v13083_v40  ;;  %v13110_v6 = vadd.f32 %v12938_v43, %v3705_v14  ;;  %v5064_v35 = vmul.f32 %v5063_v34, %v16241_v22  ;;  %v5013_v5 = vsel %vm13104_vm7, %v13037_v50, %v5009_v1  ;;  %v13124_v43 = vpop.f32.mrf.mxu2  ;;  %v16243_v14 = vld [vmem:[#allocation378_spill] sm:$0xff] }
 0x68f   : > { %v13117_v37 = vpop.eup %7063  ;;  %v5082_v23 = vsub.f32 1.0, %v5081_v54  ;;  %vm5040_vm8 = vweird.f32 %v13033_v29  ;;  %vm2788_vm9 = vcmp.lt.f32.partialorder %v16242_v12, 0.0  ;;  %v5018_v13 = vsel %vm13064_vm2, %v5017_v30, %v5013_v5  ;;  %v16245_v54 = vld [vmem:[#allocation200_spill] sm:$0xff] }
 0x690   : > { %v5036_v48 = vmul.f32 %v13117_v37, %v13033_v29  ;;  %v5044_v62 = vand.u32 2147483647, %v13033_v29  ;;  %v5046_v50 = vand.u32 2147483648, %v13033_v29  ;;  %v5990_v51 = vsel %vm2786_vm14, %v5064_v35, 0.0  ;;  %v7393_v5 = vld [vmem:[%s7582_s24 + $0x230] sm:$0xff] }
 0x691   : > { %v5019_v49 = vmul.f32 %v5018_v13, %v16243_v14  ;;  %v5083_v41 = vmul.f32 %v13074_v27, %v5082_v23  ;;  %vm5086_vm10 = vweird.f32 %v13074_v27  ;;  %v6118_v30 = vmul.f32 %v5990_v51, %v16244_v21  ;;  %v16246_v13 = vld [vmem:[#allocation87_spill] sm:$0xff]  ;;  %v16256_v29 = vld [vmem:[#allocation204_spill] sm:$0xff] }
 0x692   : > { %v5037_v36 = vsub.f32 1.0, %v5036_v48  ;;  %7067 = vrcp.f32 %v13110_v6  ;;  %v3296_v1 = vadd.f32 1e-06, %v13017_v4  ;;  %vm2785_vm11 = vcmp.lt.f32.partialorder %v16245_v54, 0.0  ;;  %vm5087_vm13 = vmor %vm5085_vm5, %vm5086_vm10  ;;  %3363 = vmatmul.f32.gmra.mxu1 %v16249_v38 }
 0x693   : > { %v5987_v25 = vsel %vm2783_vm1, %v5019_v49, 0.0  ;;  %v5084_v34 = vadd.f32 %v13074_v27, %v5083_v41  ;;  %v5119_v26 = vand.u32 2147483647, %v13083_v40  ;;  %v5121_v22 = vand.u32 2147483648, %v13083_v40  ;;  %v7394_v41 = vld [vmem:[%s7582_s24 + $0x218] sm:$0xff]  ;;  %3781 = vmatmul.f32.gmra.mxu0 %v16249_v38 }
 0x694   : > { %v13151_v35 = vpop.eup %7065  ;;  %v6246_v23 = vsub.f32 %v7393_v5, %v6118_v30  ;;  %v6115_v48 = vmul.f32 %v5987_v25, %v16246_v13  ;;  %v5038_v4 = vmul.f32 %v13117_v37, %v5037_v36  ;;  %vm5041_vm12 = vweird.f32 %v13117_v37  ;;  %v16265_v25 = vld [vmem:[#allocation379_spill] sm:$0xff] }
 0x695   : > { %v5088_v45 = vsel %vm5087_vm13, %v13074_v27, %v5084_v34  ;;  %vm13163_vm14 = vcmp.eq.f32.partialorder %v5044_v62, 8.507059e+37  ;;  %v5047_v14 = vor.u32 1.1754944e-38, %v5046_v50  ;;  %v5111_v49 = vmul.f32 %v13151_v35, %v13083_v40  ;;  %v16250_v27 = vld [vmem:[#allocation380_spill] sm:$0xff]  ;;  %vm13179_vm1 = vmor %vm5040_vm8, %vm5041_vm12  ;;  %v16255_v34 = vld [vmem:[#allocation369_spill] sm:$0xff] }
 0x696   : > { %6374 = vst [vmem:[%s10440_s17 + $0x230] sm:$0xff] %v6246_v23  ;;  %v6243_v11 = vsub.f32 %v7394_v41, %v6115_v48  ;;  %v5093_v21 = vsel %vm13090_vm6, %v5092_v31, %v5088_v45  ;;  %v5039_v30 = vadd.f32 %v13117_v37, %v5038_v4  ;;  %vm5115_vm15 = vweird.f32 %v13083_v40  ;;  %v13187_v31 = vpop.f32.mrf.mxu0  ;;  %6818 = vmatmul.msk.f32.gmra.mxu3 %vm355_vm0, %v16255_v34  ;;  %v13204_v23 = vpop.f32.mrf.mxu1  ;;  %v16257_v45 = vld [vmem:[#allocation89_spill] sm:$0xff] }
 0x697   : > { %v5094_v62 = vmul.f32 %v5093_v21, %v16250_v27  ;;  %v5112_v36 = vsub.f32 1.0, %v5111_v49  ;;  %vm13183_vm2 = vcmp.eq.f32.partialorder %v5119_v26, 8.507059e+37  ;;  %v5122_v61 = vor.u32 1.1754944e-38, %v5121_v22  ;;  %v13212_v4 = vpop.f32.mrf.mxu2  ;;  %v16258_v41 = vld [vmem:[#allocation381_spill] sm:$0xff]  ;;  %v13221_v21 = vpop.f32.mrf.mxu3  ;;  %v7395_v27 = vld [vmem:[%s7582_s24 + $0x240] sm:$0xff]  ;;  %6882 = vmatmul.msk.f32.gmra.mxu2 %vm355_vm0, %v16255_v34 }
 0x698   : > { %v7068_v5 = vpop.eup %7067  ;;  %vm2790_vm3 = vcmp.lt.f32.partialorder %v16256_v29, 0.0  ;;  %6371 = vst.msk [vmem:[%s10440_s17 + $0x218] sm:$0xff] %vm355_vm0, %v6243_v11  ;;  %v5043_v26 = vsel %vm13179_vm1, %v13117_v37, %v5039_v30  ;;  %vm5116_vm4 = vweird.f32 %v13151_v35  ;;  %vm5070_vm5 = vweird.f32 %v13110_v6  ;;  %v16259_v30 = vld [vmem:[#allocation203_spill] sm:$0xff] }
 0x699   : > { %v13202_v22 = vadd.f32 %v13048_v52, %v3296_v1  ;;  %v5992_v16 = vsel %vm2788_vm9, %v5094_v62, 0.0  ;;  %v5048_v13 = vsel %vm13163_vm14, %v5047_v14, %v5043_v26  ;;  %v5113_v48 = vmul.f32 %v13151_v35, %v5112_v36  ;;  %vm5117_vm7 = vmor %vm5115_vm15, %vm5116_vm4  ;;  %v16260_v26 = vld [vmem:[#allocation90_spill] sm:$0xff] }
 0x69a   : > { %v5066_v37 = vmul.f32 %v7068_v5, %v13110_v6  ;;  %v6120_v49 = vmul.f32 %v5992_v16, %v16257_v45  ;;  %v5049_v52 = vmul.f32 %v5048_v13, %v16258_v41  ;;  %v3708_v1 = vadd.f32 1e-06, %v13001_v15  ;;  %v16262_v45 = vld [vmem:[#allocation248_spill] sm:$0xff]  ;;  %v16271_v41 = vld [vmem:[#allocation93_spill] sm:$0xff] }
 0x69b   : > { %7069 = vrcp.f32 %v13202_v22  ;;  %v5114_v12 = vadd.f32 %v13151_v35, %v5113_v48  ;;  %v5074_v51 = vand.u32 2147483647, %v13110_v6  ;;  %v5076_v14 = vand.u32 2147483648, %v13110_v6 }
 0x69c   : > { %v5067_v11 = vsub.f32 1.0, %v5066_v37  ;;  %vm2787_vm6 = vcmp.lt.f32.partialorder %v16259_v30, 0.0  ;;  %v6248_v62 = vsub.f32 %v7395_v27, %v6120_v49  ;;  %v5989_v15 = vsel %vm2785_vm11, %v5049_v52, 0.0 }
 0x69d   : > { %v13232_v50 = vadd.f32 %v13035_v42, %v3708_v1  ;;  %v3299_v36 = vadd.f32 1e-06, %v13112_v53  ;;  %v6117_v16 = vmul.f32 %v5989_v15, %v16260_v26  ;;  %v5118_v13 = vsel %vm5117_vm7, %v13151_v35, %v5114_v12  ;;  %v16261_v53 = vld [vmem:[#allocation408_spill] sm:$0xff] }
 0x69e   : > { %v5068_v48 = vmul.f32 %v7068_v5, %v5067_v11  ;;  %vm5071_vm8 = vweird.f32 %v7068_v5  ;;  %6376 = vst [vmem:[%s10440_s17 + $0x240] sm:$0xff] %v6248_v62  ;;  %v5123_v54 = vsel %vm13183_vm2, %v5122_v61, %v5118_v13  ;;  %v5149_v40 = vand.u32 2147483647, %v13202_v22  ;;  %3366 = vmatmul.f32.gmra.mxu1 %v16261_v53  ;;  %6819 = vmatmul.msk.f32.gmra.mxu3 %vm355_vm0, %v16265_v25  ;;  %v16269_v62 = vld [vmem:[#allocation382_spill] sm:$0xff] }
 0x69f   : > { %7071 = vrcp.f32 %v13232_v50  ;;  %v3711_v42 = vadd.f32 1e-06, %v13094_v39  ;;  %v6245_v37 = vsub.f32 %v7396_v60, %v6117_v16  ;;  %v5124_v49 = vmul.f32 %v5123_v54, %v16262_v45  ;;  %vm5072_vm10 = vmor %vm5070_vm5, %vm5071_vm8  ;;  %v13287_v16 = vpop.f32.mrf.mxu2  ;;  %v7397_v54 = vld [vmem:[%s7582_s24 + $0x250] sm:$0xff]  ;;  %3784 = vmatmul.f32.gmra.mxu0 %v16261_v53  ;;  %6883 = vmatmul.msk.f32.gmra.mxu2 %vm355_vm0, %v16265_v25 }
 0x6a0   : > { %v5069_v35 = vadd.f32 %v7068_v5, %v5068_v48  ;;  %vm13247_vm9 = vcmp.eq.f32.partialorder %v5074_v51, 8.507059e+37  ;;  %v5077_v39 = vor.u32 1.1754944e-38, %v5076_v14  ;;  %v5151_v52 = vand.u32 2147483648, %v13202_v22  ;;  %v13274_v51 = vpop.f32.mrf.mxu0  ;;  %v16266_v14 = vld [vmem:[#allocation96_spill] sm:$0xff]  ;;  %v16270_v48 = vld [vmem:[#allocation207_spill] sm:$0xff] }
 0x6a1   : > { %v13255_v61 = vpop.eup %7069  ;;  %v13262_v1 = vadd.f32 %v13140_v2, %v3299_v36  ;;  %v13265_v12 = vadd.f32 %v13124_v43, %v3711_v42  ;;  %6373 = vst.msk [vmem:[%s10440_s17 + $0x228] sm:$0xff] %vm355_vm0, %v6245_v37  ;;  %v5994_v19 = vsel %vm2790_vm3, %v5124_v49, 0.0  ;;  %vm5145_vm11 = vweird.f32 %v13202_v22 }
 0x6a2   : > { %v5073_v11 = vsel %vm5072_vm10, %v7068_v5, %v5069_v35  ;;  %v5141_v6 = vmul.f32 %v13255_v61, %v13202_v22  ;;  %v6122_v2 = vmul.f32 %v5994_v19, %v16266_v14  ;;  %vm13279_vm13 = vcmp.eq.f32.partialorder %v5149_v40, 8.507059e+37  ;;  %v3304_v5 = vpop.f32.mrf.mxu1  ;;  %v13302_v35 = vpop.f32.mrf.mxu3 }
 0x6a3   : > { %v5078_v43 = vsel %vm13247_vm9, %v5077_v39, %v5073_v11  ;;  %v5104_v29 = vand.u32 2147483647, %v13232_v50  ;;  %v5106_v26 = vand.u32 2147483648, %v13232_v50  ;;  %7073 = vrcp.f32 %v13262_v1 }
 0x6a4   : > { %v5079_v15 = vmul.f32 %v5078_v43, %v16269_v62  ;;  %v5142_v36 = vsub.f32 1.0, %v5141_v6  ;;  %vm2792_vm12 = vcmp.lt.f32.partialorder %v16270_v48, 0.0  ;;  %v6250_v40 = vsub.f32 %v7397_v54, %v6122_v2  ;;  %v16275_v2 = vld [vmem:[#allocation386_spill] sm:$0xff] }
 0x6a5   : > { %v13289_v13 = vpop.eup %7071  ;;  %v5152_v42 = vor.u32 1.1754944e-38, %v5151_v52  ;;  %v5181_v60 = vand.u32 2147483648, %v13262_v1  ;;  %7075 = vrcp.f32 %v13265_v12  ;;  %vm5146_vm14 = vweird.f32 %v13255_v61  ;;  %v16272_v52 = vld [vmem:[#allocation252_spill] sm:$0xff]  ;;  %v16276_v43 = vld [vmem:[#allocation206_spill] sm:$0xff] }
 0x6a6   : > { %v5991_v37 = vsel %vm2787_vm6, %v5079_v15, 0.0  ;;  %v5143_v45 = vmul.f32 %v13255_v61, %v5142_v36  ;;  %v5096_v49 = vmul.f32 %v13289_v13, %v13232_v50  ;;  %6378 = vst [vmem:[%s10440_s17 + $0x250] sm:$0xff] %v6250_v40  ;;  %vm5100_vm15 = vweird.f32 %v13232_v50  ;;  %3369 = vmatmul.f32.gmra.mxu1 %v16272_v52  ;;  %6820 = vmatmul.msk.f32.gmra.mxu3 %vm355_vm0, %v16275_v2  ;;  %vm5147_vm3 = vmor %vm5145_vm11, %vm5146_vm14 }
 0x6a7   : > { %v6119_v39 = vmul.f32 %v5991_v37, %v16271_v41  ;;  %v5179_v38 = vand.u32 2147483647, %v13262_v1  ;;  %v3302_v30 = vadd.f32 1e-06, %v13204_v23  ;;  %vm13311_vm1 = vcmp.eq.f32.partialorder %v5104_v29, 8.507059e+37  ;;  %v7398_v23 = vld [vmem:[%s7582_s24 + $0x238] sm:$0xff] }
 0x6a8   : > { %v5144_v19 = vadd.f32 %v13255_v61, %v5143_v45  ;;  %v5097_v11 = vsub.f32 1.0, %v5096_v49  ;;  %v5107_v14 = vor.u32 1.1754944e-38, %v5106_v26  ;;  %vm2789_vm2 = vcmp.lt.f32.partialorder %v16276_v43, 0.0  ;;  %v16279_v37 = vld [vmem:[#allocation383_spill] sm:$0xff] }
 0x6a9   : > { %v6247_v62 = vsub.f32 %v7398_v23, %v6119_v39  ;;  %vm5101_vm4 = vweird.f32 %v13289_v13  ;;  %vm5175_vm5 = vweird.f32 %v13262_v1  ;;  %v13327_v29 = vor.u32 1.1754944e-38, %v5181_v60  ;;  %v7074_v36 = vpop.eup %7073 }
 0x6aa   : > { %v13330_v15 = vadd.f32 %v13221_v21, %v3302_v30  ;;  %v5148_v34 = vsel %vm5147_vm3, %v13255_v61, %v5144_v19  ;;  %v5098_v26 = vmul.f32 %v13289_v13, %v5097_v11  ;;  %vm5130_vm6 = vweird.f32 %v13265_v12  ;;  %vm13360_vm8 = vmor %vm5100_vm15, %vm5101_vm4  ;;  %v13365_v11 = vpop.f32.mrf.mxu1 }
 0x6ab   : > { %v5134_v54 = vand.u32 2147483647, %v13265_v12  ;;  %v13336_v22 = vpop.eup %7075  ;;  %6375 = vst.msk [vmem:[%s10440_s17 + $0x238] sm:$0xff] %vm355_vm0, %v6247_v62  ;;  %v5153_v40 = vsel %vm13279_vm13, %v5152_v42, %v5148_v34  ;;  %v5171_v60 = vmul.f32 %v7074_v36, %v13262_v1  ;;  %vm13343_vm7 = vcmp.eq.f32.partialorder %v5179_v38, 8.507059e+37  ;;  %v13354_v42 = vpop.f32.mrf.mxu0 }
 0x6ac   : > { %v5136_v61 = vand.u32 2147483648, %v13265_v12  ;;  %7077 = vrcp.f32 %v13330_v15  ;;  %v5154_v45 = vmul.f32 %v5153_v40, %v16279_v37  ;;  %v5099_v49 = vadd.f32 %v13289_v13, %v5098_v26  ;;  %v13377_v26 = vpop.f32.mrf.mxu2  ;;  %v16284_v40 = vld [vmem:[#allocation99_spill] sm:$0xff] }
 0x6ad   : > { %v5126_v41 = vmul.f32 %v13336_v22, %v13265_v12  ;;  %v3714_v27 = vadd.f32 1e-06, %v13187_v31  ;;  %v5172_v38 = vsub.f32 1.0, %v5171_v60  ;;  %vm5176_vm9 = vweird.f32 %v7074_v36  ;;  %v16282_v31 = vld [vmem:[#allocation210_spill] sm:$0xff] }
 0x6ae   : > { %v5209_v30 = vand.u32 2147483647, %v13330_v15  ;;  %v3305_v19 = vadd.f32 1e-06, %v3304_v5  ;;  %vm2794_vm10 = vcmp.lt.f32.partialorder %v16282_v31, 0.0  ;;  %v5996_v23 = vsel %vm2792_vm12, %v5154_v45, 0.0  ;;  %3787 = vmatmul.f32.vlgmr.msrb.gmra.mxu1 %v16272_v52  ;;  %6884 = vmatmul.msk.f32.vlgmr.msrb.gmra.mxu3 %vm355_vm0, %v16275_v2  ;;  %vm5177_vm14 = vmor %vm5175_vm5, %vm5176_vm9 }
 0x6af   : > { %v5103_v50 = vsel %vm13360_vm8, %v13289_v13, %v5099_v49  ;;  %v5127_v62 = vsub.f32 1.0, %v5126_v41  ;;  %v13375_v34 = vadd.f32 %v13212_v4, %v3714_v27  ;;  %v16283_v5 = vld [vmem:[#allocation209_spill] sm:$0xff]  ;;  %v6124_v53 = vmul.f32 %v5996_v23, %v16284_v40  ;;  %v16285_v13 = vld [vmem:[#allocation384_spill] sm:$0xff]  ;;  %v13389_v49 = vpop.f32.mrf.mxu3  ;;  %v16294_v31 = vld [vmem:[#allocation98_spill] sm:$0xff] }
 0x6b0   : > { %vm2791_vm11 = vcmp.lt.f32.partialorder %v16283_v5, 0.0  ;;  %v5108_v60 = vsel %vm13311_vm1, %v5107_v14, %v5103_v50  ;;  %v5173_v48 = vmul.f32 %v7074_v36, %v5172_v38  ;;  %v5211_v37 = vand.u32 2147483648, %v13330_v15  ;;  %v7399_v14 = vld [vmem:[%s7582_s24 + $0x260] sm:$0xff]  ;;  %v7401_v5 = vld [vmem:[%s7582_s24 + $0x270] sm:$0xff] }
 0x6b1   : > { %v5109_v45 = vmul.f32 %v5108_v60, %v16285_v13  ;;  %v5128_v4 = vmul.f32 %v13336_v22, %v5127_v62  ;;  %vm5131_vm13 = vweird.f32 %v13336_v22  ;;  %7079 = vrcp.f32 %v13375_v34 }
 0x6b2   : > { %v7078_v6 = vpop.eup %7077  ;;  %v6252_v52 = vsub.f32 %v7399_v14, %v6124_v53  ;;  %v5174_v41 = vadd.f32 %v7074_v36, %v5173_v48  ;;  %vm13396_vm12 = vcmp.eq.f32.partialorder %v5134_v54, 8.507059e+37  ;;  %v5137_v39 = vor.u32 1.1754944e-38, %v5136_v61  ;;  %v16288_v54 = vld [vmem:[#allocation95_spill] sm:$0xff]  ;;  %vm5132_vm1 = vmor %vm5130_vm6, %vm5131_vm13  ;;  %v3310_v27 = vpop.f32.mrf.mxu1 }
 0x6b3   : > { %v5993_v38 = vsel %vm2789_vm2, %v5109_v45, 0.0  ;;  %v5129_v25 = vadd.f32 %v13336_v22, %v5128_v4  ;;  %v5201_v2 = vmul.f32 %v7078_v6, %v13330_v15  ;;  %vm5205_vm15 = vweird.f32 %v13330_v15  ;;  %v7400_v53 = vld [vmem:[%s7582_s24 + $0x248] sm:$0xff] }
 0x6b4   : > { %6380 = vst [vmem:[%s10440_s17 + $0x260] sm:$0xff] %v6252_v52  ;;  %v6121_v23 = vmul.f32 %v5993_v38, %v16288_v54  ;;  %v5178_v50 = vsel %vm5177_vm14, %v7074_v36, %v5174_v41  ;;  %vm13414_vm2 = vcmp.eq.f32.partialorder %v5209_v30, 8.507059e+37  ;;  %v5212_v1 = vor.u32 1.1754944e-38, %v5211_v37  ;;  %v16291_v48 = vld [vmem:[#allocation387_spill] sm:$0xff]  ;;  %v16292_v37 = vld [vmem:[#allocation388_spill] sm:$0xff]  ;;  %v13447_v38 = vpop.f32.mrf.mxu2 }
 0x6b5   : > { %v5183_v61 = vsel %vm13343_vm7, %v13327_v29, %v5178_v50  ;;  %v5133_v62 = vsel %vm5132_vm1, %v13336_v22, %v5129_v25  ;;  %v5202_v40 = vsub.f32 1.0, %v5201_v2  ;;  %v3717_v36 = vadd.f32 1e-06, %v13274_v51  ;;  %v13434_v22 = vpop.f32.mrf.mxu0 }
 0x6b6   : > { %v6249_v60 = vsub.f32 %v7400_v53, %v6121_v23  ;;  %v5184_v12 = vmul.f32 %v5183_v61, %v16291_v48  ;;  %v5138_v30 = vsel %vm13396_vm12, %v5137_v39, %v5133_v62  ;;  %vm5206_vm3 = vweird.f32 %v7078_v6  ;;  %v16295_v23 = vld [vmem:[#allocation212_spill] sm:$0xff]  ;;  %v16296_v48 = vld [vmem:[#allocation213_spill] sm:$0xff] }
 0x6b7   : > { %v7080_v13 = vpop.eup %7079  ;;  %v5139_v45 = vmul.f32 %v5138_v30, %v16292_v37  ;;  %v5203_v4 = vmul.f32 %v7078_v6, %v5202_v40  ;;  %v13429_v21 = vadd.f32 %v13302_v35, %v3305_v19  ;;  %v13432_v29 = vadd.f32 %v13287_v16, %v3717_v36  ;;  %v16293_v35 = vld [vmem:[#allocation102_spill] sm:$0xff]  ;;  %vm5207_vm4 = vmor %vm5205_vm15, %vm5206_vm3  ;;  %v3519_v40 = vpop.f32.mrf.mxu3  ;;  %v7402_v36 = vld [vmem:[%s7582_s24 + $0x258] sm:$0xff] }
 0x6b8   : > { %6377 = vst.msk [vmem:[%s10440_s17 + $0x248] sm:$0xff] %vm355_vm0, %v6249_v60  ;;  %v5998_v51 = vsel %vm2794_vm10, %v5184_v12, 0.0  ;;  %v5156_v14 = vmul.f32 %v7080_v13, %v13375_v34  ;;  %v5164_v52 = vand.u32 2147483647, %v13375_v34  ;;  %v5166_v41 = vand.u32 2147483648, %v13375_v34  ;;  %v16297_v12 = vld [vmem:[#allocation245_spill] sm:$0xff] }
 0x6b9   : > { %v6126_v19 = vmul.f32 %v5998_v51, %v16293_v35  ;;  %v5995_v16 = vsel %vm2791_vm11, %v5139_v45, 0.0  ;;  %v5204_v39 = vadd.f32 %v7078_v6, %v5203_v4  ;;  %7081 = vrcp.f32 %v13429_v21  ;;  %v16298_v37 = vld [vmem:[#allocation246_spill] sm:$0xff]  ;;  %v16300_v45 = vld [vmem:[#allocation389_spill] sm:$0xff] }
 0x6ba   : > { %v6123_v25 = vmul.f32 %v5995_v16, %v16294_v31  ;;  %v5157_v2 = vsub.f32 1.0, %v5156_v14  ;;  %vm5161_vm5 = vweird.f32 %v7080_v13  ;;  %v3308_v54 = vadd.f32 1e-06, %v13365_v11  ;;  %v16301_v16 = vld [vmem:[#allocation105_spill] sm:$0xff] }
 0x6bb   : > { %vm2793_vm6 = vcmp.lt.f32.partialorder %v16295_v23, 0.0  ;;  %v6254_v50 = vsub.f32 %v7401_v5, %v6126_v19  ;;  %v5208_v61 = vsel %vm5207_vm4, %v7078_v6, %v5204_v39  ;;  %v5241_v62 = vand.u32 2147483648, %v13429_v21 }
 0x6bc   : > { %7083 = vrcp.f32 %v13432_v29  ;;  %v6251_v53 = vsub.f32 %v7402_v36, %v6123_v25  ;;  %v5213_v15 = vsel %vm13414_vm2, %v5212_v1, %v5208_v61  ;;  %v5158_v60 = vmul.f32 %v7080_v13, %v5157_v2  ;;  %v16304_v61 = vld [vmem:[#allocation390_spill] sm:$0xff] }
 0x6bd   : > { %v5239_v11 = vand.u32 2147483647, %v13429_v21  ;;  %vm2796_vm7 = vcmp.lt.f32.partialorder %v16296_v48, 0.0  ;;  %v13464_v30 = vmul.f32 0.99, %v16297_v12  ;;  %6382 = vst [vmem:[%s10440_s17 + $0x270] sm:$0xff] %v6254_v50  ;;  %v5214_v4 = vmul.f32 %v5213_v15, %v16300_v45  ;;  %v13488_v5 = vpop.f32.mrf.mxu0  ;;  %v13493_v15 = vpop.f32.mrf.mxu1 }
 0x6be   : > { %v13467_v6 = vmul.f32 0.99, %v16298_v37  ;;  %6379 = vst.msk [vmem:[%s10440_s17 + $0x258] sm:$0xff] %vm355_vm0, %v6251_v53  ;;  %v5159_v51 = vadd.f32 %v7080_v13, %v5158_v60  ;;  %vm5160_vm8 = vweird.f32 %v13375_v34  ;;  %vm5165_vm9 = vcmp.eq.f32.partialorder %v5164_v52, 8.507059e+37  ;;  %v7403_v50 = vld [vmem:[%s7582_s24 + $0x280] sm:$0xff]  ;;  %v16305_v60 = vld [vmem:[#allocation216_spill] sm:$0xff] }
 0x6bf   : > { %v13475_v43 = vadd.f32 %v13389_v49, %v3308_v54  ;;  %v7082_v1 = vpop.eup %7081  ;;  %v6000_v14 = vsel %vm2796_vm7, %v5214_v4, 0.0  ;;  %vm5162_vm10 = vmor %vm5160_vm8, %vm5161_vm5  ;;  %v5167_v35 = vor.u32 1.1754944e-38, %v5166_v41  ;;  %vm5235_vm11 = vweird.f32 %v13429_v21  ;;  %v16313_v34 = vld [vmem:[#allocation217_spill] sm:$0xff] }
 0x6c0   : > { %16299 = vst [vmem:[#allocation122_spill] sm:$0xff] %v13467_v6  ;;  %v5242_v19 = vor.u32 1.1754944e-38, %v5241_v62  ;;  %v6128_v39 = vmul.f32 %v6000_v14, %v16301_v16  ;;  %v5163_v31 = vsel %vm5162_vm10, %v7080_v13, %v5159_v51  ;;  %v5231_v25 = vmul.f32 %v7082_v1, %v13429_v21  ;;  %v16306_v14 = vld [vmem:[#allocation215_spill] sm:$0xff] }
 0x6c1   : > { %vm13481_vm13 = vcmp.eq.f32.partialorder %v5239_v11, 8.507059e+37  ;;  %v5194_v49 = vand.u32 2147483647, %v13432_v29  ;;  %v5168_v2 = vsel %vm5165_vm9, %v5167_v35, %v5163_v31  ;;  %v3720_v54 = vadd.f32 1e-06, %v13354_v42  ;;  %v13501_v11 = vpop.f32.mrf.mxu2  ;;  %v16307_v35 = vld [vmem:[#allocation101_spill] sm:$0xff]  ;;  %v13513_v31 = vpop.f32.mrf.mxu3 }
 0x6c2   : > { %v7084_v52 = vpop.eup %7083  ;;  %7085 = vrcp.f32 %v13475_v43  ;;  %v3311_v41 = vadd.f32 1e-06, %v3310_v27  ;;  %v6256_v13 = vsub.f32 %v7403_v50, %v6128_v39  ;;  %v5169_v62 = vmul.f32 %v5168_v2, %v16304_v61 }
 0x6c3   : > { %v5232_v36 = vsub.f32 1.0, %v5231_v25  ;;  %v5186_v53 = vmul.f32 %v7084_v52, %v13432_v29  ;;  %vm2798_vm12 = vcmp.lt.f32.partialorder %v16305_v60, 0.0  ;;  %vm5236_vm14 = vweird.f32 %v7082_v1 }
 0x6c4   : > { %vm5190_vm15 = vweird.f32 %v13432_v29  ;;  %v5196_v42 = vand.u32 2147483648, %v13432_v29  ;;  %v13499_v27 = vadd.f32 %v13377_v26, %v3720_v54  ;;  %6384 = vst [vmem:[%s10440_s17 + $0x280] sm:$0xff] %v6256_v13  ;;  %v5997_v48 = vsel %vm2793_vm6, %v5169_v62, 0.0  ;;  %v7404_v54 = vld [vmem:[%s7582_s24 + $0x268] sm:$0xff]  ;;  %vm5237_vm4 = vmor %vm5235_vm11, %vm5236_vm14 }
 0x6c5   : > { %v5233_v45 = vmul.f32 %v7082_v1, %v5232_v36  ;;  %v5187_v4 = vsub.f32 1.0, %v5186_v53  ;;  %v13506_v51 = vadd.f32 %v3519_v40, %v3311_v41  ;;  %vm2795_vm1 = vcmp.lt.f32.partialorder %v16306_v14, 0.0  ;;  %v16312_v53 = vld [vmem:[#allocation393_spill] sm:$0xff] }
 0x6c6   : > { %v6125_v16 = vmul.f32 %v5997_v48, %v16307_v35  ;;  %v5269_v39 = vand.u32 2147483647, %v13475_v43  ;;  %v5271_v26 = vand.u32 2147483648, %v13475_v43  ;;  %7087 = vrcp.f32 %v13499_v27 }
 0x6c7   : > { %v5234_v23 = vadd.f32 %v7082_v1, %v5233_v45  ;;  %v5188_v25 = vmul.f32 %v7084_v52, %v5187_v4  ;;  %vm5191_vm2 = vweird.f32 %v7084_v52  ;;  %vm13515_vm3 = vcmp.eq.f32.partialorder %v5194_v49, 8.507059e+37 }
 0x6c8   : > { %v7086_v40 = vpop.eup %7085  ;;  %v6253_v41 = vsub.f32 %v7404_v54, %v6125_v16  ;;  %v5197_v50 = vor.u32 1.1754944e-38, %v5196_v42  ;;  %v3723_v13 = vadd.f32 1e-06, %v13434_v22  ;;  %7089 = vrcp.f32 %v13506_v51  ;;  %vm5192_vm6 = vmor %vm5190_vm15, %vm5191_vm2  ;;  %v13548_v16 = vpop.f32.mrf.mxu0 }
 0x6c9   : > { %v5238_v61 = vsel %vm5237_vm4, %v7082_v1, %v5234_v23  ;;  %v5189_v62 = vadd.f32 %v7084_v52, %v5188_v25  ;;  %v5261_v36 = vmul.f32 %v7086_v40, %v13475_v43  ;;  %vm5265_vm5 = vweird.f32 %v13475_v43  ;;  %v13554_v54 = vpop.f32.mrf.mxu1 }
 0x6ca   : > { %6381 = vst.msk [vmem:[%s10440_s17 + $0x268] sm:$0xff] %vm355_vm0, %v6253_v41  ;;  %v5243_v49 = vsel %vm13481_vm13, %v5242_v19, %v5238_v61  ;;  %vm13534_vm7 = vcmp.eq.f32.partialorder %v5269_v39, 8.507059e+37  ;;  %v5272_v22 = vor.u32 1.1754944e-38, %v5271_v26  ;;  %v5224_v1 = vand.u32 2147483647, %v13499_v27  ;;  %v16314_v39 = vld [vmem:[#allocation391_spill] sm:$0xff] }
 0x6cb   : > { %v5244_v42 = vmul.f32 %v5243_v49, %v16312_v53  ;;  %v5193_v48 = vsel %vm5192_vm6, %v7084_v52, %v5189_v62  ;;  %v5262_v45 = vsub.f32 1.0, %v5261_v36  ;;  %vm5220_vm8 = vweird.f32 %v13499_v27  ;;  %v16315_v41 = vld [vmem:[#allocation108_spill] sm:$0xff]  ;;  %v7407_v61 = vld [vmem:[%s7582_s24 + $0x2a0] sm:$0xff] }
 0x6cc   : > { %v7088_v4 = vpop.eup %7087  ;;  %vm2800_vm9 = vcmp.lt.f32.partialorder %v16313_v34, 0.0  ;;  %v5198_v29 = vsel %vm13515_vm3, %v5197_v50, %v5193_v48  ;;  %vm5266_vm10 = vweird.f32 %v7086_v40  ;;  %v5226_v19 = vand.u32 2147483648, %v13499_v27  ;;  %v16318_v49 = vld [vmem:[#allocation140_spill] sm:$0xff]  ;;  %v16325_v34 = vld [vmem:[#allocation395_spill] sm:$0xff] }
 0x6cd   : > { %v13546_v35 = vadd.f32 %v13447_v38, %v3723_v13  ;;  %v6002_v52 = vsel %vm2798_vm12, %v5244_v42, 0.0  ;;  %v5199_v26 = vmul.f32 %v5198_v29, %v16314_v39  ;;  %v5263_v23 = vmul.f32 %v7086_v40, %v5262_v45  ;;  %v13563_v38 = vpop.f32.mrf.mxu2  ;;  %v16319_v42 = vld [vmem:[#allocation104_spill] sm:$0xff]  ;;  %vm5267_vm14 = vmor %vm5265_vm5, %vm5266_vm10  ;;  %v13576_v29 = vpop.f32.mrf.mxu3 }
 0x6ce   : > { %v5216_v25 = vmul.f32 %v7088_v4, %v13499_v27  ;;  %v7090_v2 = vpop.eup %7089  ;;  %v6130_v50 = vmul.f32 %v6002_v52, %v16315_v41  ;;  %vm13557_vm11 = vcmp.eq.f32.partialorder %v5224_v1, 8.507059e+37  ;;  %vm5295_vm13 = vweird.f32 %v13506_v51  ;;  %v7405_v1 = vld [vmem:[%s7582_s24 + $0x290] sm:$0xff] }
 0x6cf   : > { %7091 = vrcp.f32 %v13546_v35  ;;  %v5999_v60 = vsel %vm2795_vm1, %v5199_v26, 0.0  ;;  %v5264_v13 = vadd.f32 %v7086_v40, %v5263_v23  ;;  %v5291_v36 = vmul.f32 %v7090_v2, %v13506_v51  ;;  %v16320_v23 = vld [vmem:[#allocation218_spill] sm:$0xff] }
 0x6d0   : > { %v5217_v62 = vsub.f32 1.0, %v5216_v25  ;;  %vm2797_vm12 = vcmp.lt.f32.partialorder %v16318_v49, 0.0  ;;  %v6258_v53 = vsub.f32 %v7405_v1, %v6130_v50  ;;  %v6127_v48 = vmul.f32 %v5999_v60, %v16319_v42  ;;  %v7406_v25 = vld [vmem:[%s7582_s24 + $0x278] sm:$0xff]  ;;  %v16321_v1 = vld [vmem:[#allocation394_spill] sm:$0xff] }
 0x6d1   : > { %v5299_v45 = vand.u32 2147483647, %v13506_v51  ;;  %v5301_v14 = vand.u32 2147483648, %v13506_v51  ;;  %v5268_v52 = vsel %vm5267_vm14, %v7086_v40, %v5264_v13  ;;  %vm5221_vm15 = vweird.f32 %v7088_v4 }
 0x6d2   : > { %v5218_v39 = vmul.f32 %v7088_v4, %v5217_v62  ;;  %v5292_v26 = vsub.f32 1.0, %v5291_v36  ;;  %vm2802_vm1 = vcmp.lt.f32.partialorder %v16320_v23, 0.0  ;;  %6386 = vst [vmem:[%s10440_s17 + $0x290] sm:$0xff] %v6258_v53  ;;  %v6255_v41 = vsub.f32 %v7406_v25, %v6127_v48  ;;  %vm5222_vm3 = vmor %vm5220_vm8, %vm5221_vm15  ;;  %v16324_v48 = vld [vmem:[#allocation111_spill] sm:$0xff]  ;;  %v16326_v25 = vld [vmem:[#allocation141_spill] sm:$0xff] }
 0x6d3   : > { %v5273_v43 = vsel %vm13534_vm7, %v5272_v22, %v5268_v52  ;;  %v3314_v50 = vadd.f32 1e-06, %v13493_v15  ;;  %v3726_v60 = vadd.f32 1e-06, %v13488_v5  ;;  %vm5296_vm2 = vweird.f32 %v7090_v2 }
 0x6d4   : > { %v5274_v42 = vmul.f32 %v5273_v43, %v16321_v1  ;;  %v5219_v6 = vadd.f32 %v7088_v4, %v5218_v39  ;;  %v5293_v40 = vmul.f32 %v7090_v2, %v5292_v26  ;;  %6383 = vst.msk [vmem:[%s10440_s17 + $0x278] sm:$0xff] %vm355_vm0, %v6255_v41  ;;  %v5227_v62 = vor.u32 1.1754944e-38, %v5226_v19  ;;  %vm5297_vm5 = vmor %vm5295_vm13, %vm5296_vm2  ;;  %v3319_v26 = vpop.f32.mrf.mxu1 }
 0x6d5   : > { %v7092_v13 = vpop.eup %7091  ;;  %vm13591_vm4 = vcmp.eq.f32.partialorder %v5299_v45, 8.507059e+37  ;;  %v13596_v15 = vadd.f32 %v13513_v31, %v3314_v50  ;;  %v13599_v5 = vadd.f32 %v13501_v11, %v3726_v60  ;;  %v5302_v31 = vor.u32 1.1754944e-38, %v5301_v14  ;;  %v13610_v11 = vpop.f32.mrf.mxu0  ;;  %v16327_v50 = vld [vmem:[#allocation396_spill] sm:$0xff] }
 0x6d6   : > { %v6004_v22 = vsel %vm2800_vm9, %v5274_v42, 0.0  ;;  %v5223_v36 = vsel %vm5222_vm3, %v7088_v4, %v5219_v6  ;;  %v5294_v53 = vadd.f32 %v7090_v2, %v5293_v40  ;;  %v5246_v27 = vmul.f32 %v7092_v13, %v13546_v35  ;;  %v13619_v43 = vpop.f32.mrf.mxu2  ;;  %v16328_v42 = vld [vmem:[#allocation247_spill] sm:$0xff] }
 0x6d7   : > { %v6132_v19 = vmul.f32 %v6004_v22, %v16324_v48  ;;  %v5228_v45 = vsel %vm13557_vm11, %v5227_v62, %v5223_v36  ;;  %7093 = vrcp.f32 %v13596_v15  ;;  %v5256_v4 = vand.u32 2147483648, %v13546_v35  ;;  %v16329_v62 = vld [vmem:[#allocation107_spill] sm:$0xff]  ;;  %v3528_v36 = vpop.f32.mrf.mxu3 }
 0x6d8   : > { %v5229_v52 = vmul.f32 %v5228_v45, %v16325_v34  ;;  %v5298_v39 = vsel %vm5297_vm5, %v7090_v2, %v5294_v53  ;;  %v5247_v6 = vsub.f32 1.0, %v5246_v27  ;;  %vm2799_vm6 = vcmp.lt.f32.partialorder %v16326_v25, 0.0  ;;  %v7408_v45 = vld [vmem:[%s7582_s24 + $0x288] sm:$0xff]  ;;  %v16330_v34 = vld [vmem:[#allocation114_spill] sm:$0xff] }
 0x6d9   : > { %v6260_v41 = vsub.f32 %v7407_v61, %v6132_v19  ;;  %v5303_v51 = vsel %vm13591_vm4, %v5302_v31, %v5298_v39  ;;  %vm5251_vm7 = vweird.f32 %v7092_v13  ;;  %v5254_v14 = vand.u32 2147483647, %v13546_v35 }
 0x6da   : > { %v6001_v2 = vsel %vm2797_vm12, %v5229_v52, 0.0  ;;  %v5304_v60 = vmul.f32 %v5303_v51, %v16327_v50  ;;  %v5248_v1 = vmul.f32 %v7092_v13, %v5247_v6  ;;  %7095 = vrcp.f32 %v13599_v5  ;;  %v7409_v6 = vld [vmem:[%s7582_s24 + $0x2b0] sm:$0xff] }
 0x6db   : > { %v13626_v40 = vmul.f32 0.99, %v16328_v42  ;;  %6388 = vst [vmem:[%s10440_s17 + $0x2a0] sm:$0xff] %v6260_v41  ;;  %v6129_v21 = vmul.f32 %v6001_v2, %v16329_v62  ;;  %vm5250_vm8 = vweird.f32 %v13546_v35  ;;  %v3317_v22 = vadd.f32 1e-06, %v13554_v54  ;;  %v16331_v2 = vld [vmem:[#allocation397_spill] sm:$0xff] }
 0x6dc   : > { %v6006_v49 = vsel %vm2802_vm1, %v5304_v60, 0.0  ;;  %v5249_v53 = vadd.f32 %v7092_v13, %v5248_v1  ;;  %v5257_v27 = vor.u32 1.1754944e-38, %v5256_v4  ;;  %v5329_v48 = vand.u32 2147483647, %v13596_v15  ;;  %vm5252_vm9 = vmor %vm5250_vm8, %vm5251_vm7  ;;  %v16334_v60 = vld [vmem:[#allocation219_spill] sm:$0xff] }
 0x6dd   : > { %v7094_v19 = vpop.eup %7093  ;;  %v6257_v31 = vsub.f32 %v7408_v45, %v6129_v21  ;;  %v6134_v52 = vmul.f32 %v6006_v49, %v16330_v34  ;;  %v5331_v35 = vand.u32 2147483648, %v13596_v15  ;;  %v13640_v54 = vadd.f32 %v13576_v29, %v3317_v22  ;;  %v13662_v21 = vpop.f32.mrf.mxu0 }
 0x6de   : > { %v5253_v23 = vsel %vm5252_vm9, %v7092_v13, %v5249_v53  ;;  %vm5255_vm10 = vcmp.eq.f32.partialorder %v5254_v14, 8.507059e+37  ;;  %v5321_v39 = vmul.f32 %v7094_v19, %v13596_v15  ;;  %vm5325_vm11 = vweird.f32 %v13596_v15 }
 0x6df   : > { %6385 = vst.msk [vmem:[%s10440_s17 + $0x288] sm:$0xff] %vm355_vm0, %v6257_v31  ;;  %v6262_v4 = vsub.f32 %v7409_v6, %v6134_v52  ;;  %v5258_v61 = vsel %vm5255_vm10, %v5257_v27, %v5253_v23  ;;  %v3729_v41 = vadd.f32 1e-06, %v13548_v16  ;;  %7097 = vrcp.f32 %v13640_v54  ;;  %v13667_v27 = vpop.f32.mrf.mxu1  ;;  %v16336_v52 = vld [vmem:[#allocation143_spill] sm:$0xff] }
 0x6e0   : > { %v7096_v51 = vpop.eup %7095  ;;  %v5259_v29 = vmul.f32 %v5258_v61, %v16331_v2  ;;  %v5322_v50 = vsub.f32 1.0, %v5321_v39  ;;  %vm13650_vm13 = vcmp.eq.f32.partialorder %v5329_v48, 8.507059e+37  ;;  %v5284_v14 = vand.u32 2147483647, %v13599_v5  ;;  %v16335_v48 = vld [vmem:[#allocation110_spill] sm:$0xff]  ;;  %v13686_v2 = vpop.f32.mrf.mxu3 }
 0x6e1   : > { %vm2804_vm12 = vcmp.lt.f32.partialorder %v16334_v60, 0.0  ;;  %6390 = vst [vmem:[%s10440_s17 + $0x2b0] sm:$0xff] %v6262_v4  ;;  %v5332_v1 = vor.u32 1.1754944e-38, %v5331_v35  ;;  %v5276_v62 = vmul.f32 %v7096_v51, %v13599_v5  ;;  %vm5280_vm14 = vweird.f32 %v13599_v5  ;;  %v7410_v4 = vld [vmem:[%s7582_s24 + $0x298] sm:$0xff] }
 0x6e2   : > { %v13660_v16 = vadd.f32 %v13563_v38, %v3729_v41  ;;  %v6003_v22 = vsel %vm2799_vm6, %v5259_v29, 0.0  ;;  %v5323_v49 = vmul.f32 %v7094_v19, %v5322_v50  ;;  %vm5326_vm15 = vweird.f32 %v7094_v19  ;;  %v13671_v38 = vpop.f32.mrf.mxu2 }
 0x6e3   : > { %v5286_v53 = vand.u32 2147483648, %v13599_v5  ;;  %v6131_v45 = vmul.f32 %v6003_v22, %v16335_v48  ;;  %v5277_v31 = vsub.f32 1.0, %v5276_v62  ;;  %v3320_v34 = vadd.f32 1e-06, %v3319_v26  ;;  %vm5327_vm3 = vmor %vm5325_vm11, %vm5326_vm15 }
 0x6e4   : > { %7099 = vrcp.f32 %v13660_v16  ;;  %vm2801_vm1 = vcmp.lt.f32.partialorder %v16336_v52, 0.0  ;;  %v5324_v35 = vadd.f32 %v7094_v19, %v5323_v49  ;;  %vm13674_vm2 = vcmp.eq.f32.partialorder %v5284_v14, 8.507059e+37 }
 0x6e5   : > { %v5359_v23 = vand.u32 2147483647, %v13640_v54  ;;  %v5361_v39 = vand.u32 2147483648, %v13640_v54  ;;  %v7098_v6 = vpop.eup %7097  ;;  %v6259_v61 = vsub.f32 %v7410_v4, %v6131_v45  ;;  %v5278_v26 = vmul.f32 %v7096_v51, %v5277_v31  ;;  %v16342_v31 = vld [vmem:[#allocation220_spill] sm:$0xff]  ;;  %v16344_v4 = vld [vmem:[#allocation398_spill] sm:$0xff] }
 0x6e6   : > { %vm5281_vm4 = vweird.f32 %v7096_v51  ;;  %v13684_v41 = vadd.f32 %v3528_v36, %v3320_v34  ;;  %v5328_v29 = vsel %vm5327_vm3, %v7094_v19, %v5324_v35  ;;  %v5287_v50 = vor.u32 1.1754944e-38, %v5286_v53  ;;  %v16339_v36 = vld [vmem:[#allocation399_spill] sm:$0xff] }
 0x6e7   : > { %v5351_v14 = vmul.f32 %v7098_v6, %v13640_v54  ;;  %vm5355_vm5 = vweird.f32 %v13640_v54  ;;  %6387 = vst.msk [vmem:[%s10440_s17 + $0x298] sm:$0xff] %vm355_vm0, %v6259_v61  ;;  %v5333_v62 = vsel %vm13650_vm13, %v5332_v1, %v5328_v29  ;;  %v5279_v22 = vadd.f32 %v7096_v51, %v5278_v26  ;;  %vm5282_vm6 = vmor %vm5280_vm14, %vm5281_vm4  ;;  %v3325_v25 = vpop.f32.mrf.mxu1 }
 0x6e8   : > { %v3732_v15 = vadd.f32 1e-06, %v13610_v11  ;;  %7101 = vrcp.f32 %v13684_v41  ;;  %v5334_v49 = vmul.f32 %v5333_v62, %v16339_v36  ;;  %vm13699_vm7 = vcmp.eq.f32.partialorder %v5359_v23, 8.507059e+37  ;;  %v16343_v23 = vld [vmem:[#allocation117_spill] sm:$0xff] }
 0x6e9   : > { %v5352_v19 = vsub.f32 1.0, %v5351_v14  ;;  %v5362_v48 = vor.u32 1.1754944e-38, %v5361_v39  ;;  %vm2806_vm8 = vcmp.lt.f32.partialorder %v16342_v31, 0.0  ;;  %v5283_v13 = vsel %vm5282_vm6, %v7096_v51, %v5279_v22  ;;  %v16345_v62 = vld [vmem:[#allocation145_spill] sm:$0xff]  ;;  %v7411_v22 = vld [vmem:[%s7582_s24 + $0x2c0] sm:$0xff] }
 0x6ea   : > { %v7100_v45 = vpop.eup %7099  ;;  %vm5356_vm9 = vweird.f32 %v7098_v6  ;;  %vm5310_vm10 = vweird.f32 %v13660_v16  ;;  %v13706_v11 = vadd.f32 %v13619_v43, %v3732_v15  ;;  %v6008_v5 = vsel %vm2804_vm12, %v5334_v49, 0.0  ;;  %v13717_v43 = vpop.f32.mrf.mxu0 }
 0x6eb   : > { %v5288_v1 = vsel %vm13674_vm2, %v5287_v50, %v5283_v13  ;;  %v5353_v34 = vmul.f32 %v7098_v6, %v5352_v19  ;;  %v5306_v35 = vmul.f32 %v7100_v45, %v13660_v16  ;;  %v6136_v39 = vmul.f32 %v6008_v5, %v16343_v23  ;;  %vm5357_vm13 = vmor %vm5355_vm5, %vm5356_vm9  ;;  %v13729_v19 = vpop.f32.mrf.mxu2  ;;  %v16346_v13 = vld [vmem:[#allocation113_spill] sm:$0xff] }
 0x6ec   : > { %v5289_v51 = vmul.f32 %v5288_v1, %v16344_v4  ;;  %v5314_v61 = vand.u32 2147483647, %v13660_v16  ;;  %v5316_v26 = vand.u32 2147483648, %v13660_v16  ;;  %v5389_v14 = vand.u32 2147483647, %v13684_v41  ;;  %v3534_v4 = vpop.f32.mrf.mxu3 }
 0x6ed   : > { %v5354_v29 = vadd.f32 %v7098_v6, %v5353_v34  ;;  %v5307_v60 = vsub.f32 1.0, %v5306_v35  ;;  %7103 = vrcp.f32 %v13706_v11  ;;  %vm2803_vm11 = vcmp.lt.f32.partialorder %v16345_v62, 0.0  ;;  %v16357_v62 = vld [vmem:[#allocation402_spill] sm:$0xff] }
 0x6ee   : > { %v7102_v50 = vpop.eup %7101  ;;  %v6264_v15 = vsub.f32 %v7411_v22, %v6136_v39  ;;  %v6005_v36 = vsel %vm2801_vm1, %v5289_v51, 0.0  ;;  %vm5311_vm12 = vweird.f32 %v7100_v45  ;;  %v5391_v49 = vand.u32 2147483648, %v13684_v41  ;;  %v7412_v51 = vld [vmem:[%s7582_s24 + $0x2a8] sm:$0xff] }
 0x6ef   : > { %v6133_v5 = vmul.f32 %v6005_v36, %v16346_v13  ;;  %v5358_v1 = vsel %vm5357_vm13, %v7098_v6, %v5354_v29  ;;  %v5308_v34 = vmul.f32 %v7100_v45, %v5307_v60  ;;  %v5381_v35 = vmul.f32 %v7102_v50, %v13684_v41  ;;  %v16349_v36 = vld [vmem:[#allocation400_spill] sm:$0xff]  ;;  %v16350_v13 = vld [vmem:[#allocation221_spill] sm:$0xff]  ;;  %vm5312_vm1 = vmor %vm5310_vm10, %vm5311_vm12 }
 0x6f0   : > { %6392 = vst [vmem:[%s10440_s17 + $0x2c0] sm:$0xff] %v6264_v15  ;;  %v5363_v52 = vsel %vm13699_vm7, %v5362_v48, %v5358_v1  ;;  %vm13736_vm14 = vcmp.eq.f32.partialorder %v5314_v61, 8.507059e+37  ;;  %v5317_v54 = vor.u32 1.1754944e-38, %v5316_v26  ;;  %v3323_v39 = vadd.f32 1e-06, %v13667_v27 }
 0x6f1   : > { %v6261_v22 = vsub.f32 %v7412_v51, %v6133_v5  ;;  %v5364_v6 = vmul.f32 %v5363_v52, %v16349_v36  ;;  %v5309_v29 = vadd.f32 %v7100_v45, %v5308_v34  ;;  %v5382_v60 = vsub.f32 1.0, %v5381_v35  ;;  %v16353_v5 = vld [vmem:[#allocation120_spill] sm:$0xff] }
 0x6f2   : > { %vm2808_vm15 = vcmp.lt.f32.partialorder %v16350_v13, 0.0  ;;  %vm5385_vm2 = vweird.f32 %v13684_v41  ;;  %vm13748_vm3 = vcmp.eq.f32.partialorder %v5389_v14, 8.507059e+37  ;;  %v5392_v27 = vor.u32 1.1754944e-38, %v5391_v49  ;;  %v3328_v41 = vpop.f32.mrf.mxu1 }
 0x6f3   : > { %v13753_v48 = vadd.f32 %v13686_v2, %v3323_v39  ;;  %v7104_v61 = vpop.eup %7103  ;;  %6389 = vst.msk [vmem:[%s10440_s17 + $0x2a8] sm:$0xff] %vm355_vm0, %v6261_v22  ;;  %v6010_v26 = vsel %vm2806_vm8, %v5364_v6, 0.0  ;;  %v5313_v15 = vsel %vm5312_vm1, %v7100_v45, %v5309_v29  ;;  %v5383_v16 = vmul.f32 %v7102_v50, %v5382_v60  ;;  %v16354_v2 = vld [vmem:[#allocation401_spill] sm:$0xff]  ;;  %v7413_v39 = vld [vmem:[%s7582_s24 + $0x2d0] sm:$0xff]  ;;  %v13771_v22 = vpop.f32.mrf.mxu0 }
 0x6f4   : > { %vm5386_vm4 = vweird.f32 %v7102_v50  ;;  %v6138_v1 = vmul.f32 %v6010_v26, %v16353_v5  ;;  %v5318_v14 = vsel %vm13736_vm14, %v5317_v54, %v5313_v15  ;;  %v5336_v49 = vmul.f32 %v7104_v61, %v13706_v11  ;;  %v16356_v60 = vld [vmem:[#allocation116_spill] sm:$0xff]  ;;  %v13785_v5 = vpop.f32.mrf.mxu2  ;;  %v3537_v53 = vpop.f32.mrf.mxu3 }
 0x6f5   : > { %v3735_v34 = vadd.f32 1e-06, %v13662_v21  ;;  %v5319_v35 = vmul.f32 %v5318_v14, %v16354_v2  ;;  %v5384_v52 = vadd.f32 %v7102_v50, %v5383_v16  ;;  %7105 = vrcp.f32 %v13753_v48  ;;  %vm5387_vm5 = vmor %vm5385_vm2, %vm5386_vm4  ;;  %v16355_v21 = vld [vmem:[#allocation147_spill] sm:$0xff] }
 0x6f6   : > { %v3326_v31 = vadd.f32 1e-06, %v3325_v25  ;;  %v6266_v45 = vsub.f32 %v7413_v39, %v6138_v1  ;;  %v5337_v51 = vsub.f32 1.0, %v5336_v49  ;;  %v5344_v23 = vand.u32 2147483647, %v13706_v11 }
 0x6f7   : > { %v5346_v54 = vand.u32 2147483648, %v13706_v11  ;;  %vm2805_vm6 = vcmp.lt.f32.partialorder %v16355_v21, 0.0  ;;  %v6007_v36 = vsel %vm2803_vm11, %v5319_v35, 0.0  ;;  %v5388_v6 = vsel %vm5387_vm5, %v7102_v50, %v5384_v52  ;;  %v7414_v50 = vld [vmem:[%s7582_s24 + $0x2b8] sm:$0xff]  ;;  %v16358_v35 = vld [vmem:[#allocation118_spill] sm:$0xff] }
 0x6f8   : > { %v13777_v25 = vadd.f32 %v13671_v38, %v3735_v34  ;;  %v13779_v29 = vadd.f32 %v3534_v4, %v3326_v31  ;;  %6394 = vst [vmem:[%s10440_s17 + $0x2d0] sm:$0xff] %v6266_v45  ;;  %v6135_v26 = vmul.f32 %v6007_v36, %v16356_v60  ;;  %v5393_v15 = vsel %vm13748_vm3, %v5392_v27, %v5388_v6  ;;  %v16361_v36 = vld [vmem:[#allocation403_spill] sm:$0xff] }
 0x6f9   : > { %v5338_v16 = vmul.f32 %v7104_v61, %v5337_v51  ;;  %vm5341_vm7 = vweird.f32 %v7104_v61  ;;  %v5394_v1 = vmul.f32 %v5393_v15, %v16357_v62  ;;  %vm5340_vm8 = vweird.f32 %v13706_v11  ;;  %v16362_v15 = vld [vmem:[#allocation223_spill] sm:$0xff] }
 0x6fa   : > { %v5419_v38 = vand.u32 2147483647, %v13753_v48  ;;  %7107 = vrcp.f32 %v13777_v25  ;;  %v6263_v4 = vsub.f32 %v7414_v50, %v6135_v26  ;;  %vm5345_vm9 = vcmp.eq.f32.partialorder %v5344_v23, 8.507059e+37  ;;  %vm5342_vm10 = vmor %vm5340_vm8, %vm5341_vm7  ;;  %v7415_v23 = vld [vmem:[%s7582_s24 + $0x2e0] sm:$0xff] }
 0x6fb   : > { %v5339_v14 = vadd.f32 %v7104_v61, %v5338_v16  ;;  %v5347_v49 = vor.u32 1.1754944e-38, %v5346_v54  ;;  %v7106_v27 = vpop.eup %7105  ;;  %v6012_v34 = vsel %vm2808_vm15, %v5394_v1, 0.0  ;;  %v5421_v2 = vand.u32 2147483648, %v13753_v48 }
 0x6fc   : > { %v3738_v11 = vadd.f32 1e-06, %v13717_v43  ;;  %7109 = vrcp.f32 %v13779_v29  ;;  %6391 = vst.msk [vmem:[%s10440_s17 + $0x2b8] sm:$0xff] %vm355_vm0, %v6263_v4  ;;  %v6140_v52 = vmul.f32 %v6012_v34, %v16358_v35  ;;  %v5411_v39 = vmul.f32 %v7106_v27, %v13753_v48  ;;  %v16365_v34 = vld [vmem:[#allocation119_spill] sm:$0xff]  ;;  %v16375_v4 = vld [vmem:[#allocation224_spill] sm:$0xff] }
 0x6fd   : > { %v5343_v31 = vsel %vm5342_vm10, %v7104_v61, %v5339_v14  ;;  %v5374_v45 = vand.u32 2147483647, %v13777_v25  ;;  %vm5415_vm11 = vweird.f32 %v13753_v48  ;;  %vm13803_vm13 = vcmp.eq.f32.partialorder %v5419_v38, 8.507059e+37  ;;  %v13825_v14 = vpop.f32.mrf.mxu0 }
 0x6fe   : > { %v5348_v51 = vsel %vm5345_vm9, %v5347_v49, %v5343_v31  ;;  %v5376_v43 = vand.u32 2147483648, %v13777_v25  ;;  %v6268_v54 = vsub.f32 %v7415_v23, %v6140_v52  ;;  %v5412_v60 = vsub.f32 1.0, %v5411_v39  ;;  %v16368_v23 = vld [vmem:[#allocation222_spill] sm:$0xff] }
 0x6ff   : > { %v5349_v6 = vmul.f32 %v5348_v51, %v16361_v36  ;;  %v5449_v61 = vand.u32 2147483647, %v13779_v29  ;;  %vm2810_vm12 = vcmp.lt.f32.partialorder %v16362_v15, 0.0  ;;  %vm5416_vm14 = vweird.f32 %v7106_v27  ;;  %v13835_v51 = vpop.f32.mrf.mxu2  ;;  %v16374_v15 = vld [vmem:[#allocation405_spill] sm:$0xff] }
 0x700   : > { %v7108_v26 = vpop.eup %7107  ;;  %v5422_v16 = vor.u32 1.1754944e-38, %v5421_v2  ;;  %vm5370_vm15 = vweird.f32 %v13777_v25  ;;  %v13814_v62 = vadd.f32 %v13729_v19, %v3738_v11  ;;  %6396 = vst [vmem:[%s10440_s17 + $0x2e0] sm:$0xff] %v6268_v54  ;;  %v5413_v38 = vmul.f32 %v7106_v27, %v5412_v60  ;;  %v3331_v11 = vpop.f32.mrf.mxu1  ;;  %vm5417_vm5 = vmor %vm5415_vm11, %vm5416_vm14 }
 0x701   : > { %v6009_v1 = vsel %vm2805_vm6, %v5349_v6, 0.0  ;;  %v5366_v50 = vmul.f32 %v7108_v26, %v13777_v25  ;;  %vm13820_vm1 = vcmp.eq.f32.partialorder %v5374_v45, 8.507059e+37  ;;  %vm5445_vm2 = vweird.f32 %v13779_v29 }
 0x702   : > { %v7110_v49 = vpop.eup %7109  ;;  %v6137_v19 = vmul.f32 %v6009_v1, %v16365_v34  ;;  %v5377_v2 = vor.u32 1.1754944e-38, %v5376_v43  ;;  %7111 = vrcp.f32 %v13814_v62  ;;  %v3329_v21 = vadd.f32 1e-06, %v3328_v41  ;;  %v7416_v43 = vld [vmem:[%s7582_s24 + $0x2c8] sm:$0xff]  ;;  %v13848_v1 = vpop.f32.mrf.mxu3 }
 0x703   : > { %v5414_v35 = vadd.f32 %v7106_v27, %v5413_v38  ;;  %v5367_v52 = vsub.f32 1.0, %v5366_v50  ;;  %v5441_v31 = vmul.f32 %v7110_v49, %v13779_v29  ;;  %vm13830_vm3 = vcmp.eq.f32.partialorder %v5449_v61, 8.507059e+37  ;;  %v16369_v38 = vld [vmem:[#allocation225_spill] sm:$0xff] }
 0x704   : > { %v3741_v45 = vadd.f32 1e-06, %v13771_v22  ;;  %vm2807_vm4 = vcmp.lt.f32.partialorder %v16368_v23, 0.0  ;;  %v6265_v54 = vsub.f32 %v7416_v43, %v6137_v19  ;;  %vm5371_vm6 = vweird.f32 %v7108_v26  ;;  %v16371_v43 = vld [vmem:[#allocation121_spill] sm:$0xff] }
 0x705   : > { %v5451_v41 = vand.u32 2147483648, %v13779_v29  ;;  %v13843_v36 = vadd.f32 %v3537_v53, %v3329_v21  ;;  %v5418_v6 = vsel %vm5417_vm5, %v7106_v27, %v5414_v35  ;;  %v5368_v60 = vmul.f32 %v7108_v26, %v5367_v52  ;;  %v16370_v27 = vld [vmem:[#allocation404_spill] sm:$0xff]  ;;  %vm5372_vm9 = vmor %vm5370_vm15, %vm5371_vm6 }
 0x706   : > { %v5442_v61 = vsub.f32 1.0, %v5441_v31  ;;  %v13846_v22 = vadd.f32 %v13785_v5, %v3741_v45  ;;  %vm2812_vm7 = vcmp.lt.f32.partialorder %v16369_v38, 0.0  ;;  %6393 = vst.msk [vmem:[%s10440_s17 + $0x2c8] sm:$0xff] %vm355_vm0, %v6265_v54  ;;  %v5423_v48 = vsel %vm13803_vm13, %v5422_v16, %v5418_v6 }
 0x707   : > { %v5404_v50 = vand.u32 2147483647, %v13814_v62  ;;  %v5406_v53 = vand.u32 2147483648, %v13814_v62  ;;  %7113 = vrcp.f32 %v13843_v36  ;;  %v5424_v34 = vmul.f32 %v5423_v48, %v16370_v27 }
 0x708   : > { %v5369_v19 = vadd.f32 %v7108_v26, %v5368_v60  ;;  %v5443_v5 = vmul.f32 %v7110_v49, %v5442_v61  ;;  %vm5446_vm8 = vweird.f32 %v7110_v49  ;;  %v7112_v21 = vpop.eup %7111  ;;  %v5452_v35 = vor.u32 1.1754944e-38, %v5451_v41  ;;  %v13878_v61 = vpop.f32.mrf.mxu0 }
 0x709   : > { %vm5400_vm10 = vweird.f32 %v13814_v62  ;;  %7115 = vrcp.f32 %v13846_v22  ;;  %v3332_v13 = vadd.f32 1e-06, %v3331_v11  ;;  %v6014_v16 = vsel %vm2810_vm12, %v5424_v34, 0.0  ;;  %vm5447_vm11 = vmor %vm5445_vm2, %vm5446_vm8  ;;  %v3334_v27 = vpop.f32.mrf.mxu1  ;;  %v16376_v34 = vld [vmem:[#allocation406_spill] sm:$0xff] }
 0x70a   : > { %v5373_v52 = vsel %vm5372_vm9, %v7108_v26, %v5369_v19  ;;  %v5444_v31 = vadd.f32 %v7110_v49, %v5443_v5  ;;  %v5396_v45 = vmul.f32 %v7112_v21, %v13814_v62  ;;  %v6142_v54 = vmul.f32 %v6014_v16, %v16371_v43 }
 0x70b   : > { %v5378_v25 = vsel %vm13820_vm1, %v5377_v2, %v5373_v52  ;;  %vm13872_vm13 = vcmp.eq.f32.partialorder %v5404_v50, 8.507059e+37  ;;  %v5407_v11 = vor.u32 1.1754944e-38, %v5406_v53  ;;  %vm5475_vm12 = vweird.f32 %v13843_v36  ;;  %v7417_v2 = vld [vmem:[%s7582_s24 + $0x2f0] sm:$0xff]  ;;  %v13889_v52 = vpop.f32.mrf.mxu2 }
 0x70c   : > { %v5379_v6 = vmul.f32 %v5378_v25, %v16374_v15  ;;  %v5448_v60 = vsel %vm5447_vm11, %v7110_v49, %v5444_v31  ;;  %v5397_v26 = vsub.f32 1.0, %v5396_v45  ;;  %vm2809_vm14 = vcmp.lt.f32.partialorder %v16375_v4, 0.0  ;;  %v16377_v45 = vld [vmem:[#allocation123_spill] sm:$0xff] }
 0x70d   : > { %v7114_v48 = vpop.eup %7113  ;;  %v6270_v29 = vsub.f32 %v7417_v2, %v6142_v54  ;;  %v5453_v50 = vsel %vm13830_vm3, %v5452_v35, %v5448_v60  ;;  %vm5401_vm15 = vweird.f32 %v7112_v21  ;;  %v5479_v53 = vand.u32 2147483647, %v13843_v36  ;;  %v3543_v60 = vpop.f32.mrf.mxu3  ;;  %v7418_v2 = vld [vmem:[%s7582_s24 + $0x2d8] sm:$0xff] }
 0x70e   : > { %v6011_v49 = vsel %vm2807_vm4, %v5379_v6, 0.0  ;;  %v5454_v19 = vmul.f32 %v5453_v50, %v16376_v34  ;;  %v5398_v5 = vmul.f32 %v7112_v21, %v5397_v26  ;;  %v5471_v16 = vmul.f32 %v7114_v48, %v13843_v36  ;;  %v16378_v26 = vld [vmem:[#allocation227_spill] sm:$0xff]  ;;  %v16379_v50 = vld [vmem:[#allocation184_spill] sm:$0xff]  ;;  %vm5402_vm2 = vmor %vm5400_vm10, %vm5401_vm15 }
 0x70f   : > { %v7116_v31 = vpop.eup %7115  ;;  %6398 = vst [vmem:[%s10440_s17 + $0x2f0] sm:$0xff] %v6270_v29  ;;  %v6139_v39 = vmul.f32 %v6011_v49, %v16377_v45  ;;  %v5481_v35 = vand.u32 2147483648, %v13843_v36  ;;  %v5434_v43 = vand.u32 2147483647, %v13846_v22  ;;  %v5436_v54 = vand.u32 2147483648, %v13846_v22  ;;  %v16380_v45 = vld [vmem:[#allocation226_spill] sm:$0xff] }
 0x710   : > { %v6016_v23 = vsel %vm2812_vm7, %v5454_v19, 0.0  ;;  %v5399_v25 = vadd.f32 %v7112_v21, %v5398_v5  ;;  %v5472_v15 = vsub.f32 1.0, %v5471_v16  ;;  %v5426_v6 = vmul.f32 %v7116_v31, %v13846_v22 }
 0x711   : > { %vm2814_vm1 = vcmp.lt.f32.partialorder %v16378_v26, 0.0  ;;  %v6267_v29 = vsub.f32 %v7418_v2, %v6139_v39  ;;  %v6144_v49 = vmul.f32 %v6016_v23, %v16379_v50  ;;  %vm5476_vm3 = vweird.f32 %v7114_v48  ;;  %v7419_v39 = vld [vmem:[%s7582_s24 + $0x300] sm:$0xff] }
 0x712   : > { %v3744_v38 = vadd.f32 1e-06, %v13825_v14  ;;  %v5403_v34 = vsel %vm5402_vm2, %v7112_v21, %v5399_v25  ;;  %v5473_v19 = vmul.f32 %v7114_v48, %v5472_v15  ;;  %v5427_v5 = vsub.f32 1.0, %v5426_v6  ;;  %v16381_v14 = vld [vmem:[#allocation407_spill] sm:$0xff]  ;;  %vm5477_vm6 = vmor %vm5475_vm12, %vm5476_vm3  ;;  %v3749_v6 = vpop.f32.mrf.mxu0 }
 0x713   : > { %v13907_v16 = vadd.f32 %v13848_v1, %v3332_v13  ;;  %vm2811_vm4 = vcmp.lt.f32.partialorder %v16380_v45, 0.0  ;;  %6395 = vst.msk [vmem:[%s10440_s17 + $0x2d8] sm:$0xff] %vm355_vm0, %v6267_v29  ;;  %v6272_v23 = vsub.f32 %v7419_v39, %v6144_v49  ;;  %v5408_v62 = vsel %vm13872_vm13, %v5407_v11, %v5403_v34  ;;  %v16382_v29 = vld [vmem:[#allocation125_spill] sm:$0xff]  ;;  %v3958_v4 = vpop.f32.mrf.mxu2 }
 0x714   : > { %vm5431_vm5 = vweird.f32 %v7116_v31  ;;  %v13916_v2 = vadd.f32 %v13835_v51, %v3744_v38  ;;  %v5409_v21 = vmul.f32 %v5408_v62, %v16381_v14  ;;  %v5474_v25 = vadd.f32 %v7114_v48, %v5473_v19  ;;  %v16384_v19 = vld [vmem:[#allocation273_spill] sm:$0xff] }
 0x715   : > { %v5428_v15 = vmul.f32 %v7116_v31, %v5427_v5  ;;  %7117 = vrcp.f32 %v13907_v16  ;;  %6400 = vst [vmem:[%s10440_s17 + $0x300] sm:$0xff] %v6272_v23  ;;  %vm5480_vm7 = vcmp.eq.f32.partialorder %v5479_v53, 8.507059e+37  ;;  %v5482_v1 = vor.u32 1.1754944e-38, %v5481_v35  ;;  %v3337_v35 = vpop.f32.mrf.mxu1  ;;  %v7420_v5 = vld [vmem:[%s7582_s24 + $0x2e8] sm:$0xff] }
 0x716   : > { %vm5430_vm8 = vweird.f32 %v13846_v22  ;;  %7119 = vrcp.f32 %v13916_v2  ;;  %v6013_v51 = vsel %vm2809_vm14, %v5409_v21, 0.0  ;;  %v5478_v13 = vsel %vm5477_vm6, %v7114_v48, %v5474_v25  ;;  %v16383_v22 = vld [vmem:[#allocation410_spill] sm:$0xff]  ;;  %v16386_v21 = vld [vmem:[#allocation409_spill] sm:$0xff] }
 0x717   : > { %v5429_v41 = vadd.f32 %v7116_v31, %v5428_v15  ;;  %v5437_v11 = vor.u32 1.1754944e-38, %v5436_v54  ;;  %v6141_v50 = vmul.f32 %v6013_v51, %v16382_v29  ;;  %v5483_v49 = vsel %vm5480_vm7, %v5482_v1, %v5478_v13  ;;  %vm5432_vm9 = vmor %vm5430_vm8, %vm5431_vm5  ;;  %v16387_v15 = vld [vmem:[#allocation187_spill] sm:$0xff]  ;;  %v7421_v29 = vld [vmem:[%s7582_s24 + $0x310] sm:$0xff] }
 0x718   : > { %v5509_v36 = vand.u32 2147483647, %v13907_v16  ;;  %v3335_v53 = vadd.f32 1e-06, %v3334_v27  ;;  %v5484_v38 = vmul.f32 %v5483_v49, %v16383_v22  ;;  %vm5435_vm10 = vcmp.eq.f32.partialorder %v5434_v43, 8.507059e+37  ;;  %v3546_v43 = vpop.f32.mrf.mxu3  ;;  %v16390_v49 = vld [vmem:[#allocation127_spill] sm:$0xff] }
 0x719   : > { %v5433_v34 = vsel %vm5432_vm9, %v7116_v31, %v5429_v41  ;;  %v5511_v48 = vand.u32 2147483648, %v13907_v16  ;;  %v13934_v54 = vmul.f32 0.99, %v16384_v19  ;;  %v6269_v39 = vsub.f32 %v7420_v5, %v6141_v50  ;;  %v16392_v5 = vld [vmem:[#allocation228_spill] sm:$0xff]  ;;  %v16399_v51 = vld [vmem:[#allocation411_spill] sm:$0xff] }
 0x71a   : > { %v5438_v23 = vsel %vm5435_vm10, %v5437_v11, %v5433_v34  ;;  %v13937_v62 = vadd.f32 %v3543_v60, %v3335_v53  ;;  %v6018_v27 = vsel %vm2814_vm1, %v5484_v38, 0.0  ;;  %vm5505_vm11 = vweird.f32 %v13907_v16  ;;  %v16391_v38 = vld [vmem:[#allocation229_spill] sm:$0xff] }
 0x71b   : > { %16385 = vst [vmem:[#allocation255_spill] sm:$0xff] %v13934_v54  ;;  %v7118_v14 = vpop.eup %7117  ;;  %v5439_v31 = vmul.f32 %v5438_v23, %v16386_v21  ;;  %vm5460_vm13 = vweird.f32 %v13916_v2  ;;  %v6146_v1 = vmul.f32 %v6018_v27, %v16387_v15  ;;  %vm13948_vm12 = vcmp.eq.f32.partialorder %v5509_v36, 8.507059e+37  ;;  %v16406_v54 = vld [vmem:[#allocation233_spill] sm:$0xff] }
 0x71c   : > { %v7120_v25 = vpop.eup %7119  ;;  %6397 = vst.msk [vmem:[%s10440_s17 + $0x2e8] sm:$0xff] %vm355_vm0, %v6269_v39  ;;  %v5501_v60 = vmul.f32 %v7118_v14, %v13907_v16  ;;  %7121 = vrcp.f32 %v13937_v62  ;;  %v5512_v13 = vor.u32 1.1754944e-38, %v5511_v48  ;;  %v3747_v11 = vadd.f32 1e-06, %v13878_v61  ;;  %v7422_v61 = vld [vmem:[%s7582_s24 + $0x2f8] sm:$0xff] }
 0x71d   : > { %v6015_v26 = vsel %vm2811_vm4, %v5439_v31, 0.0  ;;  %v5456_v41 = vmul.f32 %v7120_v25, %v13916_v2  ;;  %v6274_v50 = vsub.f32 %v7421_v29, %v6146_v1  ;;  %v5464_v22 = vand.u32 2147483647, %v13916_v2  ;;  %v13970_v1 = vpop.f32.mrf.mxu0 }
 0x71e   : > { %v6143_v53 = vmul.f32 %v6015_v26, %v16390_v49  ;;  %v5502_v36 = vsub.f32 1.0, %v5501_v60  ;;  %vm2816_vm14 = vcmp.lt.f32.partialorder %v16391_v38, 0.0  ;;  %vm5506_vm15 = vweird.f32 %v7118_v14  ;;  %v16402_v26 = vld [vmem:[#allocation190_spill] sm:$0xff] }
 0x71f   : > { %v5457_v34 = vsub.f32 1.0, %v5456_v41  ;;  %v5466_v45 = vand.u32 2147483648, %v13916_v2  ;;  %v13963_v48 = vadd.f32 %v13889_v52, %v3747_v11  ;;  %vm2813_vm1 = vcmp.lt.f32.partialorder %v16392_v5, 0.0  ;;  %6402 = vst [vmem:[%s10440_s17 + $0x310] sm:$0xff] %v6274_v50  ;;  %vm5507_vm4 = vmor %vm5505_vm11, %vm5506_vm15  ;;  %v16398_v2 = vld [vmem:[#allocation412_spill] sm:$0xff] }
 0x720   : > { %v6271_v39 = vsub.f32 %v7422_v61, %v6143_v53  ;;  %v5503_v23 = vmul.f32 %v7118_v14, %v5502_v36  ;;  %vm5461_vm2 = vweird.f32 %v7120_v25  ;;  %v3338_v27 = vadd.f32 1e-06, %v3337_v35  ;;  %v3340_v35 = vpop.f32.mrf.mxu1  ;;  %v13987_v53 = vpop.f32.mrf.mxu2 }
 0x721   : > { %v5458_v21 = vmul.f32 %v7120_v25, %v5457_v34  ;;  %v5539_v31 = vand.u32 2147483647, %v13937_v62  ;;  %7123 = vrcp.f32 %v13963_v48  ;;  %v3750_v15 = vadd.f32 1e-06, %v3749_v6  ;;  %vm5462_vm5 = vmor %vm5460_vm13, %vm5461_vm2 }
 0x722   : > { %v7122_v60 = vpop.eup %7121  ;;  %6399 = vst.msk [vmem:[%s10440_s17 + $0x2f8] sm:$0xff] %vm355_vm0, %v6271_v39  ;;  %v5504_v52 = vadd.f32 %v7118_v14, %v5503_v23  ;;  %vm13974_vm3 = vcmp.eq.f32.partialorder %v5464_v22, 8.507059e+37  ;;  %v5541_v41 = vand.u32 2147483648, %v13937_v62  ;;  %v13979_v11 = vadd.f32 %v3546_v43, %v3338_v27 }
 0x723   : > { %v5459_v6 = vadd.f32 %v7120_v25, %v5458_v21  ;;  %v5467_v29 = vor.u32 1.1754944e-38, %v5466_v45  ;;  %v5531_v50 = vmul.f32 %v7122_v60, %v13937_v62  ;;  %v13985_v49 = vadd.f32 %v3958_v4, %v3750_v15  ;;  %v16397_v45 = vld [vmem:[#allocation231_spill] sm:$0xff] }
 0x724   : > { %v5508_v36 = vsel %vm5507_vm4, %v7118_v14, %v5504_v52  ;;  %vm5535_vm6 = vweird.f32 %v13937_v62  ;;  %v5494_v43 = vand.u32 2147483647, %v13963_v48  ;;  %7125 = vrcp.f32 %v13979_v11  ;;  %v3549_v14 = vpop.f32.mrf.mxu3 }
 0x725   : > { %v5513_v16 = vsel %vm13948_vm12, %v5512_v13, %v5508_v36  ;;  %v5463_v22 = vsel %vm5462_vm5, %v7120_v25, %v5459_v6  ;;  %v5532_v34 = vsub.f32 1.0, %v5531_v50  ;;  %vm13997_vm7 = vcmp.eq.f32.partialorder %v5539_v31, 8.507059e+37  ;;  %v16403_v36 = vld [vmem:[#allocation129_spill] sm:$0xff] }
 0x726   : > { %vm2818_vm8 = vcmp.lt.f32.partialorder %v16397_v45, 0.0  ;;  %v5514_v61 = vmul.f32 %v5513_v16, %v16398_v2  ;;  %v5468_v39 = vsel %vm13974_vm3, %v5467_v29, %v5463_v22  ;;  %v5542_v23 = vor.u32 1.1754944e-38, %v5541_v41  ;;  %v7423_v2 = vld [vmem:[%s7582_s24 + $0x320] sm:$0xff] }
 0x727   : > { %v5496_v27 = vand.u32 2147483648, %v13963_v48  ;;  %v7124_v21 = vpop.eup %7123  ;;  %v5469_v13 = vmul.f32 %v5468_v39, %v16399_v51  ;;  %v5533_v25 = vmul.f32 %v7122_v60, %v5532_v34  ;;  %vm5536_vm9 = vweird.f32 %v7122_v60  ;;  %v16404_v34 = vld [vmem:[#allocation230_spill] sm:$0xff] }
 0x728   : > { %7127 = vrcp.f32 %v13985_v49  ;;  %v6020_v31 = vsel %vm2816_vm14, %v5514_v61, 0.0  ;;  %v5486_v15 = vmul.f32 %v7124_v21, %v13963_v48  ;;  %vm5490_vm10 = vweird.f32 %v13963_v48  ;;  %vm5537_vm13 = vmor %vm5535_vm6, %vm5536_vm9 }
 0x729   : > { %vm14012_vm11 = vcmp.eq.f32.partialorder %v5494_v43, 8.507059e+37  ;;  %v6148_v41 = vmul.f32 %v6020_v31, %v16402_v26  ;;  %v6017_v6 = vsel %vm2813_vm1, %v5469_v13, 0.0  ;;  %v5534_v29 = vadd.f32 %v7122_v60, %v5533_v25  ;;  %v14028_v13 = vpop.f32.mrf.mxu0  ;;  %v7424_v25 = vld [vmem:[%s7582_s24 + $0x308] sm:$0xff] }
 0x72a   : > { %v5571_v50 = vand.u32 2147483648, %v13979_v11  ;;  %v7126_v38 = vpop.eup %7125  ;;  %v6145_v16 = vmul.f32 %v6017_v6, %v16403_v36  ;;  %v5487_v22 = vsub.f32 1.0, %v5486_v15  ;;  %v5497_v43 = vor.u32 1.1754944e-38, %v5496_v27  ;;  %v3343_v15 = vpop.f32.mrf.mxu1  ;;  %v16405_v6 = vld [vmem:[#allocation254_spill] sm:$0xff] }
 0x72b   : > { %vm5565_vm12 = vweird.f32 %v13979_v11  ;;  %vm2815_vm14 = vcmp.lt.f32.partialorder %v16404_v34, 0.0  ;;  %v6276_v5 = vsub.f32 %v7423_v2, %v6148_v41  ;;  %v5538_v61 = vsel %vm5537_vm13, %v7122_v60, %v5534_v29  ;;  %v14035_v2 = vpop.f32.mrf.mxu2 }
 0x72c   : > { %v5561_v39 = vmul.f32 %v7126_v38, %v13979_v11  ;;  %v5569_v51 = vand.u32 2147483647, %v13979_v11  ;;  %v6273_v62 = vsub.f32 %v7424_v25, %v6145_v16  ;;  %v5543_v27 = vsel %vm13997_vm7, %v5542_v23, %v5538_v61  ;;  %v3552_v61 = vpop.f32.mrf.mxu3  ;;  %v16411_v11 = vld [vmem:[#allocation414_spill] sm:$0xff] }
 0x72d   : > { %v5488_v31 = vmul.f32 %v7124_v21, %v5487_v22  ;;  %vm5491_vm15 = vweird.f32 %v7124_v21  ;;  %6404 = vst [vmem:[%s10440_s17 + $0x320] sm:$0xff] %v6276_v5  ;;  %v5544_v41 = vmul.f32 %v5543_v27, %v16405_v6  ;;  %v5572_v29 = vor.u32 1.1754944e-38, %v5571_v50 }
 0x72e   : > { %v7128_v26 = vpop.eup %7127  ;;  %v5562_v60 = vsub.f32 1.0, %v5561_v39  ;;  %v3341_v36 = vadd.f32 1e-06, %v3340_v35  ;;  %vm2820_vm1 = vcmp.lt.f32.partialorder %v16406_v54, 0.0  ;;  %6401 = vst.msk [vmem:[%s10440_s17 + $0x308] sm:$0xff] %vm355_vm0, %v6273_v62  ;;  %vm5492_vm2 = vmor %vm5490_vm10, %vm5491_vm15  ;;  %vm5566_vm3 = vweird.f32 %v7126_v38  ;;  %v16407_v39 = vld [vmem:[#allocation193_spill] sm:$0xff] }
 0x72f   : > { %v5489_v16 = vadd.f32 %v7124_v21, %v5488_v31  ;;  %v5516_v4 = vmul.f32 %v7128_v26, %v13985_v49  ;;  %v5524_v23 = vand.u32 2147483647, %v13985_v49  ;;  %v3753_v22 = vadd.f32 1e-06, %v13970_v1  ;;  %v16408_v1 = vld [vmem:[#allocation232_spill] sm:$0xff]  ;;  %vm5567_vm5 = vmor %vm5565_vm12, %vm5566_vm3 }
 0x730   : > { %v6022_v5 = vsel %vm2818_vm8, %v5544_v41, 0.0  ;;  %v5563_v35 = vmul.f32 %v7126_v38, %v5562_v60  ;;  %v14048_v50 = vadd.f32 %v3549_v14, %v3341_v36  ;;  %vm2817_vm4 = vcmp.lt.f32.partialorder %v16408_v1, 0.0  ;;  %v7425_v14 = vld [vmem:[%s7582_s24 + $0x330] sm:$0xff]  ;;  %v16409_v60 = vld [vmem:[#allocation413_spill] sm:$0xff] }
 0x731   : > { %v6150_v25 = vmul.f32 %v6022_v5, %v16407_v39  ;;  %v5493_v62 = vsel %vm5492_vm2, %v7124_v21, %v5489_v16  ;;  %v5517_v27 = vsub.f32 1.0, %v5516_v4  ;;  %v14052_v31 = vadd.f32 %v13987_v53, %v3753_v22  ;;  %v16410_v22 = vld [vmem:[#allocation131_spill] sm:$0xff] }
 0x732   : > { %v5498_v45 = vsel %vm14012_vm11, %v5497_v43, %v5493_v62  ;;  %v5564_v48 = vadd.f32 %v7126_v38, %v5563_v35  ;;  %v5526_v6 = vand.u32 2147483648, %v13985_v49  ;;  %7129 = vrcp.f32 %v14048_v50  ;;  %v3346_v62 = vpop.f32.mrf.mxu1 }
 0x733   : > { %v6278_v41 = vsub.f32 %v7425_v14, %v6150_v25  ;;  %v5499_v36 = vmul.f32 %v5498_v45, %v16409_v60  ;;  %v5518_v53 = vmul.f32 %v7128_v26, %v5517_v27  ;;  %vm5521_vm6 = vweird.f32 %v7128_v26  ;;  %v7426_v27 = vld [vmem:[%s7582_s24 + $0x318] sm:$0xff]  ;;  %v3967_v14 = vpop.f32.mrf.mxu2 }
 0x734   : > { %v5568_v21 = vsel %vm5567_vm5, %v7126_v38, %v5564_v48  ;;  %vm5570_vm7 = vcmp.eq.f32.partialorder %v5569_v51, 8.507059e+37  ;;  %vm5520_vm8 = vweird.f32 %v13985_v49  ;;  %7131 = vrcp.f32 %v14052_v31  ;;  %v3758_v51 = vpop.f32.mrf.mxu0 }
 0x735   : > { %6406 = vst [vmem:[%s10440_s17 + $0x330] sm:$0xff] %v6278_v41  ;;  %v6019_v52 = vsel %vm2815_vm14, %v5499_v36, 0.0  ;;  %v5573_v43 = vsel %vm5570_vm7, %v5572_v29, %v5568_v21  ;;  %v5519_v16 = vadd.f32 %v7128_v26, %v5518_v53  ;;  %v3344_v4 = vadd.f32 1e-06, %v3343_v15  ;;  %vm5522_vm9 = vmor %vm5520_vm8, %vm5521_vm6  ;;  %v16412_v41 = vld [vmem:[#allocation196_spill] sm:$0xff]  ;;  %v3555_v21 = vpop.f32.mrf.mxu3 }
 0x736   : > { %v6147_v5 = vmul.f32 %v6019_v52, %v16410_v22  ;;  %v5574_v35 = vmul.f32 %v5573_v43, %v16411_v11  ;;  %v5527_v39 = vor.u32 1.1754944e-38, %v5526_v6  ;;  %v5599_v38 = vand.u32 2147483647, %v14048_v50  ;;  %v7427_v52 = vld [vmem:[%s7582_s24 + $0x340] sm:$0xff] }
 0x737   : > { %v5523_v49 = vsel %vm5522_vm9, %v7128_v26, %v5519_v16  ;;  %vm5525_vm10 = vcmp.eq.f32.partialorder %v5524_v23, 8.507059e+37  ;;  %v5601_v25 = vand.u32 2147483648, %v14048_v50  ;;  %v14073_v34 = vadd.f32 %v3552_v61, %v3344_v4  ;;  %v16413_v23 = vld [vmem:[#allocation415_spill] sm:$0xff] }
 0x738   : > { %v7130_v29 = vpop.eup %7129  ;;  %v6275_v15 = vsub.f32 %v7426_v27, %v6147_v5  ;;  %v6024_v45 = vsel %vm2820_vm1, %v5574_v35, 0.0  ;;  %v5528_v48 = vsel %vm5525_vm10, %v5527_v39, %v5523_v49  ;;  %v5554_v6 = vand.u32 2147483647, %v14052_v31  ;;  %v16416_v5 = vld [vmem:[#allocation133_spill] sm:$0xff]  ;;  %v7428_v27 = vld [vmem:[%s7582_s24 + $0x328] sm:$0xff] }
 0x739   : > { %v6152_v26 = vmul.f32 %v6024_v45, %v16412_v41  ;;  %v5529_v60 = vmul.f32 %v5528_v48, %v16413_v23  ;;  %v5591_v36 = vmul.f32 %v7130_v29, %v14048_v50  ;;  %vm5595_vm11 = vweird.f32 %v14048_v50 }
 0x73a   : > { %v7132_v61 = vpop.eup %7131  ;;  %6403 = vst.msk [vmem:[%s10440_s17 + $0x318] sm:$0xff] %vm355_vm0, %v6275_v15  ;;  %vm14085_vm13 = vcmp.eq.f32.partialorder %v5599_v38, 8.507059e+37  ;;  %vm5550_vm12 = vweird.f32 %v14052_v31  ;;  %v3756_v53 = vadd.f32 1e-06, %v14028_v13  ;;  %7133 = vrcp.f32 %v14073_v34 }
 0x73b   : > { %v6280_v43 = vsub.f32 %v7427_v52, %v6152_v26  ;;  %v6021_v16 = vsel %vm2817_vm4, %v5529_v60, 0.0  ;;  %v5592_v4 = vsub.f32 1.0, %v5591_v36  ;;  %v5546_v22 = vmul.f32 %v7132_v61, %v14052_v31 }
 0x73c   : > { %vm2822_vm14 = vcmp.lt.f32.partialorder %v15882_v28, 0.0  ;;  %v6149_v11 = vmul.f32 %v6021_v16, %v16416_v5  ;;  %v5602_v35 = vor.u32 1.1754944e-38, %v5601_v25  ;;  %vm14098_vm15 = vcmp.eq.f32.partialorder %v5554_v6, 8.507059e+37 }
 0x73d   : > { %v5556_v13 = vand.u32 2147483648, %v14052_v31  ;;  %6408 = vst [vmem:[%s10440_s17 + $0x340] sm:$0xff] %v6280_v43  ;;  %v5593_v38 = vmul.f32 %v7130_v29, %v5592_v4  ;;  %vm5596_vm1 = vweird.f32 %v7130_v29  ;;  %v5547_v1 = vsub.f32 1.0, %v5546_v22  ;;  %v3349_v43 = vpop.f32.mrf.mxu1 }
 0x73e   : > { %v14105_v49 = vadd.f32 %v14035_v2, %v3756_v53  ;;  %vm2819_vm2 = vcmp.lt.f32.partialorder %v15883_v9, 0.0  ;;  %v6277_v15 = vsub.f32 %v7428_v27, %v6149_v11  ;;  %v5629_v25 = vand.u32 2147483647, %v14073_v34  ;;  %vm5597_vm4 = vmor %vm5595_vm11, %vm5596_vm1 }
 0x73f   : > { %v3347_v45 = vadd.f32 1e-06, %v3346_v62  ;;  %v3759_v48 = vadd.f32 1e-06, %v3758_v51  ;;  %v5594_v6 = vadd.f32 %v7130_v29, %v5593_v38  ;;  %v5548_v41 = vmul.f32 %v7132_v61, %v5547_v1  ;;  %v14121_v51 = vpop.f32.mrf.mxu0  ;;  %v16421_v1 = vld [vmem:[#allocation199_spill] sm:$0xff] }
 0x740   : > { %vm5551_vm3 = vweird.f32 %v7132_v61  ;;  %7135 = vrcp.f32 %v14105_v49  ;;  %v7134_v26 = vpop.eup %7133  ;;  %6405 = vst.msk [vmem:[%s10440_s17 + $0x328] sm:$0xff] %vm355_vm0, %v6277_v15  ;;  %v5557_v2 = vor.u32 1.1754944e-38, %v5556_v13  ;;  %v5631_v23 = vand.u32 2147483648, %v14073_v34 }
 0x741   : > { %v14117_v60 = vadd.f32 %v3555_v21, %v3347_v45  ;;  %v14119_v36 = vadd.f32 %v3967_v14, %v3759_v48  ;;  %v5598_v62 = vsel %vm5597_vm4, %v7130_v29, %v5594_v6  ;;  %v5549_v53 = vadd.f32 %v7132_v61, %v5548_v41  ;;  %vm5552_vm6 = vmor %vm5550_vm12, %vm5551_vm3  ;;  %v14136_v29 = vpop.f32.mrf.mxu2  ;;  %v7429_v48 = vld [vmem:[%s7582_s24 + $0x350] sm:$0xff]  ;;  %v16424_v41 = vld [vmem:[#allocation135_spill] sm:$0xff] }
 0x742   : > { %v5621_v52 = vmul.f32 %v7134_v26, %v14073_v34  ;;  %vm5625_vm5 = vweird.f32 %v14073_v34  ;;  %v5603_v50 = vsel %vm14085_vm13, %v5602_v35, %v5598_v62  ;;  %vm14130_vm7 = vcmp.eq.f32.partialorder %v5629_v25, 8.507059e+37  ;;  %v3558_v35 = vpop.f32.mrf.mxu3 }
 0x743   : > { %v5584_v14 = vand.u32 2147483647, %v14105_v49  ;;  %7137 = vrcp.f32 %v14117_v60  ;;  %v5604_v16 = vmul.f32 %v5603_v50, %v10796_v8  ;;  %v5553_v4 = vsel %vm5552_vm6, %v7132_v61, %v5549_v53  ;;  %v7430_v50 = vld [vmem:[%s7582_s24 + $0x338] sm:$0xff] }
 0x744   : > { %v5622_v22 = vsub.f32 1.0, %v5621_v52  ;;  %v5586_v54 = vand.u32 2147483648, %v14105_v49  ;;  %vm2824_vm8 = vcmp.lt.f32.partialorder %v15906_v55, 0.0  ;;  %v5558_v31 = vsel %vm14098_vm15, %v5557_v2, %v5553_v4 }
 0x745   : > { %v5632_v5 = vor.u32 1.1754944e-38, %v5631_v23  ;;  %7139 = vrcp.f32 %v14119_v36  ;;  %v3350_v11 = vadd.f32 1e-06, %v3349_v43  ;;  %v6026_v38 = vsel %vm2822_vm14, %v5604_v16, 0.0 }
 0x746   : > { %v7136_v13 = vpop.eup %7135  ;;  %v5559_v8 = vmul.f32 %v5558_v31, %v10799_v17  ;;  %v5623_v61 = vmul.f32 %v7134_v26, %v5622_v22  ;;  %vm5626_vm9 = vweird.f32 %v7134_v26  ;;  %v6154_v27 = vmul.f32 %v6026_v38, %v16421_v1 }
 0x747   : > { %v5576_v15 = vmul.f32 %v7136_v13, %v14105_v49  ;;  %vm5580_vm10 = vweird.f32 %v14105_v49  ;;  %vm14150_vm11 = vcmp.eq.f32.partialorder %v5584_v14, 8.507059e+37  ;;  %v5587_v28 = vor.u32 1.1754944e-38, %v5586_v54  ;;  %vm5627_vm12 = vmor %vm5625_vm5, %vm5626_vm9  ;;  %v3764_v4 = vpop.f32.mrf.mxu0 }
 0x748   : > { %v6023_v25 = vsel %vm2819_vm2, %v5559_v8, 0.0  ;;  %v5624_v45 = vadd.f32 %v7134_v26, %v5623_v61  ;;  %vm5655_vm13 = vweird.f32 %v14117_v60  ;;  %v6282_v6 = vsub.f32 %v7429_v48, %v6154_v27 }
 0x749   : > { %v7138_v17 = vpop.eup %7137  ;;  %v6151_v2 = vmul.f32 %v6023_v25, %v16424_v41  ;;  %v5577_v23 = vsub.f32 1.0, %v5576_v15  ;;  %v5659_v62 = vand.u32 2147483647, %v14117_v60  ;;  %vm2821_vm14 = vcmp.lt.f32.partialorder %v15884_v20, 0.0  ;;  %v14179_v61 = vpop.f32.mrf.mxu2  ;;  %v16425_v15 = vld [vmem:[#allocation202_spill] sm:$0xff]  ;;  %v16428_v20 = vld [vmem:[#allocation304_spill] sm:$0xff] }
 0x74a   : > { %v5628_v9 = vsel %vm5627_vm12, %v7134_v26, %v5624_v45  ;;  %v5651_v53 = vmul.f32 %v7138_v17, %v14117_v60  ;;  %v5661_v52 = vand.u32 2147483648, %v14117_v60  ;;  %vm5610_vm15 = vweird.f32 %v14119_v36  ;;  %6410 = vst [vmem:[%s10440_s17 + $0x350] sm:$0xff] %v6282_v6  ;;  %v3561_v55 = vpop.f32.mrf.mxu3  ;;  %v7431_v41 = vld [vmem:[%s7582_s24 + $0x360] sm:$0xff]  ;;  %v16426_v60 = vld [vmem:[#allocation137_spill] sm:$0xff] }
 0x74b   : > { %v7140_v43 = vpop.eup %7139  ;;  %v6279_v14 = vsub.f32 %v7430_v50, %v6151_v2  ;;  %v5633_v34 = vsel %vm14130_vm7, %v5632_v5, %v5628_v9  ;;  %v5578_v16 = vmul.f32 %v7136_v13, %v5577_v23  ;;  %vm5581_vm1 = vweird.f32 %v7136_v13  ;;  %v3352_v5 = vpop.f32.mrf.mxu1 }
 0x74c   : > { %v5634_v22 = vmul.f32 %v5633_v34, %v10998_v58  ;;  %v5652_v26 = vsub.f32 1.0, %v5651_v53  ;;  %v5606_v54 = vmul.f32 %v7140_v43, %v14119_v36  ;;  %v5614_v31 = vand.u32 2147483647, %v14119_v36  ;;  %vm5582_vm4 = vmor %vm5580_vm10, %vm5581_vm1 }
 0x74d   : > { %vm2826_vm2 = vcmp.lt.f32.partialorder %v16016_v32, 0.0  ;;  %6407 = vst.msk [vmem:[%s10440_s17 + $0x338] sm:$0xff] %vm355_vm0, %v6279_v14  ;;  %v5579_v38 = vadd.f32 %v7136_v13, %v5578_v16  ;;  %vm5656_vm3 = vweird.f32 %v7138_v17  ;;  %v5616_v8 = vand.u32 2147483648, %v14119_v36  ;;  %v16427_v14 = vld [vmem:[#allocation276_spill] sm:$0xff] }
 0x74e   : > { %v14177_v21 = vadd.f32 %v3558_v35, %v3350_v11  ;;  %v6028_v58 = vsel %vm2824_vm8, %v5634_v22, 0.0  ;;  %v5653_v1 = vmul.f32 %v7138_v17, %v5652_v26  ;;  %v5607_v27 = vsub.f32 1.0, %v5606_v54  ;;  %vm5657_vm7 = vmor %vm5655_vm13, %vm5656_vm3  ;;  %v7432_v26 = vld [vmem:[%s7582_s24 + $0x348] sm:$0xff] }
 0x74f   : > { %vm5611_vm5 = vweird.f32 %v7140_v43  ;;  %vm2823_vm6 = vcmp.lt.f32.partialorder %v15994_v0, 0.0  ;;  %v6156_v25 = vmul.f32 %v6028_v58, %v16425_v15  ;;  %v5583_v11 = vsel %vm5582_vm4, %v7136_v13, %v5579_v38  ;;  %v3767_v36 = vpop.f32.mrf.mxu0  ;;  %v16429_v38 = vld [vmem:[#allocation205_spill] sm:$0xff] }
 0x750   : > { %v3762_v35 = vadd.f32 1e-06, %v14121_v51  ;;  %7141 = vrcp.f32 %v14177_v21  ;;  %v5588_v45 = vsel %vm14150_vm11, %v5587_v28, %v5583_v11  ;;  %v5654_v48 = vadd.f32 %v7138_v17, %v5653_v1  ;;  %vm5612_vm9 = vmor %vm5610_vm15, %vm5611_vm5 }
 0x751   : > { %v5608_v49 = vmul.f32 %v7140_v43, %v5607_v27  ;;  %v3353_v6 = vadd.f32 1e-06, %v3352_v5  ;;  %v6284_v2 = vsub.f32 %v7431_v41, %v6156_v25  ;;  %v5589_v23 = vmul.f32 %v5588_v45, %v10817_v24  ;;  %v3976_v15 = vpop.f32.mrf.mxu2  ;;  %v16430_v45 = vld [vmem:[#allocation139_spill] sm:$0xff] }
 0x752   : > { %v5662_v13 = vor.u32 1.1754944e-38, %v5661_v52  ;;  %v14198_v51 = vadd.f32 %v14136_v29, %v3762_v35  ;;  %v5658_v9 = vsel %vm5657_vm7, %v7138_v17, %v5654_v48  ;;  %vm5660_vm8 = vcmp.eq.f32.partialorder %v5659_v62, 8.507059e+37  ;;  %v7433_v35 = vld [vmem:[%s7582_s24 + $0x370] sm:$0xff] }
 0x753   : > { %v5609_v53 = vadd.f32 %v7140_v43, %v5608_v49  ;;  %v14200_v39 = vadd.f32 %v3561_v55, %v3353_v6  ;;  %6412 = vst [vmem:[%s10440_s17 + $0x360] sm:$0xff] %v6284_v2  ;;  %v6025_v28 = vsel %vm2821_vm14, %v5589_v23, 0.0  ;;  %v5617_v24 = vor.u32 1.1754944e-38, %v5616_v8  ;;  %v3355_v27 = vpop.f32.mrf.mxu1  ;;  %v3564_v6 = vpop.f32.mrf.mxu3  ;;  %v7434_v23 = vld [vmem:[%s7582_s24 + $0x358] sm:$0xff] }
 0x754   : > { %v5663_v50 = vsel %vm5660_vm8, %v5662_v13, %v5658_v9  ;;  %7143 = vrcp.f32 %v14198_v51  ;;  %v6153_v29 = vmul.f32 %v6025_v28, %v16426_v60  ;;  %vm5615_vm10 = vcmp.eq.f32.partialorder %v5614_v31, 8.507059e+37 }
 0x755   : > { %v5664_v17 = vmul.f32 %v5663_v50, %v11758_v7  ;;  %v5613_v62 = vsel %vm5612_vm9, %v7140_v43, %v5609_v53  ;;  %v14212_v34 = vmul.f32 0.99, %v16427_v14  ;;  %v14215_v16 = vmul.f32 0.99, %v16428_v20 }
 0x756   : > { %v7142_v52 = vpop.eup %7141  ;;  %v5618_v22 = vsel %vm5615_vm10, %v5617_v24, %v5613_v62  ;;  %7145 = vrcp.f32 %v14200_v39  ;;  %v6281_v54 = vsub.f32 %v7432_v26, %v6153_v29  ;;  %v5689_v5 = vand.u32 2147483647, %v14177_v21 }
 0x757   : > { %v6030_v7 = vsel %vm2826_vm2, %v5664_v17, 0.0  ;;  %v5619_v43 = vmul.f32 %v5618_v22, %v11617_v3  ;;  %v5681_v31 = vmul.f32 %v7142_v52, %v14177_v21  ;;  %v5691_v58 = vand.u32 2147483648, %v14177_v21 }
 0x758   : > { %v6158_v8 = vmul.f32 %v6030_v7, %v16429_v38  ;;  %v3765_v1 = vadd.f32 1e-06, %v3764_v4  ;;  %6409 = vst.msk [vmem:[%s10440_s17 + $0x348] sm:$0xff] %vm355_vm0, %v6281_v54  ;;  %v5644_v3 = vand.u32 2147483647, %v14198_v51  ;;  %vm2828_vm11 = vcmp.lt.f32.partialorder %v16107_v18, 0.0 }
 0x759   : > { %v6027_v32 = vsel %vm2823_vm6, %v5619_v43, 0.0  ;;  %v5682_v25 = vsub.f32 1.0, %v5681_v31  ;;  %v5646_v4 = vand.u32 2147483648, %v14198_v51  ;;  %vm5685_vm13 = vweird.f32 %v14177_v21  ;;  %v3770_v31 = vpop.f32.mrf.mxu0 }
 0x75a   : > { %v7144_v11 = vpop.eup %7143  ;;  %v6286_v55 = vsub.f32 %v7433_v35, %v6158_v8  ;;  %v6155_v48 = vmul.f32 %v6027_v32, %v16430_v45  ;;  %v14236_v49 = vadd.f32 %v14179_v61, %v3765_v1  ;;  %vm5686_vm12 = vweird.f32 %v7142_v52  ;;  %v16435_v35 = vld [vmem:[#allocation208_spill] sm:$0xff] }
 0x75b   : > { %v5683_v0 = vmul.f32 %v7142_v52, %v5682_v25  ;;  %v5636_v41 = vmul.f32 %v7144_v11, %v14198_v51  ;;  %vm14242_vm14 = vcmp.eq.f32.partialorder %v5689_v5, 8.507059e+37  ;;  %v5692_v53 = vor.u32 1.1754944e-38, %v5691_v58  ;;  %vm5687_vm2 = vmor %vm5685_vm13, %vm5686_vm12  ;;  %v3567_v45 = vpop.f32.mrf.mxu3 }
 0x75c   : > { %v7146_v2 = vpop.eup %7145  ;;  %6414 = vst [vmem:[%s10440_s17 + $0x370] sm:$0xff] %v6286_v55  ;;  %v6283_v13 = vsub.f32 %v7434_v23, %v6155_v48  ;;  %7147 = vrcp.f32 %v14236_v49  ;;  %vm5640_vm15 = vweird.f32 %v14198_v51  ;;  %vm2825_vm1 = vcmp.lt.f32.partialorder %v16060_v57, 0.0 }
 0x75d   : > { %v5684_v61 = vadd.f32 %v7142_v52, %v5683_v0  ;;  %v5637_v28 = vsub.f32 1.0, %v5636_v41  ;;  %v5711_v50 = vmul.f32 %v7146_v2, %v14200_v39  ;;  %vm14255_vm3 = vcmp.eq.f32.partialorder %v5644_v3, 8.507059e+37 }
 0x75e   : > { %6411 = vst.msk [vmem:[%s10440_s17 + $0x358] sm:$0xff] %vm355_vm0, %v6283_v13  ;;  %v5647_v60 = vor.u32 1.1754944e-38, %v5646_v4  ;;  %v5721_v29 = vand.u32 2147483648, %v14200_v39  ;;  %v3356_v17 = vadd.f32 1e-06, %v3355_v27  ;;  %vm5641_vm4 = vweird.f32 %v7144_v11  ;;  %v3979_v27 = vpop.f32.mrf.mxu2  ;;  %v7435_v4 = vld [vmem:[%s7582_s24 + $0x380] sm:$0xff] }
 0x75f   : > { %v5688_v62 = vsel %vm5687_vm2, %v7142_v52, %v5684_v61  ;;  %v5638_v22 = vmul.f32 %v7144_v11, %v5637_v28  ;;  %v5712_v26 = vsub.f32 1.0, %v5711_v50  ;;  %vm2830_vm5 = vcmp.lt.f32.partialorder %v16149_v63, 0.0  ;;  %vm5642_vm7 = vmor %vm5640_vm15, %vm5641_vm4 }
 0x760   : > { %v5693_v54 = vsel %vm14242_vm14, %v5692_v53, %v5688_v62  ;;  %v5719_v21 = vand.u32 2147483647, %v14200_v39  ;;  %v3768_v7 = vadd.f32 1e-06, %v3767_v36  ;;  %v14264_v43 = vadd.f32 %v3564_v6, %v3356_v17  ;;  %v3358_v36 = vpop.f32.mrf.mxu1  ;;  %v16439_v17 = vld [vmem:[#allocation211_spill] sm:$0xff] }
 0x761   : > { %v5694_v38 = vmul.f32 %v5693_v54, %v12326_v59  ;;  %v5639_v8 = vadd.f32 %v7144_v11, %v5638_v22  ;;  %v5713_v5 = vmul.f32 %v7146_v2, %v5712_v26  ;;  %vm5716_vm6 = vweird.f32 %v7146_v2  ;;  %v3773_v54 = vpop.f32.mrf.mxu0 }
 0x762   : > { %v7148_v52 = vpop.eup %7147  ;;  %vm5715_vm8 = vweird.f32 %v14200_v39  ;;  %v5722_v58 = vor.u32 1.1754944e-38, %v5721_v29  ;;  %7149 = vrcp.f32 %v14264_v43  ;;  %v14271_v1 = vadd.f32 %v3976_v15, %v3768_v7 }
 0x763   : > { %v6032_v59 = vsel %vm2828_vm11, %v5694_v38, 0.0  ;;  %v5643_v32 = vsel %vm5642_vm7, %v7144_v11, %v5639_v8  ;;  %v5714_v25 = vadd.f32 %v7146_v2, %v5713_v5  ;;  %v5666_v3 = vmul.f32 %v7148_v52, %v14236_v49  ;;  %vm5717_vm9 = vmor %vm5715_vm8, %vm5716_vm6  ;;  %v16440_v8 = vld [vmem:[#allocation308_spill] sm:$0xff] }
 0x764   : > { %v6160_v51 = vmul.f32 %v6032_v59, %v16435_v35  ;;  %v5648_v39 = vsel %vm14255_vm3, %v5647_v60, %v5643_v32  ;;  %v5674_v15 = vand.u32 2147483647, %v14236_v49  ;;  %v5676_v55 = vand.u32 2147483648, %v14236_v49  ;;  %v7436_v60 = vld [vmem:[%s7582_s24 + $0x368] sm:$0xff] }
 0x765   : > { %v5649_v18 = vmul.f32 %v5648_v39, %v12029_v46  ;;  %v5718_v48 = vsel %vm5717_vm9, %v7146_v2, %v5714_v25  ;;  %vm5720_vm10 = vcmp.eq.f32.partialorder %v5719_v21, 8.507059e+37  ;;  %v5667_v11 = vsub.f32 1.0, %v5666_v3  ;;  %v16436_v2 = vld [vmem:[#allocation9_spill] sm:$0xff]  ;;  %v3570_v39 = vpop.f32.mrf.mxu3  ;;  %v16451_v3 = vld [vmem:[#allocation14_spill] sm:$0xff] }
 0x766   : > { %vm2827_vm11 = vcmp.lt.f32.partialorder %v16146_v44, 0.0  ;;  %v6288_v6 = vsub.f32 %v7435_v4, %v6160_v51  ;;  %v5723_v0 = vsel %vm5720_vm10, %v5722_v58, %v5718_v48  ;;  %vm5670_vm13 = vweird.f32 %v14236_v49  ;;  %v7437_v49 = vld [vmem:[%s7582_s24 + $0x390] sm:$0xff]  ;;  %v3982_v59 = vpop.f32.mrf.mxu2 }
 0x767   : > { %7151 = vrcp.f32 %v14271_v1  ;;  %v6029_v41 = vsel %vm2825_vm1, %v5649_v18, 0.0  ;;  %v5724_v23 = vmul.f32 %v5723_v0, %v12574_v47  ;;  %v5668_v13 = vmul.f32 %v7148_v52, %v5667_v11  ;;  %v7438_v0 = vld [vmem:[%s7582_s24 + $0x378] sm:$0xff] }
 0x768   : > { %vm5671_vm12 = vweird.f32 %v7148_v52  ;;  %v7150_v46 = vpop.eup %7149  ;;  %6416 = vst [vmem:[%s10440_s17 + $0x380] sm:$0xff] %v6288_v6  ;;  %v6157_v9 = vmul.f32 %v6029_v41, %v16436_v2  ;;  %vm14292_vm14 = vcmp.eq.f32.partialorder %v5674_v15, 8.507059e+37  ;;  %v5677_v61 = vor.u32 1.1754944e-38, %v5676_v55 }
 0x769   : > { %v3359_v28 = vadd.f32 1e-06, %v3358_v36  ;;  %v6034_v50 = vsel %vm2830_vm5, %v5724_v23, 0.0  ;;  %v5669_v24 = vadd.f32 %v7148_v52, %v5668_v13  ;;  %v5741_v57 = vmul.f32 %v7150_v46, %v14264_v43  ;;  %vm5672_vm15 = vmor %vm5670_vm13, %vm5671_vm12 }
 0x76a   : > { %v3771_v47 = vadd.f32 1e-06, %v3770_v31  ;;  %v6285_v29 = vsub.f32 %v7436_v60, %v6157_v9  ;;  %v6162_v62 = vmul.f32 %v6034_v50, %v16439_v17  ;;  %v5749_v22 = vand.u32 2147483647, %v14264_v43 }
 0x76b   : > { %v5751_v26 = vand.u32 2147483648, %v14264_v43  ;;  %v5673_v63 = vsel %vm5672_vm15, %v7148_v52, %v5669_v24  ;;  %v5742_v21 = vsub.f32 1.0, %v5741_v57  ;;  %v14305_v7 = vadd.f32 %v3567_v45, %v3359_v28  ;;  %v3361_v52 = vpop.f32.mrf.mxu1  ;;  %v16443_v45 = vld [vmem:[#allocation11_spill] sm:$0xff] }
 0x76c   : > { %v14307_v38 = vadd.f32 %v3979_v27, %v3771_v47  ;;  %vm2832_vm1 = vcmp.lt.f32.partialorder %v16297_v12, 0.0  ;;  %v14311_v5 = vmul.f32 0.99, %v16440_v8  ;;  %6413 = vst.msk [vmem:[%s10440_s17 + $0x368] sm:$0xff] %vm355_vm0, %v6285_v29  ;;  %v6290_v58 = vsub.f32 %v7437_v49, %v6162_v62  ;;  %v7439_v49 = vld [vmem:[%s7582_s24 + $0x3a0] sm:$0xff] }
 0x76d   : > { %v7152_v31 = vpop.eup %7151  ;;  %v5678_v36 = vsel %vm14292_vm14, %v5677_v61, %v5673_v63  ;;  %vm5745_vm2 = vweird.f32 %v14264_v43  ;;  %v5743_v32 = vmul.f32 %v7150_v46, %v5742_v21  ;;  %vm5746_vm3 = vweird.f32 %v7150_v46 }
 0x76e   : > { %v5679_v27 = vmul.f32 %v5678_v36, %v12547_v10  ;;  %v5696_v25 = vmul.f32 %v7152_v31, %v14271_v1  ;;  %6418 = vst [vmem:[%s10440_s17 + $0x390] sm:$0xff] %v6290_v58  ;;  %vm14322_vm4 = vcmp.eq.f32.partialorder %v5749_v22, 8.507059e+37  ;;  %v5752_v35 = vor.u32 1.1754944e-38, %v5751_v26  ;;  %vm5747_vm6 = vmor %vm5745_vm2, %vm5746_vm3  ;;  %v3985_v12 = vpop.f32.mrf.mxu2 }
 0x76f   : > { %v5704_v51 = vand.u32 2147483647, %v14271_v1  ;;  %7153 = vrcp.f32 %v14305_v7  ;;  %v5744_v10 = vadd.f32 %v7150_v46, %v5743_v32  ;;  %vm2829_vm5 = vcmp.lt.f32.partialorder %v16221_v56, 0.0 }
 0x770   : > { %v6031_v15 = vsel %vm2827_vm11, %v5679_v27, 0.0  ;;  %v5697_v55 = vsub.f32 1.0, %v5696_v25  ;;  %7155 = vrcp.f32 %v14307_v38  ;;  %vm5700_vm7 = vweird.f32 %v14271_v1 }
 0x771   : > { %v6159_v18 = vmul.f32 %v6031_v15, %v16443_v45  ;;  %v5706_v48 = vand.u32 2147483648, %v14271_v1  ;;  %v3362_v11 = vadd.f32 1e-06, %v3361_v52  ;;  %v5748_v4 = vsel %vm5747_vm6, %v7150_v46, %v5744_v10  ;;  %v16446_v1 = vld [vmem:[#allocation214_spill] sm:$0xff]  ;;  %v7440_v45 = vld [vmem:[%s7582_s24 + $0x388] sm:$0xff] }
 0x772   : > { %v5698_v44 = vmul.f32 %v7152_v31, %v5697_v55  ;;  %vm5701_vm8 = vweird.f32 %v7152_v31  ;;  %v3774_v6 = vadd.f32 1e-06, %v3773_v54  ;;  %v5753_v23 = vsel %vm14322_vm4, %v5752_v35, %v5748_v4 }
 0x773   : > { %v6287_v41 = vsub.f32 %v7438_v0, %v6159_v18  ;;  %v5779_v13 = vand.u32 2147483647, %v14305_v7  ;;  %v14341_v2 = vadd.f32 %v3570_v39, %v3362_v11  ;;  %v5754_v43 = vmul.f32 %v5753_v23, %v13464_v30  ;;  %vm5702_vm10 = vmor %vm5700_vm7, %vm5701_vm8  ;;  %v3776_v30 = vpop.f32.mrf.mxu0  ;;  %v3364_v54 = vpop.f32.mrf.mxu1 }
 0x774   : > { %v5699_v9 = vadd.f32 %v7152_v31, %v5698_v44  ;;  %vm14344_vm9 = vcmp.eq.f32.partialorder %v5704_v51, 8.507059e+37  ;;  %v5781_v46 = vand.u32 2147483648, %v14305_v7  ;;  %v5707_v28 = vor.u32 1.1754944e-38, %v5706_v48 }
 0x775   : > { %v7154_v61 = vpop.eup %7153  ;;  %6415 = vst.msk [vmem:[%s10440_s17 + $0x378] sm:$0xff] %vm355_vm0, %v6287_v41  ;;  %vm5775_vm11 = vweird.f32 %v14305_v7  ;;  %7157 = vrcp.f32 %v14341_v2  ;;  %v14355_v50 = vadd.f32 %v3982_v59, %v3774_v6  ;;  %v6036_v57 = vsel %vm2832_vm1, %v5754_v43, 0.0  ;;  %v3573_v59 = vpop.f32.mrf.mxu3 }
 0x776   : > { %v7156_v24 = vpop.eup %7155  ;;  %v5703_v47 = vsel %vm5702_vm10, %v7152_v31, %v5699_v9  ;;  %v5771_v60 = vmul.f32 %v7154_v61, %v14305_v7  ;;  %v5734_v29 = vand.u32 2147483647, %v14307_v38  ;;  %v6164_v17 = vmul.f32 %v6036_v57, %v16446_v1  ;;  %v16455_v1 = vld [vmem:[#allocation142_spill] sm:$0xff] }
 0x777   : > { %v5708_v62 = vsel %vm14344_vm9, %v5707_v28, %v5703_v47  ;;  %vm14364_vm13 = vcmp.eq.f32.partialorder %v5779_v13, 8.507059e+37  ;;  %v5726_v26 = vmul.f32 %v7156_v24, %v14307_v38  ;;  %v5782_v31 = vor.u32 1.1754944e-38, %v5781_v46  ;;  %v3988_v47 = vpop.f32.mrf.mxu2 }
 0x778   : > { %v5709_v63 = vmul.f32 %v5708_v62, %v13006_v33  ;;  %v5772_v21 = vsub.f32 1.0, %v5771_v60  ;;  %vm5730_vm12 = vweird.f32 %v14307_v38  ;;  %vm2834_vm14 = vcmp.lt.f32.partialorder %v16328_v42, 0.0 }
 0x779   : > { %v6292_v58 = vsub.f32 %v7439_v49, %v6164_v17  ;;  %v5727_v36 = vsub.f32 1.0, %v5726_v26  ;;  %v5736_v52 = vand.u32 2147483648, %v14307_v38  ;;  %7159 = vrcp.f32 %v14355_v50  ;;  %v16456_v26 = vld [vmem:[#allocation17_spill] sm:$0xff] }
 0x77a   : > { %vm2831_vm15 = vcmp.lt.f32.partialorder %v16298_v37, 0.0  ;;  %v6033_v33 = vsel %vm2829_vm5, %v5709_v63, 0.0  ;;  %v5773_v27 = vmul.f32 %v7154_v61, %v5772_v21  ;;  %vm5776_vm1 = vweird.f32 %v7154_v61 }
 0x77b   : > { %vm14378_vm2 = vcmp.eq.f32.partialorder %v5734_v29, 8.507059e+37  ;;  %v7158_v25 = vpop.eup %7157  ;;  %6420 = vst [vmem:[%s10440_s17 + $0x3a0] sm:$0xff] %v6292_v58  ;;  %v6161_v35 = vmul.f32 %v6033_v33, %v16451_v3  ;;  %v5728_v51 = vmul.f32 %v7156_v24, %v5727_v36  ;;  %vm5731_vm3 = vweird.f32 %v7156_v24  ;;  %vm5777_vm4 = vmor %vm5775_vm11, %vm5776_vm1  ;;  %v3779_v43 = vpop.f32.mrf.mxu0  ;;  %v7442_v36 = vld [vmem:[%s7582_s24 + $0x398] sm:$0xff] }
 0x77c   : > { %v3365_v39 = vadd.f32 1e-06, %v3364_v54  ;;  %v5774_v15 = vadd.f32 %v7154_v61, %v5773_v27  ;;  %v5801_v10 = vmul.f32 %v7158_v25, %v14341_v2  ;;  %v5809_v56 = vand.u32 2147483647, %v14341_v2  ;;  %vm5732_vm5 = vmor %vm5730_vm12, %vm5731_vm3  ;;  %v3367_v57 = vpop.f32.mrf.mxu1 }
 0x77d   : > { %v3777_v55 = vadd.f32 1e-06, %v3776_v30  ;;  %v6289_v18 = vsub.f32 %v7440_v45, %v6161_v35  ;;  %v5729_v48 = vadd.f32 %v7156_v24, %v5728_v51  ;;  %v5811_v11 = vand.u32 2147483648, %v14341_v2  ;;  %v3576_v22 = vpop.f32.mrf.mxu3 }
 0x77e   : > { %v14390_v4 = vadd.f32 %v3573_v59, %v3365_v39  ;;  %v5778_v44 = vsel %vm5777_vm4, %v7154_v61, %v5774_v15  ;;  %v5737_v6 = vor.u32 1.1754944e-38, %v5736_v52  ;;  %v5802_v0 = vsub.f32 1.0, %v5801_v10  ;;  %v16452_v61 = vld [vmem:[#allocation122_spill] sm:$0xff]  ;;  %v16457_v15 = vld [vmem:[#allocation144_spill] sm:$0xff] }
 0x77f   : > { %v14394_v41 = vadd.f32 %v3985_v12, %v3777_v55  ;;  %v7160_v23 = vpop.eup %7159  ;;  %vm2836_vm6 = vcmp.lt.f32.partialorder %v16427_v14, 0.0  ;;  %6417 = vst.msk [vmem:[%s10440_s17 + $0x388] sm:$0xff] %vm355_vm0, %v6289_v18  ;;  %v5783_v7 = vsel %vm14364_vm13, %v5782_v31, %v5778_v44  ;;  %v5733_v13 = vsel %vm5732_vm5, %v7156_v24, %v5729_v48  ;;  %v7441_v31 = vld [vmem:[%s7582_s24 + $0x3b0] sm:$0xff]  ;;  %v16458_v18 = vld [vmem:[#allocation255_spill] sm:$0xff]  ;;  %v7443_v14 = vld [vmem:[%s7582_s24 + $0x3c0] sm:$0xff] }
 0x780   : > { %vm5806_vm7 = vweird.f32 %v7158_v25  ;;  %7161 = vrcp.f32 %v14390_v4  ;;  %v5784_v38 = vmul.f32 %v5783_v7, %v13626_v40  ;;  %v5738_v9 = vsel %vm14378_vm2, %v5737_v6, %v5733_v13  ;;  %v3991_v13 = vpop.f32.mrf.mxu2 }
 0x781   : > { %v5803_v53 = vmul.f32 %v7158_v25, %v5802_v0  ;;  %v5756_v46 = vmul.f32 %v7160_v23, %v14355_v50  ;;  %v5739_v28 = vmul.f32 %v5738_v9, %v16452_v61  ;;  %vm5805_vm8 = vweird.f32 %v14341_v2 }
 0x782   : > { %vm14408_vm9 = vcmp.eq.f32.partialorder %v5809_v56, 8.507059e+37  ;;  %v5812_v24 = vor.u32 1.1754944e-38, %v5811_v11  ;;  %v6038_v40 = vsel %vm2834_vm14, %v5784_v38, 0.0  ;;  %7163 = vrcp.f32 %v14394_v41  ;;  %vm5807_vm11 = vmor %vm5805_vm8, %vm5806_vm7 }
 0x783   : > { %v5804_v60 = vadd.f32 %v7158_v25, %v5803_v53  ;;  %v5757_v29 = vsub.f32 1.0, %v5756_v46  ;;  %vm2833_vm10 = vcmp.lt.f32.partialorder %v16384_v19, 0.0  ;;  %v6166_v17 = vmul.f32 %v6038_v40, %v16455_v1  ;;  %v3782_v45 = vpop.f32.mrf.mxu0  ;;  %v16459_v46 = vld [vmem:[#allocation20_spill] sm:$0xff] }
 0x784   : > { %v6035_v2 = vsel %vm2831_vm15, %v5739_v28, 0.0  ;;  %v5764_v62 = vand.u32 2147483647, %v14355_v50  ;;  %v5766_v42 = vand.u32 2147483648, %v14355_v50  ;;  %vm5761_vm13 = vweird.f32 %v7160_v23  ;;  %v3370_v7 = vpop.f32.mrf.mxu1 }
 0x785   : > { %v6163_v54 = vmul.f32 %v6035_v2, %v16456_v26  ;;  %v5808_v12 = vsel %vm5807_vm11, %v7158_v25, %v5804_v60  ;;  %v5758_v63 = vmul.f32 %v7160_v23, %v5757_v29  ;;  %v6294_v49 = vsub.f32 %v7441_v31, %v6166_v17  ;;  %v3579_v30 = vpop.f32.mrf.mxu3 }
 0x786   : > { %v7162_v21 = vpop.eup %7161  ;;  %v5813_v37 = vsel %vm14408_vm9, %v5812_v24, %v5808_v12  ;;  %vm5760_vm12 = vweird.f32 %v14355_v50  ;;  %v3368_v58 = vadd.f32 1e-06, %v3367_v57  ;;  %vm5765_vm15 = vcmp.eq.f32.partialorder %v5764_v62, 8.507059e+37  ;;  %v7444_v57 = vld [vmem:[%s7582_s24 + $0x3a8] sm:$0xff]  ;;  %v16460_v12 = vld [vmem:[#allocation38_spill] sm:$0xff] }
 0x787   : > { %v6291_v52 = vsub.f32 %v7442_v36, %v6163_v54  ;;  %v5814_v59 = vmul.f32 %v5813_v37, %v14212_v34  ;;  %v5759_v33 = vadd.f32 %v7160_v23, %v5758_v63  ;;  %v5831_v27 = vmul.f32 %v7162_v21, %v14390_v4  ;;  %6422 = vst [vmem:[%s10440_s17 + $0x3b0] sm:$0xff] %v6294_v49  ;;  %vm5762_vm14 = vmor %vm5760_vm12, %vm5761_vm13 }
 0x788   : > { %v5767_v32 = vor.u32 1.1754944e-38, %v5766_v42  ;;  %v5839_v25 = vand.u32 2147483647, %v14390_v4  ;;  %v5841_v3 = vand.u32 2147483648, %v14390_v4  ;;  %v7164_v35 = vpop.eup %7163  ;;  %v14437_v39 = vadd.f32 %v3576_v22, %v3368_v58 }
 0x789   : > { %6419 = vst.msk [vmem:[%s10440_s17 + $0x398] sm:$0xff] %vm355_vm0, %v6291_v52  ;;  %v6040_v50 = vsel %vm2836_vm6, %v5814_v59, 0.0  ;;  %v5763_v51 = vsel %vm5762_vm14, %v7160_v23, %v5759_v33  ;;  %v5832_v34 = vsub.f32 1.0, %v5831_v27  ;;  %vm2838_vm1 = vcmp.lt.f32.partialorder %v16440_v8, 0.0  ;;  %v16462_v52 = vld [vmem:[#allocation41_spill] sm:$0xff]  ;;  %v7445_v33 = vld [vmem:[%s7582_s24 + $0x3d0] sm:$0xff] }
 0x78a   : > { %v6168_v10 = vmul.f32 %v6040_v50, %v16457_v15  ;;  %v5768_v56 = vsel %vm5765_vm15, %v5767_v32, %v5763_v51  ;;  %vm5836_vm2 = vweird.f32 %v7162_v21  ;;  %v5786_v55 = vmul.f32 %v7164_v35, %v14394_v41 }
 0x78b   : > { %v5769_v48 = vmul.f32 %v5768_v56, %v16458_v18  ;;  %v5833_v11 = vmul.f32 %v7162_v21, %v5832_v34  ;;  %v3780_v44 = vadd.f32 1e-06, %v3779_v43  ;;  %7165 = vrcp.f32 %v14437_v39  ;;  %v3785_v58 = vpop.f32.mrf.mxu0 }
 0x78c   : > { %v6296_v6 = vsub.f32 %v7443_v14, %v6168_v10  ;;  %vm5835_vm3 = vweird.f32 %v14390_v4  ;;  %v5787_v0 = vsub.f32 1.0, %v5786_v55  ;;  %v5794_v23 = vand.u32 2147483647, %v14394_v41 }
 0x78d   : > { %vm2835_vm4 = vcmp.lt.f32.partialorder %v16428_v20, 0.0  ;;  %v6037_v38 = vsel %vm2833_vm10, %v5769_v48, 0.0  ;;  %v5834_v9 = vadd.f32 %v7162_v21, %v5833_v11  ;;  %v5796_v43 = vand.u32 2147483648, %v14394_v41  ;;  %vm5837_vm5 = vmor %vm5835_vm3, %vm5836_vm2  ;;  %v3788_v20 = vpop.f32.mrf.mxu1 }
 0x78e   : > { %v14451_v53 = vadd.f32 %v3988_v47, %v3780_v44  ;;  %6424 = vst [vmem:[%s10440_s17 + $0x3c0] sm:$0xff] %v6296_v6  ;;  %v6165_v61 = vmul.f32 %v6037_v38, %v16459_v46  ;;  %v5842_v4 = vor.u32 1.1754944e-38, %v5841_v3  ;;  %v5788_v28 = vmul.f32 %v7164_v35, %v5787_v0  ;;  %v3994_v3 = vpop.f32.mrf.mxu2 }
 0x78f   : > { %vm5791_vm6 = vweird.f32 %v7164_v35  ;;  %v5838_v24 = vsel %vm5837_vm5, %v7162_v21, %v5834_v9  ;;  %vm5840_vm7 = vcmp.eq.f32.partialorder %v5839_v25, 8.507059e+37  ;;  %v3371_v19 = vadd.f32 1e-06, %v3370_v7  ;;  %v16461_v21 = vld [vmem:[#allocation146_spill] sm:$0xff] }
 0x790   : > { %7167 = vrcp.f32 %v14451_v53  ;;  %v6293_v40 = vsub.f32 %v7444_v57, %v6165_v61  ;;  %v5843_v60 = vsel %vm5840_vm7, %v5842_v4, %v5838_v24  ;;  %v5789_v47 = vadd.f32 %v7164_v35, %v5788_v28  ;;  %v16466_v61 = vld [vmem:[#allocation338_spill] sm:$0xff] }
 0x791   : > { %vm5790_vm8 = vweird.f32 %v14394_v41  ;;  %v7166_v29 = vpop.eup %7165  ;;  %v5844_v1 = vmul.f32 %v5843_v60, %v14311_v5  ;;  %vm5795_vm10 = vcmp.eq.f32.partialorder %v5794_v23, 8.507059e+37  ;;  %v5797_v17 = vor.u32 1.1754944e-38, %v5796_v43  ;;  %v3997_v23 = vpop.f32.mrf.mxu3  ;;  %v16467_v60 = vld [vmem:[#allocation148_spill] sm:$0xff] }
 0x792   : > { %vm5792_vm9 = vmor %vm5790_vm8, %vm5791_vm6  ;;  %v14460_v2 = vadd.f32 %v3579_v30, %v3371_v19  ;;  %6421 = vst.msk [vmem:[%s10440_s17 + $0x3a8] sm:$0xff] %vm355_vm0, %v6293_v40  ;;  %v5861_v42 = vmul.f32 %v7166_v29, %v14437_v39  ;;  %v5869_v22 = vand.u32 2147483647, %v14437_v39  ;;  %v5871_v26 = vand.u32 2147483648, %v14437_v39 }
 0x793   : > { %v5793_v62 = vsel %vm5792_vm9, %v7164_v35, %v5789_v47  ;;  %v6042_v41 = vsel %vm2838_vm1, %v5844_v1, 0.0  ;;  %v3783_v5 = vadd.f32 1e-06, %v3782_v45  ;;  %v14471_v63 = vmul.f32 0.99, %v16460_v12  ;;  %v16463_v35 = vld [vmem:[#allocation23_spill] sm:$0xff] }
 0x794   : > { %v5798_v54 = vsel %vm5795_vm10, %v5797_v17, %v5793_v62  ;;  %7169 = vrcp.f32 %v14460_v2  ;;  %v6170_v31 = vmul.f32 %v6042_v41, %v16461_v21  ;;  %v5862_v37 = vsub.f32 1.0, %v5861_v42  ;;  %v7446_v45 = vld [vmem:[%s7582_s24 + $0x3b8] sm:$0xff] }
 0x795   : > { %v5799_v49 = vmul.f32 %v5798_v54, %v14215_v16  ;;  %vm2840_vm11 = vcmp.lt.f32.partialorder %v16462_v52, 0.0  ;;  %v2968_v8 = vmul.f32 0.99, %v16462_v52  ;;  %vm5865_vm13 = vweird.f32 %v14437_v39 }
 0x796   : > { %v7168_v36 = vpop.eup %7167  ;;  %vm5866_vm12 = vweird.f32 %v7166_v29  ;;  %v14478_v59 = vadd.f32 %v3991_v13, %v3783_v5  ;;  %v6298_v27 = vsub.f32 %v7445_v33, %v6170_v31  ;;  %v5863_v16 = vmul.f32 %v7166_v29, %v5862_v37  ;;  %v16468_v31 = vld [vmem:[#allocation26_spill] sm:$0xff] }
 0x797   : > { %v6039_v32 = vsel %vm2835_vm4, %v5799_v49, 0.0  ;;  %v5816_v25 = vmul.f32 %v7168_v36, %v14451_v53  ;;  %vm14485_vm14 = vcmp.eq.f32.partialorder %v5869_v22, 8.507059e+37  ;;  %v5872_v34 = vor.u32 1.1754944e-38, %v5871_v26  ;;  %vm5867_vm2 = vmor %vm5865_vm13, %vm5866_vm12  ;;  %v7447_v22 = vld [vmem:[%s7582_s24 + $0x3e0] sm:$0xff] }
 0x798   : > { %v6167_v50 = vmul.f32 %v6039_v32, %v16463_v35  ;;  %v3786_v15 = vadd.f32 1e-06, %v3785_v58  ;;  %6426 = vst [vmem:[%s10440_s17 + $0x3d0] sm:$0xff] %v6298_v27  ;;  %v5864_v10 = vadd.f32 %v7166_v29, %v5863_v16  ;;  %vm5820_vm15 = vweird.f32 %v14451_v53 }
 0x799   : > { %v5817_v56 = vsub.f32 1.0, %v5816_v25  ;;  %7171 = vrcp.f32 %v14478_v59  ;;  %vm2837_vm1 = vcmp.lt.f32.partialorder %v16460_v12, 0.0  ;;  %v5824_v48 = vand.u32 2147483647, %v14451_v53  ;;  %v7448_v12 = vld [vmem:[%s7582_s24 + $0x3c8] sm:$0xff] }
 0x79a   : > { %v7170_v55 = vpop.eup %7169  ;;  %v6295_v18 = vsub.f32 %v7446_v45, %v6167_v50  ;;  %v5826_v11 = vand.u32 2147483648, %v14451_v53  ;;  %v14499_v44 = vadd.f32 %v3994_v3, %v3786_v15  ;;  %v5868_v14 = vsel %vm5867_vm2, %v7166_v29, %v5864_v10  ;;  %v16469_v50 = vld [vmem:[#allocation335_spill] sm:$0xff] }
 0x79b   : > { %v5818_v6 = vmul.f32 %v7168_v36, %v5817_v56  ;;  %vm5821_vm3 = vweird.f32 %v7168_v36  ;;  %v5891_v0 = vmul.f32 %v7170_v55, %v14460_v2  ;;  %v5873_v7 = vsel %vm14485_vm14, %v5872_v34, %v5868_v14 }
 0x79c   : > { %6423 = vst.msk [vmem:[%s10440_s17 + $0x3b8] sm:$0xff] %vm355_vm0, %v6295_v18  ;;  %v5899_v39 = vand.u32 2147483647, %v14460_v2  ;;  %v3789_v13 = vadd.f32 1e-06, %v3788_v20  ;;  %7173 = vrcp.f32 %v14499_v44  ;;  %v5874_v38 = vmul.f32 %v5873_v7, %v2968_v8  ;;  %vm5822_vm4 = vmor %vm5820_vm15, %vm5821_vm3 }
 0x79d   : > { %v5819_v9 = vadd.f32 %v7168_v36, %v5818_v6  ;;  %v5892_v43 = vsub.f32 1.0, %v5891_v0  ;;  %v5901_v46 = vand.u32 2147483648, %v14460_v2  ;;  %v2970_v4 = vmul.f32 0.99, %v16466_v61 }
 0x79e   : > { %vm5825_vm5 = vcmp.eq.f32.partialorder %v5824_v48, 8.507059e+37  ;;  %v5827_v28 = vor.u32 1.1754944e-38, %v5826_v11  ;;  %v14512_v30 = vadd.f32 %v3997_v23, %v3789_v13  ;;  %v6044_v19 = vsel %vm2840_vm11, %v5874_v38, 0.0  ;;  %v16471_v11 = vld [vmem:[#allocation365_spill] sm:$0xff] }
 0x79f   : > { %v7172_v24 = vpop.eup %7171  ;;  %v5823_v57 = vsel %vm5822_vm4, %v7168_v36, %v5819_v9  ;;  %v5893_v40 = vmul.f32 %v7170_v55, %v5892_v43  ;;  %vm5896_vm6 = vweird.f32 %v7170_v55  ;;  %v6172_v47 = vmul.f32 %v6044_v19, %v16467_v60  ;;  %v16472_v13 = vld [vmem:[#allocation29_spill] sm:$0xff] }
 0x7a0   : > { %v5828_v29 = vsel %vm5825_vm5, %v5827_v28, %v5823_v57  ;;  %vm5895_vm7 = vweird.f32 %v14460_v2  ;;  %v5846_v53 = vmul.f32 %v7172_v24, %v14478_v59  ;;  %vm5900_vm8 = vcmp.eq.f32.partialorder %v5899_v39, 8.507059e+37 }
 0x7a1   : > { %v5829_v1 = vmul.f32 %v5828_v29, %v14471_v63  ;;  %v5894_v17 = vadd.f32 %v7170_v55, %v5893_v40  ;;  %v5902_v62 = vor.u32 1.1754944e-38, %v5901_v46  ;;  %v6300_v26 = vsub.f32 %v7447_v22, %v6172_v47  ;;  %vm5897_vm9 = vmor %vm5895_vm7, %vm5896_vm6  ;;  %v7450_v46 = vld [vmem:[%s7582_s24 + $0x3d8] sm:$0xff]  ;;  %v16474_v40 = vld [vmem:[#allocation392_spill] sm:$0xff] }
 0x7a2   : > { %v7174_v42 = vpop.eup %7173  ;;  %v5847_v41 = vsub.f32 1.0, %v5846_v53  ;;  %v5856_v54 = vand.u32 2147483648, %v14478_v59  ;;  %7175 = vrcp.f32 %v14512_v30  ;;  %v5854_v21 = vand.u32 2147483647, %v14478_v59  ;;  %v7451_v29 = vld [vmem:[%s7582_s24 + $0x3e8] sm:$0xff]  ;;  %v7452_v22 = vld [vmem:[%s7582_s24 + $0x3f8] sm:$0xff] }
 0x7a3   : > { %v6041_v2 = vsel %vm2837_vm1, %v5829_v1, 0.0  ;;  %v5898_v5 = vsel %vm5897_vm9, %v7170_v55, %v5894_v17  ;;  %v5876_v63 = vmul.f32 %v7174_v42, %v14499_v44  ;;  %6428 = vst [vmem:[%s10440_s17 + $0x3e0] sm:$0xff] %v6300_v26  ;;  %vm5851_vm10 = vweird.f32 %v7172_v24  ;;  %v7449_v55 = vld [vmem:[%s7582_s24 + $0x3f0] sm:$0xff] }
 0x7a4   : > { %v6169_v49 = vmul.f32 %v6041_v2, %v16468_v31  ;;  %v5903_v37 = vsel %vm5900_vm8, %v5902_v62, %v5898_v5  ;;  %v5848_v58 = vmul.f32 %v7172_v24, %v5847_v41  ;;  %vm2842_vm11 = vcmp.lt.f32.partialorder %v16466_v61, 0.0  ;;  %v16475_v62 = vld [vmem:[#allocation35_spill] sm:$0xff] }
 0x7a5   : > { %v5904_v36 = vmul.f32 %v5903_v37, %v2970_v4  ;;  %vm5850_vm13 = vweird.f32 %v14478_v59  ;;  %v5877_v52 = vsub.f32 1.0, %v5876_v63  ;;  %v5857_v27 = vor.u32 1.1754944e-38, %v5856_v54  ;;  %v16470_v59 = vld [vmem:[#allocation149_spill] sm:$0xff] }
 0x7a6   : > { %v6297_v8 = vsub.f32 %v7448_v12, %v6169_v49  ;;  %v5849_v33 = vadd.f32 %v7172_v24, %v5848_v58  ;;  %v5886_v32 = vand.u32 2147483648, %v14499_v44  ;;  %vm5852_vm12 = vmor %vm5850_vm13, %vm5851_vm10  ;;  %vm5881_vm14 = vweird.f32 %v7174_v42 }
 0x7a7   : > { %v6046_v16 = vsel %vm2842_vm11, %v5904_v36, 0.0  ;;  %v5878_v25 = vmul.f32 %v7174_v42, %v5877_v52  ;;  %v5884_v3 = vand.u32 2147483647, %v14499_v44  ;;  %v2967_v51 = vmul.f32 0.99, %v16469_v50 }
 0x7a8   : > { %v7176_v35 = vpop.eup %7175  ;;  %6425 = vst.msk [vmem:[%s10440_s17 + $0x3c8] sm:$0xff] %vm355_vm0, %v6297_v8  ;;  %v6174_v34 = vmul.f32 %v6046_v16, %v16470_v59  ;;  %v5853_v15 = vsel %vm5852_vm12, %v7172_v24, %v5849_v33  ;;  %vm5855_vm15 = vcmp.eq.f32.partialorder %v5854_v21, 8.507059e+37  ;;  %vm5880_vm1 = vweird.f32 %v14499_v44  ;;  %v16473_v24 = vld [vmem:[#allocation32_spill] sm:$0xff] }
 0x7a9   : > { %v5858_v10 = vsel %vm5855_vm15, %v5857_v27, %v5853_v15  ;;  %v5879_v56 = vadd.f32 %v7174_v42, %v5878_v25  ;;  %v5906_v20 = vmul.f32 %v7176_v35, %v14512_v30  ;;  %vm2839_vm2 = vcmp.lt.f32.partialorder %v16469_v50, 0.0  ;;  %vm5882_vm3 = vmor %vm5880_vm1, %vm5881_vm14 }
 0x7aa   : > { %v6302_v45 = vsub.f32 %v7449_v55, %v6174_v34  ;;  %v5859_v18 = vmul.f32 %v5858_v10, %v2967_v51  ;;  %v5887_v48 = vor.u32 1.1754944e-38, %v5886_v32  ;;  %v2969_v14 = vmul.f32 0.99, %v16471_v11 }
 0x7ab   : > { %v5883_v6 = vsel %vm5882_vm3, %v7174_v42, %v5879_v56  ;;  %vm5885_vm4 = vcmp.eq.f32.partialorder %v5884_v3, 8.507059e+37  ;;  %v5907_v0 = vsub.f32 1.0, %v5906_v20  ;;  %v5914_v44 = vand.u32 2147483647, %v14512_v30 }
 0x7ac   : > { %6430 = vst [vmem:[%s10440_s17 + $0x3f0] sm:$0xff] %v6302_v45  ;;  %v6043_v23 = vsel %vm2839_vm2, %v5859_v18, 0.0  ;;  %v5888_v7 = vsel %vm5885_vm4, %v5887_v48, %v5883_v6  ;;  %v5916_v39 = vand.u32 2147483648, %v14512_v30  ;;  %vm5911_vm5 = vweird.f32 %v7176_v35 }
 0x7ad   : > { %v6171_v38 = vmul.f32 %v6043_v23, %v16472_v13  ;;  %v5889_v9 = vmul.f32 %v5888_v7, %v2969_v14  ;;  %v5908_v43 = vmul.f32 %v7176_v35, %v5907_v0  ;;  %vm2841_vm6 = vcmp.lt.f32.partialorder %v16471_v11, 0.0 }
 0x7ae   : > { %vm5910_vm7 = vweird.f32 %v14512_v30  ;;  %v5917_v57 = vor.u32 1.1754944e-38, %v5916_v39  ;;  %v2971_v60 = vmul.f32 0.99, %v16474_v40  ;;  %vm5915_vm9 = vcmp.eq.f32.partialorder %v5914_v44, 8.507059e+37 }
 0x7af   : > { %v6299_v61 = vsub.f32 %v7450_v46, %v6171_v38  ;;  %v6045_v4 = vsel %vm2841_vm6, %v5889_v9, 0.0  ;;  %v5909_v28 = vadd.f32 %v7176_v35, %v5908_v43  ;;  %vm5912_vm8 = vmor %vm5910_vm7, %vm5911_vm5  ;;  %vm2843_vm10 = vcmp.lt.f32.partialorder %v16474_v40, 0.0 }
 0x7b0   : > { %v6173_v19 = vmul.f32 %v6045_v4, %v16473_v24 }
 0x7b1   : > { %6427 = vst.msk [vmem:[%s10440_s17 + $0x3d8] sm:$0xff] %vm355_vm0, %v6299_v61  ;;  %v5913_v47 = vsel %vm5912_vm8, %v7176_v35, %v5909_v28 }
 0x7b2   : > { %v6301_v53 = vsub.f32 %v7451_v29, %v6173_v19  ;;  %v5918_v1 = vsel %vm5915_vm9, %v5917_v57, %v5913_v47 }
 0x7b3   : > { %v5919_v17 = vmul.f32 %v5918_v1, %v2971_v60 }
 0x7b4   : > { %6429 = vst.msk [vmem:[%s10440_s17 + $0x3e8] sm:$0xff] %vm355_vm0, %v6301_v53 }
 0x7b5   : > { %v6047_v30 = vsel %vm2843_vm10, %v5919_v17, 0.0 }
 0x7b6   : > { %v6175_v42 = vmul.f32 %v6047_v30, %v16475_v62 }
 0x7b8   : > { %v6303_v26 = vsub.f32 %v7452_v22, %v6175_v42 }
 0x7ba   : > { %6431 = vst.msk [vmem:[%s10440_s17 + $0x3f8] sm:$0xff] %vm355_vm0, %v6303_v26 }
 0x7bb PF: > { %s13_s12 = sadd.s32 1, %s7459_s12  }
 0x7bc   : > { %p10_p4 = scmp.ge.s32.totalorder %s13_s12, 6  }
 0x7be   :  { %12 = sbr.rel (!%p10_p4) target bundleno = 1 (0x1), region = 62 }

</bundles_post_ra>
